<compile_context>
chip_gen: v5e
topology: v5e:2x2
jax: 0.10.0
libtpu: 0.0.40
codegen_flags: <defaults>
</compile_context>

<pallas_src>
import functools

import numpy as np

import jax
import jax.numpy as jnp
from jax.experimental import pallas as pl
from jax.experimental.pallas import tpu as pltpu

LANE = 128  # lane-dense channel padding target


def _round_up(x, m):
    return ((x + m - 1) // m) * m


# ------------------------------ fused kernel --------------------------------

def _fused_block_kernel(*refs, equal):
    """One WRN BasicBlock, fully fused, one batch sample per grid step.

    Inputs (flattened spatial x padded channels):
      x:  [1, Hin*Win, CP]
      bn scale/shift: [1, CP] each (eval-mode BN folded)
      g1/g2: [9, Hout*Wout, Hin*Win] / [9, Hout*Wout, Hout*Wout] constant 0/1
             gather matrices encoding the 3x3 taps + padding + stride
      w1/w2: [9, CP, CP] per-tap conv weights
      (non-equal only) g_sc: [Hout*Wout, Hin*Win], w_sc: [CP, CP]
    """
    if equal:
        (x_ref, s1_ref, b1_ref, s2_ref, b2_ref,
         g1_ref, w1_ref, g2_ref, w2_ref, o_ref) = refs
    else:
        (x_ref, s1_ref, b1_ref, s2_ref, b2_ref,
         g1_ref, w1_ref, g2_ref, w2_ref, gsc_ref, wsc_ref, o_ref) = refs

    x = x_ref[0]                                              # [HWin, CP]
    # BN1 + ReLU fused (pure VPU work riding under the MXU matmuls below).
    a = jnp.maximum(x * s1_ref[...] + b1_ref[...], 0.0)

    def conv3x3(act, g_ref, w_ref):
        acc = None
        for t in range(9):                                    # unrolled taps
            lhs = jnp.dot(g_ref[t], act,
                          preferred_element_type=jnp.float32)  # gather (MXU)
            contrib = jnp.dot(lhs, w_ref[t],
                              preferred_element_type=jnp.float32)
            acc = contrib if acc is None else acc + contrib
        return acc

    h1 = conv3x3(a, g1_ref, w1_ref)                           # conv1 (stride s)
    # BN2 + ReLU fused on the f32 accumulator (no HBM round trip).
    b = jnp.maximum(h1 * s2_ref[...] + b2_ref[...], 0.0)
    h2 = conv3x3(b, g2_ref, w2_ref)                           # conv2 (stride 1)

    if equal:
        res = x                                               # identity shortcut
    else:
        a_s = jnp.dot(gsc_ref[...], a,
                      preferred_element_type=jnp.float32)     # strided subsample
        res = jnp.dot(a_s, wsc_ref[...],
                      preferred_element_type=jnp.float32)     # 1x1 conv shortcut

    o_ref[0] = (h2 + res).astype(o_ref.dtype)


def basic_block_forward(x_flat, p):
    """x_flat: [N, Hin*Win, CP] -> [N, Hout*Wout, CP] (one fused pallas_call)."""
    n, hw_in, cp = x_flat.shape
    hw_out = p["g1"].shape[1]
    equal = p["equal"]

    in_specs = [
        pl.BlockSpec((1, hw_in, cp), lambda b: (b, 0, 0)),     # x (per sample)
        pl.BlockSpec((1, cp), lambda b: (0, 0)),               # bn1 scale
        pl.BlockSpec((1, cp), lambda b: (0, 0)),               # bn1 shift
        pl.BlockSpec((1, cp), lambda b: (0, 0)),               # bn2 scale
        pl.BlockSpec((1, cp), lambda b: (0, 0)),               # bn2 shift
        pl.BlockSpec(p["g1"].shape, lambda b: (0, 0, 0)),      # gather conv1
        pl.BlockSpec(p["w1"].shape, lambda b: (0, 0, 0)),      # weights conv1
        pl.BlockSpec(p["g2"].shape, lambda b: (0, 0, 0)),      # gather conv2
        pl.BlockSpec(p["w2"].shape, lambda b: (0, 0, 0)),      # weights conv2
    ]
    args = [x_flat, p["bn1_scale"], p["bn1_shift"], p["bn2_scale"], p["bn2_shift"],
            p["g1"], p["w1"], p["g2"], p["w2"]]
    if not equal:
        in_specs.append(pl.BlockSpec(p["g_sc"].shape, lambda b: (0, 0)))
        in_specs.append(pl.BlockSpec(p["w_sc"].shape, lambda b: (0, 0)))
        args.append(p["g_sc"])
        args.append(p["w_sc"])

    return pl.pallas_call(
        functools.partial(_fused_block_kernel, equal=equal),
        out_shape=jax.ShapeDtypeStruct((n, hw_out, cp), jnp.float32),
        grid=(n,),
        in_specs=in_specs,
        out_specs=pl.BlockSpec((1, hw_out, cp), lambda b: (b, 0, 0)),
        compiler_params=pltpu.CompilerParams(
            dimension_semantics=("parallel",),
            vmem_limit_bytes=32 * 1024 * 1024),
    )(*args)


def network_block_forward(x_nchw, kparams_list, out_planes):
    """NetworkBlock.forward: sequential BasicBlocks. NCHW in -> NCHW out."""
    n, c, h, w = x_nchw.shape
    cp = kparams_list[0]["bn1_scale"].shape[1]
    x = jnp.transpose(x_nchw, (0, 2, 3, 1))                    # NCHW -> NHWC
    x = jnp.pad(x, ((0, 0), (0, 0), (0, 0), (0, cp - c)))      # lane-dense, once
    x = x.reshape(n, h * w, cp)
    for p in kparams_list:
        x = basic_block_forward(x, p)
        h, w = p["ho"], p["wo"]
    x = x.reshape(n, h, w, cp)[..., :out_planes]               # un-pad, once
    return jnp.transpose(x, (0, 3, 1, 2))                      # NHWC -> NCHW


# --------------------------- setup: gather matrices --------------------------

def _gather_matrices_3x3(h, w, stride):
    """[9, ho*wo, h*w] 0/1 matrices: tap t selects input pixel (or 0 for padding)."""
    ho = (h + 2 - 3) // stride + 1
    wo = (w + 2 - 3) // stride + 1
    g = np.zeros((9, ho * wo, h * w), np.float32)
    for di in range(3):
        for dj in range(3):
            t = di * 3 + dj
            for i in range(ho):
                r = stride * i + di - 1
                if not 0 <= r < h:
                    continue
                for j in range(wo):
                    c = stride * j + dj - 1
                    if 0 <= c < w:
                        g[t, i * wo + j, r * w + c] = 1.0
    return jnp.asarray(g), ho, wo


def _gather_matrix_1x1(h, w, stride):
    ho = (h - 1) // stride + 1
    wo = (w - 1) // stride + 1
    g = np.zeros((ho * wo, h * w), np.float32)
    for i in range(ho):
        for j in range(wo):
            g[i * wo + j, (stride * i) * w + (stride * j)] = 1.0
    return jnp.asarray(g)


# ------------------------------ parameter prep -------------------------------

def _make_bn(key, c):
    k1, k2, k3, k4 = jax.random.split(key, 4)
    gamma = 1.0 + 0.1 * jax.random.normal(k1, (c,), jnp.float32)
    beta = 0.1 * jax.random.normal(k2, (c,), jnp.float32)
    mean = 0.1 * jax.random.normal(k3, (c,), jnp.float32)
    var = 1.0 + 0.1 * jax.random.uniform(k4, (c,), jnp.float32)
    scale = gamma / jnp.sqrt(var + 1e-5)
    shift = beta - mean * scale
    return scale, shift


def _he_conv(key, cout, cin, k):
    w = jax.random.normal(key, (cout, cin, k, k), jnp.float32)   # PyTorch OIHW
    return w * jnp.sqrt(2.0 / (cin * k * k))


def make_raw_network_block_params(key, nb_layers, in_planes, out_planes, stride):
    raws = []
    for i in range(nb_layers):
        key, k1, k2, k3, k4, k5 = jax.random.split(key, 6)
        cin = in_planes if i == 0 else out_planes
        s = stride if i == 0 else 1
        equal = (cin == out_planes) and (s == 1)
        raw = dict(stride=s, equal=equal,
                   bn1=_make_bn(k1, cin), bn2=_make_bn(k2, out_planes),
                   w1=_he_conv(k3, out_planes, cin, 3),
                   w2=_he_conv(k4, out_planes, out_planes, 3))
        if not equal:
            raw["w_sc"] = _he_conv(k5, out_planes, cin, 1)
        raws.append(raw)
    return raws


def _pad_vec(v, cp):
    return jnp.pad(v, (0, cp - v.shape[0]))[None, :]


def _prep_conv3x3(w_oihw, cp):
    cout, cin = w_oihw.shape[:2]
    w = jnp.transpose(w_oihw, (2, 3, 1, 0)).reshape(9, cin, cout)  # tap-major
    return jnp.pad(w, ((0, 0), (0, cp - cin), (0, cp - cout)))


def _prep_conv1x1(w_oihw, cp):
    cout, cin = w_oihw.shape[:2]
    w = jnp.transpose(w_oihw[:, :, 0, 0], (1, 0))
    return jnp.pad(w, ((0, cp - cin), (0, cp - cout)))


def prepare_kernel_params(raws, h, w, cp):
    kparams = []
    for raw in raws:
        s = raw["stride"]
        g1, ho, wo = _gather_matrices_3x3(h, w, s)
        g2, _, _ = _gather_matrices_3x3(ho, wo, 1)
        p = dict(equal=raw["equal"], ho=ho, wo=wo,
                 bn1_scale=_pad_vec(raw["bn1"][0], cp),
                 bn1_shift=_pad_vec(raw["bn1"][1], cp),
                 bn2_scale=_pad_vec(raw["bn2"][0], cp),
                 bn2_shift=_pad_vec(raw["bn2"][1], cp),
                 w1=_prep_conv3x3(raw["w1"], cp),
                 w2=_prep_conv3x3(raw["w2"], cp),
                 g1=g1, g2=g2)
        if not raw["equal"]:
            p["g_sc"] = _gather_matrix_1x1(h, w, s)
            p["w_sc"] = _prep_conv1x1(raw["w_sc"], cp)
        kparams.append(p)
        h, w = ho, wo
    return kparams


# ------------------------------ reference (JAX) ------------------------------

def _ref_conv(x_nhwc, w_oihw, stride, pad):
    w = jnp.transpose(w_oihw, (2, 3, 1, 0))  # OIHW -> HWIO
    return jax.lax.conv_general_dilated(
        x_nhwc, w, (stride, stride), ((pad, pad), (pad, pad)),
        dimension_numbers=("NHWC", "HWIO", "NHWC"))


def ref_network_block(x_nchw, raws):
    x = jnp.transpose(x_nchw, (0, 2, 3, 1))
    for raw in raws:
        s1, b1 = raw["bn1"]
        s2, b2 = raw["bn2"]
        a = jnp.maximum(x * s1 + b1, 0.0)
        h1 = _ref_conv(a, raw["w1"], raw["stride"], 1)
        b = jnp.maximum(h1 * s2 + b2, 0.0)
        out = _ref_conv(b, raw["w2"], 1, 1)
        res = x if raw["equal"] else _ref_conv(a, raw["w_sc"], raw["stride"], 0)
        x = out + res
    return jnp.transpose(x, (0, 3, 1, 2))


# ----------------------------------- main ------------------------------------

if __name__ == "__main__":
    key = jax.random.PRNGKey(0)
    kx, kp = jax.random.split(key)

    # NetworkBlock(nb_layers=2, in_planes=4, out_planes=8, block=BasicBlock, stride=2)
    nb_layers, in_planes, out_planes, stride = 2, 4, 8, 2
    n, h, w = 2, 16, 16
    x = jax.random.normal(kx, (n, in_planes, h, w), jnp.float32)   # NCHW input

    cp = _round_up(max(in_planes, out_planes), LANE)
    raws = make_raw_network_block_params(kp, nb_layers, in_planes, out_planes, stride)
    kparams = prepare_kernel_params(raws, h, w, cp)

    fwd = jax.jit(functools.partial(network_block_forward,
                                    kparams_list=kparams, out_planes=out_planes))
    out = jax.block_until_ready(fwd(x))

    ref = ref_network_block(x, raws)
    assert out.shape == (n, out_planes, h // stride, w // stride), out.shape
    if not jnp.allclose(out, ref, atol=1e-2, rtol=1e-2):
        err = float(jnp.max(jnp.abs(out - ref)))
        raise AssertionError(f"Pallas output does not match reference (max err {err})")

    print("KERNEL_OK")
</pallas_src>

<mosaic_0001>
module attributes {stable_mosaic.version = 11 : i64} {
  func.func @_fused_block_kernel(%arg0: i32, %arg1: memref<1x64x128xf32, #tpu.memory_space<vmem>>, %arg2: memref<1x128xf32, #tpu.memory_space<vmem>>, %arg3: memref<1x128xf32, #tpu.memory_space<vmem>>, %arg4: memref<1x128xf32, #tpu.memory_space<vmem>>, %arg5: memref<1x128xf32, #tpu.memory_space<vmem>>, %arg6: memref<9x64x64xf32, #tpu.memory_space<vmem>>, %arg7: memref<9x128x128xf32, #tpu.memory_space<vmem>>, %arg8: memref<9x64x64xf32, #tpu.memory_space<vmem>>, %arg9: memref<9x128x128xf32, #tpu.memory_space<vmem>>, %arg10: memref<1x64x128xf32, #tpu.memory_space<vmem>>) attributes {dimension_semantics = [#tpu.dimension_semantics<parallel>], iteration_bounds = array<i64: 2>, scalar_prefetch = 0 : i64, scratch_operands = 0 : i64, tpu.core_type = #tpu.core_type<tc>, window_params = [{transform_indices = @transform_0, window_bounds = array<i64: 1, 64, 128>}, {pipeline_mode = #tpu.pipeline_mode<synchronous>, transform_indices = @transform_1, window_bounds = array<i64: 1, 128>}, {pipeline_mode = #tpu.pipeline_mode<synchronous>, transform_indices = @transform_2, window_bounds = array<i64: 1, 128>}, {pipeline_mode = #tpu.pipeline_mode<synchronous>, transform_indices = @transform_3, window_bounds = array<i64: 1, 128>}, {pipeline_mode = #tpu.pipeline_mode<synchronous>, transform_indices = @transform_4, window_bounds = array<i64: 1, 128>}, {pipeline_mode = #tpu.pipeline_mode<synchronous>, transform_indices = @transform_5, window_bounds = array<i64: 9, 64, 64>}, {pipeline_mode = #tpu.pipeline_mode<synchronous>, transform_indices = @transform_6, window_bounds = array<i64: 9, 128, 128>}, {pipeline_mode = #tpu.pipeline_mode<synchronous>, transform_indices = @transform_7, window_bounds = array<i64: 9, 64, 64>}, {pipeline_mode = #tpu.pipeline_mode<synchronous>, transform_indices = @transform_8, window_bounds = array<i64: 9, 128, 128>}, {transform_indices = @transform_9, window_bounds = array<i64: 1, 64, 128>}]} {
    %c0 = arith.constant 0 : index
    %c0_0 = arith.constant 0 : index
    %c0_1 = arith.constant 0 : index
    %0 = vector.load %arg1[%c0, %c0_0, %c0_1] : memref<1x64x128xf32, #tpu.memory_space<vmem>>, vector<1x64x128xf32>
    %1 = vector.shape_cast %0 : vector<1x64x128xf32> to vector<64x128xf32>
    %c0_2 = arith.constant 0 : index
    %c0_3 = arith.constant 0 : index
    %2 = vector.load %arg2[%c0_2, %c0_3] : memref<1x128xf32, #tpu.memory_space<vmem>>, vector<1x128xf32>
    %3 = vector.broadcast %2 : vector<1x128xf32> to vector<64x128xf32>
    %4 = arith.mulf %1, %3 : vector<64x128xf32>
    %c0_4 = arith.constant 0 : index
    %c0_5 = arith.constant 0 : index
    %5 = vector.load %arg3[%c0_4, %c0_5] : memref<1x128xf32, #tpu.memory_space<vmem>>, vector<1x128xf32>
    %6 = vector.broadcast %5 : vector<1x128xf32> to vector<64x128xf32>
    %7 = arith.addf %4, %6 : vector<64x128xf32>
    %cst = arith.constant 0.000000e+00 : f32
    %8 = vector.broadcast %cst : f32 to vector<64x128xf32>
    %9 = arith.maximumf %7, %8 : vector<64x128xf32>
    %c0_6 = arith.constant 0 : index
    %c0_7 = arith.constant 0 : index
    %c0_8 = arith.constant 0 : index
    %10 = vector.load %arg6[%c0_6, %c0_7, %c0_8] : memref<9x64x64xf32, #tpu.memory_space<vmem>>, vector<1x64x64xf32>
    %11 = vector.shape_cast %10 : vector<1x64x64xf32> to vector<64x64xf32>
    %cst_9 = arith.constant dense<0.000000e+00> : vector<64x128xf32>
    %12 = tpu.matmul %11, %9, %cst_9 {dimension_numbers = #tpu.dot_dimension_numbers<[1], [0], [0], [1], [0, 0, 1, 1], [], []>} : vector<64x64xf32>, vector<64x128xf32>, vector<64x128xf32> -> vector<64x128xf32>
    %c0_10 = arith.constant 0 : index
    %c0_11 = arith.constant 0 : index
    %c0_12 = arith.constant 0 : index
    %13 = vector.load %arg7[%c0_10, %c0_11, %c0_12] : memref<9x128x128xf32, #tpu.memory_space<vmem>>, vector<1x128x128xf32>
    %14 = vector.shape_cast %13 : vector<1x128x128xf32> to vector<128x128xf32>
    %cst_13 = arith.constant dense<0.000000e+00> : vector<64x128xf32>
    %15 = tpu.matmul %12, %14, %cst_13 {dimension_numbers = #tpu.dot_dimension_numbers<[1], [0], [0], [1], [0, 0, 1, 1], [], []>} : vector<64x128xf32>, vector<128x128xf32>, vector<64x128xf32> -> vector<64x128xf32>
    %c1 = arith.constant 1 : index
    %c0_14 = arith.constant 0 : index
    %c0_15 = arith.constant 0 : index
    %16 = vector.load %arg6[%c1, %c0_14, %c0_15] : memref<9x64x64xf32, #tpu.memory_space<vmem>>, vector<1x64x64xf32>
    %17 = vector.shape_cast %16 : vector<1x64x64xf32> to vector<64x64xf32>
    %cst_16 = arith.constant dense<0.000000e+00> : vector<64x128xf32>
    %18 = tpu.matmul %17, %9, %cst_16 {dimension_numbers = #tpu.dot_dimension_numbers<[1], [0], [0], [1], [0, 0, 1, 1], [], []>} : vector<64x64xf32>, vector<64x128xf32>, vector<64x128xf32> -> vector<64x128xf32>
    %c1_17 = arith.constant 1 : index
    %c0_18 = arith.constant 0 : index
    %c0_19 = arith.constant 0 : index
    %19 = vector.load %arg7[%c1_17, %c0_18, %c0_19] : memref<9x128x128xf32, #tpu.memory_space<vmem>>, vector<1x128x128xf32>
    %20 = vector.shape_cast %19 : vector<1x128x128xf32> to vector<128x128xf32>
    %cst_20 = arith.constant dense<0.000000e+00> : vector<64x128xf32>
    %21 = tpu.matmul %18, %20, %cst_20 {dimension_numbers = #tpu.dot_dimension_numbers<[1], [0], [0], [1], [0, 0, 1, 1], [], []>} : vector<64x128xf32>, vector<128x128xf32>, vector<64x128xf32> -> vector<64x128xf32>
    %22 = arith.addf %15, %21 : vector<64x128xf32>
    %c2 = arith.constant 2 : index
    %c0_21 = arith.constant 0 : index
    %c0_22 = arith.constant 0 : index
    %23 = vector.load %arg6[%c2, %c0_21, %c0_22] : memref<9x64x64xf32, #tpu.memory_space<vmem>>, vector<1x64x64xf32>
    %24 = vector.shape_cast %23 : vector<1x64x64xf32> to vector<64x64xf32>
    %cst_23 = arith.constant dense<0.000000e+00> : vector<64x128xf32>
    %25 = tpu.matmul %24, %9, %cst_23 {dimension_numbers = #tpu.dot_dimension_numbers<[1], [0], [0], [1], [0, 0, 1, 1], [], []>} : vector<64x64xf32>, vector<64x128xf32>, vector<64x128xf32> -> vector<64x128xf32>
    %c2_24 = arith.constant 2 : index
    %c0_25 = arith.constant 0 : index
    %c0_26 = arith.constant 0 : index
    %26 = vector.load %arg7[%c2_24, %c0_25, %c0_26] : memref<9x128x128xf32, #tpu.memory_space<vmem>>, vector<1x128x128xf32>
    %27 = vector.shape_cast %26 : vector<1x128x128xf32> to vector<128x128xf32>
    %cst_27 = arith.constant dense<0.000000e+00> : vector<64x128xf32>
    %28 = tpu.matmul %25, %27, %cst_27 {dimension_numbers = #tpu.dot_dimension_numbers<[1], [0], [0], [1], [0, 0, 1, 1], [], []>} : vector<64x128xf32>, vector<128x128xf32>, vector<64x128xf32> -> vector<64x128xf32>
    %29 = arith.addf %22, %28 : vector<64x128xf32>
    %c3 = arith.constant 3 : index
    %c0_28 = arith.constant 0 : index
    %c0_29 = arith.constant 0 : index
    %30 = vector.load %arg6[%c3, %c0_28, %c0_29] : memref<9x64x64xf32, #tpu.memory_space<vmem>>, vector<1x64x64xf32>
    %31 = vector.shape_cast %30 : vector<1x64x64xf32> to vector<64x64xf32>
    %cst_30 = arith.constant dense<0.000000e+00> : vector<64x128xf32>
    %32 = tpu.matmul %31, %9, %cst_30 {dimension_numbers = #tpu.dot_dimension_numbers<[1], [0], [0], [1], [0, 0, 1, 1], [], []>} : vector<64x64xf32>, vector<64x128xf32>, vector<64x128xf32> -> vector<64x128xf32>
    %c3_31 = arith.constant 3 : index
    %c0_32 = arith.constant 0 : index
    %c0_33 = arith.constant 0 : index
    %33 = vector.load %arg7[%c3_31, %c0_32, %c0_33] : memref<9x128x128xf32, #tpu.memory_space<vmem>>, vector<1x128x128xf32>
    %34 = vector.shape_cast %33 : vector<1x128x128xf32> to vector<128x128xf32>
    %cst_34 = arith.constant dense<0.000000e+00> : vector<64x128xf32>
    %35 = tpu.matmul %32, %34, %cst_34 {dimension_numbers = #tpu.dot_dimension_numbers<[1], [0], [0], [1], [0, 0, 1, 1], [], []>} : vector<64x128xf32>, vector<128x128xf32>, vector<64x128xf32> -> vector<64x128xf32>
    %36 = arith.addf %29, %35 : vector<64x128xf32>
    %c4 = arith.constant 4 : index
    %c0_35 = arith.constant 0 : index
    %c0_36 = arith.constant 0 : index
    %37 = vector.load %arg6[%c4, %c0_35, %c0_36] : memref<9x64x64xf32, #tpu.memory_space<vmem>>, vector<1x64x64xf32>
    %38 = vector.shape_cast %37 : vector<1x64x64xf32> to vector<64x64xf32>
    %cst_37 = arith.constant dense<0.000000e+00> : vector<64x128xf32>
    %39 = tpu.matmul %38, %9, %cst_37 {dimension_numbers = #tpu.dot_dimension_numbers<[1], [0], [0], [1], [0, 0, 1, 1], [], []>} : vector<64x64xf32>, vector<64x128xf32>, vector<64x128xf32> -> vector<64x128xf32>
    %c4_38 = arith.constant 4 : index
    %c0_39 = arith.constant 0 : index
    %c0_40 = arith.constant 0 : index
    %40 = vector.load %arg7[%c4_38, %c0_39, %c0_40] : memref<9x128x128xf32, #tpu.memory_space<vmem>>, vector<1x128x128xf32>
    %41 = vector.shape_cast %40 : vector<1x128x128xf32> to vector<128x128xf32>
    %cst_41 = arith.constant dense<0.000000e+00> : vector<64x128xf32>
    %42 = tpu.matmul %39, %41, %cst_41 {dimension_numbers = #tpu.dot_dimension_numbers<[1], [0], [0], [1], [0, 0, 1, 1], [], []>} : vector<64x128xf32>, vector<128x128xf32>, vector<64x128xf32> -> vector<64x128xf32>
    %43 = arith.addf %36, %42 : vector<64x128xf32>
    %c5 = arith.constant 5 : index
    %c0_42 = arith.constant 0 : index
    %c0_43 = arith.constant 0 : index
    %44 = vector.load %arg6[%c5, %c0_42, %c0_43] : memref<9x64x64xf32, #tpu.memory_space<vmem>>, vector<1x64x64xf32>
    %45 = vector.shape_cast %44 : vector<1x64x64xf32> to vector<64x64xf32>
    %cst_44 = arith.constant dense<0.000000e+00> : vector<64x128xf32>
    %46 = tpu.matmul %45, %9, %cst_44 {dimension_numbers = #tpu.dot_dimension_numbers<[1], [0], [0], [1], [0, 0, 1, 1], [], []>} : vector<64x64xf32>, vector<64x128xf32>, vector<64x128xf32> -> vector<64x128xf32>
    %c5_45 = arith.constant 5 : index
    %c0_46 = arith.constant 0 : index
    %c0_47 = arith.constant 0 : index
    %47 = vector.load %arg7[%c5_45, %c0_46, %c0_47] : memref<9x128x128xf32, #tpu.memory_space<vmem>>, vector<1x128x128xf32>
    %48 = vector.shape_cast %47 : vector<1x128x128xf32> to vector<128x128xf32>
    %cst_48 = arith.constant dense<0.000000e+00> : vector<64x128xf32>
    %49 = tpu.matmul %46, %48, %cst_48 {dimension_numbers = #tpu.dot_dimension_numbers<[1], [0], [0], [1], [0, 0, 1, 1], [], []>} : vector<64x128xf32>, vector<128x128xf32>, vector<64x128xf32> -> vector<64x128xf32>
    %50 = arith.addf %43, %49 : vector<64x128xf32>
    %c6 = arith.constant 6 : index
    %c0_49 = arith.constant 0 : index
    %c0_50 = arith.constant 0 : index
    %51 = vector.load %arg6[%c6, %c0_49, %c0_50] : memref<9x64x64xf32, #tpu.memory_space<vmem>>, vector<1x64x64xf32>
    %52 = vector.shape_cast %51 : vector<1x64x64xf32> to vector<64x64xf32>
    %cst_51 = arith.constant dense<0.000000e+00> : vector<64x128xf32>
    %53 = tpu.matmul %52, %9, %cst_51 {dimension_numbers = #tpu.dot_dimension_numbers<[1], [0], [0], [1], [0, 0, 1, 1], [], []>} : vector<64x64xf32>, vector<64x128xf32>, vector<64x128xf32> -> vector<64x128xf32>
    %c6_52 = arith.constant 6 : index
    %c0_53 = arith.constant 0 : index
    %c0_54 = arith.constant 0 : index
    %54 = vector.load %arg7[%c6_52, %c0_53, %c0_54] : memref<9x128x128xf32, #tpu.memory_space<vmem>>, vector<1x128x128xf32>
    %55 = vector.shape_cast %54 : vector<1x128x128xf32> to vector<128x128xf32>
    %cst_55 = arith.constant dense<0.000000e+00> : vector<64x128xf32>
    %56 = tpu.matmul %53, %55, %cst_55 {dimension_numbers = #tpu.dot_dimension_numbers<[1], [0], [0], [1], [0, 0, 1, 1], [], []>} : vector<64x128xf32>, vector<128x128xf32>, vector<64x128xf32> -> vector<64x128xf32>
    %57 = arith.addf %50, %56 : vector<64x128xf32>
    %c7 = arith.constant 7 : index
    %c0_56 = arith.constant 0 : index
    %c0_57 = arith.constant 0 : index
    %58 = vector.load %arg6[%c7, %c0_56, %c0_57] : memref<9x64x64xf32, #tpu.memory_space<vmem>>, vector<1x64x64xf32>
    %59 = vector.shape_cast %58 : vector<1x64x64xf32> to vector<64x64xf32>
    %cst_58 = arith.constant dense<0.000000e+00> : vector<64x128xf32>
    %60 = tpu.matmul %59, %9, %cst_58 {dimension_numbers = #tpu.dot_dimension_numbers<[1], [0], [0], [1], [0, 0, 1, 1], [], []>} : vector<64x64xf32>, vector<64x128xf32>, vector<64x128xf32> -> vector<64x128xf32>
    %c7_59 = arith.constant 7 : index
    %c0_60 = arith.constant 0 : index
    %c0_61 = arith.constant 0 : index
    %61 = vector.load %arg7[%c7_59, %c0_60, %c0_61] : memref<9x128x128xf32, #tpu.memory_space<vmem>>, vector<1x128x128xf32>
    %62 = vector.shape_cast %61 : vector<1x128x128xf32> to vector<128x128xf32>
    %cst_62 = arith.constant dense<0.000000e+00> : vector<64x128xf32>
    %63 = tpu.matmul %60, %62, %cst_62 {dimension_numbers = #tpu.dot_dimension_numbers<[1], [0], [0], [1], [0, 0, 1, 1], [], []>} : vector<64x128xf32>, vector<128x128xf32>, vector<64x128xf32> -> vector<64x128xf32>
    %64 = arith.addf %57, %63 : vector<64x128xf32>
    %c8 = arith.constant 8 : index
    %c0_63 = arith.constant 0 : index
    %c0_64 = arith.constant 0 : index
    %65 = vector.load %arg6[%c8, %c0_63, %c0_64] : memref<9x64x64xf32, #tpu.memory_space<vmem>>, vector<1x64x64xf32>
    %66 = vector.shape_cast %65 : vector<1x64x64xf32> to vector<64x64xf32>
    %cst_65 = arith.constant dense<0.000000e+00> : vector<64x128xf32>
    %67 = tpu.matmul %66, %9, %cst_65 {dimension_numbers = #tpu.dot_dimension_numbers<[1], [0], [0], [1], [0, 0, 1, 1], [], []>} : vector<64x64xf32>, vector<64x128xf32>, vector<64x128xf32> -> vector<64x128xf32>
    %c8_66 = arith.constant 8 : index
    %c0_67 = arith.constant 0 : index
    %c0_68 = arith.constant 0 : index
    %68 = vector.load %arg7[%c8_66, %c0_67, %c0_68] : memref<9x128x128xf32, #tpu.memory_space<vmem>>, vector<1x128x128xf32>
    %69 = vector.shape_cast %68 : vector<1x128x128xf32> to vector<128x128xf32>
    %cst_69 = arith.constant dense<0.000000e+00> : vector<64x128xf32>
    %70 = tpu.matmul %67, %69, %cst_69 {dimension_numbers = #tpu.dot_dimension_numbers<[1], [0], [0], [1], [0, 0, 1, 1], [], []>} : vector<64x128xf32>, vector<128x128xf32>, vector<64x128xf32> -> vector<64x128xf32>
    %71 = arith.addf %64, %70 : vector<64x128xf32>
    %c0_70 = arith.constant 0 : index
    %c0_71 = arith.constant 0 : index
    %72 = vector.load %arg4[%c0_70, %c0_71] : memref<1x128xf32, #tpu.memory_space<vmem>>, vector<1x128xf32>
    %73 = vector.broadcast %72 : vector<1x128xf32> to vector<64x128xf32>
    %74 = arith.mulf %71, %73 : vector<64x128xf32>
    %c0_72 = arith.constant 0 : index
    %c0_73 = arith.constant 0 : index
    %75 = vector.load %arg5[%c0_72, %c0_73] : memref<1x128xf32, #tpu.memory_space<vmem>>, vector<1x128xf32>
    %76 = vector.broadcast %75 : vector<1x128xf32> to vector<64x128xf32>
    %77 = arith.addf %74, %76 : vector<64x128xf32>
    %cst_74 = arith.constant 0.000000e+00 : f32
    %78 = vector.broadcast %cst_74 : f32 to vector<64x128xf32>
    %79 = arith.maximumf %77, %78 : vector<64x128xf32>
    %c0_75 = arith.constant 0 : index
    %c0_76 = arith.constant 0 : index
    %c0_77 = arith.constant 0 : index
    %80 = vector.load %arg8[%c0_75, %c0_76, %c0_77] : memref<9x64x64xf32, #tpu.memory_space<vmem>>, vector<1x64x64xf32>
    %81 = vector.shape_cast %80 : vector<1x64x64xf32> to vector<64x64xf32>
    %cst_78 = arith.constant dense<0.000000e+00> : vector<64x128xf32>
    %82 = tpu.matmul %81, %79, %cst_78 {dimension_numbers = #tpu.dot_dimension_numbers<[1], [0], [0], [1], [0, 0, 1, 1], [], []>} : vector<64x64xf32>, vector<64x128xf32>, vector<64x128xf32> -> vector<64x128xf32>
    %c0_79 = arith.constant 0 : index
    %c0_80 = arith.constant 0 : index
    %c0_81 = arith.constant 0 : index
    %83 = vector.load %arg9[%c0_79, %c0_80, %c0_81] : memref<9x128x128xf32, #tpu.memory_space<vmem>>, vector<1x128x128xf32>
    %84 = vector.shape_cast %83 : vector<1x128x128xf32> to vector<128x128xf32>
    %cst_82 = arith.constant dense<0.000000e+00> : vector<64x128xf32>
    %85 = tpu.matmul %82, %84, %cst_82 {dimension_numbers = #tpu.dot_dimension_numbers<[1], [0], [0], [1], [0, 0, 1, 1], [], []>} : vector<64x128xf32>, vector<128x128xf32>, vector<64x128xf32> -> vector<64x128xf32>
    %c1_83 = arith.constant 1 : index
    %c0_84 = arith.constant 0 : index
    %c0_85 = arith.constant 0 : index
    %86 = vector.load %arg8[%c1_83, %c0_84, %c0_85] : memref<9x64x64xf32, #tpu.memory_space<vmem>>, vector<1x64x64xf32>
    %87 = vector.shape_cast %86 : vector<1x64x64xf32> to vector<64x64xf32>
    %cst_86 = arith.constant dense<0.000000e+00> : vector<64x128xf32>
    %88 = tpu.matmul %87, %79, %cst_86 {dimension_numbers = #tpu.dot_dimension_numbers<[1], [0], [0], [1], [0, 0, 1, 1], [], []>} : vector<64x64xf32>, vector<64x128xf32>, vector<64x128xf32> -> vector<64x128xf32>
    %c1_87 = arith.constant 1 : index
    %c0_88 = arith.constant 0 : index
    %c0_89 = arith.constant 0 : index
    %89 = vector.load %arg9[%c1_87, %c0_88, %c0_89] : memref<9x128x128xf32, #tpu.memory_space<vmem>>, vector<1x128x128xf32>
    %90 = vector.shape_cast %89 : vector<1x128x128xf32> to vector<128x128xf32>
    %cst_90 = arith.constant dense<0.000000e+00> : vector<64x128xf32>
    %91 = tpu.matmul %88, %90, %cst_90 {dimension_numbers = #tpu.dot_dimension_numbers<[1], [0], [0], [1], [0, 0, 1, 1], [], []>} : vector<64x128xf32>, vector<128x128xf32>, vector<64x128xf32> -> vector<64x128xf32>
    %92 = arith.addf %85, %91 : vector<64x128xf32>
    %c2_91 = arith.constant 2 : index
    %c0_92 = arith.constant 0 : index
    %c0_93 = arith.constant 0 : index
    %93 = vector.load %arg8[%c2_91, %c0_92, %c0_93] : memref<9x64x64xf32, #tpu.memory_space<vmem>>, vector<1x64x64xf32>
    %94 = vector.shape_cast %93 : vector<1x64x64xf32> to vector<64x64xf32>
    %cst_94 = arith.constant dense<0.000000e+00> : vector<64x128xf32>
    %95 = tpu.matmul %94, %79, %cst_94 {dimension_numbers = #tpu.dot_dimension_numbers<[1], [0], [0], [1], [0, 0, 1, 1], [], []>} : vector<64x64xf32>, vector<64x128xf32>, vector<64x128xf32> -> vector<64x128xf32>
    %c2_95 = arith.constant 2 : index
    %c0_96 = arith.constant 0 : index
    %c0_97 = arith.constant 0 : index
    %96 = vector.load %arg9[%c2_95, %c0_96, %c0_97] : memref<9x128x128xf32, #tpu.memory_space<vmem>>, vector<1x128x128xf32>
    %97 = vector.shape_cast %96 : vector<1x128x128xf32> to vector<128x128xf32>
    %cst_98 = arith.constant dense<0.000000e+00> : vector<64x128xf32>
    %98 = tpu.matmul %95, %97, %cst_98 {dimension_numbers = #tpu.dot_dimension_numbers<[1], [0], [0], [1], [0, 0, 1, 1], [], []>} : vector<64x128xf32>, vector<128x128xf32>, vector<64x128xf32> -> vector<64x128xf32>
    %99 = arith.addf %92, %98 : vector<64x128xf32>
    %c3_99 = arith.constant 3 : index
    %c0_100 = arith.constant 0 : index
    %c0_101 = arith.constant 0 : index
    %100 = vector.load %arg8[%c3_99, %c0_100, %c0_101] : memref<9x64x64xf32, #tpu.memory_space<vmem>>, vector<1x64x64xf32>
    %101 = vector.shape_cast %100 : vector<1x64x64xf32> to vector<64x64xf32>
    %cst_102 = arith.constant dense<0.000000e+00> : vector<64x128xf32>
    %102 = tpu.matmul %101, %79, %cst_102 {dimension_numbers = #tpu.dot_dimension_numbers<[1], [0], [0], [1], [0, 0, 1, 1], [], []>} : vector<64x64xf32>, vector<64x128xf32>, vector<64x128xf32> -> vector<64x128xf32>
    %c3_103 = arith.constant 3 : index
    %c0_104 = arith.constant 0 : index
    %c0_105 = arith.constant 0 : index
    %103 = vector.load %arg9[%c3_103, %c0_104, %c0_105] : memref<9x128x128xf32, #tpu.memory_space<vmem>>, vector<1x128x128xf32>
    %104 = vector.shape_cast %103 : vector<1x128x128xf32> to vector<128x128xf32>
    %cst_106 = arith.constant dense<0.000000e+00> : vector<64x128xf32>
    %105 = tpu.matmul %102, %104, %cst_106 {dimension_numbers = #tpu.dot_dimension_numbers<[1], [0], [0], [1], [0, 0, 1, 1], [], []>} : vector<64x128xf32>, vector<128x128xf32>, vector<64x128xf32> -> vector<64x128xf32>
    %106 = arith.addf %99, %105 : vector<64x128xf32>
    %c4_107 = arith.constant 4 : index
    %c0_108 = arith.constant 0 : index
    %c0_109 = arith.constant 0 : index
    %107 = vector.load %arg8[%c4_107, %c0_108, %c0_109] : memref<9x64x64xf32, #tpu.memory_space<vmem>>, vector<1x64x64xf32>
    %108 = vector.shape_cast %107 : vector<1x64x64xf32> to vector<64x64xf32>
    %cst_110 = arith.constant dense<0.000000e+00> : vector<64x128xf32>
    %109 = tpu.matmul %108, %79, %cst_110 {dimension_numbers = #tpu.dot_dimension_numbers<[1], [0], [0], [1], [0, 0, 1, 1], [], []>} : vector<64x64xf32>, vector<64x128xf32>, vector<64x128xf32> -> vector<64x128xf32>
    %c4_111 = arith.constant 4 : index
    %c0_112 = arith.constant 0 : index
    %c0_113 = arith.constant 0 : index
    %110 = vector.load %arg9[%c4_111, %c0_112, %c0_113] : memref<9x128x128xf32, #tpu.memory_space<vmem>>, vector<1x128x128xf32>
    %111 = vector.shape_cast %110 : vector<1x128x128xf32> to vector<128x128xf32>
    %cst_114 = arith.constant dense<0.000000e+00> : vector<64x128xf32>
    %112 = tpu.matmul %109, %111, %cst_114 {dimension_numbers = #tpu.dot_dimension_numbers<[1], [0], [0], [1], [0, 0, 1, 1], [], []>} : vector<64x128xf32>, vector<128x128xf32>, vector<64x128xf32> -> vector<64x128xf32>
    %113 = arith.addf %106, %112 : vector<64x128xf32>
    %c5_115 = arith.constant 5 : index
    %c0_116 = arith.constant 0 : index
    %c0_117 = arith.constant 0 : index
    %114 = vector.load %arg8[%c5_115, %c0_116, %c0_117] : memref<9x64x64xf32, #tpu.memory_space<vmem>>, vector<1x64x64xf32>
    %115 = vector.shape_cast %114 : vector<1x64x64xf32> to vector<64x64xf32>
    %cst_118 = arith.constant dense<0.000000e+00> : vector<64x128xf32>
    %116 = tpu.matmul %115, %79, %cst_118 {dimension_numbers = #tpu.dot_dimension_numbers<[1], [0], [0], [1], [0, 0, 1, 1], [], []>} : vector<64x64xf32>, vector<64x128xf32>, vector<64x128xf32> -> vector<64x128xf32>
    %c5_119 = arith.constant 5 : index
    %c0_120 = arith.constant 0 : index
    %c0_121 = arith.constant 0 : index
    %117 = vector.load %arg9[%c5_119, %c0_120, %c0_121] : memref<9x128x128xf32, #tpu.memory_space<vmem>>, vector<1x128x128xf32>
    %118 = vector.shape_cast %117 : vector<1x128x128xf32> to vector<128x128xf32>
    %cst_122 = arith.constant dense<0.000000e+00> : vector<64x128xf32>
    %119 = tpu.matmul %116, %118, %cst_122 {dimension_numbers = #tpu.dot_dimension_numbers<[1], [0], [0], [1], [0, 0, 1, 1], [], []>} : vector<64x128xf32>, vector<128x128xf32>, vector<64x128xf32> -> vector<64x128xf32>
    %120 = arith.addf %113, %119 : vector<64x128xf32>
    %c6_123 = arith.constant 6 : index
    %c0_124 = arith.constant 0 : index
    %c0_125 = arith.constant 0 : index
    %121 = vector.load %arg8[%c6_123, %c0_124, %c0_125] : memref<9x64x64xf32, #tpu.memory_space<vmem>>, vector<1x64x64xf32>
    %122 = vector.shape_cast %121 : vector<1x64x64xf32> to vector<64x64xf32>
    %cst_126 = arith.constant dense<0.000000e+00> : vector<64x128xf32>
    %123 = tpu.matmul %122, %79, %cst_126 {dimension_numbers = #tpu.dot_dimension_numbers<[1], [0], [0], [1], [0, 0, 1, 1], [], []>} : vector<64x64xf32>, vector<64x128xf32>, vector<64x128xf32> -> vector<64x128xf32>
    %c6_127 = arith.constant 6 : index
    %c0_128 = arith.constant 0 : index
    %c0_129 = arith.constant 0 : index
    %124 = vector.load %arg9[%c6_127, %c0_128, %c0_129] : memref<9x128x128xf32, #tpu.memory_space<vmem>>, vector<1x128x128xf32>
    %125 = vector.shape_cast %124 : vector<1x128x128xf32> to vector<128x128xf32>
    %cst_130 = arith.constant dense<0.000000e+00> : vector<64x128xf32>
    %126 = tpu.matmul %123, %125, %cst_130 {dimension_numbers = #tpu.dot_dimension_numbers<[1], [0], [0], [1], [0, 0, 1, 1], [], []>} : vector<64x128xf32>, vector<128x128xf32>, vector<64x128xf32> -> vector<64x128xf32>
    %127 = arith.addf %120, %126 : vector<64x128xf32>
    %c7_131 = arith.constant 7 : index
    %c0_132 = arith.constant 0 : index
    %c0_133 = arith.constant 0 : index
    %128 = vector.load %arg8[%c7_131, %c0_132, %c0_133] : memref<9x64x64xf32, #tpu.memory_space<vmem>>, vector<1x64x64xf32>
    %129 = vector.shape_cast %128 : vector<1x64x64xf32> to vector<64x64xf32>
    %cst_134 = arith.constant dense<0.000000e+00> : vector<64x128xf32>
    %130 = tpu.matmul %129, %79, %cst_134 {dimension_numbers = #tpu.dot_dimension_numbers<[1], [0], [0], [1], [0, 0, 1, 1], [], []>} : vector<64x64xf32>, vector<64x128xf32>, vector<64x128xf32> -> vector<64x128xf32>
    %c7_135 = arith.constant 7 : index
    %c0_136 = arith.constant 0 : index
    %c0_137 = arith.constant 0 : index
    %131 = vector.load %arg9[%c7_135, %c0_136, %c0_137] : memref<9x128x128xf32, #tpu.memory_space<vmem>>, vector<1x128x128xf32>
    %132 = vector.shape_cast %131 : vector<1x128x128xf32> to vector<128x128xf32>
    %cst_138 = arith.constant dense<0.000000e+00> : vector<64x128xf32>
    %133 = tpu.matmul %130, %132, %cst_138 {dimension_numbers = #tpu.dot_dimension_numbers<[1], [0], [0], [1], [0, 0, 1, 1], [], []>} : vector<64x128xf32>, vector<128x128xf32>, vector<64x128xf32> -> vector<64x128xf32>
    %134 = arith.addf %127, %133 : vector<64x128xf32>
    %c8_139 = arith.constant 8 : index
    %c0_140 = arith.constant 0 : index
    %c0_141 = arith.constant 0 : index
    %135 = vector.load %arg8[%c8_139, %c0_140, %c0_141] : memref<9x64x64xf32, #tpu.memory_space<vmem>>, vector<1x64x64xf32>
    %136 = vector.shape_cast %135 : vector<1x64x64xf32> to vector<64x64xf32>
    %cst_142 = arith.constant dense<0.000000e+00> : vector<64x128xf32>
    %137 = tpu.matmul %136, %79, %cst_142 {dimension_numbers = #tpu.dot_dimension_numbers<[1], [0], [0], [1], [0, 0, 1, 1], [], []>} : vector<64x64xf32>, vector<64x128xf32>, vector<64x128xf32> -> vector<64x128xf32>
    %c8_143 = arith.constant 8 : index
    %c0_144 = arith.constant 0 : index
    %c0_145 = arith.constant 0 : index
    %138 = vector.load %arg9[%c8_143, %c0_144, %c0_145] : memref<9x128x128xf32, #tpu.memory_space<vmem>>, vector<1x128x128xf32>
    %139 = vector.shape_cast %138 : vector<1x128x128xf32> to vector<128x128xf32>
    %cst_146 = arith.constant dense<0.000000e+00> : vector<64x128xf32>
    %140 = tpu.matmul %137, %139, %cst_146 {dimension_numbers = #tpu.dot_dimension_numbers<[1], [0], [0], [1], [0, 0, 1, 1], [], []>} : vector<64x128xf32>, vector<128x128xf32>, vector<64x128xf32> -> vector<64x128xf32>
    %141 = arith.addf %134, %140 : vector<64x128xf32>
    %142 = arith.addf %141, %1 : vector<64x128xf32>
    %c0_147 = arith.constant 0 : index
    %c0_148 = arith.constant 0 : index
    %c0_149 = arith.constant 0 : index
    %143 = vector.load %arg10[%c0_147, %c0_148, %c0_149] : memref<1x64x128xf32, #tpu.memory_space<vmem>>, vector<1x64x128xf32>
    %144 = vector.shape_cast %143 : vector<1x64x128xf32> to vector<64x128xf32>
    %145 = vector.shape_cast %142 : vector<64x128xf32> to vector<1x64x128xf32>
    tpu.vector_store %arg10[%c0_147, %c0_148, %c0_149], %145 {strides = array<i32>} : memref<1x64x128xf32, #tpu.memory_space<vmem>>, vector<1x64x128xf32>,
    return
  }
  func.func @transform_0(%arg0: i32) -> (i32, i32, i32) {
    %c0_i32 = arith.constant 0 : i32
    %c0_i32_0 = arith.constant 0 : i32
    %c0_i32_1 = arith.constant 0 : i32
    return %arg0, %c0_i32, %c0_i32_0 : i32, i32, i32
  }
  func.func @transform_1(%arg0: i32) -> (i32, i32) {
    %c0_i32 = arith.constant 0 : i32
    %c0_i32_0 = arith.constant 0 : i32
    %c0_i32_1 = arith.constant 0 : i32
    return %c0_i32, %c0_i32_0 : i32, i32
  }
  func.func @transform_2(%arg0: i32) -> (i32, i32) {
    %c0_i32 = arith.constant 0 : i32
    %c0_i32_0 = arith.constant 0 : i32
    %c0_i32_1 = arith.constant 0 : i32
    return %c0_i32, %c0_i32_0 : i32, i32
  }
  func.func @transform_3(%arg0: i32) -> (i32, i32) {
    %c0_i32 = arith.constant 0 : i32
    %c0_i32_0 = arith.constant 0 : i32
    %c0_i32_1 = arith.constant 0 : i32
    return %c0_i32, %c0_i32_0 : i32, i32
  }
  func.func @transform_4(%arg0: i32) -> (i32, i32) {
    %c0_i32 = arith.constant 0 : i32
    %c0_i32_0 = arith.constant 0 : i32
    %c0_i32_1 = arith.constant 0 : i32
    return %c0_i32, %c0_i32_0 : i32, i32
  }
  func.func @transform_5(%arg0: i32) -> (i32, i32, i32) {
    %c0_i32 = arith.constant 0 : i32
    %c0_i32_0 = arith.constant 0 : i32
    %c0_i32_1 = arith.constant 0 : i32
    %c0_i32_2 = arith.constant 0 : i32
    return %c0_i32, %c0_i32_0, %c0_i32_1 : i32, i32, i32
  }
  func.func @transform_6(%arg0: i32) -> (i32, i32, i32) {
    %c0_i32 = arith.constant 0 : i32
    %c0_i32_0 = arith.constant 0 : i32
    %c0_i32_1 = arith.constant 0 : i32
    %c0_i32_2 = arith.constant 0 : i32
    return %c0_i32, %c0_i32_0, %c0_i32_1 : i32, i32, i32
  }
  func.func @transform_7(%arg0: i32) -> (i32, i32, i32) {
    %c0_i32 = arith.constant 0 : i32
    %c0_i32_0 = arith.constant 0 : i32
    %c0_i32_1 = arith.constant 0 : i32
    %c0_i32_2 = arith.constant 0 : i32
    return %c0_i32, %c0_i32_0, %c0_i32_1 : i32, i32, i32
  }
  func.func @transform_8(%arg0: i32) -> (i32, i32, i32) {
    %c0_i32 = arith.constant 0 : i32
    %c0_i32_0 = arith.constant 0 : i32
    %c0_i32_1 = arith.constant 0 : i32
    %c0_i32_2 = arith.constant 0 : i32
    return %c0_i32, %c0_i32_0, %c0_i32_1 : i32, i32, i32
  }
  func.func @transform_9(%arg0: i32) -> (i32, i32, i32) {
    %c0_i32 = arith.constant 0 : i32
    %c0_i32_0 = arith.constant 0 : i32
    %c0_i32_1 = arith.constant 0 : i32
    return %arg0, %c0_i32, %c0_i32_0 : i32, i32, i32
  }
}

module attributes {stable_mosaic.version = 11 : i64} {
  func.func @_fused_block_kernel(%arg0: i32, %arg1: memref<1x256x128xf32, #tpu.memory_space<vmem>>, %arg2: memref<1x128xf32, #tpu.memory_space<vmem>>, %arg3: memref<1x128xf32, #tpu.memory_space<vmem>>, %arg4: memref<1x128xf32, #tpu.memory_space<vmem>>, %arg5: memref<1x128xf32, #tpu.memory_space<vmem>>, %arg6: memref<9x64x256xf32, #tpu.memory_space<vmem>>, %arg7: memref<9x128x128xf32, #tpu.memory_space<vmem>>, %arg8: memref<9x64x64xf32, #tpu.memory_space<vmem>>, %arg9: memref<9x128x128xf32, #tpu.memory_space<vmem>>, %arg10: memref<64x256xf32, #tpu.memory_space<vmem>>, %arg11: memref<128x128xf32, #tpu.memory_space<vmem>>, %arg12: memref<1x64x128xf32, #tpu.memory_space<vmem>>) attributes {dimension_semantics = [#tpu.dimension_semantics<parallel>], iteration_bounds = array<i64: 2>, scalar_prefetch = 0 : i64, scratch_operands = 0 : i64, tpu.core_type = #tpu.core_type<tc>, window_params = [{transform_indices = @transform_0, window_bounds = array<i64: 1, 256, 128>}, {pipeline_mode = #tpu.pipeline_mode<synchronous>, transform_indices = @transform_1, window_bounds = array<i64: 1, 128>}, {pipeline_mode = #tpu.pipeline_mode<synchronous>, transform_indices = @transform_2, window_bounds = array<i64: 1, 128>}, {pipeline_mode = #tpu.pipeline_mode<synchronous>, transform_indices = @transform_3, window_bounds = array<i64: 1, 128>}, {pipeline_mode = #tpu.pipeline_mode<synchronous>, transform_indices = @transform_4, window_bounds = array<i64: 1, 128>}, {pipeline_mode = #tpu.pipeline_mode<synchronous>, transform_indices = @transform_5, window_bounds = array<i64: 9, 64, 256>}, {pipeline_mode = #tpu.pipeline_mode<synchronous>, transform_indices = @transform_6, window_bounds = array<i64: 9, 128, 128>}, {pipeline_mode = #tpu.pipeline_mode<synchronous>, transform_indices = @transform_7, window_bounds = array<i64: 9, 64, 64>}, {pipeline_mode = #tpu.pipeline_mode<synchronous>, transform_indices = @transform_8, window_bounds = array<i64: 9, 128, 128>}, {pipeline_mode = #tpu.pipeline_mode<synchronous>, transform_indices = @transform_9, window_bounds = array<i64: 64, 256>}, {pipeline_mode = #tpu.pipeline_mode<synchronous>, transform_indices = @transform_10, window_bounds = array<i64: 128, 128>}, {transform_indices = @transform_11, window_bounds = array<i64: 1, 64, 128>}]} {
    %c0 = arith.constant 0 : index
    %c0_0 = arith.constant 0 : index
    %c0_1 = arith.constant 0 : index
    %0 = vector.load %arg1[%c0, %c0_0, %c0_1] : memref<1x256x128xf32, #tpu.memory_space<vmem>>, vector<1x256x128xf32>
    %1 = vector.shape_cast %0 : vector<1x256x128xf32> to vector<256x128xf32>
    %c0_2 = arith.constant 0 : index
    %c0_3 = arith.constant 0 : index
    %2 = vector.load %arg2[%c0_2, %c0_3] : memref<1x128xf32, #tpu.memory_space<vmem>>, vector<1x128xf32>
    %3 = vector.broadcast %2 : vector<1x128xf32> to vector<256x128xf32>
    %4 = arith.mulf %1, %3 : vector<256x128xf32>
    %c0_4 = arith.constant 0 : index
    %c0_5 = arith.constant 0 : index
    %5 = vector.load %arg3[%c0_4, %c0_5] : memref<1x128xf32, #tpu.memory_space<vmem>>, vector<1x128xf32>
    %6 = vector.broadcast %5 : vector<1x128xf32> to vector<256x128xf32>
    %7 = arith.addf %4, %6 : vector<256x128xf32>
    %cst = arith.constant 0.000000e+00 : f32
    %8 = vector.broadcast %cst : f32 to vector<256x128xf32>
    %9 = arith.maximumf %7, %8 : vector<256x128xf32>
    %c0_6 = arith.constant 0 : index
    %c0_7 = arith.constant 0 : index
    %c0_8 = arith.constant 0 : index
    %10 = vector.load %arg6[%c0_6, %c0_7, %c0_8] : memref<9x64x256xf32, #tpu.memory_space<vmem>>, vector<1x64x256xf32>
    %11 = vector.shape_cast %10 : vector<1x64x256xf32> to vector<64x256xf32>
    %cst_9 = arith.constant dense<0.000000e+00> : vector<64x128xf32>
    %12 = tpu.matmul %11, %9, %cst_9 {dimension_numbers = #tpu.dot_dimension_numbers<[1], [0], [0], [1], [0, 0, 1, 1], [], []>} : vector<64x256xf32>, vector<256x128xf32>, vector<64x128xf32> -> vector<64x128xf32>
    %c0_10 = arith.constant 0 : index
    %c0_11 = arith.constant 0 : index
    %c0_12 = arith.constant 0 : index
    %13 = vector.load %arg7[%c0_10, %c0_11, %c0_12] : memref<9x128x128xf32, #tpu.memory_space<vmem>>, vector<1x128x128xf32>
    %14 = vector.shape_cast %13 : vector<1x128x128xf32> to vector<128x128xf32>
    %cst_13 = arith.constant dense<0.000000e+00> : vector<64x128xf32>
    %15 = tpu.matmul %12, %14, %cst_13 {dimension_numbers = #tpu.dot_dimension_numbers<[1], [0], [0], [1], [0, 0, 1, 1], [], []>} : vector<64x128xf32>, vector<128x128xf32>, vector<64x128xf32> -> vector<64x128xf32>
    %c1 = arith.constant 1 : index
    %c0_14 = arith.constant 0 : index
    %c0_15 = arith.constant 0 : index
    %16 = vector.load %arg6[%c1, %c0_14, %c0_15] : memref<9x64x256xf32, #tpu.memory_space<vmem>>, vector<1x64x256xf32>
    %17 = vector.shape_cast %16 : vector<1x64x256xf32> to vector<64x256xf32>
    %cst_16 = arith.constant dense<0.000000e+00> : vector<64x128xf32>
    %18 = tpu.matmul %17, %9, %cst_16 {dimension_numbers = #tpu.dot_dimension_numbers<[1], [0], [0], [1], [0, 0, 1, 1], [], []>} : vector<64x256xf32>, vector<256x128xf32>, vector<64x128xf32> -> vector<64x128xf32>
    %c1_17 = arith.constant 1 : index
    %c0_18 = arith.constant 0 : index
    %c0_19 = arith.constant 0 : index
    %19 = vector.load %arg7[%c1_17, %c0_18, %c0_19] : memref<9x128x128xf32, #tpu.memory_space<vmem>>, vector<1x128x128xf32>
    %20 = vector.shape_cast %19 : vector<1x128x128xf32> to vector<128x128xf32>
    %cst_20 = arith.constant dense<0.000000e+00> : vector<64x128xf32>
    %21 = tpu.matmul %18, %20, %cst_20 {dimension_numbers = #tpu.dot_dimension_numbers<[1], [0], [0], [1], [0, 0, 1, 1], [], []>} : vector<64x128xf32>, vector<128x128xf32>, vector<64x128xf32> -> vector<64x128xf32>
    %22 = arith.addf %15, %21 : vector<64x128xf32>
    %c2 = arith.constant 2 : index
    %c0_21 = arith.constant 0 : index
    %c0_22 = arith.constant 0 : index
    %23 = vector.load %arg6[%c2, %c0_21, %c0_22] : memref<9x64x256xf32, #tpu.memory_space<vmem>>, vector<1x64x256xf32>
    %24 = vector.shape_cast %23 : vector<1x64x256xf32> to vector<64x256xf32>
    %cst_23 = arith.constant dense<0.000000e+00> : vector<64x128xf32>
    %25 = tpu.matmul %24, %9, %cst_23 {dimension_numbers = #tpu.dot_dimension_numbers<[1], [0], [0], [1], [0, 0, 1, 1], [], []>} : vector<64x256xf32>, vector<256x128xf32>, vector<64x128xf32> -> vector<64x128xf32>
    %c2_24 = arith.constant 2 : index
    %c0_25 = arith.constant 0 : index
    %c0_26 = arith.constant 0 : index
    %26 = vector.load %arg7[%c2_24, %c0_25, %c0_26] : memref<9x128x128xf32, #tpu.memory_space<vmem>>, vector<1x128x128xf32>
    %27 = vector.shape_cast %26 : vector<1x128x128xf32> to vector<128x128xf32>
    %cst_27 = arith.constant dense<0.000000e+00> : vector<64x128xf32>
    %28 = tpu.matmul %25, %27, %cst_27 {dimension_numbers = #tpu.dot_dimension_numbers<[1], [0], [0], [1], [0, 0, 1, 1], [], []>} : vector<64x128xf32>, vector<128x128xf32>, vector<64x128xf32> -> vector<64x128xf32>
    %29 = arith.addf %22, %28 : vector<64x128xf32>
    %c3 = arith.constant 3 : index
    %c0_28 = arith.constant 0 : index
    %c0_29 = arith.constant 0 : index
    %30 = vector.load %arg6[%c3, %c0_28, %c0_29] : memref<9x64x256xf32, #tpu.memory_space<vmem>>, vector<1x64x256xf32>
    %31 = vector.shape_cast %30 : vector<1x64x256xf32> to vector<64x256xf32>
    %cst_30 = arith.constant dense<0.000000e+00> : vector<64x128xf32>
    %32 = tpu.matmul %31, %9, %cst_30 {dimension_numbers = #tpu.dot_dimension_numbers<[1], [0], [0], [1], [0, 0, 1, 1], [], []>} : vector<64x256xf32>, vector<256x128xf32>, vector<64x128xf32> -> vector<64x128xf32>
    %c3_31 = arith.constant 3 : index
    %c0_32 = arith.constant 0 : index
    %c0_33 = arith.constant 0 : index
    %33 = vector.load %arg7[%c3_31, %c0_32, %c0_33] : memref<9x128x128xf32, #tpu.memory_space<vmem>>, vector<1x128x128xf32>
    %34 = vector.shape_cast %33 : vector<1x128x128xf32> to vector<128x128xf32>
    %cst_34 = arith.constant dense<0.000000e+00> : vector<64x128xf32>
    %35 = tpu.matmul %32, %34, %cst_34 {dimension_numbers = #tpu.dot_dimension_numbers<[1], [0], [0], [1], [0, 0, 1, 1], [], []>} : vector<64x128xf32>, vector<128x128xf32>, vector<64x128xf32> -> vector<64x128xf32>
    %36 = arith.addf %29, %35 : vector<64x128xf32>
    %c4 = arith.constant 4 : index
    %c0_35 = arith.constant 0 : index
    %c0_36 = arith.constant 0 : index
    %37 = vector.load %arg6[%c4, %c0_35, %c0_36] : memref<9x64x256xf32, #tpu.memory_space<vmem>>, vector<1x64x256xf32>
    %38 = vector.shape_cast %37 : vector<1x64x256xf32> to vector<64x256xf32>
    %cst_37 = arith.constant dense<0.000000e+00> : vector<64x128xf32>
    %39 = tpu.matmul %38, %9, %cst_37 {dimension_numbers = #tpu.dot_dimension_numbers<[1], [0], [0], [1], [0, 0, 1, 1], [], []>} : vector<64x256xf32>, vector<256x128xf32>, vector<64x128xf32> -> vector<64x128xf32>
    %c4_38 = arith.constant 4 : index
    %c0_39 = arith.constant 0 : index
    %c0_40 = arith.constant 0 : index
    %40 = vector.load %arg7[%c4_38, %c0_39, %c0_40] : memref<9x128x128xf32, #tpu.memory_space<vmem>>, vector<1x128x128xf32>
    %41 = vector.shape_cast %40 : vector<1x128x128xf32> to vector<128x128xf32>
    %cst_41 = arith.constant dense<0.000000e+00> : vector<64x128xf32>
    %42 = tpu.matmul %39, %41, %cst_41 {dimension_numbers = #tpu.dot_dimension_numbers<[1], [0], [0], [1], [0, 0, 1, 1], [], []>} : vector<64x128xf32>, vector<128x128xf32>, vector<64x128xf32> -> vector<64x128xf32>
    %43 = arith.addf %36, %42 : vector<64x128xf32>
    %c5 = arith.constant 5 : index
    %c0_42 = arith.constant 0 : index
    %c0_43 = arith.constant 0 : index
    %44 = vector.load %arg6[%c5, %c0_42, %c0_43] : memref<9x64x256xf32, #tpu.memory_space<vmem>>, vector<1x64x256xf32>
    %45 = vector.shape_cast %44 : vector<1x64x256xf32> to vector<64x256xf32>
    %cst_44 = arith.constant dense<0.000000e+00> : vector<64x128xf32>
    %46 = tpu.matmul %45, %9, %cst_44 {dimension_numbers = #tpu.dot_dimension_numbers<[1], [0], [0], [1], [0, 0, 1, 1], [], []>} : vector<64x256xf32>, vector<256x128xf32>, vector<64x128xf32> -> vector<64x128xf32>
    %c5_45 = arith.constant 5 : index
    %c0_46 = arith.constant 0 : index
    %c0_47 = arith.constant 0 : index
    %47 = vector.load %arg7[%c5_45, %c0_46, %c0_47] : memref<9x128x128xf32, #tpu.memory_space<vmem>>, vector<1x128x128xf32>
    %48 = vector.shape_cast %47 : vector<1x128x128xf32> to vector<128x128xf32>
    %cst_48 = arith.constant dense<0.000000e+00> : vector<64x128xf32>
    %49 = tpu.matmul %46, %48, %cst_48 {dimension_numbers = #tpu.dot_dimension_numbers<[1], [0], [0], [1], [0, 0, 1, 1], [], []>} : vector<64x128xf32>, vector<128x128xf32>, vector<64x128xf32> -> vector<64x128xf32>
    %50 = arith.addf %43, %49 : vector<64x128xf32>
    %c6 = arith.constant 6 : index
    %c0_49 = arith.constant 0 : index
    %c0_50 = arith.constant 0 : index
    %51 = vector.load %arg6[%c6, %c0_49, %c0_50] : memref<9x64x256xf32, #tpu.memory_space<vmem>>, vector<1x64x256xf32>
    %52 = vector.shape_cast %51 : vector<1x64x256xf32> to vector<64x256xf32>
    %cst_51 = arith.constant dense<0.000000e+00> : vector<64x128xf32>
    %53 = tpu.matmul %52, %9, %cst_51 {dimension_numbers = #tpu.dot_dimension_numbers<[1], [0], [0], [1], [0, 0, 1, 1], [], []>} : vector<64x256xf32>, vector<256x128xf32>, vector<64x128xf32> -> vector<64x128xf32>
    %c6_52 = arith.constant 6 : index
    %c0_53 = arith.constant 0 : index
    %c0_54 = arith.constant 0 : index
    %54 = vector.load %arg7[%c6_52, %c0_53, %c0_54] : memref<9x128x128xf32, #tpu.memory_space<vmem>>, vector<1x128x128xf32>
    %55 = vector.shape_cast %54 : vector<1x128x128xf32> to vector<128x128xf32>
    %cst_55 = arith.constant dense<0.000000e+00> : vector<64x128xf32>
    %56 = tpu.matmul %53, %55, %cst_55 {dimension_numbers = #tpu.dot_dimension_numbers<[1], [0], [0], [1], [0, 0, 1, 1], [], []>} : vector<64x128xf32>, vector<128x128xf32>, vector<64x128xf32> -> vector<64x128xf32>
    %57 = arith.addf %50, %56 : vector<64x128xf32>
    %c7 = arith.constant 7 : index
    %c0_56 = arith.constant 0 : index
    %c0_57 = arith.constant 0 : index
    %58 = vector.load %arg6[%c7, %c0_56, %c0_57] : memref<9x64x256xf32, #tpu.memory_space<vmem>>, vector<1x64x256xf32>
    %59 = vector.shape_cast %58 : vector<1x64x256xf32> to vector<64x256xf32>
    %cst_58 = arith.constant dense<0.000000e+00> : vector<64x128xf32>
    %60 = tpu.matmul %59, %9, %cst_58 {dimension_numbers = #tpu.dot_dimension_numbers<[1], [0], [0], [1], [0, 0, 1, 1], [], []>} : vector<64x256xf32>, vector<256x128xf32>, vector<64x128xf32> -> vector<64x128xf32>
    %c7_59 = arith.constant 7 : index
    %c0_60 = arith.constant 0 : index
    %c0_61 = arith.constant 0 : index
    %61 = vector.load %arg7[%c7_59, %c0_60, %c0_61] : memref<9x128x128xf32, #tpu.memory_space<vmem>>, vector<1x128x128xf32>
    %62 = vector.shape_cast %61 : vector<1x128x128xf32> to vector<128x128xf32>
    %cst_62 = arith.constant dense<0.000000e+00> : vector<64x128xf32>
    %63 = tpu.matmul %60, %62, %cst_62 {dimension_numbers = #tpu.dot_dimension_numbers<[1], [0], [0], [1], [0, 0, 1, 1], [], []>} : vector<64x128xf32>, vector<128x128xf32>, vector<64x128xf32> -> vector<64x128xf32>
    %64 = arith.addf %57, %63 : vector<64x128xf32>
    %c8 = arith.constant 8 : index
    %c0_63 = arith.constant 0 : index
    %c0_64 = arith.constant 0 : index
    %65 = vector.load %arg6[%c8, %c0_63, %c0_64] : memref<9x64x256xf32, #tpu.memory_space<vmem>>, vector<1x64x256xf32>
    %66 = vector.shape_cast %65 : vector<1x64x256xf32> to vector<64x256xf32>
    %cst_65 = arith.constant dense<0.000000e+00> : vector<64x128xf32>
    %67 = tpu.matmul %66, %9, %cst_65 {dimension_numbers = #tpu.dot_dimension_numbers<[1], [0], [0], [1], [0, 0, 1, 1], [], []>} : vector<64x256xf32>, vector<256x128xf32>, vector<64x128xf32> -> vector<64x128xf32>
    %c8_66 = arith.constant 8 : index
    %c0_67 = arith.constant 0 : index
    %c0_68 = arith.constant 0 : index
    %68 = vector.load %arg7[%c8_66, %c0_67, %c0_68] : memref<9x128x128xf32, #tpu.memory_space<vmem>>, vector<1x128x128xf32>
    %69 = vector.shape_cast %68 : vector<1x128x128xf32> to vector<128x128xf32>
    %cst_69 = arith.constant dense<0.000000e+00> : vector<64x128xf32>
    %70 = tpu.matmul %67, %69, %cst_69 {dimension_numbers = #tpu.dot_dimension_numbers<[1], [0], [0], [1], [0, 0, 1, 1], [], []>} : vector<64x128xf32>, vector<128x128xf32>, vector<64x128xf32> -> vector<64x128xf32>
    %71 = arith.addf %64, %70 : vector<64x128xf32>
    %c0_70 = arith.constant 0 : index
    %c0_71 = arith.constant 0 : index
    %72 = vector.load %arg4[%c0_70, %c0_71] : memref<1x128xf32, #tpu.memory_space<vmem>>, vector<1x128xf32>
    %73 = vector.broadcast %72 : vector<1x128xf32> to vector<64x128xf32>
    %74 = arith.mulf %71, %73 : vector<64x128xf32>
    %c0_72 = arith.constant 0 : index
    %c0_73 = arith.constant 0 : index
    %75 = vector.load %arg5[%c0_72, %c0_73] : memref<1x128xf32, #tpu.memory_space<vmem>>, vector<1x128xf32>
    %76 = vector.broadcast %75 : vector<1x128xf32> to vector<64x128xf32>
    %77 = arith.addf %74, %76 : vector<64x128xf32>
    %cst_74 = arith.constant 0.000000e+00 : f32
    %78 = vector.broadcast %cst_74 : f32 to vector<64x128xf32>
    %79 = arith.maximumf %77, %78 : vector<64x128xf32>
    %c0_75 = arith.constant 0 : index
    %c0_76 = arith.constant 0 : index
    %c0_77 = arith.constant 0 : index
    %80 = vector.load %arg8[%c0_75, %c0_76, %c0_77] : memref<9x64x64xf32, #tpu.memory_space<vmem>>, vector<1x64x64xf32>
    %81 = vector.shape_cast %80 : vector<1x64x64xf32> to vector<64x64xf32>
    %cst_78 = arith.constant dense<0.000000e+00> : vector<64x128xf32>
    %82 = tpu.matmul %81, %79, %cst_78 {dimension_numbers = #tpu.dot_dimension_numbers<[1], [0], [0], [1], [0, 0, 1, 1], [], []>} : vector<64x64xf32>, vector<64x128xf32>, vector<64x128xf32> -> vector<64x128xf32>
    %c0_79 = arith.constant 0 : index
    %c0_80 = arith.constant 0 : index
    %c0_81 = arith.constant 0 : index
    %83 = vector.load %arg9[%c0_79, %c0_80, %c0_81] : memref<9x128x128xf32, #tpu.memory_space<vmem>>, vector<1x128x128xf32>
    %84 = vector.shape_cast %83 : vector<1x128x128xf32> to vector<128x128xf32>
    %cst_82 = arith.constant dense<0.000000e+00> : vector<64x128xf32>
    %85 = tpu.matmul %82, %84, %cst_82 {dimension_numbers = #tpu.dot_dimension_numbers<[1], [0], [0], [1], [0, 0, 1, 1], [], []>} : vector<64x128xf32>, vector<128x128xf32>, vector<64x128xf32> -> vector<64x128xf32>
    %c1_83 = arith.constant 1 : index
    %c0_84 = arith.constant 0 : index
    %c0_85 = arith.constant 0 : index
    %86 = vector.load %arg8[%c1_83, %c0_84, %c0_85] : memref<9x64x64xf32, #tpu.memory_space<vmem>>, vector<1x64x64xf32>
    %87 = vector.shape_cast %86 : vector<1x64x64xf32> to vector<64x64xf32>
    %cst_86 = arith.constant dense<0.000000e+00> : vector<64x128xf32>
    %88 = tpu.matmul %87, %79, %cst_86 {dimension_numbers = #tpu.dot_dimension_numbers<[1], [0], [0], [1], [0, 0, 1, 1], [], []>} : vector<64x64xf32>, vector<64x128xf32>, vector<64x128xf32> -> vector<64x128xf32>
    %c1_87 = arith.constant 1 : index
    %c0_88 = arith.constant 0 : index
    %c0_89 = arith.constant 0 : index
    %89 = vector.load %arg9[%c1_87, %c0_88, %c0_89] : memref<9x128x128xf32, #tpu.memory_space<vmem>>, vector<1x128x128xf32>
    %90 = vector.shape_cast %89 : vector<1x128x128xf32> to vector<128x128xf32>
    %cst_90 = arith.constant dense<0.000000e+00> : vector<64x128xf32>
    %91 = tpu.matmul %88, %90, %cst_90 {dimension_numbers = #tpu.dot_dimension_numbers<[1], [0], [0], [1], [0, 0, 1, 1], [], []>} : vector<64x128xf32>, vector<128x128xf32>, vector<64x128xf32> -> vector<64x128xf32>
    %92 = arith.addf %85, %91 : vector<64x128xf32>
    %c2_91 = arith.constant 2 : index
    %c0_92 = arith.constant 0 : index
    %c0_93 = arith.constant 0 : index
    %93 = vector.load %arg8[%c2_91, %c0_92, %c0_93] : memref<9x64x64xf32, #tpu.memory_space<vmem>>, vector<1x64x64xf32>
    %94 = vector.shape_cast %93 : vector<1x64x64xf32> to vector<64x64xf32>
    %cst_94 = arith.constant dense<0.000000e+00> : vector<64x128xf32>
    %95 = tpu.matmul %94, %79, %cst_94 {dimension_numbers = #tpu.dot_dimension_numbers<[1], [0], [0], [1], [0, 0, 1, 1], [], []>} : vector<64x64xf32>, vector<64x128xf32>, vector<64x128xf32> -> vector<64x128xf32>
    %c2_95 = arith.constant 2 : index
    %c0_96 = arith.constant 0 : index
    %c0_97 = arith.constant 0 : index
    %96 = vector.load %arg9[%c2_95, %c0_96, %c0_97] : memref<9x128x128xf32, #tpu.memory_space<vmem>>, vector<1x128x128xf32>
    %97 = vector.shape_cast %96 : vector<1x128x128xf32> to vector<128x128xf32>
    %cst_98 = arith.constant dense<0.000000e+00> : vector<64x128xf32>
    %98 = tpu.matmul %95, %97, %cst_98 {dimension_numbers = #tpu.dot_dimension_numbers<[1], [0], [0], [1], [0, 0, 1, 1], [], []>} : vector<64x128xf32>, vector<128x128xf32>, vector<64x128xf32> -> vector<64x128xf32>
    %99 = arith.addf %92, %98 : vector<64x128xf32>
    %c3_99 = arith.constant 3 : index
    %c0_100 = arith.constant 0 : index
    %c0_101 = arith.constant 0 : index
    %100 = vector.load %arg8[%c3_99, %c0_100, %c0_101] : memref<9x64x64xf32, #tpu.memory_space<vmem>>, vector<1x64x64xf32>
    %101 = vector.shape_cast %100 : vector<1x64x64xf32> to vector<64x64xf32>
    %cst_102 = arith.constant dense<0.000000e+00> : vector<64x128xf32>
    %102 = tpu.matmul %101, %79, %cst_102 {dimension_numbers = #tpu.dot_dimension_numbers<[1], [0], [0], [1], [0, 0, 1, 1], [], []>} : vector<64x64xf32>, vector<64x128xf32>, vector<64x128xf32> -> vector<64x128xf32>
    %c3_103 = arith.constant 3 : index
    %c0_104 = arith.constant 0 : index
    %c0_105 = arith.constant 0 : index
    %103 = vector.load %arg9[%c3_103, %c0_104, %c0_105] : memref<9x128x128xf32, #tpu.memory_space<vmem>>, vector<1x128x128xf32>
    %104 = vector.shape_cast %103 : vector<1x128x128xf32> to vector<128x128xf32>
    %cst_106 = arith.constant dense<0.000000e+00> : vector<64x128xf32>
    %105 = tpu.matmul %102, %104, %cst_106 {dimension_numbers = #tpu.dot_dimension_numbers<[1], [0], [0], [1], [0, 0, 1, 1], [], []>} : vector<64x128xf32>, vector<128x128xf32>, vector<64x128xf32> -> vector<64x128xf32>
    %106 = arith.addf %99, %105 : vector<64x128xf32>
    %c4_107 = arith.constant 4 : index
    %c0_108 = arith.constant 0 : index
    %c0_109 = arith.constant 0 : index
    %107 = vector.load %arg8[%c4_107, %c0_108, %c0_109] : memref<9x64x64xf32, #tpu.memory_space<vmem>>, vector<1x64x64xf32>
    %108 = vector.shape_cast %107 : vector<1x64x64xf32> to vector<64x64xf32>
    %cst_110 = arith.constant dense<0.000000e+00> : vector<64x128xf32>
    %109 = tpu.matmul %108, %79, %cst_110 {dimension_numbers = #tpu.dot_dimension_numbers<[1], [0], [0], [1], [0, 0, 1, 1], [], []>} : vector<64x64xf32>, vector<64x128xf32>, vector<64x128xf32> -> vector<64x128xf32>
    %c4_111 = arith.constant 4 : index
    %c0_112 = arith.constant 0 : index
    %c0_113 = arith.constant 0 : index
    %110 = vector.load %arg9[%c4_111, %c0_112, %c0_113] : memref<9x128x128xf32, #tpu.memory_space<vmem>>, vector<1x128x128xf32>
    %111 = vector.shape_cast %110 : vector<1x128x128xf32> to vector<128x128xf32>
    %cst_114 = arith.constant dense<0.000000e+00> : vector<64x128xf32>
    %112 = tpu.matmul %109, %111, %cst_114 {dimension_numbers = #tpu.dot_dimension_numbers<[1], [0], [0], [1], [0, 0, 1, 1], [], []>} : vector<64x128xf32>, vector<128x128xf32>, vector<64x128xf32> -> vector<64x128xf32>
    %113 = arith.addf %106, %112 : vector<64x128xf32>
    %c5_115 = arith.constant 5 : index
    %c0_116 = arith.constant 0 : index
    %c0_117 = arith.constant 0 : index
    %114 = vector.load %arg8[%c5_115, %c0_116, %c0_117] : memref<9x64x64xf32, #tpu.memory_space<vmem>>, vector<1x64x64xf32>
    %115 = vector.shape_cast %114 : vector<1x64x64xf32> to vector<64x64xf32>
    %cst_118 = arith.constant dense<0.000000e+00> : vector<64x128xf32>
    %116 = tpu.matmul %115, %79, %cst_118 {dimension_numbers = #tpu.dot_dimension_numbers<[1], [0], [0], [1], [0, 0, 1, 1], [], []>} : vector<64x64xf32>, vector<64x128xf32>, vector<64x128xf32> -> vector<64x128xf32>
    %c5_119 = arith.constant 5 : index
    %c0_120 = arith.constant 0 : index
    %c0_121 = arith.constant 0 : index
    %117 = vector.load %arg9[%c5_119, %c0_120, %c0_121] : memref<9x128x128xf32, #tpu.memory_space<vmem>>, vector<1x128x128xf32>
    %118 = vector.shape_cast %117 : vector<1x128x128xf32> to vector<128x128xf32>
    %cst_122 = arith.constant dense<0.000000e+00> : vector<64x128xf32>
    %119 = tpu.matmul %116, %118, %cst_122 {dimension_numbers = #tpu.dot_dimension_numbers<[1], [0], [0], [1], [0, 0, 1, 1], [], []>} : vector<64x128xf32>, vector<128x128xf32>, vector<64x128xf32> -> vector<64x128xf32>
    %120 = arith.addf %113, %119 : vector<64x128xf32>
    %c6_123 = arith.constant 6 : index
    %c0_124 = arith.constant 0 : index
    %c0_125 = arith.constant 0 : index
    %121 = vector.load %arg8[%c6_123, %c0_124, %c0_125] : memref<9x64x64xf32, #tpu.memory_space<vmem>>, vector<1x64x64xf32>
    %122 = vector.shape_cast %121 : vector<1x64x64xf32> to vector<64x64xf32>
    %cst_126 = arith.constant dense<0.000000e+00> : vector<64x128xf32>
    %123 = tpu.matmul %122, %79, %cst_126 {dimension_numbers = #tpu.dot_dimension_numbers<[1], [0], [0], [1], [0, 0, 1, 1], [], []>} : vector<64x64xf32>, vector<64x128xf32>, vector<64x128xf32> -> vector<64x128xf32>
    %c6_127 = arith.constant 6 : index
    %c0_128 = arith.constant 0 : index
    %c0_129 = arith.constant 0 : index
    %124 = vector.load %arg9[%c6_127, %c0_128, %c0_129] : memref<9x128x128xf32, #tpu.memory_space<vmem>>, vector<1x128x128xf32>
    %125 = vector.shape_cast %124 : vector<1x128x128xf32> to vector<128x128xf32>
    %cst_130 = arith.constant dense<0.000000e+00> : vector<64x128xf32>
    %126 = tpu.matmul %123, %125, %cst_130 {dimension_numbers = #tpu.dot_dimension_numbers<[1], [0], [0], [1], [0, 0, 1, 1], [], []>} : vector<64x128xf32>, vector<128x128xf32>, vector<64x128xf32> -> vector<64x128xf32>
    %127 = arith.addf %120, %126 : vector<64x128xf32>
    %c7_131 = arith.constant 7 : index
    %c0_132 = arith.constant 0 : index
    %c0_133 = arith.constant 0 : index
    %128 = vector.load %arg8[%c7_131, %c0_132, %c0_133] : memref<9x64x64xf32, #tpu.memory_space<vmem>>, vector<1x64x64xf32>
    %129 = vector.shape_cast %128 : vector<1x64x64xf32> to vector<64x64xf32>
    %cst_134 = arith.constant dense<0.000000e+00> : vector<64x128xf32>
    %130 = tpu.matmul %129, %79, %cst_134 {dimension_numbers = #tpu.dot_dimension_numbers<[1], [0], [0], [1], [0, 0, 1, 1], [], []>} : vector<64x64xf32>, vector<64x128xf32>, vector<64x128xf32> -> vector<64x128xf32>
    %c7_135 = arith.constant 7 : index
    %c0_136 = arith.constant 0 : index
    %c0_137 = arith.constant 0 : index
    %131 = vector.load %arg9[%c7_135, %c0_136, %c0_137] : memref<9x128x128xf32, #tpu.memory_space<vmem>>, vector<1x128x128xf32>
    %132 = vector.shape_cast %131 : vector<1x128x128xf32> to vector<128x128xf32>
    %cst_138 = arith.constant dense<0.000000e+00> : vector<64x128xf32>
    %133 = tpu.matmul %130, %132, %cst_138 {dimension_numbers = #tpu.dot_dimension_numbers<[1], [0], [0], [1], [0, 0, 1, 1], [], []>} : vector<64x128xf32>, vector<128x128xf32>, vector<64x128xf32> -> vector<64x128xf32>
    %134 = arith.addf %127, %133 : vector<64x128xf32>
    %c8_139 = arith.constant 8 : index
    %c0_140 = arith.constant 0 : index
    %c0_141 = arith.constant 0 : index
    %135 = vector.load %arg8[%c8_139, %c0_140, %c0_141] : memref<9x64x64xf32, #tpu.memory_space<vmem>>, vector<1x64x64xf32>
    %136 = vector.shape_cast %135 : vector<1x64x64xf32> to vector<64x64xf32>
    %cst_142 = arith.constant dense<0.000000e+00> : vector<64x128xf32>
    %137 = tpu.matmul %136, %79, %cst_142 {dimension_numbers = #tpu.dot_dimension_numbers<[1], [0], [0], [1], [0, 0, 1, 1], [], []>} : vector<64x64xf32>, vector<64x128xf32>, vector<64x128xf32> -> vector<64x128xf32>
    %c8_143 = arith.constant 8 : index
    %c0_144 = arith.constant 0 : index
    %c0_145 = arith.constant 0 : index
    %138 = vector.load %arg9[%c8_143, %c0_144, %c0_145] : memref<9x128x128xf32, #tpu.memory_space<vmem>>, vector<1x128x128xf32>
    %139 = vector.shape_cast %138 : vector<1x128x128xf32> to vector<128x128xf32>
    %cst_146 = arith.constant dense<0.000000e+00> : vector<64x128xf32>
    %140 = tpu.matmul %137, %139, %cst_146 {dimension_numbers = #tpu.dot_dimension_numbers<[1], [0], [0], [1], [0, 0, 1, 1], [], []>} : vector<64x128xf32>, vector<128x128xf32>, vector<64x128xf32> -> vector<64x128xf32>
    %141 = arith.addf %134, %140 : vector<64x128xf32>
    %c0_147 = arith.constant 0 : index
    %c0_148 = arith.constant 0 : index
    %142 = vector.load %arg10[%c0_147, %c0_148] : memref<64x256xf32, #tpu.memory_space<vmem>>, vector<64x256xf32>
    %cst_149 = arith.constant dense<0.000000e+00> : vector<64x128xf32>
    %143 = tpu.matmul %142, %9, %cst_149 {dimension_numbers = #tpu.dot_dimension_numbers<[1], [0], [0], [1], [0, 0, 1, 1], [], []>} : vector<64x256xf32>, vector<256x128xf32>, vector<64x128xf32> -> vector<64x128xf32>
    %c0_150 = arith.constant 0 : index
    %c0_151 = arith.constant 0 : index
    %144 = vector.load %arg11[%c0_150, %c0_151] : memref<128x128xf32, #tpu.memory_space<vmem>>, vector<128x128xf32>
    %cst_152 = arith.constant dense<0.000000e+00> : vector<64x128xf32>
    %145 = tpu.matmul %143, %144, %cst_152 {dimension_numbers = #tpu.dot_dimension_numbers<[1], [0], [0], [1], [0, 0, 1, 1], [], []>} : vector<64x128xf32>, vector<128x128xf32>, vector<64x128xf32> -> vector<64x128xf32>
    %146 = arith.addf %141, %145 : vector<64x128xf32>
    %c0_153 = arith.constant 0 : index
    %c0_154 = arith.constant 0 : index
    %c0_155 = arith.constant 0 : index
    %147 = vector.load %arg12[%c0_153, %c0_154, %c0_155] : memref<1x64x128xf32, #tpu.memory_space<vmem>>, vector<1x64x128xf32>
    %148 = vector.shape_cast %147 : vector<1x64x128xf32> to vector<64x128xf32>
    %149 = vector.shape_cast %146 : vector<64x128xf32> to vector<1x64x128xf32>
    tpu.vector_store %arg12[%c0_153, %c0_154, %c0_155], %149 {strides = array<i32>} : memref<1x64x128xf32, #tpu.memory_space<vmem>>, vector<1x64x128xf32>,
    return
  }
  func.func @transform_0(%arg0: i32) -> (i32, i32, i32) {
    %c0_i32 = arith.constant 0 : i32
    %c0_i32_0 = arith.constant 0 : i32
    %c0_i32_1 = arith.constant 0 : i32
    return %arg0, %c0_i32, %c0_i32_0 : i32, i32, i32
  }
  func.func @transform_1(%arg0: i32) -> (i32, i32) {
    %c0_i32 = arith.constant 0 : i32
    %c0_i32_0 = arith.constant 0 : i32
    %c0_i32_1 = arith.constant 0 : i32
    return %c0_i32, %c0_i32_0 : i32, i32
  }
  func.func @transform_2(%arg0: i32) -> (i32, i32) {
    %c0_i32 = arith.constant 0 : i32
    %c0_i32_0 = arith.constant 0 : i32
    %c0_i32_1 = arith.constant 0 : i32
    return %c0_i32, %c0_i32_0 : i32, i32
  }
  func.func @transform_3(%arg0: i32) -> (i32, i32) {
    %c0_i32 = arith.constant 0 : i32
    %c0_i32_0 = arith.constant 0 : i32
    %c0_i32_1 = arith.constant 0 : i32
    return %c0_i32, %c0_i32_0 : i32, i32
  }
  func.func @transform_4(%arg0: i32) -> (i32, i32) {
    %c0_i32 = arith.constant 0 : i32
    %c0_i32_0 = arith.constant 0 : i32
    %c0_i32_1 = arith.constant 0 : i32
    return %c0_i32, %c0_i32_0 : i32, i32
  }
  func.func @transform_5(%arg0: i32) -> (i32, i32, i32) {
    %c0_i32 = arith.constant 0 : i32
    %c0_i32_0 = arith.constant 0 : i32
    %c0_i32_1 = arith.constant 0 : i32
    %c0_i32_2 = arith.constant 0 : i32
    return %c0_i32, %c0_i32_0, %c0_i32_1 : i32, i32, i32
  }
  func.func @transform_6(%arg0: i32) -> (i32, i32, i32) {
    %c0_i32 = arith.constant 0 : i32
    %c0_i32_0 = arith.constant 0 : i32
    %c0_i32_1 = arith.constant 0 : i32
    %c0_i32_2 = arith.constant 0 : i32
    return %c0_i32, %c0_i32_0, %c0_i32_1 : i32, i32, i32
  }
  func.func @transform_7(%arg0: i32) -> (i32, i32, i32) {
    %c0_i32 = arith.constant 0 : i32
    %c0_i32_0 = arith.constant 0 : i32
    %c0_i32_1 = arith.constant 0 : i32
    %c0_i32_2 = arith.constant 0 : i32
    return %c0_i32, %c0_i32_0, %c0_i32_1 : i32, i32, i32
  }
  func.func @transform_8(%arg0: i32) -> (i32, i32, i32) {
    %c0_i32 = arith.constant 0 : i32
    %c0_i32_0 = arith.constant 0 : i32
    %c0_i32_1 = arith.constant 0 : i32
    %c0_i32_2 = arith.constant 0 : i32
    return %c0_i32, %c0_i32_0, %c0_i32_1 : i32, i32, i32
  }
  func.func @transform_9(%arg0: i32) -> (i32, i32) {
    %c0_i32 = arith.constant 0 : i32
    %c0_i32_0 = arith.constant 0 : i32
    %c0_i32_1 = arith.constant 0 : i32
    return %c0_i32, %c0_i32_0 : i32, i32
  }
  func.func @transform_10(%arg0: i32) -> (i32, i32) {
    %c0_i32 = arith.constant 0 : i32
    %c0_i32_0 = arith.constant 0 : i32
    %c0_i32_1 = arith.constant 0 : i32
    return %c0_i32, %c0_i32_0 : i32, i32
  }
  func.func @transform_11(%arg0: i32) -> (i32, i32, i32) {
    %c0_i32 = arith.constant 0 : i32
    %c0_i32_0 = arith.constant 0 : i32
    %c0_i32_1 = arith.constant 0 : i32
    return %arg0, %c0_i32, %c0_i32_0 : i32, i32, i32
  }
}

</mosaic_0001>

<bundles_post_ra>
// kernel: network_block_forward.3
= control target key start
LH: loop header
LB: loop body
LE: loop exit
PB: predicated region body
PF: predicated region fallthrough
CT: control target
= control target key end

     0   :  { %14 = vsyncpa [#allocation3], 0  ;;  %s4740_s0 = inlined_call_operand.vmem [shape: f32[2,64,128], index: 0, kind: input, shape index: {}]   ;;  %s4741_s1 = inlined_call_operand.vmem [shape: f32[1,128], index: 1, kind: input, shape index: {}]   ;;  %s4742_s2 = inlined_call_operand.vmem [shape: f32[1,128], index: 2, kind: input, shape index: {}]   ;;  %s4743_s3 = inlined_call_operand.vmem [shape: f32[1,128], index: 3, kind: input, shape index: {}]   ;;  %s4744_s4 = inlined_call_operand.vmem [shape: f32[1,128], index: 4, kind: input, shape index: {}]   ;;  %s4745_s5 = inlined_call_operand.hbm [shape: f32[9,64,64], index: 5, kind: input, shape index: {}, may-alias: {5,7}]   ;;  %s4746_s6 = inlined_call_operand.hbm [shape: f32[9,128,128], index: 6, kind: input, shape index: {}]   ;;  %s4747_s7 = inlined_call_operand.hbm [shape: f32[9,64,64], index: 7, kind: input, shape index: {}, may-alias: {5,7}]   ;;  %s4748_s8 = inlined_call_operand.vmem [shape: f32[9,128,128], index: 8, kind: input, shape index: {}]   ;;  %s4749_s9 = inlined_call_operand.vmem [shape: f32[2,64,128], index: 9, kind: output, shape index: {}]  }
   0x1   :  { %15 = vsyncpa [#allocation5], 0  ;;  %s3571_s30 = smov 0  }
   0x2 LB: > { %s3577_s10 = sadd.s32 4294967295, %s3514_s30   ;;  %p3044_p0 = scmp.ge.s32.totalorder %s3514_s30, 1  ;;  %s3514_s30 = sphi %s3571_s30, %s21_s30  }
   0x3   : > { %p246_p1 = scmp.lt.s32.totalorder %s3514_s30, 3  ;;  %p3379_p2 = scmp.eq.s32.totalorder %s3577_s10, 0 }
   0x4   : > { %s283_s13 = sshll.u32 %s4746_s6, 4  ;;  %s269_s17 = sshll.u32 %s4745_s5, 4  ;;  %s284_s13 = int_to_ptr.hbm [resolvable:$true] %s283_s13  ;;  %s270_s17 = int_to_ptr.hbm [resolvable:$true] %s269_s17 }
   0x5   : > { %p3585_p3 = pnand %p3044_p0, %p246_p1  ;;  %s3516_s18 = smov [#allocation4]  }
   0x6   : > { %s285_s19 = sshll.u32 %s3516_s18, 4  ;;  %s3517_s20 = smov [#allocation2]   ;;  %s286_s19 = int_to_ptr.vmem [resolvable:$true] %s285_s19 }
   0x7   : > { %p3369_p4 = pneg %p3585_p3  ;;  %s271_s21 = sshll.u32 %s3517_s20, 4  ;;  %s272_s21 = int_to_ptr.vmem [resolvable:$true] %s271_s21 }
   0x8   : > { %s297_s24 = sshll.u32 %s4747_s7, 4  ;;  %s3518_s25 = smov 128   ;;  %s298_s24 = int_to_ptr.hbm [resolvable:$true] %s297_s24 }
   0x9   : > { %p3370_p5 = pnand %p3379_p2, %p3369_p4  ;;  %s3519_s26 = smov 8  }
   0xa   : > { %s3520_s27 = smov [#allocation6]   ;;  %326 = sbr.rel (%p3585_p3) target bundleno = 1354 (0x54a), region = 56 }
   0xb   : > { %3375 = dma.hbm_to_vmem [thread:$0]  (!%p3370_p5), %s284_s13, 18432, %s286_s19, [#allocation5], %s3518_s25, %s3518_s25, %s3519_s26  }
   0xc   : > { %3372 = dma.hbm_to_vmem [thread:$0]  (!%p3370_p5), %s270_s17, 9216, %s272_s21, [#allocation3], %s3518_s25, %s3518_s25, %s3519_s26  }
   0xd   : > { %s299_s28 = sshll.u32 %s3520_s27, 4  ;;  %s300_s28 = int_to_ptr.vmem [resolvable:$true] %s299_s28 }
   0xe   : > { %3378 = dma.hbm_to_vmem [thread:$0]  (!%p3370_p5), %s298_s24, 9216, %s300_s28, [#allocation5], %s3518_s25, %s3518_s25, %s3519_s26  }
   0xf   : > { %3505 = dma.done.wait (%p3379_p2), [#allocation3], 9216  }
  0x10   : > { %3507 = vsyncadd (%p3379_p2), [#allocation3], 4294958080 }
  0x11   : > { %3509 = dma.done.wait (%p3379_p2), [#allocation5], 27648  }
  0x12   : > { %3511 = vsyncadd (%p3379_p2), [#allocation5], 4294939648  ;;  %p373_p6 = scmp.lt.s32.totalorder %s3577_s10, 1  ;;  %v3398_v1 = vld [vmem:[%s4741_s1] ss:$0 sm:$0xff]  ;;  %vm431_vm0 = vcmask 523264  }
  0x13   : > { %v3399_v2 = vld [vmem:[%s4742_s2] ss:$0 sm:$0xff]  ;;  %v424_v36 = vld [vmem:[#allocation2 + $0x8] sm:$0xff]  ;;  %v425_v38 = vld [vmem:[#allocation2 + $0x10] sm:$0xff] }
  0x14   : > { %s4774_s10 = smov (!%p373_p6, %s3577_s10), 1  ;;  %v423_v34 = vld [vmem:[#allocation2] sm:$0xff]  ;;  %v515_v37 = vld [vmem:[#allocation2 + $0x48] sm:$0xff]  ;;  %v516_v39 = vld [vmem:[#allocation2 + $0x50] sm:$0xff] }
  0x15   : > { %s3331_s29 = sshll.u32 %s4774_s10, 6  ;;  %v514_v35 = vld [vmem:[#allocation2 + $0x40] sm:$0xff]  ;;  %v426_v40 = vld [vmem:[#allocation2 + $0x18] sm:$0xff]  ;;  %v428_v44 = vld [vmem:[#allocation2 + $0x28] sm:$0xff] }
  0x16   : > { %s3619_s13 = scalar_lea.vmem %s4740_s0, %s3331_s29  ;;  %v517_v41 = vld [vmem:[#allocation2 + $0x58] sm:$0xff]  ;;  %v427_v42 = vld [vmem:[#allocation2 + $0x20] sm:$0xff]  ;;  %v519_v45 = vld [vmem:[#allocation2 + $0x68] sm:$0xff]  ;;  %s4712_s23 = scalar_lea.vmem %s4749_s9, %s3331_s29 }
  0x17   : > { %v390_v0 = vld [vmem:[%s3619_s13 + $0x38] sm:$0xff]  ;;  %v389_v3 = vld [vmem:[%s3619_s13 + $0x30] sm:$0xff]  ;;  %v388_v6 = vld [vmem:[%s3619_s13 + $0x28] sm:$0xff] }
  0x18   : > { %v402_v4 = vmul.f32 %v3398_v1, %v390_v0  ;;  %v401_v5 = vmul.f32 %v3398_v1, %v389_v3  ;;  %v387_v7 = vld [vmem:[%s3619_s13 + $0x20] sm:$0xff]  ;;  %v386_v8 = vld [vmem:[%s3619_s13 + $0x18] sm:$0xff]  ;;  %v400_v9 = vmul.f32 %v3398_v1, %v388_v6  ;;  %v385_v11 = vld [vmem:[%s3619_s13 + $0x10] sm:$0xff] }
  0x19   : > { %v399_v10 = vmul.f32 %v3398_v1, %v387_v7  ;;  %v398_v14 = vmul.f32 %v3398_v1, %v386_v8  ;;  %v384_v16 = vld [vmem:[%s3619_s13 + $0x8] sm:$0xff]  ;;  %v397_v20 = vmul.f32 %v3398_v1, %v385_v11  ;;  %v383_v21 = vld [vmem:[%s3619_s13] sm:$0xff]  ;;  %v429_v46 = vld [vmem:[#allocation2 + $0x30] sm:$0xff] }
  0x1a   : > { %v414_v12 = vadd.f32 %v3399_v2, %v402_v4  ;;  %v413_v13 = vadd.f32 %v3399_v2, %v401_v5  ;;  %v412_v15 = vadd.f32 %v3399_v2, %v400_v9  ;;  %v396_v24 = vmul.f32 %v3398_v1, %v384_v16  ;;  %v518_v43 = vld [vmem:[#allocation2 + $0x60] sm:$0xff]  ;;  %v520_v47 = vld [vmem:[#allocation2 + $0x70] sm:$0xff]  ;;  %v430_v48 = vld [vmem:[#allocation2 + $0x38] sm:$0xff] }
  0x1b   : > { %v411_v19 = vadd.f32 %v3399_v2, %v399_v10  ;;  %v410_v23 = vadd.f32 %v3399_v2, %v398_v14  ;;  %v409_v26 = vadd.f32 %v3399_v2, %v397_v20  ;;  %v395_v27 = vmul.f32 %v3398_v1, %v383_v21  ;;  %v521_v49 = vld [vmem:[#allocation2 + $0x78] sm:$0xff]  ;;  %v687_v52 = vld [vmem:[#allocation2 + $0x80] sm:$0xff]  ;;  %v602_v53 = vld [vmem:[#allocation4 + $0xf0] sm:$0xff] }
  0x1c   : > { %v3634_v17 = vmax.f32 %v414_v12, 0.0  ;;  %v3636_v18 = vmax.f32 %v413_v13, 0.0  ;;  %v3641_v22 = vmax.f32 %v412_v15, 0.0  ;;  %v408_v29 = vadd.f32 %v3399_v2, %v396_v24  ;;  %v603_v50 = vld [vmem:[#allocation4 + $0xf8] sm:$0xff]  ;;  %v511_v54 = vld [vmem:[#allocation4 + $0x70] sm:$0xff]  ;;  %v601_v55 = vld [vmem:[#allocation4 + $0xe8] sm:$0xff] }
  0x1d   : > { %v3645_v25 = vmax.f32 %v411_v19, 0.0  ;;  %v3649_v28 = vmax.f32 %v410_v23, 0.0  ;;  %v3653_v30 = vmax.f32 %v409_v26, 0.0  ;;  %v407_v31 = vadd.f32 %v3399_v2, %v395_v27  ;;  %v512_v51 = vld [vmem:[#allocation4 + $0x78] sm:$0xff]  ;;  %604 = vmatpush.msra.mxu2 %v603_v50  ;;  %v510_v56 = vld [vmem:[#allocation4 + $0x68] sm:$0xff]  ;;  %v600_v57 = vld [vmem:[#allocation4 + $0xe0] sm:$0xff] }
  0x1e   : > { %464 = vmatpush.msra.mxu0 %v3634_v17  ;;  %554 = vmatpush.msra.mxu1 %v3634_v17  ;;  %v3657_v32 = vmax.f32 %v408_v29, 0.0  ;;  %v509_v58 = vld [vmem:[#allocation4 + $0x60] sm:$0xff]  ;;  %v599_v59 = vld [vmem:[#allocation4 + $0xd8] sm:$0xff]  ;;  %v688_v61 = vld [vmem:[#allocation2 + $0x88] sm:$0xff] }
  0x1f   : > { %v3661_v33 = vmax.f32 %v407_v31, 0.0  ;;  %645 = vmatpush.msra.mxu3 %v512_v51  ;;  %605 = vmatpush.msra.mxu2 %v602_v53  ;;  %v508_v60 = vld [vmem:[#allocation4 + $0x58] sm:$0xff]  ;;  %v598_v62 = vld [vmem:[#allocation4 + $0xd0] sm:$0xff]  ;;  %v597_v0 = vld [vmem:[#allocation4 + $0xc8] sm:$0xff] }
  0x20   : > { %465 = vmatpush.msra.mxu0 %v3636_v18  ;;  %555 = vmatpush.msra.mxu1 %v3636_v18  ;;  %v507_v63 = vld [vmem:[#allocation4 + $0x50] sm:$0xff]  ;;  %v506_v1 = vld [vmem:[#allocation4 + $0x48] sm:$0xff]  ;;  %v596_v2 = vld [vmem:[#allocation4 + $0xc0] sm:$0xff] }
  0x21   : > { %646 = vmatpush.msra.mxu3 %v511_v54  ;;  %606 = vmatpush.msra.mxu2 %v601_v55  ;;  %v505_v3 = vld [vmem:[#allocation4 + $0x40] sm:$0xff]  ;;  %v595_v4 = vld [vmem:[#allocation4 + $0xb8] sm:$0xff]  ;;  %v689_v6 = vld [vmem:[#allocation2 + $0x90] sm:$0xff] }
  0x22   : > { %466 = vmatpush.msra.mxu0 %v3641_v22  ;;  %556 = vmatpush.msra.mxu1 %v3641_v22  ;;  %v504_v5 = vld [vmem:[#allocation4 + $0x38] sm:$0xff]  ;;  %v594_v7 = vld [vmem:[#allocation4 + $0xb0] sm:$0xff]  ;;  %v593_v9 = vld [vmem:[#allocation4 + $0xa8] sm:$0xff] }
  0x23   : > { %647 = vmatpush.msra.mxu3 %v510_v56  ;;  %607 = vmatpush.msra.mxu2 %v600_v57  ;;  %v503_v8 = vld [vmem:[#allocation4 + $0x30] sm:$0xff]  ;;  %v502_v10 = vld [vmem:[#allocation4 + $0x28] sm:$0xff]  ;;  %v592_v11 = vld [vmem:[#allocation4 + $0xa0] sm:$0xff] }
  0x24   : > { %467 = vmatpush.msra.mxu0 %v3645_v25  ;;  %557 = vmatpush.msra.mxu1 %v3645_v25  ;;  %v501_v12 = vld [vmem:[#allocation4 + $0x20] sm:$0xff]  ;;  %v591_v13 = vld [vmem:[#allocation4 + $0x98] sm:$0xff]  ;;  %v590_v16 = vld [vmem:[#allocation4 + $0x90] sm:$0xff] }
  0x25   : > { %648 = vmatpush.msra.mxu3 %v509_v58  ;;  %608 = vmatpush.msra.mxu2 %v599_v59  ;;  %v500_v14 = vld [vmem:[#allocation4 + $0x18] sm:$0xff]  ;;  %v499_v19 = vld [vmem:[#allocation4 + $0x10] sm:$0xff]  ;;  %v589_v20 = vld [vmem:[#allocation4 + $0x88] sm:$0xff] }
  0x26   : > { %468 = vmatpush.msra.mxu0 %v3649_v28  ;;  %558 = vmatpush.msra.mxu1 %v3649_v28  ;;  %v690_v15 = vld [vmem:[#allocation2 + $0x98] sm:$0xff]  ;;  %v498_v21 = vld [vmem:[#allocation4 + $0x8] sm:$0xff]  ;;  %v588_v23 = vld [vmem:[#allocation4 + $0x80] sm:$0xff] }
  0x27   : > { %649 = vmatpush.msra.mxu3 %v508_v60  ;;  %609 = vmatpush.msra.mxu2 %v598_v62  ;;  %v497_v24 = vld [vmem:[#allocation4] sm:$0xff]  ;;  %v692_v27 = vld [vmem:[#allocation2 + $0xa8] sm:$0xff]  ;;  %v693_v29 = vld [vmem:[#allocation2 + $0xb0] sm:$0xff] }
  0x28   : > { %469 = vmatpush.msra.mxu0 %v3653_v30  ;;  %559 = vmatpush.msra.mxu1 %v3653_v30  ;;  %v691_v26 = vld [vmem:[#allocation2 + $0xa0] sm:$0xff]  ;;  %v694_v31 = vld [vmem:[#allocation2 + $0xb8] sm:$0xff]  ;;  %v766_v50 = vld [vmem:[#allocation4 + $0x128] sm:$0xff] }
  0x29   : > { %650 = vmatpush.msra.mxu3 %v507_v63  ;;  %610 = vmatpush.msra.mxu2 %v597_v0  ;;  %v765_v51 = vld [vmem:[#allocation4 + $0x120] sm:$0xff]  ;;  %v764_v54 = vld [vmem:[#allocation4 + $0x118] sm:$0xff]  ;;  %v763_v55 = vld [vmem:[#allocation4 + $0x110] sm:$0xff] }
  0x2a   : > { %470 = vmatpush.msra.mxu0 %v3657_v32  ;;  %560 = vmatpush.msra.mxu1 %v3657_v32  ;;  %v762_v56 = vld [vmem:[#allocation4 + $0x108] sm:$0xff]  ;;  %v761_v57 = vld [vmem:[#allocation4 + $0x100] sm:$0xff] }
  0x2b   : > { %651 = vmatpush.msra.mxu3 %v506_v1  ;;  %611 = vmatpush.msra.mxu2 %v596_v2  ;;  %v967_v62 = vld [vmem:[#allocation2 + $0x100] sm:$0xff]  ;;  %v968_v1 = vld [vmem:[#allocation2 + $0x108] sm:$0xff] }
  0x2c   : > { %471 = vmatpush.msra.mxu0 %v3661_v33  ;;  %561 = vmatpush.msra.mxu1 %v3661_v33 }
  0x2d   : > { %3057 = vmatmul.msk.f32.vlgmr.msra.gmra.mxu0 %vm431_vm0, %v423_v34  ;;  %3065 = vmatmul.msk.f32.vlgmr.msra.gmra.mxu1 %vm431_vm0, %v514_v35 }
  0x2e   : > { %727 = vmatpush.msrb.mxu0 %v3634_v17  ;;  %652 = vmatpush.msra.mxu3 %v505_v3 }
  0x2f   : > { %612 = vmatpush.msra.mxu2 %v595_v4  ;;  %v969_v4 = vld [vmem:[#allocation2 + $0x110] sm:$0xff] }
  0x30   : > { %728 = vmatpush.msrb.mxu0 %v3636_v18  ;;  %653 = vmatpush.msra.mxu3 %v504_v5  ;;  %v827_v5 = vld [vmem:[#allocation2 + $0xc0] sm:$0xff] }
  0x31   : > { %613 = vmatpush.msra.mxu2 %v594_v7  ;;  %v970_v7 = vld [vmem:[#allocation2 + $0x118] sm:$0xff] }
  0x32   : > { %729 = vmatpush.msrb.mxu0 %v3641_v22  ;;  %654 = vmatpush.msra.mxu3 %v503_v8  ;;  %v828_v8 = vld [vmem:[#allocation2 + $0xc8] sm:$0xff] }
  0x33   : > { %614 = vmatpush.msra.mxu2 %v593_v9 }
  0x34   : > { %730 = vmatpush.msrb.mxu0 %v3645_v25  ;;  %655 = vmatpush.msra.mxu3 %v502_v10  ;;  %v971_v10 = vld [vmem:[#allocation2 + $0x120] sm:$0xff] }
  0x35   : > { %3058 = vmatmul.msk.f32.gmra.mxu0 %vm431_vm0, %v424_v36  ;;  %3066 = vmatmul.msk.f32.gmra.mxu1 %vm431_vm0, %v515_v37  ;;  %v776_v36 = vld [vmem:[#allocation4 + $0x178] sm:$0xff]  ;;  %v775_v37 = vld [vmem:[#allocation4 + $0x170] sm:$0xff] }
  0x36   : > { %731 = vmatpush.msrb.mxu0 %v3649_v28  ;;  %615 = vmatpush.msra.mxu2 %v592_v11  ;;  %v829_v11 = vld [vmem:[#allocation2 + $0xd0] sm:$0xff] }
  0x37   : > { %656 = vmatpush.msra.mxu3 %v501_v12  ;;  %777 = vmatpush.msrb.mxu1 %v776_v36  ;;  %v913_v36 = vld [vmem:[#allocation4 + $0x1e0] sm:$0xff] }
  0x38   : > { %732 = vmatpush.msrb.mxu0 %v3653_v30  ;;  %616 = vmatpush.msra.mxu2 %v591_v13 }
  0x39   : > { %657 = vmatpush.msra.mxu3 %v500_v14  ;;  %778 = vmatpush.msrb.mxu1 %v775_v37  ;;  %v1247_v14 = vld [vmem:[#allocation2 + $0x180] sm:$0xff] }
  0x3a   : > { %733 = vmatpush.msrb.mxu0 %v3657_v32  ;;  %617 = vmatpush.msra.mxu2 %v590_v16 }
  0x3b   : > { %658 = vmatpush.msra.mxu3 %v499_v19  ;;  %v1248_v19 = vld [vmem:[#allocation2 + $0x188] sm:$0xff] }
  0x3c   : > { %734 = vmatpush.msrb.mxu0 %v3661_v33  ;;  %618 = vmatpush.msra.mxu2 %v589_v20  ;;  %v834_v20 = vld [vmem:[#allocation2 + $0xf8] sm:$0xff] }
  0x3d   : > { %3059 = vmatmul.msk.f32.gmra.mxu0 %vm431_vm0, %v425_v38  ;;  %3067 = vmatmul.msk.f32.gmra.mxu1 %vm431_vm0, %v516_v39  ;;  %v774_v38 = vld [vmem:[#allocation4 + $0x168] sm:$0xff]  ;;  %v773_v39 = vld [vmem:[#allocation4 + $0x160] sm:$0xff] }
  0x3e   : > { %1007 = vmatpush.msra.mxu0 %v3634_v17  ;;  %659 = vmatpush.msra.mxu3 %v498_v21 }
  0x3f   : > { %619 = vmatpush.msra.mxu2 %v588_v23  ;;  %779 = vmatpush.msrb.mxu1 %v774_v38  ;;  %v1249_v23 = vld [vmem:[#allocation2 + $0x190] sm:$0xff]  ;;  %v912_v38 = vld [vmem:[#allocation4 + $0x1d8] sm:$0xff] }
  0x40   : > { %1008 = vmatpush.msra.mxu0 %v3636_v18  ;;  %660 = vmatpush.msra.mxu3 %v497_v24  ;;  %v1107_v24 = vld [vmem:[#allocation2 + $0x140] sm:$0xff] }
  0x41   : > { %867 = vmatpush.msrb.mxu2 %v3634_v17  ;;  %780 = vmatpush.msrb.mxu1 %v773_v39  ;;  %v1056_v39 = vld [vmem:[#allocation4 + $0x278] sm:$0xff] }
  0x42   : > { %1009 = vmatpush.msra.mxu0 %v3641_v22 }
  0x43   : > { %868 = vmatpush.msrb.mxu2 %v3636_v18 }
  0x44   : > { %1010 = vmatpush.msra.mxu0 %v3645_v25 }
  0x45   : > { %3060 = vmatmul.msk.f32.gmra.mxu0 %vm431_vm0, %v426_v40  ;;  %3068 = vmatmul.msk.f32.gmra.mxu1 %vm431_vm0, %v517_v41 }
  0x46   : > { %1011 = vmatpush.msra.mxu0 %v3649_v28  ;;  %869 = vmatpush.msrb.mxu2 %v3641_v22 }
  0x48   : > { %1012 = vmatpush.msra.mxu0 %v3653_v30  ;;  %870 = vmatpush.msrb.mxu2 %v3645_v25 }
  0x4a   : > { %1013 = vmatpush.msra.mxu0 %v3657_v32  ;;  %871 = vmatpush.msrb.mxu2 %v3649_v28 }
  0x4c   : > { %1014 = vmatpush.msra.mxu0 %v3661_v33  ;;  %872 = vmatpush.msrb.mxu2 %v3653_v30 }
  0x4d   : > { %3061 = vmatmul.msk.f32.gmra.mxu0 %vm431_vm0, %v427_v42  ;;  %3069 = vmatmul.msk.f32.gmra.mxu1 %vm431_vm0, %v518_v43  ;;  %v772_v42 = vld [vmem:[#allocation4 + $0x158] sm:$0xff]  ;;  %v771_v43 = vld [vmem:[#allocation4 + $0x150] sm:$0xff] }
  0x4e   : > { %873 = vmatpush.msrb.mxu2 %v3657_v32  ;;  %781 = vmatpush.msrb.mxu1 %v772_v42  ;;  %v911_v42 = vld [vmem:[#allocation4 + $0x1d0] sm:$0xff] }
  0x50   : > { %874 = vmatpush.msrb.mxu2 %v3661_v33  ;;  %782 = vmatpush.msrb.mxu1 %v771_v43  ;;  %v1055_v43 = vld [vmem:[#allocation4 + $0x270] sm:$0xff] }
  0x55   : > { %3062 = vmatmul.msk.f32.gmra.mxu0 %vm431_vm0, %v428_v44  ;;  %3070 = vmatmul.msk.f32.gmra.mxu1 %vm431_vm0, %v519_v45  ;;  %v770_v44 = vld [vmem:[#allocation4 + $0x148] sm:$0xff]  ;;  %v769_v45 = vld [vmem:[#allocation4 + $0x140] sm:$0xff] }
  0x56   : > { %783 = vmatpush.msrb.mxu1 %v770_v44  ;;  %v910_v44 = vld [vmem:[#allocation4 + $0x1c8] sm:$0xff] }
  0x58   : > { %784 = vmatpush.msrb.mxu1 %v769_v45  ;;  %v1054_v45 = vld [vmem:[#allocation4 + $0x268] sm:$0xff] }
  0x5d   : > { %3063 = vmatmul.msk.f32.gmra.mxu0 %vm431_vm0, %v429_v46  ;;  %3071 = vmatmul.msk.f32.gmra.mxu1 %vm431_vm0, %v520_v47 }
  0x65   : > { %3064 = vmatmul.msk.f32.gmra.mxu0 %vm431_vm0, %v430_v48  ;;  %3072 = vmatmul.msk.f32.gmra.mxu1 %vm431_vm0, %v521_v49  ;;  %v768_v48 = vld [vmem:[#allocation4 + $0x138] sm:$0xff]  ;;  %v767_v49 = vld [vmem:[#allocation4 + $0x130] sm:$0xff] }
  0x66   : > { %785 = vmatpush.msrb.mxu1 %v768_v48 }
  0x68   : > { %786 = vmatpush.msrb.mxu1 %v767_v49  ;;  %v908_v49 = vld [vmem:[#allocation4 + $0x1b8] sm:$0xff] }
  0x6a   : > { %787 = vmatpush.msrb.mxu1 %v766_v50  ;;  %v1052_v50 = vld [vmem:[#allocation4 + $0x258] sm:$0xff] }
  0x6c   : > { %788 = vmatpush.msrb.mxu1 %v765_v51  ;;  %v1252_v51 = vld [vmem:[#allocation2 + $0x1a8] sm:$0xff] }
  0x6d   : > { %3073 = vmatmul.msk.f32.vlgmr.msrb.gmra.mxu0 %vm431_vm0, %v687_v52 }
  0x6e   : > { %1287 = vmatpush.msrb.mxu0 %v3634_v17  ;;  %789 = vmatpush.msrb.mxu1 %v764_v54  ;;  %v1051_v54 = vld [vmem:[#allocation4 + $0x250] sm:$0xff] }
  0x70   : > { %1288 = vmatpush.msrb.mxu0 %v3636_v18  ;;  %790 = vmatpush.msrb.mxu1 %v763_v55  ;;  %v906_v55 = vld [vmem:[#allocation4 + $0x1a8] sm:$0xff] }
  0x72   : > { %1289 = vmatpush.msrb.mxu0 %v3641_v22  ;;  %791 = vmatpush.msrb.mxu1 %v762_v56  ;;  %v1050_v56 = vld [vmem:[#allocation4 + $0x248] sm:$0xff] }
  0x74   : > { %1290 = vmatpush.msrb.mxu0 %v3645_v25  ;;  %792 = vmatpush.msrb.mxu1 %v761_v57  ;;  %v905_v57 = vld [vmem:[#allocation4 + $0x1a0] sm:$0xff] }
  0x75   : > { %3074 = vmatmul.msk.f32.gmra.mxu0 %vm431_vm0, %v688_v61 }
  0x76   : > { %1291 = vmatpush.msrb.mxu0 %v3649_v28  ;;  %1057 = vmatpush.msra.mxu1 %v1056_v39  ;;  %v1389_v39 = vld [vmem:[#allocation2 + $0x1d0] sm:$0xff] }
  0x78   : > { %1292 = vmatpush.msrb.mxu0 %v3653_v30  ;;  %1058 = vmatpush.msra.mxu1 %v1055_v43  ;;  %v1190_v43 = vld [vmem:[#allocation4 + $0x2c8] sm:$0xff] }
  0x7a   : > { %1293 = vmatpush.msrb.mxu0 %v3657_v32  ;;  %1059 = vmatpush.msra.mxu1 %v1054_v45  ;;  %v1189_v45 = vld [vmem:[#allocation4 + $0x2c0] sm:$0xff] }
  0x7c   : > { %1294 = vmatpush.msrb.mxu0 %v3661_v33 }
  0x7d   : > { %3075 = vmatmul.msk.f32.gmra.mxu0 %vm431_vm0, %v689_v6 }
  0x85   : > { %3076 = vmatmul.msk.f32.gmra.mxu0 %vm431_vm0, %v690_v15  ;;  %v833_v15 = vld [vmem:[#allocation2 + $0xf0] sm:$0xff] }
  0x8d   : > { %3077 = vmatmul.msk.f32.gmra.mxu0 %vm431_vm0, %v691_v26 }
  0x95   : > { %3078 = vmatmul.msk.f32.gmra.mxu0 %vm431_vm0, %v692_v27  ;;  %v916_v27 = vld [vmem:[#allocation4 + $0x1f8] sm:$0xff] }
  0x96   : > { %917 = vmatpush.msrb.mxu3 %v916_v27  ;;  %v1195_v27 = vld [vmem:[#allocation4 + $0x2f0] sm:$0xff] }
  0x9d   : > { %3079 = vmatmul.msk.f32.gmra.mxu0 %vm431_vm0, %v693_v29  ;;  %v1250_v29 = vld [vmem:[#allocation2 + $0x198] sm:$0xff] }
  0xa5   : > { %3080 = vmatmul.msk.f32.gmra.mxu0 %vm431_vm0, %v694_v31  ;;  %v915_v31 = vld [vmem:[#allocation4 + $0x1f0] sm:$0xff] }
  0xa6   : > { %918 = vmatpush.msrb.mxu3 %v915_v31  ;;  %v1193_v31 = vld [vmem:[#allocation4 + $0x2e0] sm:$0xff] }
  0xaa   : > { %v473_v34 = vpop.f32.mrf.mxu0  ;;  %v563_v35 = vpop.f32.mrf.mxu1 }
  0xab   : > { %620 = vmatmul.f32.vlgmr.msra.gmra.mxu2 %v563_v35  ;;  %661 = vmatmul.f32.vlgmr.msra.gmra.mxu3 %v473_v34  ;;  %v1108_v34 = vld [vmem:[#allocation2 + $0x148] sm:$0xff] }
  0xac   : > { %1147 = vmatpush.msra.mxu2 %v3634_v17  ;;  %v914_v35 = vld [vmem:[#allocation4 + $0x1e8] sm:$0xff] }
  0xad   : > { %3089 = vmatmul.msk.f32.vlgmr.msra.gmra.mxu0 %vm431_vm0, %v967_v62  ;;  %919 = vmatpush.msrb.mxu3 %v914_v35  ;;  %v1111_v62 = vld [vmem:[#allocation2 + $0x160] sm:$0xff] }
  0xae   : > { %1148 = vmatpush.msra.mxu2 %v3636_v18  ;;  %1567 = vmatpush.msra.mxu0 %v3634_v17 }
  0xaf   : > { %920 = vmatpush.msrb.mxu3 %v913_v36  ;;  %v1192_v36 = vld [vmem:[#allocation4 + $0x2d8] sm:$0xff] }
  0xb0   : > { %1149 = vmatpush.msra.mxu2 %v3641_v22  ;;  %1568 = vmatpush.msra.mxu0 %v3636_v18 }
  0xb1   : > { %921 = vmatpush.msrb.mxu3 %v912_v38  ;;  %v1336_v38 = vld [vmem:[#allocation4 + $0x378] sm:$0xff] }
  0xb2   : > { %v476_v40 = vpop.f32.mrf.mxu0  ;;  %v566_v41 = vpop.f32.mrf.mxu1  ;;  %1150 = vmatpush.msra.mxu2 %v3645_v25  ;;  %1569 = vmatpush.msra.mxu0 %v3641_v22 }
  0xb3   : > { %623 = vmatmul.f32.gmra.mxu2 %v566_v41  ;;  %664 = vmatmul.f32.gmra.mxu3 %v476_v40  ;;  %v1251_v40 = vld [vmem:[#allocation2 + $0x1a0] sm:$0xff]  ;;  %v1109_v41 = vld [vmem:[#allocation2 + $0x150] sm:$0xff] }
  0xb4   : > { %1151 = vmatpush.msra.mxu2 %v3649_v28  ;;  %1570 = vmatpush.msra.mxu0 %v3645_v25 }
  0xb5   : > { %3090 = vmatmul.msk.f32.gmra.mxu0 %vm431_vm0, %v968_v1  ;;  %922 = vmatpush.msrb.mxu3 %v911_v42  ;;  %v1047_v1 = vld [vmem:[#allocation4 + $0x230] sm:$0xff] }
  0xb6   : > { %1152 = vmatpush.msra.mxu2 %v3653_v30  ;;  %1571 = vmatpush.msra.mxu0 %v3649_v28  ;;  %v1335_v42 = vld [vmem:[#allocation4 + $0x370] sm:$0xff] }
  0xb7   : > { %923 = vmatpush.msrb.mxu3 %v910_v44  ;;  %v1334_v44 = vld [vmem:[#allocation4 + $0x368] sm:$0xff] }
  0xb8   : > { %1153 = vmatpush.msra.mxu2 %v3657_v32  ;;  %1572 = vmatpush.msra.mxu0 %v3653_v30 }
  0xba   : > { %v479_v46 = vpop.f32.mrf.mxu0  ;;  %v569_v47 = vpop.f32.mrf.mxu1  ;;  %1154 = vmatpush.msra.mxu2 %v3661_v33  ;;  %1573 = vmatpush.msra.mxu0 %v3657_v32 }
  0xbb   : > { %626 = vmatmul.f32.gmra.mxu2 %v569_v47  ;;  %667 = vmatmul.f32.gmra.mxu3 %v479_v46  ;;  %v909_v46 = vld [vmem:[#allocation4 + $0x1c0] sm:$0xff] }
  0xbc   : > { %1574 = vmatpush.msra.mxu0 %v3661_v33  ;;  %v1053_v47 = vld [vmem:[#allocation4 + $0x260] sm:$0xff]  ;;  %924 = vmatpush.msrb.mxu3 %v909_v46 }
  0xbd   : > { %3091 = vmatmul.msk.f32.gmra.mxu0 %vm431_vm0, %v969_v4  ;;  %1060 = vmatpush.msra.mxu1 %v1053_v47  ;;  %v901_v4 = vld [vmem:[#allocation4 + $0x180] sm:$0xff] }
  0xbe   : > { %925 = vmatpush.msrb.mxu3 %v908_v49  ;;  %v1333_v46 = vld [vmem:[#allocation4 + $0x360] sm:$0xff] }
  0xbf   : > { %1061 = vmatpush.msra.mxu1 %v1052_v50  ;;  %v1188_v50 = vld [vmem:[#allocation4 + $0x2b8] sm:$0xff] }
  0xc1   : > { %1062 = vmatpush.msra.mxu1 %v1051_v54  ;;  %v1187_v54 = vld [vmem:[#allocation4 + $0x2b0] sm:$0xff] }
  0xc2   : > { %v482_v52 = vpop.f32.mrf.mxu0  ;;  %v572_v53 = vpop.f32.mrf.mxu1 }
  0xc3   : > { %629 = vmatmul.f32.gmra.mxu2 %v572_v53  ;;  %670 = vmatmul.f32.gmra.mxu3 %v482_v52  ;;  %v1110_v52 = vld [vmem:[#allocation2 + $0x158] sm:$0xff]  ;;  %v907_v53 = vld [vmem:[#allocation4 + $0x1b0] sm:$0xff] }
  0xc4   : > { %926 = vmatpush.msrb.mxu3 %v907_v53  ;;  %1063 = vmatpush.msra.mxu1 %v1050_v56  ;;  %v1532_v53 = vld [vmem:[#allocation2 + $0x228] sm:$0xff] }
  0xc5   : > { %3092 = vmatmul.msk.f32.gmra.mxu0 %vm431_vm0, %v970_v7  ;;  %v1044_v7 = vld [vmem:[#allocation4 + $0x218] sm:$0xff]  ;;  %v1186_v56 = vld [vmem:[#allocation4 + $0x2a8] sm:$0xff] }
  0xc6   : > { %927 = vmatpush.msrb.mxu3 %v906_v55  ;;  %v1331_v55 = vld [vmem:[#allocation4 + $0x350] sm:$0xff] }
  0xc8   : > { %928 = vmatpush.msrb.mxu3 %v905_v57  ;;  %v1330_v57 = vld [vmem:[#allocation4 + $0x348] sm:$0xff] }
  0xca   : > { %v485_v58 = vpop.f32.mrf.mxu0  ;;  %v575_v59 = vpop.f32.mrf.mxu1 }
  0xcb   : > { %632 = vmatmul.f32.gmra.mxu2 %v575_v59  ;;  %673 = vmatmul.f32.gmra.mxu3 %v485_v58  ;;  %v1049_v58 = vld [vmem:[#allocation4 + $0x240] sm:$0xff] }
  0xcc   : > { %1064 = vmatpush.msra.mxu1 %v1049_v58  ;;  %v1185_v58 = vld [vmem:[#allocation4 + $0x2a0] sm:$0xff] }
  0xcd   : > { %3093 = vmatmul.msk.f32.gmra.mxu0 %vm431_vm0, %v971_v10  ;;  %v1043_v10 = vld [vmem:[#allocation4 + $0x210] sm:$0xff] }
  0xd2   : > { %v488_v60 = vpop.f32.mrf.mxu0  ;;  %v578_v61 = vpop.f32.mrf.mxu1 }
  0xd3   : > { %635 = vmatmul.f32.gmra.mxu2 %v578_v61  ;;  %676 = vmatmul.f32.gmra.mxu3 %v488_v60  ;;  %v904_v60 = vld [vmem:[#allocation4 + $0x198] sm:$0xff] }
  0xd4   : > { %v1048_v61 = vld [vmem:[#allocation4 + $0x238] sm:$0xff]  ;;  %929 = vmatpush.msrb.mxu3 %v904_v60  ;;  %v1329_v60 = vld [vmem:[#allocation4 + $0x340] sm:$0xff] }
  0xd5   : > { %1065 = vmatpush.msra.mxu1 %v1048_v61 }
  0xd7   : > { %1066 = vmatpush.msra.mxu1 %v1047_v1  ;;  %v1328_v1 = vld [vmem:[#allocation4 + $0x338] sm:$0xff] }
  0xda   : > { %v491_v63 = vpop.f32.mrf.mxu0  ;;  %v581_v0 = vpop.f32.mrf.mxu1 }
  0xdb   : > { %638 = vmatmul.f32.gmra.mxu2 %v581_v0  ;;  %679 = vmatmul.f32.gmra.mxu3 %v491_v63  ;;  %v1253_v63 = vld [vmem:[#allocation2 + $0x1b0] sm:$0xff] }
  0xdc   : > { %v903_v0 = vld [vmem:[#allocation4 + $0x190] sm:$0xff] }
  0xdd   : > { %930 = vmatpush.msrb.mxu3 %v903_v0  ;;  %v1184_v0 = vld [vmem:[#allocation4 + $0x298] sm:$0xff] }
  0xe2   : > { %v494_v2 = vpop.f32.mrf.mxu0  ;;  %v584_v3 = vpop.f32.mrf.mxu1 }
  0xe3   : > { %641 = vmatmul.f32.gmra.mxu2 %v584_v3  ;;  %682 = vmatmul.f32.gmra.mxu3 %v494_v2  ;;  %v902_v2 = vld [vmem:[#allocation4 + $0x188] sm:$0xff] }
  0xe4   : > { %v1046_v3 = vld [vmem:[#allocation4 + $0x228] sm:$0xff]  ;;  %931 = vmatpush.msrb.mxu3 %v902_v2  ;;  %v1533_v2 = vld [vmem:[#allocation2 + $0x230] sm:$0xff] }
  0xe5   : > { %1067 = vmatpush.msra.mxu1 %v1046_v3  ;;  %v1391_v3 = vld [vmem:[#allocation2 + $0x1e0] sm:$0xff] }
  0xe6   : > { %932 = vmatpush.msrb.mxu3 %v901_v4  ;;  %v1183_v4 = vld [vmem:[#allocation4 + $0x290] sm:$0xff] }
  0xea   : > { %v736_v6 = vpop.f32.mrf.mxu0 }
  0xeb   : > { %793 = vmatmul.f32.vlgmr.msrb.gmra.mxu1 %v736_v6  ;;  %3081 = vmatmul.msk.f32.vlgmr.msrb.gmra.mxu2 %vm431_vm0, %v827_v5  ;;  %v1045_v5 = vld [vmem:[#allocation4 + $0x220] sm:$0xff] }
  0xec   : > { %1427 = vmatpush.msrb.mxu2 %v3634_v17  ;;  %1068 = vmatpush.msra.mxu1 %v1045_v5  ;;  %v1327_v5 = vld [vmem:[#allocation4 + $0x330] sm:$0xff] }
  0xee   : > { %1428 = vmatpush.msrb.mxu2 %v3636_v18  ;;  %v972_v18 = vld [vmem:[#allocation2 + $0x128] sm:$0xff]  ;;  %1069 = vmatpush.msra.mxu1 %v1044_v7 }
  0xef   : > { %3094 = vmatmul.msk.f32.gmra.mxu0 %vm431_vm0, %v972_v18  ;;  %v1182_v7 = vld [vmem:[#allocation4 + $0x288] sm:$0xff] }
  0xf0   : > { %1429 = vmatpush.msrb.mxu2 %v3641_v22  ;;  %v830_v22 = vld [vmem:[#allocation2 + $0xd8] sm:$0xff]  ;;  %1070 = vmatpush.msra.mxu1 %v1043_v10  ;;  %v1325_v10 = vld [vmem:[#allocation4 + $0x320] sm:$0xff] }
  0xf2   : > { %v739_v9 = vpop.f32.mrf.mxu0  ;;  %1430 = vmatpush.msrb.mxu2 %v3645_v25 }
  0xf3   : > { %796 = vmatmul.f32.gmra.mxu1 %v739_v9  ;;  %3082 = vmatmul.msk.f32.gmra.mxu2 %vm431_vm0, %v828_v8  ;;  %v1112_v8 = vld [vmem:[#allocation2 + $0x168] sm:$0xff]  ;;  %v1254_v9 = vld [vmem:[#allocation2 + $0x1b8] sm:$0xff] }
  0xf4   : > { %1431 = vmatpush.msrb.mxu2 %v3649_v28  ;;  %v973_v28 = vld [vmem:[#allocation2 + $0x130] sm:$0xff] }
  0xf6   : > { %1432 = vmatpush.msrb.mxu2 %v3653_v30  ;;  %v831_v30 = vld [vmem:[#allocation2 + $0xe0] sm:$0xff] }
  0xf7   : > { %3095 = vmatmul.msk.f32.gmra.mxu0 %vm431_vm0, %v973_v28  ;;  %v1527_v28 = vld [vmem:[#allocation2 + $0x200] sm:$0xff] }
  0xf8   : > { %1433 = vmatpush.msrb.mxu2 %v3657_v32  ;;  %v974_v32 = vld [vmem:[#allocation2 + $0x138] sm:$0xff] }
  0xfa   : > { %v742_v17 = vpop.f32.mrf.mxu0  ;;  %1434 = vmatpush.msrb.mxu2 %v3661_v33  ;;  %v832_v33 = vld [vmem:[#allocation2 + $0xe8] sm:$0xff] }
  0xfb   : > { %799 = vmatmul.f32.gmra.mxu1 %v742_v17  ;;  %3083 = vmatmul.msk.f32.gmra.mxu2 %vm431_vm0, %v829_v11  ;;  %v1042_v11 = vld [vmem:[#allocation4 + $0x208] sm:$0xff]  ;;  %v1041_v17 = vld [vmem:[#allocation4 + $0x200] sm:$0xff] }
  0xfc   : > { %1071 = vmatpush.msra.mxu1 %v1042_v11 }
  0xfe   : > { %1072 = vmatpush.msra.mxu1 %v1041_v17 }
  0xff   : > { %3096 = vmatmul.msk.f32.gmra.mxu0 %vm431_vm0, %v974_v32  ;;  %v1114_v32 = vld [vmem:[#allocation2 + $0x178] sm:$0xff] }
 0x100   : > { %1337 = vmatpush.msrb.mxu1 %v1336_v38 }
 0x102   : > { %v745_v25 = vpop.f32.mrf.mxu0  ;;  %1338 = vmatpush.msrb.mxu1 %v1335_v42  ;;  %v1474_v42 = vld [vmem:[#allocation4 + $0x3e8] sm:$0xff] }
 0x103   : > { %802 = vmatmul.f32.gmra.mxu1 %v745_v25  ;;  %3084 = vmatmul.msk.f32.gmra.mxu2 %vm431_vm0, %v830_v22  ;;  %v1113_v25 = vld [vmem:[#allocation2 + $0x170] sm:$0xff] }
 0x104   : > { %1339 = vmatpush.msrb.mxu1 %v1334_v44 }
 0x106   : > { %1340 = vmatpush.msrb.mxu1 %v1333_v46  ;;  %v1472_v46 = vld [vmem:[#allocation4 + $0x3d8] sm:$0xff] }
 0x107   : > { %3105 = vmatmul.msk.f32.vlgmr.msrb.gmra.mxu0 %vm431_vm0, %v1247_v14 }
 0x10a   : > { %v748_v12 = vpop.f32.mrf.mxu0 }
 0x10b   : > { %805 = vmatmul.f32.gmra.mxu1 %v748_v12  ;;  %3085 = vmatmul.msk.f32.gmra.mxu2 %vm431_vm0, %v831_v30 }
 0x10f   : > { %3106 = vmatmul.msk.f32.gmra.mxu0 %vm431_vm0, %v1248_v19 }
 0x112   : > { %v751_v13 = vpop.f32.mrf.mxu0 }
 0x113   : > { %808 = vmatmul.f32.gmra.mxu1 %v751_v13  ;;  %3086 = vmatmul.msk.f32.gmra.mxu2 %vm431_vm0, %v832_v33  ;;  %v1528_v33 = vld [vmem:[#allocation2 + $0x208] sm:$0xff] }
 0x117   : > { %3107 = vmatmul.msk.f32.gmra.mxu0 %vm431_vm0, %v1249_v23  ;;  %v1388_v23 = vld [vmem:[#allocation2 + $0x1c8] sm:$0xff] }
 0x11a   : > { %v754_v16 = vpop.f32.mrf.mxu0 }
 0x11b   : > { %811 = vmatmul.f32.gmra.mxu1 %v754_v16  ;;  %3087 = vmatmul.msk.f32.gmra.mxu2 %vm431_vm0, %v833_v15  ;;  %v1387_v15 = vld [vmem:[#allocation2 + $0x1c0] sm:$0xff]  ;;  %v1529_v16 = vld [vmem:[#allocation2 + $0x210] sm:$0xff] }
 0x11f   : > { %3108 = vmatmul.msk.f32.gmra.mxu0 %vm431_vm0, %v1250_v29  ;;  %v1194_v29 = vld [vmem:[#allocation4 + $0x2e8] sm:$0xff] }
 0x122   : > { %v757_v21 = vpop.f32.mrf.mxu0 }
 0x123   : > { %814 = vmatmul.f32.gmra.mxu1 %v757_v21  ;;  %3088 = vmatmul.msk.f32.gmra.mxu2 %vm431_vm0, %v834_v20  ;;  %v1196_v21 = vld [vmem:[#allocation4 + $0x2f8] sm:$0xff] }
 0x124   : > { %1197 = vmatpush.msra.mxu3 %v1196_v21 }
 0x126   : > { %1198 = vmatpush.msra.mxu3 %v1195_v27 }
 0x127   : > { %3109 = vmatmul.msk.f32.gmra.mxu0 %vm431_vm0, %v1251_v40  ;;  %v1531_v40 = vld [vmem:[#allocation2 + $0x220] sm:$0xff] }
 0x128   : > { %1199 = vmatpush.msra.mxu3 %v1194_v29 }
 0x12a   : > { %v1016_v22 = vpop.f32.mrf.mxu0  ;;  %1200 = vmatpush.msra.mxu3 %v1193_v31 }
 0x12b   : > { %3097 = vmatmul.msk.f32.vlgmr.msra.gmra.mxu2 %vm431_vm0, %v1107_v24  ;;  %1073 = vmatmul.f32.vlgmr.msra.gmra.mxu1 %v1016_v22  ;;  %v1530_v24 = vld [vmem:[#allocation2 + $0x218] sm:$0xff] }
 0x12c   : > { %1201 = vmatpush.msra.mxu3 %v1192_v36  ;;  %v1324_v22 = vld [vmem:[#allocation4 + $0x318] sm:$0xff] }
 0x12e   : > { %v3767_v26 = vpop.f32.mrf.mxu2  ;;  %v3817_v27 = vpop.f32.mrf.mxu3 }
 0x12f   : > { %3110 = vmatmul.msk.f32.gmra.mxu0 %vm431_vm0, %v1252_v51  ;;  %v1332_v51 = vld [vmem:[#allocation4 + $0x358] sm:$0xff] }
 0x130   : > { %1341 = vmatpush.msrb.mxu1 %v1332_v51  ;;  %v1615_v51 = vld [vmem:[#allocation4 + $0x470] sm:$0xff] }
 0x132   : > { %v1019_v12 = vpop.f32.mrf.mxu0  ;;  %1342 = vmatpush.msrb.mxu1 %v1331_v55  ;;  %v1469_v55 = vld [vmem:[#allocation4 + $0x3c0] sm:$0xff] }
 0x133   : > { %3098 = vmatmul.msk.f32.gmra.mxu2 %vm431_vm0, %v1108_v34  ;;  %1076 = vmatmul.f32.gmra.mxu1 %v1019_v12  ;;  %v1323_v12 = vld [vmem:[#allocation4 + $0x310] sm:$0xff] }
 0x134   : > { %1343 = vmatpush.msrb.mxu1 %v1330_v57 }
 0x136   : > { %v3771_v37 = vpop.f32.mrf.mxu2  ;;  %1344 = vmatpush.msrb.mxu1 %v1329_v60  ;;  %v1468_v60 = vld [vmem:[#allocation4 + $0x3b8] sm:$0xff] }
 0x137   : > { %3111 = vmatmul.msk.f32.gmra.mxu0 %vm431_vm0, %v1253_v63 }
 0x138   : > { %1345 = vmatpush.msrb.mxu1 %v1328_v1  ;;  %v1466_v1 = vld [vmem:[#allocation4 + $0x3a8] sm:$0xff] }
 0x13a   : > { %v1022_v14 = vpop.f32.mrf.mxu0  ;;  %1346 = vmatpush.msrb.mxu1 %v1327_v5  ;;  %v1465_v5 = vld [vmem:[#allocation4 + $0x3a0] sm:$0xff] }
 0x13b   : > { %3099 = vmatmul.msk.f32.gmra.mxu2 %vm431_vm0, %v1109_v41  ;;  %1079 = vmatmul.f32.gmra.mxu1 %v1022_v14  ;;  %v1191_v41 = vld [vmem:[#allocation4 + $0x2d0] sm:$0xff]  ;;  %v1321_v14 = vld [vmem:[#allocation4 + $0x300] sm:$0xff] }
 0x13c   : > { %1202 = vmatpush.msra.mxu3 %v1191_v41  ;;  %v1475_v41 = vld [vmem:[#allocation4 + $0x3f0] sm:$0xff] }
 0x13e   : > { %v3775_v48 = vpop.f32.mrf.mxu2  ;;  %1203 = vmatpush.msra.mxu3 %v1190_v43  ;;  %v1473_v43 = vld [vmem:[#allocation4 + $0x3e0] sm:$0xff] }
 0x13f   : > { %3112 = vmatmul.msk.f32.gmra.mxu0 %vm431_vm0, %v1254_v9  ;;  %v1181_v9 = vld [vmem:[#allocation4 + $0x280] sm:$0xff] }
 0x140   : > { %1204 = vmatpush.msra.mxu3 %v1189_v45 }
 0x142   : > { %v1025_v20 = vpop.f32.mrf.mxu0  ;;  %1205 = vmatpush.msra.mxu3 %v1188_v50 }
 0x143   : > { %3100 = vmatmul.msk.f32.gmra.mxu2 %vm431_vm0, %v1110_v52  ;;  %1082 = vmatmul.f32.gmra.mxu1 %v1025_v20  ;;  %v1390_v52 = vld [vmem:[#allocation2 + $0x1d8] sm:$0xff] }
 0x144   : > { %1206 = vmatpush.msra.mxu3 %v1187_v54  ;;  %v1614_v54 = vld [vmem:[#allocation4 + $0x468] sm:$0xff] }
 0x146   : > { %v3779_v59 = vpop.f32.mrf.mxu2  ;;  %1207 = vmatpush.msra.mxu3 %v1186_v56  ;;  %v1613_v56 = vld [vmem:[#allocation4 + $0x460] sm:$0xff] }
 0x147   : > { %3121 = vmatmul.msk.f32.vlgmr.msra.gmra.mxu0 %vm431_vm0, %v1527_v28  ;;  %v1392_v28 = vld [vmem:[#allocation2 + $0x1e8] sm:$0xff] }
 0x148   : > { %1208 = vmatpush.msra.mxu3 %v1185_v58 }
 0x14a   : > { %v1028_v35 = vpop.f32.mrf.mxu0  ;;  %1209 = vmatpush.msra.mxu3 %v1184_v0  ;;  %v1611_v0 = vld [vmem:[#allocation4 + $0x450] sm:$0xff] }
 0x14b   : > { %3101 = vmatmul.msk.f32.gmra.mxu2 %vm431_vm0, %v1111_v62  ;;  %1085 = vmatmul.f32.gmra.mxu1 %v1028_v35  ;;  %v3821_v35 = vpop.f32.mrf.mxu3 }
 0x14c   : > { %1210 = vmatpush.msra.mxu3 %v1183_v4 }
 0x14e   : > { %v3783_v6 = vpop.f32.mrf.mxu2  ;;  %1211 = vmatpush.msra.mxu3 %v1182_v7  ;;  %v1609_v7 = vld [vmem:[#allocation4 + $0x440] sm:$0xff] }
 0x14f   : > { %3122 = vmatmul.msk.f32.gmra.mxu0 %vm431_vm0, %v1528_v33  ;;  %v1322_v33 = vld [vmem:[#allocation4 + $0x308] sm:$0xff] }
 0x150   : > { %1212 = vmatpush.msra.mxu3 %v1181_v9 }
 0x153   : > { %3102 = vmatmul.msk.f32.gmra.mxu2 %vm431_vm0, %v1112_v8  ;;  %v1326_v8 = vld [vmem:[#allocation4 + $0x328] sm:$0xff]  ;;  %v3825_v50 = vpop.f32.mrf.mxu3 }
 0x154   : > { %1347 = vmatpush.msrb.mxu1 %v1326_v8 }
 0x156   : > { %v3787_v18 = vpop.f32.mrf.mxu2  ;;  %1348 = vmatpush.msrb.mxu1 %v1325_v10  ;;  %v1464_v10 = vld [vmem:[#allocation4 + $0x398] sm:$0xff] }
 0x157   : > { %3123 = vmatmul.msk.f32.gmra.mxu0 %vm431_vm0, %v1529_v16 }
 0x158   : > { %1349 = vmatpush.msrb.mxu1 %v1324_v22  ;;  %v1607_v22 = vld [vmem:[#allocation4 + $0x430] sm:$0xff] }
 0x15a   : > { %1350 = vmatpush.msrb.mxu1 %v1323_v12 }
 0x15b   : > { %3103 = vmatmul.msk.f32.gmra.mxu2 %vm431_vm0, %v1113_v25  ;;  %v1534_v25 = vld [vmem:[#allocation2 + $0x238] sm:$0xff] }
 0x15c   : > { %1351 = vmatpush.msrb.mxu1 %v1322_v33 }
 0x15e   : > { %v3791_v30 = vpop.f32.mrf.mxu2  ;;  %1352 = vmatpush.msrb.mxu1 %v1321_v14  ;;  %v1461_v14 = vld [vmem:[#allocation4 + $0x380] sm:$0xff] }
 0x15f   : > { %3124 = vmatmul.msk.f32.gmra.mxu0 %vm431_vm0, %v1530_v24  ;;  %v1394_v24 = vld [vmem:[#allocation2 + $0x1f8] sm:$0xff] }
 0x163   : > { %3104 = vmatmul.msk.f32.gmra.mxu2 %vm431_vm0, %v1114_v32 }
 0x166   : > { %v3795_v13 = vpop.f32.mrf.mxu2 }
 0x167   : > { %3125 = vmatmul.msk.f32.gmra.mxu0 %vm431_vm0, %v1531_v40  ;;  %v1476_v40 = vld [vmem:[#allocation4 + $0x3f8] sm:$0xff] }
 0x168   : > { %v3805_v62 = vpop.f32.mrf.mxu1 }
 0x16b   : > { %3113 = vmatmul.msk.f32.vlgmr.msrb.gmra.mxu2 %vm431_vm0, %v1387_v15 }
 0x16c   : > { %v1031_v49 = vpop.f32.mrf.mxu0 }
 0x16d   : > { %1088 = vmatmul.f32.gmra.mxu1 %v1031_v49  ;;  %v1471_v49 = vld [vmem:[#allocation4 + $0x3d0] sm:$0xff] }
 0x16e   : > { %v876_v19 = vpop.f32.mrf.mxu2 }
 0x16f   : > { %933 = vmatmul.f32.vlgmr.msrb.gmra.mxu3 %v876_v19  ;;  %3126 = vmatmul.msk.f32.gmra.mxu0 %vm431_vm0, %v1532_v53  ;;  %v1393_v19 = vld [vmem:[#allocation2 + $0x1f0] sm:$0xff]  ;;  %v1470_v53 = vld [vmem:[#allocation4 + $0x3c8] sm:$0xff] }
 0x170   : > { %v3809_v32 = vpop.f32.mrf.mxu1  ;;  %1477 = vmatpush.msrb.mxu3 %v1476_v40 }
 0x172   : > { %1478 = vmatpush.msrb.mxu3 %v1475_v41 }
 0x173   : > { %3114 = vmatmul.msk.f32.gmra.mxu2 %vm431_vm0, %v1388_v23 }
 0x174   : > { %v1034_v63 = vpop.f32.mrf.mxu0  ;;  %1479 = vmatpush.msrb.mxu3 %v1474_v42 }
 0x175   : > { %1091 = vmatmul.f32.gmra.mxu1 %v1034_v63  ;;  %v1467_v63 = vld [vmem:[#allocation4 + $0x3b0] sm:$0xff] }
 0x176   : > { %v879_v34 = vpop.f32.mrf.mxu2  ;;  %1480 = vmatpush.msrb.mxu3 %v1473_v43 }
 0x177   : > { %936 = vmatmul.f32.gmra.mxu3 %v879_v34  ;;  %3127 = vmatmul.msk.f32.gmra.mxu0 %vm431_vm0, %v1533_v2  ;;  %v3829_v2 = vpop.f32.mrf.mxu3 }
 0x178   : > { %v3813_v20 = vpop.f32.mrf.mxu1  ;;  %1481 = vmatpush.msrb.mxu3 %v1472_v46 }
 0x17a   : > { %1482 = vmatpush.msrb.mxu3 %v1471_v49 }
 0x17b   : > { %3115 = vmatmul.msk.f32.gmra.mxu2 %vm431_vm0, %v1389_v39 }
 0x17c   : > { %v1037_v17 = vpop.f32.mrf.mxu0  ;;  %1483 = vmatpush.msrb.mxu3 %v1470_v53 }
 0x17d   : > { %1094 = vmatmul.f32.gmra.mxu1 %v1037_v17  ;;  %v1463_v17 = vld [vmem:[#allocation4 + $0x390] sm:$0xff] }
 0x17e   : > { %v882_v47 = vpop.f32.mrf.mxu2  ;;  %1484 = vmatpush.msrb.mxu3 %v1469_v55 }
 0x17f   : > { %939 = vmatmul.f32.gmra.mxu3 %v882_v47  ;;  %3128 = vmatmul.msk.f32.gmra.mxu0 %vm431_vm0, %v1534_v25  ;;  %v1616_v47 = vld [vmem:[#allocation4 + $0x478] sm:$0xff]  ;;  %v1462_v25 = vld [vmem:[#allocation4 + $0x388] sm:$0xff]  ;;  %v3833_v12 = vpop.f32.mrf.mxu3 }
 0x180   : > { %v3819_v29 = vpop.f32.mrf.mxu1  ;;  %1617 = vmatpush.msra.mxu1 %v1616_v47  ;;  %1485 = vmatpush.msrb.mxu3 %v1468_v60 }
 0x182   : > { %1618 = vmatpush.msra.mxu1 %v1615_v51  ;;  %1486 = vmatpush.msrb.mxu3 %v1467_v63 }
 0x183   : > { %3116 = vmatmul.msk.f32.gmra.mxu2 %vm431_vm0, %v1390_v52 }
 0x184   : > { %v1296_v16 = vpop.f32.mrf.mxu0  ;;  %1619 = vmatpush.msra.mxu1 %v1614_v54  ;;  %1487 = vmatpush.msrb.mxu3 %v1466_v1 }
 0x185   : > { %1353 = vmatmul.f32.vlgmr.msrb.gmra.mxu1 %v1296_v16 }
 0x186   : > { %v885_v61 = vpop.f32.mrf.mxu2  ;;  %1620 = vmatpush.msra.mxu1 %v1613_v56  ;;  %1488 = vmatpush.msrb.mxu3 %v1465_v5 }
 0x187   : > { %942 = vmatmul.f32.gmra.mxu3 %v885_v61  ;;  %v1612_v61 = vld [vmem:[#allocation4 + $0x458] sm:$0xff] }
 0x188   : > { %v3823_v38 = vpop.f32.mrf.mxu1  ;;  %1621 = vmatpush.msra.mxu1 %v1612_v61  ;;  %1489 = vmatpush.msrb.mxu3 %v1464_v10 }
 0x18a   : > { %1622 = vmatpush.msra.mxu1 %v1611_v0  ;;  %1490 = vmatpush.msrb.mxu3 %v1463_v17 }
 0x18b   : > { %3117 = vmatmul.msk.f32.gmra.mxu2 %vm431_vm0, %v1391_v3  ;;  %v1610_v3 = vld [vmem:[#allocation4 + $0x448] sm:$0xff] }
 0x18c   : > { %v1299_v23 = vpop.f32.mrf.mxu0  ;;  %1623 = vmatpush.msra.mxu1 %v1610_v3  ;;  %1491 = vmatpush.msrb.mxu3 %v1462_v25 }
 0x18d   : > { %1356 = vmatmul.f32.gmra.mxu1 %v1299_v23  ;;  %v1603_v23 = vld [vmem:[#allocation4 + $0x410] sm:$0xff] }
 0x18e   : > { %v888_v11 = vpop.f32.mrf.mxu2  ;;  %1624 = vmatpush.msra.mxu1 %v1609_v7  ;;  %1492 = vmatpush.msrb.mxu3 %v1461_v14 }
 0x18f   : > { %945 = vmatmul.f32.gmra.mxu3 %v888_v11  ;;  %v1608_v11 = vld [vmem:[#allocation4 + $0x438] sm:$0xff] }
 0x190   : > { %v3827_v52 = vpop.f32.mrf.mxu1  ;;  %1625 = vmatpush.msra.mxu1 %v1608_v11 }
 0x192   : > { %1626 = vmatpush.msra.mxu1 %v1607_v22 }
 0x193   : > { %3118 = vmatmul.msk.f32.gmra.mxu2 %vm431_vm0, %v1392_v28  ;;  %v1606_v28 = vld [vmem:[#allocation4 + $0x428] sm:$0xff] }
 0x194   : > { %v1302_v34 = vpop.f32.mrf.mxu0  ;;  %1627 = vmatpush.msra.mxu1 %v1606_v28 }
 0x195   : > { %1359 = vmatmul.f32.gmra.mxu1 %v1302_v34  ;;  %v1601_v34 = vld [vmem:[#allocation4 + $0x400] sm:$0xff] }
 0x196   : > { %v891_v15 = vpop.f32.mrf.mxu2 }
 0x197   : > { %948 = vmatmul.f32.gmra.mxu3 %v891_v15  ;;  %v1605_v15 = vld [vmem:[#allocation4 + $0x420] sm:$0xff] }
 0x198   : > { %v3831_v4 = vpop.f32.mrf.mxu1  ;;  %1628 = vmatpush.msra.mxu1 %v1605_v15 }
 0x19b   : > { %3119 = vmatmul.msk.f32.gmra.mxu2 %vm431_vm0, %v1393_v19 }
 0x19c   : > { %v1305_v39 = vpop.f32.mrf.mxu0 }
 0x19d   : > { %1362 = vmatmul.f32.gmra.mxu1 %v1305_v39 }
 0x19e   : > { %v894_v21 = vpop.f32.mrf.mxu2 }
 0x19f   : > { %951 = vmatmul.f32.gmra.mxu3 %v894_v21  ;;  %v1604_v21 = vld [vmem:[#allocation4 + $0x418] sm:$0xff] }
 0x1a0   : > { %v3835_v33 = vpop.f32.mrf.mxu1  ;;  %1629 = vmatpush.msra.mxu1 %v1604_v21 }
 0x1a2   : > { %1630 = vmatpush.msra.mxu1 %v1603_v23 }
 0x1a3   : > { %3120 = vmatmul.msk.f32.gmra.mxu2 %vm431_vm0, %v1394_v24  ;;  %v1602_v24 = vld [vmem:[#allocation4 + $0x408] sm:$0xff] }
 0x1a4   : > { %v1308_v45 = vpop.f32.mrf.mxu0  ;;  %1631 = vmatpush.msra.mxu1 %v1602_v24 }
 0x1a5   : > { %1365 = vmatmul.f32.gmra.mxu1 %v1308_v45 }
 0x1a6   : > { %v897_v31 = vpop.f32.mrf.mxu2  ;;  %1632 = vmatpush.msra.mxu1 %v1601_v34 }
 0x1a7   : > { %954 = vmatmul.f32.gmra.mxu3 %v897_v31 }
 0x1a8   : > { %v3837_v31 = vpop.f32.mrf.mxu1 }
 0x1ac   : > { %v1311_v58 = vpop.f32.mrf.mxu0 }
 0x1ad   : > { %1368 = vmatmul.f32.gmra.mxu1 %v1311_v58 }
 0x1ae   : > { %v1156_v36 = vpop.f32.mrf.mxu2 }
 0x1af   : > { %1213 = vmatmul.f32.vlgmr.msra.gmra.mxu3 %v1156_v36  ;;  %v3839_v36 = vpop.f32.mrf.mxu3 }
 0x1b0   : > { %v3841_v41 = vpop.f32.mrf.mxu1 }
 0x1b4   : > { %v1314_v9 = vpop.f32.mrf.mxu0 }
 0x1b5   : > { %1371 = vmatmul.f32.gmra.mxu1 %v1314_v9 }
 0x1b6   : > { %v1159_v44 = vpop.f32.mrf.mxu2 }
 0x1b7   : > { %1216 = vmatmul.f32.gmra.mxu3 %v1159_v44  ;;  %v3843_v44 = vpop.f32.mrf.mxu3 }
 0x1b8   : > { %v3845_v45 = vpop.f32.mrf.mxu1 }
 0x1bc   : > { %v1317_v19 = vpop.f32.mrf.mxu0 }
 0x1bd   : > { %1374 = vmatmul.f32.gmra.mxu1 %v1317_v19 }
 0x1be   : > { %v1162_v57 = vpop.f32.mrf.mxu2 }
 0x1bf   : > { %1219 = vmatmul.f32.gmra.mxu3 %v1162_v57  ;;  %v3847_v49 = vpop.f32.mrf.mxu3 }
 0x1c0   : > { %v3849_v51 = vpop.f32.mrf.mxu1 }
 0x1c4   : > { %v1576_v40 = vpop.f32.mrf.mxu0 }
 0x1c5   : > { %1633 = vmatmul.f32.vlgmr.msra.gmra.mxu1 %v1576_v40 }
 0x1c6   : > { %v1165_v8 = vpop.f32.mrf.mxu2 }
 0x1c7   : > { %1222 = vmatmul.f32.gmra.mxu3 %v1165_v8 }
 0x1c8   : > { %v3853_v56 = vpop.f32.mrf.mxu1 }
 0x1cc   : > { %v1579_v43 = vpop.f32.mrf.mxu0 }
 0x1cd   : > { %1636 = vmatmul.f32.gmra.mxu1 %v1579_v43 }
 0x1ce   : > { %v1168_v16 = vpop.f32.mrf.mxu2 }
 0x1cf   : > { %1225 = vmatmul.f32.gmra.mxu3 %v1168_v16 }
 0x1d4   : > { %v1582_v47 = vpop.f32.mrf.mxu0 }
 0x1d5   : > { %1639 = vmatmul.f32.gmra.mxu1 %v1582_v47 }
 0x1d6   : > { %v1171_v39 = vpop.f32.mrf.mxu2 }
 0x1d7   : > { %1228 = vmatmul.f32.gmra.mxu3 %v1171_v39 }
 0x1dc   : > { %v1585_v54 = vpop.f32.mrf.mxu0 }
 0x1dd   : > { %1642 = vmatmul.f32.gmra.mxu1 %v1585_v54 }
 0x1de   : > { %v1174_v42 = vpop.f32.mrf.mxu2 }
 0x1df   : > { %1231 = vmatmul.f32.gmra.mxu3 %v1174_v42 }
 0x1e4   : > { %v1588_v58 = vpop.f32.mrf.mxu0 }
 0x1e5   : > { %1645 = vmatmul.f32.gmra.mxu1 %v1588_v58 }
 0x1e6   : > { %v1177_v46 = vpop.f32.mrf.mxu2 }
 0x1e7   : > { %1234 = vmatmul.f32.gmra.mxu3 %v1177_v46 }
 0x1ea   : > { %v3857_v61 = vpop.f32.mrf.mxu1 }
 0x1ec   : > { %v1591_v0 = vpop.f32.mrf.mxu0 }
 0x1ed   : > { %1648 = vmatmul.f32.gmra.mxu1 %v1591_v0 }
 0x1ee   : > { %v1436_v53 = vpop.f32.mrf.mxu2 }
 0x1ef   : > { %1493 = vmatmul.f32.vlgmr.msrb.gmra.mxu3 %v1436_v53 }
 0x1f2   : > { %v3851_v55 = vpop.f32.mrf.mxu3  ;;  %v3861_v3 = vpop.f32.mrf.mxu1 }
 0x1f4   : > { %v1594_v7 = vpop.f32.mrf.mxu0 }
 0x1f5   : > { %1651 = vmatmul.f32.gmra.mxu1 %v1594_v7 }
 0x1f6   : > { %v1439_v57 = vpop.f32.mrf.mxu2 }
 0x1f7   : > { %1496 = vmatmul.f32.gmra.mxu3 %v1439_v57 }
 0x1fa   : > { %v3855_v60 = vpop.f32.mrf.mxu3  ;;  %v3865_v9 = vpop.f32.mrf.mxu1 }
 0x1fc   : > { %v1597_v11 = vpop.f32.mrf.mxu0 }
 0x1fd   : > { %1654 = vmatmul.f32.gmra.mxu1 %v1597_v11  ;;  %v3159_v11 = vld [vmem:[%s4748_s8 + $0xf0] sm:$0xff] }
 0x1fe   : > { %v1442_v63 = vpop.f32.mrf.mxu2 }
 0x1ff   : > { %1499 = vmatmul.f32.gmra.mxu3 %v1442_v63 }
 0x202   : > { %v3859_v1 = vpop.f32.mrf.mxu3  ;;  %v3869_v22 = vpop.f32.mrf.mxu1 }
 0x203   : > { %4751 = vst [vmem:[#allocation9_spill] sm:$0xff] %v3869_v22  ;;  %v681_v22 = vadd.f32 %v3843_v44, %v3791_v30  ;;  %v684_v30 = vadd.f32 %v3847_v49, %v3795_v13 }
 0x206   : > { %v1445_v5 = vpop.f32.mrf.mxu2 }
 0x207   : > { %1502 = vmatmul.f32.gmra.mxu3 %v1445_v5 }
 0x20a   : > { %v3863_v8 = vpop.f32.mrf.mxu3  ;;  %v3873_v15 = vpop.f32.mrf.mxu1 }
 0x20b   : > { %4752 = vst [vmem:[#allocation10_spill] sm:$0xff] %v3873_v15 }
 0x20e   : > { %v1448_v10 = vpop.f32.mrf.mxu2 }
 0x20f   : > { %1505 = vmatmul.f32.gmra.mxu3 %v1448_v10  ;;  %v3160_v10 = vld [vmem:[%s4748_s8 + $0xf8] sm:$0xff] }
 0x210   : > { %1878 = vmatpush.msrb.mxu0 %v3160_v10  ;;  %v3156_v10 = vld [vmem:[%s4748_s8 + $0xd8] sm:$0xff] }
 0x212   : > { %v3867_v17 = vpop.f32.mrf.mxu3  ;;  %v3877_v21 = vpop.f32.mrf.mxu1  ;;  %1879 = vmatpush.msrb.mxu0 %v3159_v11  ;;  %v3155_v11 = vld [vmem:[%s4748_s8 + $0xd0] sm:$0xff] }
 0x216   : > { %v1451_v25 = vpop.f32.mrf.mxu2 }
 0x217   : > { %1508 = vmatmul.f32.gmra.mxu3 %v1451_v25 }
 0x21a   : > { %v3871_v28 = vpop.f32.mrf.mxu3  ;;  %v3883_v34 = vpop.f32.mrf.mxu1 }
 0x21e   : > { %v1454_v14 = vpop.f32.mrf.mxu2 }
 0x21f   : > { %1511 = vmatmul.f32.gmra.mxu3 %v1454_v14  ;;  %v3158_v14 = vld [vmem:[%s4748_s8 + $0xe8] sm:$0xff] }
 0x220   : > { %1880 = vmatpush.msrb.mxu0 %v3158_v14 }
 0x222   : > { %v3875_v16 = vpop.f32.mrf.mxu3  ;;  %v3887_v40 = vpop.f32.mrf.mxu1 }
 0x226   : > { %v1457_v19 = vpop.f32.mrf.mxu2 }
 0x227   : > { %1514 = vmatmul.f32.gmra.mxu3 %v1457_v19 }
 0x22a   : > { %v3879_v23 = vpop.f32.mrf.mxu3  ;;  %v3891_v43 = vpop.f32.mrf.mxu1 }
 0x232   : > { %v3881_v24 = vpop.f32.mrf.mxu3  ;;  %v3895_v47 = vpop.f32.mrf.mxu1 }
 0x23a   : > { %v3885_v39 = vpop.f32.mrf.mxu3  ;;  %v3901_v57 = vpop.f32.mrf.mxu1 }
 0x242   : > { %v3889_v42 = vpop.f32.mrf.mxu3  ;;  %v3905_v63 = vpop.f32.mrf.mxu1 }
 0x243   : > { %4753 = vst [vmem:[#allocation11_spill] sm:$0xff] %v3905_v63  ;;  %v3157_v63 = vld [vmem:[%s4748_s8 + $0xe0] sm:$0xff] }
 0x244   : > { %1881 = vmatpush.msrb.mxu0 %v3157_v63  ;;  %v3153_v63 = vld [vmem:[%s4748_s8 + $0xc0] sm:$0xff] }
 0x246   : > { %1882 = vmatpush.msrb.mxu0 %v3156_v10  ;;  %v3152_v10 = vld [vmem:[%s4748_s8 + $0xb8] sm:$0xff] }
 0x248   : > { %1883 = vmatpush.msrb.mxu0 %v3155_v11  ;;  %v3151_v11 = vld [vmem:[%s4748_s8 + $0xb0] sm:$0xff] }
 0x24a   : > { %v3893_v46 = vpop.f32.mrf.mxu3  ;;  %v3909_v5 = vpop.f32.mrf.mxu1 }
 0x24b   : > { %4754 = vst [vmem:[#allocation12_spill] sm:$0xff] %v3909_v5  ;;  %v3154_v5 = vld [vmem:[%s4748_s8 + $0xc8] sm:$0xff] }
 0x24c   : > { %1884 = vmatpush.msrb.mxu0 %v3154_v5 }
 0x24e   : > { %1885 = vmatpush.msrb.mxu0 %v3153_v63  ;;  %v3149_v63 = vld [vmem:[%s4748_s8 + $0xa0] sm:$0xff] }
 0x250   : > { %1886 = vmatpush.msrb.mxu0 %v3152_v10  ;;  %v3148_v10 = vld [vmem:[%s4748_s8 + $0x98] sm:$0xff] }
 0x252   : > { %v3897_v53 = vpop.f32.mrf.mxu3  ;;  %v3919_v25 = vpop.f32.mrf.mxu1  ;;  %1887 = vmatpush.msrb.mxu0 %v3151_v11  ;;  %v3147_v11 = vld [vmem:[%s4748_s8 + $0x90] sm:$0xff] }
 0x253   : > { %4756 = vst [vmem:[#allocation14_spill] sm:$0xff] %v3919_v25 }
 0x25a   : > { %v3899_v54 = vpop.f32.mrf.mxu3  ;;  %v3940_v25 = vpop.f32.mrf.mxu1 }
 0x25b   : > { %4759 = vst [vmem:[#allocation17_spill] sm:$0xff] %v3940_v25 }
 0x262   : > { %v3903_v58 = vpop.f32.mrf.mxu3  ;;  %v3959_v25 = vpop.f32.mrf.mxu1 }
 0x263   : > { %4761 = vst [vmem:[#allocation19_spill] sm:$0xff] %v3959_v25  ;;  %v678_v25 = vadd.f32 %v3839_v36, %v3787_v18 }
 0x265   : > { %v823_v15 = vadd.f32 %v3827_v52, %v678_v25  ;;  %v825_v52 = vadd.f32 %v3835_v33, %v684_v30  ;;  %v4763_v25 = vld [vmem:[#allocation10_spill] sm:$0xff] }
 0x267   : > { %v963_v18 = vadd.f32 %v3871_v28, %v823_v15  ;;  %v965_v49 = vadd.f32 %v3879_v23, %v825_v52 }
 0x26a   : > { %v3907_v0 = vpop.f32.mrf.mxu3 }
 0x272   : > { %v3911_v7 = vpop.f32.mrf.mxu3 }
 0x273   : > { %4755 = vst [vmem:[#allocation13_spill] sm:$0xff] %v3911_v7  ;;  %v3150_v7 = vld [vmem:[%s4748_s8 + $0xa8] sm:$0xff] }
 0x274   : > { %1888 = vmatpush.msrb.mxu0 %v3150_v7  ;;  %v3146_v7 = vld [vmem:[%s4748_s8 + $0x88] sm:$0xff] }
 0x276   : > { %1889 = vmatpush.msrb.mxu0 %v3149_v63  ;;  %v3145_v63 = vld [vmem:[%s4748_s8 + $0x80] sm:$0xff] }
 0x278   : > { %1890 = vmatpush.msrb.mxu0 %v3148_v10  ;;  %v1649_v10 = vpop.f32.mrf.mxu1 }
 0x27a   : > { %v3924_v19 = vpop.f32.mrf.mxu3  ;;  %1891 = vmatpush.msrb.mxu0 %v3147_v11  ;;  %v824_v11 = vadd.f32 %v3831_v4, %v681_v22  ;;  %v669_v4 = vadd.f32 %v3825_v50, %v3775_v48  ;;  %v1105_v22 = vadd.f32 %v3865_v9, %v965_v49  ;;  %v4769_v52 = vld [vmem:[#allocation13_spill] sm:$0xff]  ;;  %v4771_v49 = vld [vmem:[#allocation12_spill] sm:$0xff] }
 0x27b   : > { %4757 = vst [vmem:[#allocation15_spill] sm:$0xff] %v3924_v19 }
 0x27c   : > { %1892 = vmatpush.msrb.mxu0 %v3146_v7  ;;  %v964_v7 = vadd.f32 %v3875_v16, %v824_v11  ;;  %v820_v13 = vadd.f32 %v3813_v20, %v669_v4 }
 0x27e   : > { %1893 = vmatpush.msrb.mxu0 %v3145_v63  ;;  %v672_v63 = vadd.f32 %v3829_v2, %v3779_v59  ;;  %v1104_v36 = vadd.f32 %v3861_v3, %v964_v7  ;;  %v666_v59 = vadd.f32 %v3821_v35, %v3771_v37  ;;  %v1103_v2 = vadd.f32 %v3857_v61, %v963_v18  ;;  %v4766_v7 = vld [vmem:[#allocation9_spill] sm:$0xff] }
 0x27f   : > { %v960_v33 = vadd.f32 %v3859_v1, %v820_v13  ;;  %v4768_v18 = vld [vmem:[#allocation17_spill] sm:$0xff] }
 0x280   : > { %v1244_v48 = vadd.f32 %v3903_v58, %v1104_v36  ;;  %v819_v50 = vadd.f32 %v3809_v32, %v666_v59  ;;  %v1652_v3 = vpop.f32.mrf.mxu1  ;;  %v1243_v20 = vadd.f32 %v3899_v54, %v1103_v2  ;;  %v4770_v36 = vld [vmem:[#allocation14_spill] sm:$0xff] }
 0x281   : > { %v1100_v1 = vadd.f32 %v3845_v45, %v960_v33 }
 0x282   : > { %v3938_v14 = vpop.f32.mrf.mxu3  ;;  %v959_v61 = vadd.f32 %v3855_v60, %v819_v50  ;;  %v1384_v32 = vadd.f32 %v3895_v47, %v1244_v48  ;;  %v1383_v28 = vadd.f32 %v3891_v43, %v1243_v20  ;;  %v4767_v30 = vld [vmem:[#allocation15_spill] sm:$0xff] }
 0x283   : > { %4758 = vst [vmem:[#allocation16_spill] sm:$0xff] %v3938_v14  ;;  %v675_v14 = vadd.f32 %v3833_v12, %v3783_v6  ;;  %v821_v6 = vadd.f32 %v3819_v29, %v672_v63  ;;  %v663_v29 = vadd.f32 %v3817_v27, %v3767_v26 }
 0x284   : > { %v1099_v15 = vadd.f32 %v3841_v41, %v959_v61 }
 0x285   : > { %v822_v44 = vadd.f32 %v3823_v38, %v675_v14  ;;  %v961_v38 = vadd.f32 %v3863_v8, %v821_v6  ;;  %v818_v35 = vadd.f32 %v3805_v62, %v663_v29  ;;  %v1245_v62 = vadd.f32 %v3907_v0, %v1105_v22 }
 0x287   : > { %v962_v12 = vadd.f32 %v3867_v17, %v822_v44  ;;  %v1101_v17 = vadd.f32 %v3849_v51, %v961_v38  ;;  %v958_v27 = vadd.f32 %v3851_v55, %v818_v35  ;;  %v1240_v51 = vadd.f32 %v3889_v42, %v1100_v1 }
 0x288   : > { %v1239_v55 = vadd.f32 %v3885_v39, %v1099_v15  ;;  %v1655_v58 = vpop.f32.mrf.mxu1 }
 0x289   : > { %v1102_v37 = vadd.f32 %v3853_v56, %v962_v12  ;;  %v1241_v56 = vadd.f32 %v3893_v46, %v1101_v17  ;;  %v1098_v23 = vadd.f32 %v3837_v31, %v958_v27  ;;  %v1385_v46 = vadd.f32 %v3901_v57, %v1245_v62 }
 0x28a   : > { %v3954_v5 = vpop.f32.mrf.mxu3  ;;  %v1380_v41 = vadd.f32 %v3877_v21, %v1240_v51  ;;  %v4764_v14 = vld [vmem:[#allocation16_spill] sm:$0xff]  ;;  %v3401_v21 = vld [vmem:[%s4744_s4] ss:$0 sm:$0xff] }
 0x28b   : > { %4760 = vst [vmem:[#allocation18_spill] sm:$0xff] %v3954_v5  ;;  %v1242_v26 = vadd.f32 %v3897_v53, %v1102_v37  ;;  %v1381_v45 = vadd.f32 %v3883_v34, %v1241_v56  ;;  %v1238_v53 = vadd.f32 %v3881_v24, %v1098_v23  ;;  %v1379_v34 = vadd.f32 %v4763_v25, %v1239_v55  ;;  %v1698_v51 = vld [vmem:[#allocation6] sm:$0xff]  ;;  %v1789_v23 = vld [vmem:[#allocation6 + $0x48] sm:$0xff]  ;;  %v1700_v55 = vld [vmem:[#allocation6 + $0x10] sm:$0xff] }
 0x28c   : > { %v1520_v57 = vadd.f32 %v4764_v14, %v1380_v41  ;;  %v1704_v41 = vld [vmem:[#allocation6 + $0x30] sm:$0xff]  ;;  %v1786_v25 = vld [vmem:[%s4748_s8 + $0x78] sm:$0xff]  ;;  %v1784_v14 = vld [vmem:[%s4748_s8 + $0x68] sm:$0xff] }
 0x28d   : > { %v1382_v9 = vadd.f32 %v3887_v40, %v1242_v26  ;;  %v3400_v40 = vld [vmem:[%s4743_s3] ss:$0 sm:$0xff]  ;;  %v1378_v63 = vadd.f32 %v4766_v7, %v1238_v53  ;;  %v1519_v44 = vadd.f32 %v4767_v30, %v1379_v34  ;;  %1919 = vmatpush.msrb.mxu1 %v1786_v25  ;;  %v1785_v34 = vld [vmem:[%s4748_s8 + $0x70] sm:$0xff] }
 0x28e   : > { %v1660_v59 = vadd.f32 %v4770_v36, %v1520_v57  ;;  %v1792_v53 = vld [vmem:[#allocation6 + $0x60] sm:$0xff]  ;;  %v1777_v30 = vld [vmem:[%s4748_s8 + $0x30] sm:$0xff]  ;;  %v1966_v36 = vld [vmem:[#allocation6 + $0xa8] sm:$0xff] }
 0x28f   : > { %v1518_v12 = vadd.f32 %v4769_v52, %v1378_v63  ;;  %v1659_v48 = vadd.f32 %v4771_v49, %v1519_v44  ;;  %1920 = vmatpush.msrb.mxu1 %v1785_v34  ;;  %v1783_v57 = vld [vmem:[%s4748_s8 + $0x60] sm:$0xff]  ;;  %v1964_v63 = vld [vmem:[#allocation6 + $0x98] sm:$0xff]  ;;  %v1776_v44 = vld [vmem:[%s4748_s8 + $0x28] sm:$0xff] }
 0x290   : > { %v1672_v20 = vmul.f32 %v3400_v40, %v1660_v59  ;;  %v1779_v7 = vld [vmem:[%s4748_s8 + $0x40] sm:$0xff]  ;;  %v1772_v52 = vld [vmem:[%s4748_s8 + $0x8] sm:$0xff]  ;;  %v1967_v59 = vld [vmem:[#allocation6 + $0xb0] sm:$0xff] }
 0x291   : > { %1921 = vmatpush.msrb.mxu1 %v1784_v14  ;;  %v2245_v25 = vld [vmem:[#allocation6 + $0x120] sm:$0xff] }
 0x292   : > { %v1506_v19 = vpop.f32.mrf.mxu3  ;;  %v4762_v42 = vld [vmem:[#allocation18_spill] sm:$0xff] }
 0x293   : > { %v1522_v47 = vadd.f32 %v1506_v19, %v1382_v9  ;;  %v1521_v31 = vadd.f32 %v4762_v42, %v1381_v45  ;;  %v4765_v19 = vld [vmem:[#allocation19_spill] sm:$0xff]  ;;  %v1788_v9 = vld [vmem:[#allocation6 + $0x40] sm:$0xff]  ;;  %v1705_v42 = vld [vmem:[#allocation6 + $0x38] sm:$0xff]  ;;  %1922 = vmatpush.msrb.mxu1 %v1783_v57 }
 0x294   : > { %v1790_v45 = vld [vmem:[#allocation6 + $0x50] sm:$0xff]  ;;  %v2246_v57 = vld [vmem:[#allocation6 + $0x128] sm:$0xff] }
 0x295   : > { %v1661_v4 = vadd.f32 %v4768_v18, %v1521_v31  ;;  %v1795_v31 = vld [vmem:[#allocation6 + $0x78] sm:$0xff]  ;;  %v1775_v18 = vld [vmem:[%s4748_s8 + $0x20] sm:$0xff] }
 0x297   : > { %v1673_v29 = vmul.f32 %v3400_v40, %v1661_v4  ;;  %v1965_v4 = vld [vmem:[#allocation6 + $0xa0] sm:$0xff] }
 0x299   : > { %v1685_v17 = vadd.f32 %v3401_v21, %v1673_v29  ;;  %v3183_v29 = vld [vmem:[%s4748_s8 + $0x170] sm:$0xff] }
 0x29a   : > { %v1509_v5 = vpop.f32.mrf.mxu3 }
 0x29b   : > { %v1523_v16 = vadd.f32 %v1509_v5, %v1383_v28  ;;  %v1662_v5 = vadd.f32 %v4765_v19, %v1522_v47  ;;  %v4061_v56 = vmax.f32 %v1685_v17, 0.0  ;;  %v1791_v47 = vld [vmem:[#allocation6 + $0x58] sm:$0xff]  ;;  %v1963_v19 = vld [vmem:[#allocation6 + $0x90] sm:$0xff]  ;;  %v3178_v17 = vld [vmem:[%s4748_s8 + $0x148] sm:$0xff] }
 0x29d   : > { %v1663_v0 = vadd.f32 %v1649_v10, %v1523_v16  ;;  %v1674_v13 = vmul.f32 %v3400_v40, %v1662_v5  ;;  %v1699_v16 = vld [vmem:[#allocation6 + $0x8] sm:$0xff]  ;;  %v1782_v5 = vld [vmem:[%s4748_s8 + $0x58] sm:$0xff] }
 0x29e   : > { %1923 = vmatpush.msrb.mxu1 %v1782_v5 }
 0x29f   : > { %v1675_v10 = vmul.f32 %v3400_v40, %v1663_v0  ;;  %v1686_v35 = vadd.f32 %v3401_v21, %v1674_v13  ;;  %v1961_v0 = vld [vmem:[#allocation6 + $0x80] sm:$0xff]  ;;  %v1968_v13 = vld [vmem:[#allocation6 + $0xb8] sm:$0xff] }
 0x2a1   : > { %v1687_v50 = vadd.f32 %v3401_v21, %v1675_v10  ;;  %v4056_v27 = vmax.f32 %v1686_v35, 0.0  ;;  %v1774_v10 = vld [vmem:[%s4748_s8 + $0x18] sm:$0xff] }
 0x2a2   : > { %v1512_v8 = vpop.f32.mrf.mxu3  ;;  %v3180_v35 = vld [vmem:[%s4748_s8 + $0x158] sm:$0xff] }
 0x2a3   : > { %v1524_v60 = vadd.f32 %v1512_v8, %v1384_v32  ;;  %v1671_v8 = vmul.f32 %v3400_v40, %v1659_v48  ;;  %v4051_v22 = vmax.f32 %v1687_v50, 0.0  ;;  %v1684_v32 = vadd.f32 %v3401_v21, %v1672_v20  ;;  %v3184_v48 = vld [vmem:[%s4748_s8 + $0x178] sm:$0xff]  ;;  %v3182_v50 = vld [vmem:[%s4748_s8 + $0x168] sm:$0xff]  ;;  %v3181_v20 = vld [vmem:[%s4748_s8 + $0x160] sm:$0xff] }
 0x2a5   : > { %v1664_v43 = vadd.f32 %v1652_v3, %v1524_v60  ;;  %v4772_v3 = vld [vmem:[#allocation11_spill] sm:$0xff]  ;;  %v1683_v1 = vadd.f32 %v3401_v21, %v1671_v8  ;;  %v4066_v62 = vmax.f32 %v1684_v32, 0.0 }
 0x2a6   : > { %v1658_v37 = vadd.f32 %v4772_v3, %v1518_v12  ;;  %v1771_v12 = vld [vmem:[%s4748_s8] sm:$0xff]  ;;  %v3179_v8 = vld [vmem:[%s4748_s8 + $0x150] sm:$0xff] }
 0x2a7   : > { %v1676_v11 = vmul.f32 %v3400_v40, %v1664_v43  ;;  %v4071_v60 = vmax.f32 %v1683_v1, 0.0  ;;  %v1702_v43 = vld [vmem:[#allocation6 + $0x20] sm:$0xff] }
 0x2a8   : > { %v1670_v26 = vmul.f32 %v3400_v40, %v1658_v37  ;;  %v3177_v1 = vld [vmem:[%s4748_s8 + $0x140] sm:$0xff] }
 0x2a9   : > { %v1688_v38 = vadd.f32 %v3401_v21, %v1676_v11  ;;  %v1781_v11 = vld [vmem:[%s4748_s8 + $0x50] sm:$0xff] }
 0x2aa   : > { %v1515_v54 = vpop.f32.mrf.mxu3  ;;  %v1682_v28 = vadd.f32 %v3401_v21, %v1670_v26  ;;  %1924 = vmatpush.msrb.mxu1 %v1781_v11  ;;  %v2247_v11 = vld [vmem:[#allocation6 + $0x130] sm:$0xff] }
 0x2ab   : > { %v1525_v39 = vadd.f32 %v1515_v54, %v1385_v46  ;;  %v4046_v61 = vmax.f32 %v1688_v38, 0.0  ;;  %v1701_v46 = vld [vmem:[#allocation6 + $0x18] sm:$0xff]  ;;  %v1703_v54 = vld [vmem:[#allocation6 + $0x28] sm:$0xff]  ;;  %v2241_v38 = vld [vmem:[#allocation6 + $0x100] sm:$0xff] }
 0x2ac   : > { %v4076_v15 = vmax.f32 %v1682_v28, 0.0  ;;  %v3176_v28 = vld [vmem:[%s4748_s8 + $0x138] sm:$0xff] }
 0x2ad   : > { %v1665_v24 = vadd.f32 %v1655_v58, %v1525_v39  ;;  %v1793_v58 = vld [vmem:[#allocation6 + $0x68] sm:$0xff] }
 0x2ae   : > { %v1962_v39 = vld [vmem:[#allocation6 + $0x88] sm:$0xff] }
 0x2af   : > { %v1677_v6 = vmul.f32 %v3400_v40, %v1665_v24  ;;  %v1794_v40 = vld [vmem:[#allocation6 + $0x70] sm:$0xff]  ;;  %v1780_v24 = vld [vmem:[%s4748_s8 + $0x48] sm:$0xff] }
 0x2b0   : > { %1925 = vmatpush.msrb.mxu1 %v1780_v24  ;;  %v2102_v24 = vld [vmem:[#allocation6 + $0xc8] sm:$0xff] }
 0x2b1   : > { %v1689_v2 = vadd.f32 %v3401_v21, %v1677_v6  ;;  %v1778_v21 = vld [vmem:[%s4748_s8 + $0x38] sm:$0xff]  ;;  %v1773_v6 = vld [vmem:[%s4748_s8 + $0x10] sm:$0xff] }
 0x2b2   : > { %1926 = vmatpush.msrb.mxu1 %v1779_v7 }
 0x2b3   : > { %v4043_v33 = vmax.f32 %v1689_v2, 0.0 }
 0x2b4   : > { %1927 = vmatpush.msrb.mxu1 %v1778_v21  ;;  %v2103_v21 = vld [vmem:[#allocation6 + $0xd0] sm:$0xff] }
 0x2b5   : > { %1738 = vmatpush.msra.mxu2 %v4043_v33  ;;  %1828 = vmatpush.msra.mxu3 %v4043_v33 }
 0x2b6   : > { %2141 = vmatpush.msra.mxu0 %v4043_v33  ;;  %1928 = vmatpush.msrb.mxu1 %v1777_v30 }
 0x2b7   : > { %1739 = vmatpush.msra.mxu2 %v4046_v61  ;;  %1829 = vmatpush.msra.mxu3 %v4046_v61 }
 0x2b8   : > { %2142 = vmatpush.msra.mxu0 %v4046_v61  ;;  %1929 = vmatpush.msrb.mxu1 %v1776_v44  ;;  %v2521_v44 = vld [vmem:[#allocation6 + $0x180] sm:$0xff] }
 0x2b9   : > { %1740 = vmatpush.msra.mxu2 %v4051_v22  ;;  %1830 = vmatpush.msra.mxu3 %v4051_v22 }
 0x2ba   : > { %2143 = vmatpush.msra.mxu0 %v4051_v22  ;;  %1930 = vmatpush.msrb.mxu1 %v1775_v18  ;;  %v2104_v18 = vld [vmem:[#allocation6 + $0xd8] sm:$0xff] }
 0x2bb   : > { %1741 = vmatpush.msra.mxu2 %v4056_v27  ;;  %1831 = vmatpush.msra.mxu3 %v4056_v27 }
 0x2bc   : > { %2144 = vmatpush.msra.mxu0 %v4056_v27  ;;  %1931 = vmatpush.msrb.mxu1 %v1774_v10  ;;  %v2105_v10 = vld [vmem:[#allocation6 + $0xe0] sm:$0xff] }
 0x2bd   : > { %1742 = vmatpush.msra.mxu2 %v4061_v56  ;;  %1832 = vmatpush.msra.mxu3 %v4061_v56 }
 0x2be   : > { %2145 = vmatpush.msra.mxu0 %v4061_v56  ;;  %1932 = vmatpush.msrb.mxu1 %v1773_v6  ;;  %v2522_v6 = vld [vmem:[#allocation6 + $0x188] sm:$0xff] }
 0x2bf   : > { %1743 = vmatpush.msra.mxu2 %v4066_v62  ;;  %1833 = vmatpush.msra.mxu3 %v4066_v62 }
 0x2c0   : > { %2146 = vmatpush.msra.mxu0 %v4066_v62  ;;  %1933 = vmatpush.msrb.mxu1 %v1772_v52 }
 0x2c1   : > { %1744 = vmatpush.msra.mxu2 %v4071_v60  ;;  %1834 = vmatpush.msra.mxu3 %v4071_v60 }
 0x2c2   : > { %2147 = vmatpush.msra.mxu0 %v4071_v60  ;;  %1934 = vmatpush.msrb.mxu1 %v1771_v12  ;;  %v2106_v12 = vld [vmem:[#allocation6 + $0xe8] sm:$0xff] }
 0x2c3   : > { %1745 = vmatpush.msra.mxu2 %v4076_v15  ;;  %1835 = vmatpush.msra.mxu3 %v4076_v15 }
 0x2c4   : > { %2148 = vmatpush.msra.mxu0 %v4076_v15  ;;  %3129 = vmatmul.msk.f32.vlgmr.msra.gmra.mxu2 %vm431_vm0, %v1698_v51  ;;  %v3175_v51 = vld [vmem:[%s4748_s8 + $0x130] sm:$0xff] }
 0x2c5   : > { %3137 = vmatmul.msk.f32.vlgmr.msra.gmra.mxu3 %vm431_vm0, %v1788_v9  ;;  %2001 = vmatpush.msrb.mxu2 %v4043_v33  ;;  %v3174_v9 = vld [vmem:[%s4748_s8 + $0x128] sm:$0xff] }
 0x2c6   : > { %2051 = vmatpush.msrb.mxu3 %v3184_v48  ;;  %v2525_v48 = vld [vmem:[#allocation6 + $0x1a0] sm:$0xff] }
 0x2c7   : > { %2002 = vmatpush.msrb.mxu2 %v4046_v61 }
 0x2c8   : > { %2052 = vmatpush.msrb.mxu3 %v3183_v29 }
 0x2c9   : > { %2003 = vmatpush.msrb.mxu2 %v4051_v22 }
 0x2ca   : > { %2053 = vmatpush.msrb.mxu3 %v3182_v50  ;;  %v3232_v50 = vld [vmem:[%s4748_s8 + $0x278] sm:$0xff] }
 0x2cb   : > { %2004 = vmatpush.msrb.mxu2 %v4056_v27 }
 0x2cc   : > { %3130 = vmatmul.msk.f32.gmra.mxu2 %vm431_vm0, %v1699_v16  ;;  %2054 = vmatpush.msrb.mxu3 %v3181_v20  ;;  %v3231_v20 = vld [vmem:[%s4748_s8 + $0x270] sm:$0xff] }
 0x2cd   : > { %3138 = vmatmul.msk.f32.gmra.mxu3 %vm431_vm0, %v1789_v23  ;;  %2005 = vmatpush.msrb.mxu2 %v4061_v56 }
 0x2ce   : > { %2055 = vmatpush.msrb.mxu3 %v3180_v35  ;;  %v2526_v35 = vld [vmem:[#allocation6 + $0x1a8] sm:$0xff] }
 0x2cf   : > { %2006 = vmatpush.msrb.mxu2 %v4066_v62 }
 0x2d0   : > { %2056 = vmatpush.msrb.mxu3 %v3179_v8  ;;  %v3208_v8 = vld [vmem:[%s4748_s8 + $0x1f8] sm:$0xff] }
 0x2d1   : > { %2007 = vmatpush.msrb.mxu2 %v4071_v60  ;;  %2191 = vmatpush.msra.mxu1 %v3208_v8  ;;  %v3278_v8 = vld [vmem:[%s4748_s8 + $0x368] sm:$0xff] }
 0x2d2   : > { %2057 = vmatpush.msrb.mxu3 %v3178_v17  ;;  %v3230_v17 = vld [vmem:[%s4748_s8 + $0x268] sm:$0xff] }
 0x2d3   : > { %2008 = vmatpush.msrb.mxu2 %v4076_v15 }
 0x2d4   : > { %3131 = vmatmul.msk.f32.gmra.mxu2 %vm431_vm0, %v1700_v55  ;;  %2058 = vmatpush.msrb.mxu3 %v3177_v1  ;;  %v3173_v55 = vld [vmem:[%s4748_s8 + $0x120] sm:$0xff]  ;;  %v3206_v1 = vld [vmem:[%s4748_s8 + $0x1e8] sm:$0xff] }
 0x2d5   : > { %2281 = vmatpush.msra.mxu2 %v4043_v33  ;;  %3139 = vmatmul.msk.f32.gmra.mxu3 %vm431_vm0, %v1790_v45  ;;  %v3172_v45 = vld [vmem:[%s4748_s8 + $0x118] sm:$0xff] }
 0x2d6   : > { %2059 = vmatpush.msrb.mxu3 %v3176_v28  ;;  %v3228_v28 = vld [vmem:[%s4748_s8 + $0x258] sm:$0xff] }
 0x2d7   : > { %2282 = vmatpush.msra.mxu2 %v4046_v61 }
 0x2d8   : > { %2060 = vmatpush.msrb.mxu3 %v3175_v51  ;;  %v2382_v51 = vld [vmem:[#allocation6 + $0x148] sm:$0xff] }
 0x2d9   : > { %2283 = vmatpush.msra.mxu2 %v4051_v22 }
 0x2da   : > { %2061 = vmatpush.msrb.mxu3 %v3174_v9 }
 0x2db   : > { %2284 = vmatpush.msra.mxu2 %v4056_v27 }
 0x2dc   : > { %3132 = vmatmul.msk.f32.gmra.mxu2 %vm431_vm0, %v1701_v46  ;;  %2062 = vmatpush.msrb.mxu3 %v3173_v55  ;;  %v3171_v46 = vld [vmem:[%s4748_s8 + $0x110] sm:$0xff] }
 0x2dd   : > { %2285 = vmatpush.msra.mxu2 %v4061_v56  ;;  %3140 = vmatmul.msk.f32.gmra.mxu3 %vm431_vm0, %v1791_v47  ;;  %v2242_v47 = vld [vmem:[#allocation6 + $0x108] sm:$0xff]  ;;  %v3203_v55 = vld [vmem:[%s4748_s8 + $0x1d0] sm:$0xff] }
 0x2de   : > { %2063 = vmatpush.msrb.mxu3 %v3172_v45  ;;  %v3225_v45 = vld [vmem:[%s4748_s8 + $0x240] sm:$0xff] }
 0x2df   : > { %2286 = vmatpush.msra.mxu2 %v4066_v62 }
 0x2e0   : > { %2064 = vmatpush.msrb.mxu3 %v3171_v46  ;;  %v3224_v46 = vld [vmem:[%s4748_s8 + $0x238] sm:$0xff] }
 0x2e1   : > { %2287 = vmatpush.msra.mxu2 %v4071_v60 }
 0x2e3   : > { %2288 = vmatpush.msra.mxu2 %v4076_v15 }
 0x2e4   : > { %3133 = vmatmul.msk.f32.gmra.mxu2 %vm431_vm0, %v1702_v43  ;;  %v3170_v43 = vld [vmem:[%s4748_s8 + $0x108] sm:$0xff] }
 0x2e5   : > { %3141 = vmatmul.msk.f32.gmra.mxu3 %vm431_vm0, %v1792_v53 }
 0x2e6   : > { %2065 = vmatpush.msrb.mxu3 %v3170_v43 }
 0x2ec   : > { %3134 = vmatmul.msk.f32.gmra.mxu2 %vm431_vm0, %v1703_v54 }
 0x2ed   : > { %3142 = vmatmul.msk.f32.gmra.mxu3 %vm431_vm0, %v1793_v58  ;;  %v3169_v58 = vld [vmem:[%s4748_s8 + $0x100] sm:$0xff] }
 0x2ee   : > { %2066 = vmatpush.msrb.mxu3 %v3169_v58  ;;  %v3199_v58 = vld [vmem:[%s4748_s8 + $0x1b0] sm:$0xff] }
 0x2f0   : > { %2331 = vmatpush.msra.mxu3 %v3232_v50  ;;  %v2661_v50 = vld [vmem:[#allocation6 + $0x1c0] sm:$0xff] }
 0x2f2   : > { %2332 = vmatpush.msra.mxu3 %v3231_v20  ;;  %v2806_v20 = vld [vmem:[#allocation6 + $0x228] sm:$0xff] }
 0x2f4   : > { %3135 = vmatmul.msk.f32.gmra.mxu2 %vm431_vm0, %v1704_v41  ;;  %v2243_v41 = vld [vmem:[#allocation6 + $0x110] sm:$0xff]  ;;  %2333 = vmatpush.msra.mxu3 %v3230_v17 }
 0x2f5   : > { %3143 = vmatmul.msk.f32.gmra.mxu3 %vm431_vm0, %v1794_v40  ;;  %v3255_v17 = vld [vmem:[%s4748_s8 + $0x2f0] sm:$0xff] }
 0x2fc   : > { %3136 = vmatmul.msk.f32.gmra.mxu2 %vm431_vm0, %v1705_v42 }
 0x2fd   : > { %3144 = vmatmul.msk.f32.gmra.mxu3 %vm431_vm0, %v1795_v31  ;;  %v2244_v31 = vld [vmem:[#allocation6 + $0x118] sm:$0xff] }
 0x304   : > { %3161 = vmatmul.msk.f32.vlgmr.msrb.gmra.mxu2 %vm431_vm0, %v1961_v0 }
 0x305   : > { %2561 = vmatpush.msrb.mxu2 %v4043_v33 }
 0x307   : > { %2562 = vmatpush.msrb.mxu2 %v4046_v61 }
 0x309   : > { %2563 = vmatpush.msrb.mxu2 %v4051_v22 }
 0x30b   : > { %2564 = vmatpush.msrb.mxu2 %v4056_v27 }
 0x30c   : > { %3162 = vmatmul.msk.f32.gmra.mxu2 %vm431_vm0, %v1962_v39 }
 0x30d   : > { %2565 = vmatpush.msrb.mxu2 %v4061_v56 }
 0x30f   : > { %2566 = vmatpush.msrb.mxu2 %v4066_v62 }
 0x311   : > { %2567 = vmatpush.msrb.mxu2 %v4071_v60 }
 0x313   : > { %2568 = vmatpush.msrb.mxu2 %v4076_v15 }
 0x314   : > { %3163 = vmatmul.msk.f32.gmra.mxu2 %vm431_vm0, %v1963_v19  ;;  %v2101_v19 = vld [vmem:[#allocation6 + $0xc0] sm:$0xff] }
 0x31c   : > { %3164 = vmatmul.msk.f32.gmra.mxu2 %vm431_vm0, %v1964_v63  ;;  %v2248_v63 = vld [vmem:[#allocation6 + $0x138] sm:$0xff] }
 0x324   : > { %3165 = vmatmul.msk.f32.gmra.mxu2 %vm431_vm0, %v1965_v4 }
 0x32c   : > { %3166 = vmatmul.msk.f32.gmra.mxu2 %vm431_vm0, %v1966_v36  ;;  %v2523_v36 = vld [vmem:[#allocation6 + $0x190] sm:$0xff] }
 0x334   : > { %3167 = vmatmul.msk.f32.gmra.mxu2 %vm431_vm0, %v1967_v59 }
 0x33c   : > { %3168 = vmatmul.msk.f32.gmra.mxu2 %vm431_vm0, %v1968_v13  ;;  %v2107_v13 = vld [vmem:[#allocation6 + $0xf0] sm:$0xff] }
 0x344   : > { %3209 = vmatmul.msk.f32.vlgmr.msra.gmra.mxu2 %vm431_vm0, %v2241_v38  ;;  %v2524_v38 = vld [vmem:[#allocation6 + $0x198] sm:$0xff] }
 0x345   : > { %3333 = vmatpush.msra.mxu2 %v4043_v33 }
 0x347   : > { %v1747_v2 = vpop.f32.mrf.mxu2  ;;  %3334 = vmatpush.msra.mxu2 %v4046_v61 }
 0x348   : > { %v1837_v49 = vpop.f32.mrf.mxu3  ;;  %1935 = vmatmul.f32.vlgmr.msrb.gmra.mxu1 %v1747_v2 }
 0x349   : > { %1894 = vmatmul.f32.vlgmr.msrb.gmra.mxu0 %v1837_v49  ;;  %3335 = vmatpush.msra.mxu2 %v4051_v22  ;;  %v2108_v49 = vld [vmem:[#allocation6 + $0xf8] sm:$0xff] }
 0x34a   : > { %2421 = vmatpush.msrb.mxu0 %v4043_v33 }
 0x34b   : > { %3336 = vmatpush.msra.mxu2 %v4056_v27 }
 0x34c   : > { %2422 = vmatpush.msrb.mxu0 %v4046_v61  ;;  %3210 = vmatmul.msk.f32.gmra.mxu2 %vm431_vm0, %v2242_v47  ;;  %v2383_v47 = vld [vmem:[#allocation6 + $0x150] sm:$0xff] }
 0x34d   : > { %3337 = vmatpush.msra.mxu2 %v4061_v56 }
 0x34e   : > { %2423 = vmatpush.msrb.mxu0 %v4051_v22 }
 0x34f   : > { %v1750_v3 = vpop.f32.mrf.mxu2  ;;  %3338 = vmatpush.msra.mxu2 %v4066_v62 }
 0x350   : > { %2424 = vmatpush.msrb.mxu0 %v4056_v27  ;;  %v1840_v37 = vpop.f32.mrf.mxu3  ;;  %1938 = vmatmul.f32.gmra.mxu1 %v1750_v3  ;;  %v2381_v3 = vld [vmem:[#allocation6 + $0x140] sm:$0xff] }
 0x351   : > { %1897 = vmatmul.f32.gmra.mxu0 %v1840_v37  ;;  %3339 = vmatpush.msra.mxu2 %v4071_v60 }
 0x352   : > { %2425 = vmatpush.msrb.mxu0 %v4061_v56 }
 0x353   : > { %3340 = vmatpush.msra.mxu2 %v4076_v15 }
 0x354   : > { %2426 = vmatpush.msrb.mxu0 %v4066_v62  ;;  %3211 = vmatmul.msk.f32.gmra.mxu2 %vm431_vm0, %v2243_v41  ;;  %v3221_v41 = vld [vmem:[%s4748_s8 + $0x220] sm:$0xff] }
 0x356   : > { %2427 = vmatpush.msrb.mxu0 %v4071_v60 }
 0x357   : > { %v1753_v26 = vpop.f32.mrf.mxu2 }
 0x358   : > { %2428 = vmatpush.msrb.mxu0 %v4076_v15  ;;  %v1843_v32 = vpop.f32.mrf.mxu3  ;;  %1941 = vmatmul.f32.gmra.mxu1 %v1753_v26  ;;  %v3207_v26 = vld [vmem:[%s4748_s8 + $0x1f0] sm:$0xff] }
 0x359   : > { %1900 = vmatmul.f32.gmra.mxu0 %v1843_v32  ;;  %v3229_v32 = vld [vmem:[%s4748_s8 + $0x260] sm:$0xff]  ;;  %2192 = vmatpush.msra.mxu1 %v3207_v26 }
 0x35a   : > { %2334 = vmatpush.msra.mxu3 %v3229_v32  ;;  %v3277_v26 = vld [vmem:[%s4748_s8 + $0x360] sm:$0xff] }
 0x35b   : > { %2193 = vmatpush.msra.mxu1 %v3206_v1 }
 0x35c   : > { %3212 = vmatmul.msk.f32.gmra.mxu2 %vm431_vm0, %v2244_v31  ;;  %2335 = vmatpush.msra.mxu3 %v3228_v28  ;;  %v2384_v31 = vld [vmem:[#allocation6 + $0x158] sm:$0xff]  ;;  %v3254_v28 = vld [vmem:[%s4748_s8 + $0x2e8] sm:$0xff] }
 0x35f   : > { %v1756_v16 = vpop.f32.mrf.mxu2 }
 0x360   : > { %v1846_v23 = vpop.f32.mrf.mxu3  ;;  %1944 = vmatmul.f32.gmra.mxu1 %v1756_v16  ;;  %v3205_v16 = vld [vmem:[%s4748_s8 + $0x1e0] sm:$0xff] }
 0x361   : > { %1903 = vmatmul.f32.gmra.mxu0 %v1846_v23  ;;  %v2527_v23 = vld [vmem:[#allocation6 + $0x1b0] sm:$0xff]  ;;  %2194 = vmatpush.msra.mxu1 %v3205_v16 }
 0x364   : > { %3213 = vmatmul.msk.f32.gmra.mxu2 %vm431_vm0, %v2245_v25  ;;  %v3196_v25 = vld [vmem:[%s4748_s8 + $0x198] sm:$0xff] }
 0x367   : > { %v1759_v53 = vpop.f32.mrf.mxu2 }
 0x368   : > { %v1849_v54 = vpop.f32.mrf.mxu3  ;;  %1947 = vmatmul.f32.gmra.mxu1 %v1759_v53  ;;  %v3223_v53 = vld [vmem:[%s4748_s8 + $0x230] sm:$0xff] }
 0x369   : > { %1906 = vmatmul.f32.gmra.mxu0 %v1849_v54  ;;  %v2528_v54 = vld [vmem:[#allocation6 + $0x1b8] sm:$0xff] }
 0x36c   : > { %3214 = vmatmul.msk.f32.gmra.mxu2 %vm431_vm0, %v2246_v57 }
 0x36f   : > { %v1762_v40 = vpop.f32.mrf.mxu2 }
 0x370   : > { %v1852_v42 = vpop.f32.mrf.mxu3  ;;  %1950 = vmatmul.f32.gmra.mxu1 %v1762_v40  ;;  %v3198_v40 = vld [vmem:[%s4748_s8 + $0x1a8] sm:$0xff] }
 0x371   : > { %1909 = vmatmul.f32.gmra.mxu0 %v1852_v42 }
 0x374   : > { %3215 = vmatmul.msk.f32.gmra.mxu2 %vm431_vm0, %v2247_v11 }
 0x377   : > { %v1765_v0 = vpop.f32.mrf.mxu2 }
 0x378   : > { %v1855_v39 = vpop.f32.mrf.mxu3  ;;  %1953 = vmatmul.f32.gmra.mxu1 %v1765_v0  ;;  %v3197_v0 = vld [vmem:[%s4748_s8 + $0x1a0] sm:$0xff] }
 0x379   : > { %1912 = vmatmul.f32.gmra.mxu0 %v1855_v39  ;;  %v3219_v39 = vld [vmem:[%s4748_s8 + $0x210] sm:$0xff] }
 0x37c   : > { %3216 = vmatmul.msk.f32.gmra.mxu2 %vm431_vm0, %v2248_v63  ;;  %v2802_v63 = vld [vmem:[#allocation6 + $0x208] sm:$0xff] }
 0x37f   : > { %v1768_v34 = vpop.f32.mrf.mxu2 }
 0x380   : > { %v1858_v14 = vpop.f32.mrf.mxu3  ;;  %1956 = vmatmul.f32.gmra.mxu1 %v1768_v34  ;;  %v3218_v34 = vld [vmem:[%s4748_s8 + $0x208] sm:$0xff] }
 0x381   : > { %1915 = vmatmul.f32.gmra.mxu0 %v1858_v14  ;;  %v3195_v14 = vld [vmem:[%s4748_s8 + $0x190] sm:$0xff] }
 0x384   : > { %3257 = vmatmul.msk.f32.vlgmr.msrb.gmra.mxu2 %vm431_vm0, %v2521_v44  ;;  %v2386_v44 = vld [vmem:[#allocation6 + $0x168] sm:$0xff] }
 0x387   : > { %v2010_v5 = vpop.f32.mrf.mxu2 }
 0x388   : > { %2067 = vmatmul.f32.vlgmr.msrb.gmra.mxu3 %v2010_v5  ;;  %v3194_v5 = vld [vmem:[%s4748_s8 + $0x188] sm:$0xff] }
 0x389   : > { %3185 = vmatmul.msk.f32.vlgmr.msra.gmra.mxu0 %vm431_vm0, %v2101_v19  ;;  %v3217_v19 = vld [vmem:[%s4748_s8 + $0x200] sm:$0xff] }
 0x38a   : > { %2701 = vmatpush.msra.mxu0 %v4043_v33 }
 0x38c   : > { %2702 = vmatpush.msra.mxu0 %v4046_v61  ;;  %3258 = vmatmul.msk.f32.gmra.mxu2 %vm431_vm0, %v2522_v6  ;;  %v2387_v6 = vld [vmem:[#allocation6 + $0x170] sm:$0xff] }
 0x38e   : > { %2703 = vmatpush.msra.mxu0 %v4051_v22 }
 0x38f   : > { %v2013_v7 = vpop.f32.mrf.mxu2 }
 0x390   : > { %2704 = vmatpush.msra.mxu0 %v4056_v27  ;;  %2070 = vmatmul.f32.gmra.mxu3 %v2013_v7  ;;  %v3193_v7 = vld [vmem:[%s4748_s8 + $0x180] sm:$0xff] }
 0x391   : > { %3186 = vmatmul.msk.f32.gmra.mxu0 %vm431_vm0, %v2102_v24  ;;  %v2385_v24 = vld [vmem:[#allocation6 + $0x160] sm:$0xff] }
 0x392   : > { %2705 = vmatpush.msra.mxu0 %v4061_v56 }
 0x394   : > { %2706 = vmatpush.msra.mxu0 %v4066_v62  ;;  %3259 = vmatmul.msk.f32.gmra.mxu2 %vm431_vm0, %v2523_v36 }
 0x396   : > { %2707 = vmatpush.msra.mxu0 %v4071_v60 }
 0x397   : > { %v2016_v30 = vpop.f32.mrf.mxu2 }
 0x398   : > { %2708 = vmatpush.msra.mxu0 %v4076_v15  ;;  %2073 = vmatmul.f32.gmra.mxu3 %v2016_v30 }
 0x399   : > { %3187 = vmatmul.msk.f32.gmra.mxu0 %vm431_vm0, %v2103_v21 }
 0x39c   : > { %3260 = vmatmul.msk.f32.gmra.mxu2 %vm431_vm0, %v2524_v38  ;;  %v2805_v38 = vld [vmem:[#allocation6 + $0x220] sm:$0xff] }
 0x39f   : > { %v2019_v4 = vpop.f32.mrf.mxu2 }
 0x3a0   : > { %2076 = vmatmul.f32.gmra.mxu3 %v2019_v4 }
 0x3a1   : > { %3188 = vmatmul.msk.f32.gmra.mxu0 %vm431_vm0, %v2104_v18  ;;  %v2803_v18 = vld [vmem:[#allocation6 + $0x210] sm:$0xff] }
 0x3a4   : > { %3261 = vmatmul.msk.f32.gmra.mxu2 %vm431_vm0, %v2525_v48  ;;  %v3280_v48 = vld [vmem:[%s4748_s8 + $0x378] sm:$0xff] }
 0x3a7   : > { %v2022_v52 = vpop.f32.mrf.mxu2 }
 0x3a8   : > { %2079 = vmatmul.f32.gmra.mxu3 %v2022_v52  ;;  %v2804_v52 = vld [vmem:[#allocation6 + $0x218] sm:$0xff] }
 0x3a9   : > { %3189 = vmatmul.msk.f32.gmra.mxu0 %vm431_vm0, %v2105_v10 }
 0x3ac   : > { %3262 = vmatmul.msk.f32.gmra.mxu2 %vm431_vm0, %v2526_v35  ;;  %v3256_v35 = vld [vmem:[%s4748_s8 + $0x2f8] sm:$0xff] }
 0x3af   : > { %v2025_v59 = vpop.f32.mrf.mxu2 }
 0x3b0   : > { %2082 = vmatmul.f32.gmra.mxu3 %v2025_v59 }
 0x3b1   : > { %3190 = vmatmul.msk.f32.gmra.mxu0 %vm431_vm0, %v2106_v12 }
 0x3b4   : > { %3263 = vmatmul.msk.f32.gmra.mxu2 %vm431_vm0, %v2527_v23  ;;  %v2662_v23 = vld [vmem:[#allocation6 + $0x1c8] sm:$0xff] }
 0x3b7   : > { %v2028_v2 = vpop.f32.mrf.mxu2 }
 0x3b8   : > { %2085 = vmatmul.f32.gmra.mxu3 %v2028_v2 }
 0x3b9   : > { %3191 = vmatmul.msk.f32.gmra.mxu0 %vm431_vm0, %v2107_v13  ;;  %v2388_v13 = vld [vmem:[#allocation6 + $0x178] sm:$0xff] }
 0x3bc   : > { %3264 = vmatmul.msk.f32.gmra.mxu2 %vm431_vm0, %v2528_v54  ;;  %v3250_v54 = vld [vmem:[%s4748_s8 + $0x2c8] sm:$0xff] }
 0x3bf   : > { %v2031_v29 = vpop.f32.mrf.mxu2 }
 0x3c0   : > { %2088 = vmatmul.f32.gmra.mxu3 %v2031_v29 }
 0x3c1   : > { %3192 = vmatmul.msk.f32.gmra.mxu0 %vm431_vm0, %v2108_v49 }
 0x3c4   : > { %3306 = vmatmul.msk.f32.vlgmr.msra.gmra.mxu2 %vm431_vm0, %v2802_v63  ;;  %v3245_v63 = vld [vmem:[%s4748_s8 + $0x2a0] sm:$0xff] }
 0x3c5   : > { %v4404_v12 = vpop.f32.mrf.mxu1 }
 0x3c6   : > { %v4276_v37 = vpop.f32.mrf.mxu0 }
 0x3c7   : > { %v2290_v57 = vpop.f32.mrf.mxu2 }
 0x3c9   : > { %3233 = vmatmul.msk.f32.vlgmr.msrb.gmra.mxu0 %vm431_vm0, %v2381_v3  ;;  %v3279_v3 = vld [vmem:[%s4748_s8 + $0x370] sm:$0xff] }
 0x3ca   : > { %2841 = vmatpush.msrb.mxu0 %v4043_v33  ;;  %v3227_v33 = vld [vmem:[%s4748_s8 + $0x250] sm:$0xff] }
 0x3cb   : > { %2336 = vmatpush.msra.mxu3 %v3227_v33 }
 0x3cc   : > { %2842 = vmatpush.msrb.mxu0 %v4046_v61  ;;  %v3204_v61 = vld [vmem:[%s4748_s8 + $0x1d8] sm:$0xff]  ;;  %3307 = vmatmul.msk.f32.gmra.mxu2 %vm431_vm0, %v2803_v18  ;;  %v3266_v18 = vld [vmem:[%s4748_s8 + $0x308] sm:$0xff] }
 0x3cd   : > { %2195 = vmatpush.msra.mxu1 %v3204_v61  ;;  %v4410_v49 = vpop.f32.mrf.mxu1  ;;  %v3253_v61 = vld [vmem:[%s4748_s8 + $0x2e0] sm:$0xff] }
 0x3ce   : > { %2843 = vmatpush.msrb.mxu0 %v4051_v22  ;;  %v4304_v9 = vpop.f32.mrf.mxu0  ;;  %v3226_v22 = vld [vmem:[%s4748_s8 + $0x248] sm:$0xff] }
 0x3cf   : > { %2337 = vmatpush.msra.mxu3 %v3226_v22  ;;  %2196 = vmatpush.msra.mxu1 %v3203_v55  ;;  %v2293_v21 = vpop.f32.mrf.mxu2  ;;  %v3275_v22 = vld [vmem:[%s4748_s8 + $0x350] sm:$0xff] }
 0x3d0   : > { %2844 = vmatpush.msrb.mxu0 %v4056_v27  ;;  %v3202_v27 = vld [vmem:[%s4748_s8 + $0x1c8] sm:$0xff]  ;;  %v2807_v55 = vld [vmem:[#allocation6 + $0x230] sm:$0xff] }
 0x3d1   : > { %3234 = vmatmul.msk.f32.gmra.mxu0 %vm431_vm0, %v2382_v51  ;;  %2338 = vmatpush.msra.mxu3 %v3225_v45  ;;  %v3276_v51 = vld [vmem:[%s4748_s8 + $0x358] sm:$0xff] }
 0x3d2   : > { %2845 = vmatpush.msrb.mxu0 %v4061_v56  ;;  %2197 = vmatpush.msra.mxu1 %v3202_v27  ;;  %v3201_v56 = vld [vmem:[%s4748_s8 + $0x1c0] sm:$0xff]  ;;  %v3252_v45 = vld [vmem:[%s4748_s8 + $0x2d8] sm:$0xff]  ;;  %v3274_v27 = vld [vmem:[%s4748_s8 + $0x348] sm:$0xff] }
 0x3d3   : > { %2339 = vmatpush.msra.mxu3 %v3224_v46  ;;  %v3251_v46 = vld [vmem:[%s4748_s8 + $0x2d0] sm:$0xff] }
 0x3d4   : > { %2846 = vmatpush.msrb.mxu0 %v4066_v62  ;;  %2198 = vmatpush.msra.mxu1 %v3201_v56  ;;  %v3200_v62 = vld [vmem:[%s4748_s8 + $0x1b8] sm:$0xff] }
 0x3d5   : > { %2340 = vmatpush.msra.mxu3 %v3223_v53  ;;  %3308 = vmatmul.msk.f32.gmra.mxu2 %vm431_vm0, %v2804_v52  ;;  %v4440_v16 = vpop.f32.mrf.mxu1 }
 0x3d6   : > { %2847 = vmatpush.msrb.mxu0 %v4071_v60  ;;  %v4336_v43 = vpop.f32.mrf.mxu0  ;;  %v3222_v60 = vld [vmem:[%s4748_s8 + $0x228] sm:$0xff]  ;;  %2199 = vmatpush.msra.mxu1 %v3200_v62  ;;  %v3272_v62 = vld [vmem:[%s4748_s8 + $0x338] sm:$0xff] }
 0x3d7   : > { %2341 = vmatpush.msra.mxu3 %v3222_v60  ;;  %v2296_v4 = vpop.f32.mrf.mxu2 }
 0x3d8   : > { %2848 = vmatpush.msrb.mxu0 %v4076_v15  ;;  %v3220_v15 = vld [vmem:[%s4748_s8 + $0x218] sm:$0xff]  ;;  %2200 = vmatpush.msra.mxu1 %v3199_v58  ;;  %v2663_v58 = vld [vmem:[#allocation6 + $0x1d0] sm:$0xff] }
 0x3d9   : > { %3235 = vmatmul.msk.f32.gmra.mxu0 %vm431_vm0, %v2383_v47  ;;  %2342 = vmatpush.msra.mxu3 %v3221_v41  ;;  %v3273_v47 = vld [vmem:[%s4748_s8 + $0x340] sm:$0xff] }
 0x3da   : > { %2201 = vmatpush.msra.mxu1 %v3198_v40  ;;  %v3249_v41 = vld [vmem:[%s4748_s8 + $0x2c0] sm:$0xff]  ;;  %v3271_v40 = vld [vmem:[%s4748_s8 + $0x330] sm:$0xff] }
 0x3db   : > { %2343 = vmatpush.msra.mxu3 %v3220_v15  ;;  %v2808_v15 = vld [vmem:[#allocation6 + $0x238] sm:$0xff] }
 0x3dc   : > { %2202 = vmatpush.msra.mxu1 %v3197_v0  ;;  %v3270_v0 = vld [vmem:[%s4748_s8 + $0x328] sm:$0xff] }
 0x3dd   : > { %2344 = vmatpush.msra.mxu3 %v3219_v39  ;;  %3309 = vmatmul.msk.f32.gmra.mxu2 %vm431_vm0, %v2805_v38  ;;  %v4482_v39 = vpop.f32.mrf.mxu1  ;;  %v3242_v38 = vld [vmem:[%s4748_s8 + $0x288] sm:$0xff] }
 0x3de   : > { %v4365_v42 = vpop.f32.mrf.mxu0  ;;  %2203 = vmatpush.msra.mxu1 %v3196_v25  ;;  %v3247_v25 = vld [vmem:[%s4748_s8 + $0x2b0] sm:$0xff] }
 0x3df   : > { %2345 = vmatpush.msra.mxu3 %v3218_v34  ;;  %v2299_v36 = vpop.f32.mrf.mxu2  ;;  %v3269_v34 = vld [vmem:[%s4748_s8 + $0x320] sm:$0xff] }
 0x3e0   : > { %2204 = vmatpush.msra.mxu1 %v3195_v14 }
 0x3e1   : > { %3236 = vmatmul.msk.f32.gmra.mxu0 %vm431_vm0, %v2384_v31  ;;  %2346 = vmatpush.msra.mxu3 %v3217_v19  ;;  %v3248_v31 = vld [vmem:[%s4748_s8 + $0x2b8] sm:$0xff]  ;;  %v3246_v19 = vld [vmem:[%s4748_s8 + $0x2a8] sm:$0xff] }
 0x3e2   : > { %2347 = vmatmul.f32.vlgmr.msra.gmra.mxu3 %v2290_v57  ;;  %2205 = vmatpush.msra.mxu1 %v3194_v5  ;;  %v3268_v5 = vld [vmem:[%s4748_s8 + $0x318] sm:$0xff] }
 0x3e3   : > { %2611 = vmatpush.msrb.mxu3 %v3280_v48  ;;  %v2665_v48 = vld [vmem:[#allocation6 + $0x1e0] sm:$0xff] }
 0x3e4   : > { %2206 = vmatpush.msra.mxu1 %v3193_v7  ;;  %v2664_v7 = vld [vmem:[#allocation6 + $0x1d8] sm:$0xff] }
 0x3e5   : > { %2612 = vmatpush.msrb.mxu3 %v3279_v3  ;;  %3310 = vmatmul.msk.f32.gmra.mxu2 %vm431_vm0, %v2806_v20  ;;  %v4519_v52 = vpop.f32.mrf.mxu1 }
 0x3e6   : > { %v4389_v11 = vpop.f32.mrf.mxu0  ;;  %2471 = vmatpush.msrb.mxu1 %v3256_v35 }
 0x3e7   : > { %v2302_v2 = vpop.f32.mrf.mxu2  ;;  %2613 = vmatpush.msrb.mxu3 %v3278_v8  ;;  %v2666_v8 = vld [vmem:[#allocation6 + $0x1e8] sm:$0xff] }
 0x3e8   : > { %2472 = vmatpush.msrb.mxu1 %v3255_v17 }
 0x3e9   : > { %3237 = vmatmul.msk.f32.gmra.mxu0 %vm431_vm0, %v2385_v24  ;;  %2614 = vmatpush.msrb.mxu3 %v3277_v26 }
 0x3ea   : > { %2350 = vmatmul.f32.gmra.mxu3 %v2293_v21  ;;  %2473 = vmatpush.msrb.mxu1 %v3254_v28  ;;  %v3267_v21 = vld [vmem:[%s4748_s8 + $0x310] sm:$0xff] }
 0x3eb   : > { %2615 = vmatpush.msrb.mxu3 %v3276_v51  ;;  %v2667_v51 = vld [vmem:[#allocation6 + $0x1f0] sm:$0xff] }
 0x3ec   : > { %2474 = vmatpush.msrb.mxu1 %v3253_v61 }
 0x3ed   : > { %2616 = vmatpush.msrb.mxu3 %v3275_v22  ;;  %3311 = vmatmul.msk.f32.gmra.mxu2 %vm431_vm0, %v2807_v55  ;;  %v4530_v3 = vpop.f32.mrf.mxu1  ;;  %v2668_v22 = vld [vmem:[#allocation6 + $0x1f8] sm:$0xff] }
 0x3ee   : > { %v4396_v30 = vpop.f32.mrf.mxu0  ;;  %2475 = vmatpush.msrb.mxu1 %v3252_v45 }
 0x3ef   : > { %v2305_v32 = vpop.f32.mrf.mxu2  ;;  %2617 = vmatpush.msrb.mxu3 %v3274_v27 }
 0x3f0   : > { %2476 = vmatpush.msrb.mxu1 %v3251_v46 }
 0x3f1   : > { %3238 = vmatmul.msk.f32.gmra.mxu0 %vm431_vm0, %v2386_v44  ;;  %2618 = vmatpush.msrb.mxu3 %v3273_v47  ;;  %v3244_v44 = vld [vmem:[%s4748_s8 + $0x298] sm:$0xff] }
 0x3f2   : > { %2353 = vmatmul.f32.gmra.mxu3 %v2296_v4  ;;  %2477 = vmatpush.msrb.mxu1 %v3250_v54  ;;  %v3243_v4 = vld [vmem:[%s4748_s8 + $0x290] sm:$0xff]  ;;  %v2801_v54 = vld [vmem:[#allocation6 + $0x200] sm:$0xff] }
 0x3f3   : > { %2619 = vmatpush.msrb.mxu3 %v3272_v62  ;;  %v3304_v62 = vld [vmem:[%s4748_s8 + $0x3f8] sm:$0xff] }
 0x3f4   : > { %2478 = vmatpush.msrb.mxu1 %v3249_v41 }
 0x3f5   : > { %2620 = vmatpush.msrb.mxu3 %v3271_v40  ;;  %3312 = vmatmul.msk.f32.gmra.mxu2 %vm431_vm0, %v2808_v15  ;;  %v3301_v15 = vld [vmem:[%s4748_s8 + $0x3e0] sm:$0xff] }
 0x3f6   : > { %v4400_v10 = vpop.f32.mrf.mxu0  ;;  %2479 = vmatpush.msrb.mxu1 %v3248_v31  ;;  %v4568_v31 = vld [vmem:[%s4748_s8 + $0x470] sm:$0xff] }
 0x3f7   : > { %v2308_v56 = vpop.f32.mrf.mxu2  ;;  %2621 = vmatpush.msrb.mxu3 %v3270_v0  ;;  %v3300_v0 = vld [vmem:[%s4748_s8 + $0x3d8] sm:$0xff] }
 0x3f8   : > { %2480 = vmatpush.msrb.mxu1 %v3247_v25  ;;  %v4577_v25 = vld [vmem:[%s4748_s8 + $0x468] sm:$0xff] }
 0x3f9   : > { %3239 = vmatmul.msk.f32.gmra.mxu0 %vm431_vm0, %v2387_v6  ;;  %2622 = vmatpush.msrb.mxu3 %v3269_v34  ;;  %v3265_v6 = vld [vmem:[%s4748_s8 + $0x300] sm:$0xff] }
 0x3fa   : > { %2356 = vmatmul.f32.gmra.mxu3 %v2299_v36  ;;  %2481 = vmatpush.msrb.mxu1 %v3246_v19  ;;  %v4582_v34 = vld [vmem:[%s4748_s8 + $0x460] sm:$0xff] }
 0x3fb   : > { %2623 = vmatpush.msrb.mxu3 %v3268_v5  ;;  %v3298_v5 = vld [vmem:[%s4748_s8 + $0x3c8] sm:$0xff] }
 0x3fc   : > { %2482 = vmatpush.msrb.mxu1 %v3245_v63  ;;  %v3297_v63 = vld [vmem:[%s4748_s8 + $0x3c0] sm:$0xff] }
 0x3fd   : > { %2624 = vmatpush.msrb.mxu3 %v3267_v21  ;;  %v3323_v21 = vld [vmem:[%s4748_s8 + $0x450] sm:$0xff] }
 0x3fe   : > { %v4406_v59 = vpop.f32.mrf.mxu0  ;;  %2483 = vmatpush.msrb.mxu1 %v3244_v44  ;;  %v3296_v44 = vld [vmem:[%s4748_s8 + $0x3b8] sm:$0xff] }
 0x3ff   : > { %v2311_v14 = vpop.f32.mrf.mxu2  ;;  %2625 = vmatpush.msrb.mxu3 %v3266_v18  ;;  %v3322_v18 = vld [vmem:[%s4748_s8 + $0x448] sm:$0xff] }
 0x400   : > { %2484 = vmatpush.msrb.mxu1 %v3243_v4  ;;  %v3295_v4 = vld [vmem:[%s4748_s8 + $0x3b0] sm:$0xff] }
 0x401   : > { %3240 = vmatmul.msk.f32.gmra.mxu0 %vm431_vm0, %v2388_v13  ;;  %2626 = vmatpush.msrb.mxu3 %v3265_v6  ;;  %v3321_v6 = vld [vmem:[%s4748_s8 + $0x440] sm:$0xff] }
 0x402   : > { %2359 = vmatmul.f32.gmra.mxu3 %v2302_v2  ;;  %2485 = vmatpush.msrb.mxu1 %v3242_v38  ;;  %v3320_v38 = vld [vmem:[%s4748_s8 + $0x438] sm:$0xff] }
 0x406   : > { %v2150_v29 = vpop.f32.mrf.mxu0 }
 0x407   : > { %2207 = vmatmul.f32.vlgmr.msra.gmra.mxu1 %v2150_v29  ;;  %v2570_v36 = vpop.f32.mrf.mxu2  ;;  %v3241_v29 = vld [vmem:[%s4748_s8 + $0x280] sm:$0xff] }
 0x408   : > { %2486 = vmatpush.msrb.mxu1 %v3241_v29  ;;  %v3293_v29 = vld [vmem:[%s4748_s8 + $0x3a0] sm:$0xff] }
 0x409   : > { %3281 = vmatmul.msk.f32.vlgmr.msra.gmra.mxu0 %vm431_vm0, %v2661_v50 }
 0x40a   : > { %2362 = vmatmul.f32.gmra.mxu3 %v2305_v32  ;;  %v4537_v32 = vpop.f32.mrf.mxu1  ;;  %2751 = vmatpush.msra.mxu1 %v3304_v62 }
 0x40b   : > { %v4432_v1 = vpop.f32.mrf.mxu3 }
 0x40e   : > { %v2153_v33 = vpop.f32.mrf.mxu0 }
 0x40f   : > { %2210 = vmatmul.f32.gmra.mxu1 %v2153_v33  ;;  %v2573_v50 = vpop.f32.mrf.mxu2 }
 0x411   : > { %3282 = vmatmul.msk.f32.gmra.mxu0 %vm431_vm0, %v2662_v23 }
 0x412   : > { %2365 = vmatmul.f32.gmra.mxu3 %v2308_v56  ;;  %v1957_v55 = vpop.f32.mrf.mxu1 }
 0x413   : > { %v4462_v53 = vpop.f32.mrf.mxu3  ;;  %v1958_v27 = vadd.f32 %v1957_v55, %v4406_v59  ;;  %v4555_v59 = vld [vmem:[%s4748_s8 + $0x478] sm:$0xff]  ;;  %v3315_v55 = vld [vmem:[%s4748_s8 + $0x410] sm:$0xff] }
 0x414   : > { %3341 = vmatpush.msra.mxu3 %v4555_v59 }
 0x416   : > { %v2156_v60 = vpop.f32.mrf.mxu0  ;;  %3342 = vmatpush.msra.mxu3 %v4568_v31 }
 0x417   : > { %2213 = vmatmul.f32.gmra.mxu1 %v2156_v60  ;;  %v2576_v17 = vpop.f32.mrf.mxu2  ;;  %v3303_v60 = vld [vmem:[%s4748_s8 + $0x3f0] sm:$0xff] }
 0x418   : > { %2752 = vmatpush.msra.mxu1 %v3303_v60  ;;  %3343 = vmatpush.msra.mxu3 %v4577_v25 }
 0x419   : > { %3283 = vmatmul.msk.f32.gmra.mxu0 %vm431_vm0, %v2663_v58  ;;  %v3302_v58 = vld [vmem:[%s4748_s8 + $0x3e8] sm:$0xff] }
 0x41a   : > { %2368 = vmatmul.f32.gmra.mxu3 %v2311_v14  ;;  %2753 = vmatpush.msra.mxu1 %v3302_v58  ;;  %v3299_v14 = vld [vmem:[%s4748_s8 + $0x3d0] sm:$0xff] }
 0x41b   : > { %v4492_v57 = vpop.f32.mrf.mxu3  ;;  %3344 = vmatpush.msra.mxu3 %v4582_v34 }
 0x41c   : > { %2754 = vmatpush.msra.mxu1 %v3301_v15 }
 0x41e   : > { %v2159_v24 = vpop.f32.mrf.mxu0  ;;  %2755 = vmatpush.msra.mxu1 %v3300_v0 }
 0x41f   : > { %2216 = vmatmul.f32.gmra.mxu1 %v2159_v24  ;;  %v2579_v33 = vpop.f32.mrf.mxu2  ;;  %v3324_v24 = vld [vmem:[%s4748_s8 + $0x458] sm:$0xff] }
 0x420   : > { %2756 = vmatpush.msra.mxu1 %v3299_v14  ;;  %3345 = vmatpush.msra.mxu3 %v3324_v24 }
 0x421   : > { %3284 = vmatmul.msk.f32.gmra.mxu0 %vm431_vm0, %v2664_v7 }
 0x422   : > { %2627 = vmatmul.f32.vlgmr.msrb.gmra.mxu3 %v2570_v36  ;;  %2757 = vmatpush.msra.mxu1 %v3298_v5  ;;  %v3294_v36 = vld [vmem:[%s4748_s8 + $0x3a8] sm:$0xff] }
 0x423   : > { %v4521_v13 = vpop.f32.mrf.mxu3  ;;  %3346 = vmatpush.msra.mxu3 %v3323_v21 }
 0x424   : > { %2758 = vmatpush.msra.mxu1 %v3297_v63 }
 0x425   : > { %3347 = vmatpush.msra.mxu3 %v3322_v18 }
 0x426   : > { %v2162_v2 = vpop.f32.mrf.mxu0  ;;  %2759 = vmatpush.msra.mxu1 %v3296_v44  ;;  %v1943_v44 = vadd.f32 %v4440_v16, %v4336_v43 }
 0x427   : > { %2219 = vmatmul.f32.gmra.mxu1 %v2162_v2  ;;  %v2582_v45 = vpop.f32.mrf.mxu2  ;;  %3348 = vmatpush.msra.mxu3 %v3321_v6 }
 0x428   : > { %2760 = vmatpush.msra.mxu1 %v3295_v4 }
 0x429   : > { %3285 = vmatmul.msk.f32.gmra.mxu0 %vm431_vm0, %v2665_v48  ;;  %3349 = vmatpush.msra.mxu3 %v3320_v38 }
 0x42a   : > { %2630 = vmatmul.f32.gmra.mxu3 %v2573_v50  ;;  %2761 = vmatpush.msra.mxu1 %v3294_v36  ;;  %v3319_v50 = vld [vmem:[%s4748_s8 + $0x430] sm:$0xff] }
 0x42b   : > { %v4532_v20 = vpop.f32.mrf.mxu3  ;;  %3350 = vmatpush.msra.mxu3 %v3319_v50 }
 0x42c   : > { %2762 = vmatpush.msra.mxu1 %v3293_v29 }
 0x42e   : > { %v2165_v35 = vpop.f32.mrf.mxu0 }
 0x42f   : > { %2222 = vmatmul.f32.gmra.mxu1 %v2165_v35  ;;  %v2585_v41 = vpop.f32.mrf.mxu2  ;;  %v3292_v35 = vld [vmem:[%s4748_s8 + $0x398] sm:$0xff] }
 0x430   : > { %2763 = vmatpush.msra.mxu1 %v3292_v35  ;;  %v1949_v35 = vadd.f32 %v4519_v52, %v4389_v11  ;;  %v1955_v11 = vadd.f32 %v4537_v32, %v4400_v10 }
 0x431   : > { %3286 = vmatmul.msk.f32.gmra.mxu0 %vm431_vm0, %v2666_v8  ;;  %v3318_v8 = vld [vmem:[%s4748_s8 + $0x428] sm:$0xff] }
 0x432   : > { %2633 = vmatmul.f32.gmra.mxu3 %v2576_v17  ;;  %v3291_v17 = vld [vmem:[%s4748_s8 + $0x390] sm:$0xff] }
 0x433   : > { %v4535_v26 = vpop.f32.mrf.mxu3  ;;  %3351 = vmatpush.msra.mxu3 %v3318_v8  ;;  %2764 = vmatpush.msra.mxu1 %v3291_v17 }
 0x436   : > { %v2168_v28 = vpop.f32.mrf.mxu0 }
 0x437   : > { %2225 = vmatmul.f32.gmra.mxu1 %v2168_v28  ;;  %v2588_v19 = vpop.f32.mrf.mxu2  ;;  %v3317_v28 = vld [vmem:[%s4748_s8 + $0x420] sm:$0xff] }
 0x438   : > { %3352 = vmatpush.msra.mxu3 %v3317_v28 }
 0x439   : > { %3287 = vmatmul.msk.f32.gmra.mxu0 %vm431_vm0, %v2667_v51  ;;  %v3290_v51 = vld [vmem:[%s4748_s8 + $0x388] sm:$0xff] }
 0x43a   : > { %2636 = vmatmul.f32.gmra.mxu3 %v2579_v33  ;;  %v3316_v33 = vld [vmem:[%s4748_s8 + $0x418] sm:$0xff]  ;;  %2765 = vmatpush.msra.mxu1 %v3290_v51 }
 0x43b   : > { %v4540_v23 = vpop.f32.mrf.mxu3  ;;  %3353 = vmatpush.msra.mxu3 %v3316_v33 }
 0x43d   : > { %3354 = vmatpush.msra.mxu3 %v3315_v55 }
 0x43e   : > { %v2171_v61 = vpop.f32.mrf.mxu0 }
 0x43f   : > { %2228 = vmatmul.f32.gmra.mxu1 %v2171_v61  ;;  %v2591_v2 = vpop.f32.mrf.mxu2 }
 0x441   : > { %3288 = vmatmul.msk.f32.gmra.mxu0 %vm431_vm0, %v2668_v22  ;;  %v3289_v22 = vld [vmem:[%s4748_s8 + $0x380] sm:$0xff] }
 0x442   : > { %2639 = vmatmul.f32.gmra.mxu3 %v2582_v45  ;;  %v3314_v45 = vld [vmem:[%s4748_s8 + $0x408] sm:$0xff]  ;;  %2766 = vmatpush.msra.mxu1 %v3289_v22 }
 0x443   : > { %v2089_v46 = vpop.f32.mrf.mxu3  ;;  %3355 = vmatpush.msra.mxu3 %v3314_v45 }
 0x444   : > { %v4544_v47 = vadd.f32 %v2089_v46, %v1958_v27  ;;  %v3313_v46 = vld [vmem:[%s4748_s8 + $0x400] sm:$0xff] }
 0x445   : > { %3356 = vmatpush.msra.mxu3 %v3313_v46 }
 0x446   : > { %v2430_v56 = vpop.f32.mrf.mxu0 }
 0x447   : > { %2487 = vmatmul.f32.vlgmr.msrb.gmra.mxu1 %v2430_v56  ;;  %v2853_v56 = vpop.f32.mrf.mxu2 }
 0x448   : > { %2891 = vmatpush.msrb.mxu1 %v4555_v59 }
 0x449   : > { %3305 = vmatmul.msk.f32.vlgmr.msrb.gmra.mxu0 %vm431_vm0, %v2801_v54 }
 0x44a   : > { %2642 = vmatmul.f32.gmra.mxu3 %v2585_v41  ;;  %2892 = vmatpush.msrb.mxu1 %v4568_v31 }
 0x44c   : > { %2893 = vmatpush.msrb.mxu1 %v4577_v25 }
 0x44e   : > { %v2433_v40 = vpop.f32.mrf.mxu0  ;;  %2894 = vmatpush.msrb.mxu1 %v4582_v34  ;;  %v1940_v34 = vadd.f32 %v4410_v49, %v4304_v9 }
 0x44f   : > { %2490 = vmatmul.f32.gmra.mxu1 %v2433_v40  ;;  %v2856_v60 = vpop.f32.mrf.mxu2 }
 0x450   : > { %2895 = vmatpush.msrb.mxu1 %v3324_v24 }
 0x452   : > { %2645 = vmatmul.f32.gmra.mxu3 %v2588_v19  ;;  %2896 = vmatpush.msrb.mxu1 %v3323_v21  ;;  %v2093_v19 = vadd.f32 %v4462_v53, %v1940_v34 }
 0x454   : > { %2897 = vmatpush.msrb.mxu1 %v3322_v18  ;;  %v2094_v18 = vadd.f32 %v4492_v57, %v1943_v44 }
 0x456   : > { %v2436_v7 = vpop.f32.mrf.mxu0  ;;  %2898 = vmatpush.msrb.mxu1 %v3321_v6 }
 0x457   : > { %2493 = vmatmul.f32.gmra.mxu1 %v2436_v7 }
 0x458   : > { %2899 = vmatpush.msrb.mxu1 %v3320_v38  ;;  %v2859_v41 = vpop.f32.mrf.mxu2  ;;  %v1946_v38 = vadd.f32 %v4482_v39, %v4365_v42 }
 0x45a   : > { %2648 = vmatmul.f32.gmra.mxu3 %v2591_v2  ;;  %2900 = vmatpush.msrb.mxu1 %v3319_v50  ;;  %v2095_v2 = vadd.f32 %v4521_v13, %v1946_v38  ;;  %v1952_v13 = vadd.f32 %v4530_v3, %v4396_v30  ;;  %v1937_v30 = vadd.f32 %v4404_v12, %v4276_v37 }
 0x45c   : > { %2901 = vmatpush.msrb.mxu1 %v3318_v8  ;;  %v2096_v8 = vadd.f32 %v4532_v20, %v1949_v35  ;;  %v2098_v20 = vadd.f32 %v4540_v23, %v1955_v11  ;;  %v3403_v35 = vld [vmem:[%s3619_s13 + $0x10] sm:$0xff] }
 0x45e   : > { %v2439_v48 = vpop.f32.mrf.mxu0  ;;  %2902 = vmatpush.msrb.mxu1 %v3317_v28 }
 0x45f   : > { %2496 = vmatmul.f32.gmra.mxu1 %v2439_v48 }
 0x460   : > { %2903 = vmatpush.msrb.mxu1 %v3316_v33  ;;  %v2862_v31 = vpop.f32.mrf.mxu2  ;;  %v2097_v33 = vadd.f32 %v4535_v26, %v1952_v13 }
 0x462   : > { %2910 = vmatmul.f32.vlgmr.msra.gmra.mxu3 %v2853_v56  ;;  %2904 = vmatpush.msrb.mxu1 %v3315_v55 }
 0x464   : > { %2905 = vmatpush.msrb.mxu1 %v3314_v45 }
 0x465   : > { %v4652_v27 = vpop.f32.mrf.mxu3 }
 0x466   : > { %v2442_v61 = vpop.f32.mrf.mxu0  ;;  %2906 = vmatpush.msrb.mxu1 %v3313_v46 }
 0x467   : > { %2499 = vmatmul.f32.gmra.mxu1 %v2442_v61 }
 0x468   : > { %v2865_v5 = vpop.f32.mrf.mxu2 }
 0x46a   : > { %2913 = vmatmul.f32.gmra.mxu3 %v2856_v60  ;;  %v2092_v60 = vadd.f32 %v4432_v1, %v1937_v30 }
 0x46d   : > { %v2351_v62 = vpop.f32.mrf.mxu3 }
 0x46e   : > { %v2445_v54 = vpop.f32.mrf.mxu0 }
 0x46f   : > { %2502 = vmatmul.f32.gmra.mxu1 %v2445_v54 }
 0x470   : > { %v2868_v36 = vpop.f32.mrf.mxu2 }
 0x472   : > { %2916 = vmatmul.f32.gmra.mxu3 %v2859_v41 }
 0x475   : > { %v2354_v59 = vpop.f32.mrf.mxu3 }
 0x476   : > { %v2448_v58 = vpop.f32.mrf.mxu0 }
 0x477   : > { %2505 = vmatmul.f32.gmra.mxu1 %v2448_v58 }
 0x478   : > { %v2871_v29 = vpop.f32.mrf.mxu2 }
 0x47a   : > { %2919 = vmatmul.f32.gmra.mxu3 %v2862_v31 }
 0x47d   : > { %v2357_v15 = vpop.f32.mrf.mxu3 }
 0x47e   : > { %v2451_v40 = vpop.f32.mrf.mxu0 }
 0x47f   : > { %2508 = vmatmul.f32.gmra.mxu1 %v2451_v40 }
 0x482   : > { %2922 = vmatmul.f32.gmra.mxu3 %v2865_v5 }
 0x484   : > { %v4661_v0 = vpop.f32.mrf.mxu1 }
 0x485   : > { %v2360_v14 = vpop.f32.mrf.mxu3  ;;  %v2232_v10 = vadd.f32 %v4661_v0, %v2092_v60 }
 0x486   : > { %v2710_v25 = vpop.f32.mrf.mxu0 }
 0x487   : > { %2767 = vmatmul.f32.vlgmr.msra.gmra.mxu1 %v2710_v25  ;;  %v2372_v23 = vadd.f32 %v4652_v27, %v2232_v10 }
 0x48a   : > { %2925 = vmatmul.f32.gmra.mxu3 %v2868_v36 }
 0x48c   : > { %v2211_v24 = vpop.f32.mrf.mxu1 }
 0x48d   : > { %v2233_v7 = vadd.f32 %v2211_v24, %v2093_v19  ;;  %v2363_v4 = vpop.f32.mrf.mxu3 }
 0x48e   : > { %v2713_v63 = vpop.f32.mrf.mxu0 }
 0x48f   : > { %v4666_v21 = vadd.f32 %v2351_v62, %v2233_v7  ;;  %2770 = vmatmul.f32.gmra.mxu1 %v2713_v63 }
 0x492   : > { %2928 = vmatmul.f32.gmra.mxu3 %v2871_v29 }
 0x494   : > { %v2214_v6 = vpop.f32.mrf.mxu1 }
 0x495   : > { %v2234_v9 = vadd.f32 %v2214_v6, %v2094_v18  ;;  %v2366_v16 = vpop.f32.mrf.mxu3 }
 0x496   : > { %v2716_v49 = vpop.f32.mrf.mxu0 }
 0x497   : > { %v4671_v53 = vadd.f32 %v2354_v59, %v2234_v9  ;;  %2773 = vmatmul.f32.gmra.mxu1 %v2716_v49 }
 0x49c   : > { %v2217_v48 = vpop.f32.mrf.mxu1 }
 0x49d   : > { %v2235_v50 = vadd.f32 %v2217_v48, %v2095_v2  ;;  %v2369_v39 = vpop.f32.mrf.mxu3  ;;  %v3402_v2 = vld [vmem:[%s3619_s13 + $0x8] sm:$0xff] }
 0x49e   : > { %v2719_v43 = vpop.f32.mrf.mxu0 }
 0x49f   : > { %v4676_v57 = vadd.f32 %v2357_v15, %v2235_v50  ;;  %2776 = vmatmul.f32.gmra.mxu1 %v2719_v43 }
 0x4a4   : > { %v2220_v17 = vpop.f32.mrf.mxu1 }
 0x4a5   : > { %v2236_v28 = vadd.f32 %v2220_v17, %v2096_v8  ;;  %v2628_v52 = vpop.f32.mrf.mxu3 }
 0x4a6   : > { %v2722_v51 = vpop.f32.mrf.mxu0 }
 0x4a7   : > { %v4681_v42 = vadd.f32 %v2360_v14, %v2236_v28  ;;  %2779 = vmatmul.f32.gmra.mxu1 %v2722_v51 }
 0x4ac   : > { %v2223_v61 = vpop.f32.mrf.mxu1 }
 0x4ad   : > { %v2237_v22 = vadd.f32 %v2223_v61, %v2097_v33  ;;  %v2631_v26 = vpop.f32.mrf.mxu3  ;;  %v3404_v61 = vld [vmem:[%s3619_s13 + $0x18] sm:$0xff] }
 0x4ae   : > { %v2725_v55 = vpop.f32.mrf.mxu0 }
 0x4af   : > { %v4686_v45 = vadd.f32 %v2363_v4, %v2237_v22  ;;  %2782 = vmatmul.f32.gmra.mxu1 %v2725_v55 }
 0x4b4   : > { %v2226_v46 = vpop.f32.mrf.mxu1 }
 0x4b5   : > { %v2238_v56 = vadd.f32 %v2226_v46, %v2098_v20  ;;  %v2634_v31 = vpop.f32.mrf.mxu3 }
 0x4b6   : > { %v2728_v54 = vpop.f32.mrf.mxu0 }
 0x4b7   : > { %v4691_v62 = vadd.f32 %v2366_v16, %v2238_v56  ;;  %2785 = vmatmul.f32.gmra.mxu1 %v2728_v54  ;;  %v3405_v56 = vld [vmem:[%s3619_s13 + $0x20] sm:$0xff] }
 0x4bc   : > { %v2229_v3 = vpop.f32.mrf.mxu1 }
 0x4bd   : > { %v2239_v58 = vadd.f32 %v2229_v3, %v4544_v47  ;;  %v2637_v12 = vpop.f32.mrf.mxu3 }
 0x4be   : > { %v2731_v59 = vpop.f32.mrf.mxu0 }
 0x4bf   : > { %v4698_v32 = vadd.f32 %v2369_v39, %v2239_v58  ;;  %2788 = vmatmul.f32.gmra.mxu1 %v2731_v59  ;;  %v3406_v58 = vld [vmem:[%s3619_s13 + $0x28] sm:$0xff] }
 0x4c4   : > { %v2488_v41 = vpop.f32.mrf.mxu1 }
 0x4c5   : > { %v2512_v40 = vadd.f32 %v2488_v41, %v2372_v23  ;;  %v2640_v34 = vpop.f32.mrf.mxu3 }
 0x4c6   : > { %v2850_v15 = vpop.f32.mrf.mxu0 }
 0x4c7   : > { %v4701_v25 = vadd.f32 %v2628_v52, %v2512_v40  ;;  %2907 = vmatmul.f32.vlgmr.msrb.gmra.mxu1 %v2850_v15 }
 0x4cc   : > { %v2491_v37 = vpop.f32.mrf.mxu1 }
 0x4cd   : > { %v2643_v0 = vpop.f32.mrf.mxu3  ;;  %v2513_v18 = vadd.f32 %v2491_v37, %v4666_v21 }
 0x4cf   : > { %v2653_v6 = vadd.f32 %v2631_v26, %v2513_v18 }
 0x4d4   : > { %v2494_v1 = vpop.f32.mrf.mxu1 }
 0x4d5   : > { %v2646_v5 = vpop.f32.mrf.mxu3  ;;  %v2514_v49 = vadd.f32 %v2494_v1, %v4671_v53 }
 0x4d7   : > { %v2654_v29 = vadd.f32 %v2634_v31, %v2514_v49  ;;  %v3407_v31 = vld [vmem:[%s3619_s13 + $0x30] sm:$0xff] }
 0x4dc   : > { %v2497_v47 = vpop.f32.mrf.mxu1 }
 0x4dd   : > { %v2649_v27 = vpop.f32.mrf.mxu3  ;;  %v2515_v53 = vadd.f32 %v2497_v47, %v4676_v57 }
 0x4df   : > { %v2655_v17 = vadd.f32 %v2637_v12, %v2515_v53 }
 0x4e4   : > { %v2500_v14 = vpop.f32.mrf.mxu1 }
 0x4e5   : > { %v2911_v63 = vpop.f32.mrf.mxu3  ;;  %v2516_v13 = vadd.f32 %v2500_v14, %v4681_v42  ;;  %v3408_v14 = vld [vmem:[%s3619_s13 + $0x38] sm:$0xff] }
 0x4e7   : > { %v2656_v55 = vadd.f32 %v2640_v34, %v2516_v13 }
 0x4ec   : > { %v2503_v19 = vpop.f32.mrf.mxu1 }
 0x4ed   : > { %v2914_v4 = vpop.f32.mrf.mxu3  ;;  %v2517_v52 = vadd.f32 %v2503_v19, %v4686_v45 }
 0x4ef   : > { %v2657_v30 = vadd.f32 %v2643_v0, %v2517_v52 }
 0x4f4   : > { %v2506_v24 = vpop.f32.mrf.mxu1 }
 0x4f5   : > { %v2917_v50 = vpop.f32.mrf.mxu3  ;;  %v2518_v26 = vadd.f32 %v2506_v24, %v4691_v62 }
 0x4f7   : > { %v2658_v23 = vadd.f32 %v2646_v5, %v2518_v26 }
 0x4fc   : > { %v2509_v7 = vpop.f32.mrf.mxu1 }
 0x4fd   : > { %v2920_v39 = vpop.f32.mrf.mxu3  ;;  %v2519_v40 = vadd.f32 %v2509_v7, %v4698_v32  ;;  %v3409_v32 = vld [vmem:[%s3619_s13] sm:$0xff] }
 0x4ff   : > { %v2659_v12 = vadd.f32 %v2649_v27, %v2519_v40 }
 0x504   : > { %v4703_v44 = vpop.f32.mrf.mxu1 }
 0x505   : > { %v2923_v46 = vpop.f32.mrf.mxu3  ;;  %v2792_v19 = vadd.f32 %v4703_v44, %v4701_v25 }
 0x50c   : > { %v2771_v36 = vpop.f32.mrf.mxu1 }
 0x50d   : > { %v2793_v9 = vadd.f32 %v2771_v36, %v2653_v6  ;;  %v2926_v10 = vpop.f32.mrf.mxu3 }
 0x50f   : > { %v2933_v38 = vadd.f32 %v2911_v63, %v2793_v9 }
 0x511   : > { %v2941_v48 = vadd.f32 %v3402_v2, %v2933_v38 }
 0x513   : > { %2949 = vst [vmem:[%s4712_s23 + $0x8] sm:$0xff] %v2941_v48 }
 0x514   : > { %v2774_v21 = vpop.f32.mrf.mxu1 }
 0x515   : > { %v2794_v43 = vadd.f32 %v2774_v21, %v2654_v29  ;;  %v2929_v1 = vpop.f32.mrf.mxu3 }
 0x517   : > { %v2934_v16 = vadd.f32 %v2914_v4, %v2794_v43 }
 0x519   : > { %v2942_v8 = vadd.f32 %v3403_v35, %v2934_v16 }
 0x51b   : > { %2950 = vst [vmem:[%s4712_s23 + $0x10] sm:$0xff] %v2942_v8 }
 0x51c   : > { %v2777_v28 = vpop.f32.mrf.mxu1 }
 0x51d   : > { %v2795_v51 = vadd.f32 %v2777_v28, %v2655_v17 }
 0x51f   : > { %v2935_v33 = vadd.f32 %v2917_v50, %v2795_v51 }
 0x521   : > { %v2943_v22 = vadd.f32 %v3404_v61, %v2935_v33 }
 0x523   : > { %2951 = vst [vmem:[%s4712_s23 + $0x18] sm:$0xff] %v2943_v22 }
 0x524   : > { %v2780_v11 = vpop.f32.mrf.mxu1 }
 0x525   : > { %v2796_v57 = vadd.f32 %v2780_v11, %v2656_v55 }
 0x527   : > { %v2936_v20 = vadd.f32 %v2920_v39, %v2796_v57 }
 0x529   : > { %v2944_v54 = vadd.f32 %v3405_v56, %v2936_v20 }
 0x52b   : > { %2952 = vst [vmem:[%s4712_s23 + $0x20] sm:$0xff] %v2944_v54 }
 0x52c   : > { %v2783_v3 = vpop.f32.mrf.mxu1 }
 0x52d   : > { %v2797_v42 = vadd.f32 %v2783_v3, %v2657_v30 }
 0x52f   : > { %v2937_v60 = vadd.f32 %v2923_v46, %v2797_v42 }
 0x531   : > { %v2945_v59 = vadd.f32 %v3406_v58, %v2937_v60 }
 0x533   : > { %2953 = vst [vmem:[%s4712_s23 + $0x28] sm:$0xff] %v2945_v59 }
 0x534   : > { %v2786_v45 = vpop.f32.mrf.mxu1 }
 0x535   : > { %v2798_v41 = vadd.f32 %v2786_v45, %v2658_v23 }
 0x537   : > { %v2938_v15 = vadd.f32 %v2926_v10, %v2798_v41 }
 0x539   : > { %v2946_v37 = vadd.f32 %v3407_v31, %v2938_v15 }
 0x53b   : > { %2954 = vst [vmem:[%s4712_s23 + $0x30] sm:$0xff] %v2946_v37 }
 0x53c   : > { %v2789_v62 = vpop.f32.mrf.mxu1 }
 0x53d   : > { %v2799_v34 = vadd.f32 %v2789_v62, %v2659_v12 }
 0x53f   : > { %v2939_v47 = vadd.f32 %v2929_v1, %v2799_v34 }
 0x541   : > { %v2947_v0 = vadd.f32 %v3408_v14, %v2939_v47 }
 0x543   : > { %2955 = vst [vmem:[%s4712_s23 + $0x38] sm:$0xff] %v2947_v0 }
 0x544   : > { %v2908_v5 = vpop.f32.mrf.mxu1 }
 0x545   : > { %v2932_v24 = vadd.f32 %v2908_v5, %v2792_v19 }
 0x547   : > { %v2940_v7 = vadd.f32 %v3409_v32, %v2932_v24 }
 0x549   : > { %2948 = vst [vmem:[%s4712_s23] sm:$0xff] %v2940_v7 }
 0x54a PF: > { %s21_s30 = sadd.s32 1, %s3514_s30  }
 0x54b   : > { %p18_p7 = scmp.ge.s32.totalorder %s21_s30, 4  }
 0x54d   :  { %20 = sbr.rel (!%p18_p7) target bundleno = 2 (0x2), region = 131 }
 0x552   :  { %2977 = vsyncpa [#allocation3], 1 }
 0x553   :  { %2979 = vsyncpa [#allocation3 + $0x1], 1 }
 0x554   :  { %2980 = vsyncpa [#allocation5], 1 }

// kernel: network_block_forward.2
= control target key start
LH: loop header
LB: loop body
LE: loop exit
PB: predicated region body
PF: predicated region fallthrough
CT: control target
= control target key end

     0   :  { %s5096_s0 = inlined_call_operand.vmem [shape: f32[2,256,128], index: 0, kind: input, shape index: {}]   ;;  %s5097_s1 = inlined_call_operand.vmem [shape: f32[1,128], index: 1, kind: input, shape index: {}]   ;;  %s5098_s2 = inlined_call_operand.vmem [shape: f32[1,128], index: 2, kind: input, shape index: {}]   ;;  %s5099_s3 = inlined_call_operand.vmem [shape: f32[1,128], index: 3, kind: input, shape index: {}]   ;;  %s5100_s4 = inlined_call_operand.vmem [shape: f32[1,128], index: 4, kind: input, shape index: {}]   ;;  %s5101_s5 = inlined_call_operand.hbm [shape: f32[9,64,256], index: 5, kind: input, shape index: {}]   ;;  %s5102_s6 = inlined_call_operand.hbm [shape: f32[9,128,128], index: 6, kind: input, shape index: {}]   ;;  %s5103_s7 = inlined_call_operand.hbm [shape: f32[9,64,64], index: 7, kind: input, shape index: {}]   ;;  %s5104_s8 = inlined_call_operand.hbm [shape: f32[9,128,128], index: 8, kind: input, shape index: {}]   ;;  %s5105_s9 = inlined_call_operand.vmem [shape: f32[64,256], index: 9, kind: input, shape index: {}]   ;;  %s5106_s10 = inlined_call_operand.vmem [shape: f32[128,128], index: 10, kind: input, shape index: {}]   ;;  %s5107_s11 = inlined_call_operand.vmem [shape: f32[2,64,128], index: 11, kind: output, shape index: {}]  }
   0x1   :  { %5140 = sst [smem:[#allocation56_spill]] %s5101_s5 }
   0x2   :  { %16 = vsyncpa [#allocation3], 0 }
   0x3   :  { %17 = vsyncpa [#allocation5], 0 }
   0x4   :  { %18 = vsyncpa [#allocation8], 0  ;;  %s3957_s17 = smov 0  }
   0x5 LB: > { %s328_s20 = sshll.u32 %s5102_s6, 4  ;;  %s3966_s21 = sadd.s32 4294967295, %s3887_s17   ;;  %s3887_s17 = sphi %s3957_s17, %s24_s17   ;;  %s329_s20 = int_to_ptr.hbm [resolvable:$true] %s328_s20 }
   0x6   : > { %p3601_p0 = scmp.ge.s32.totalorder %s3887_s17, 1  ;;  %p291_p1 = scmp.lt.s32.totalorder %s3887_s17, 3 }
   0x7   : > { %p3721_p2 = scmp.eq.s32.totalorder %s3966_s21, 0  ;;  %s3889_s23 = smov [#allocation4]  }
   0x8   : > { %p3971_p3 = pnand %p3601_p0, %p291_p1  ;;  %s330_s24 = sshll.u32 %s3889_s23, 4  ;;  %s331_s24 = int_to_ptr.vmem [resolvable:$true] %s330_s24 }
   0x9   : > { %s5142_s5 = sld [smem:[#allocation56_spill]]  ;;  %s3890_s29 = smov [#allocation2]  }
   0xa   : > { %p3708_p4 = pneg %p3971_p3  ;;  %s316_s30 = sshll.u32 %s3890_s29, 4  ;;  %s317_s30 = int_to_ptr.vmem [resolvable:$true] %s316_s30 }
   0xb   : > { %s3891_s12 = smov 128   ;;  %s3892_s13 = smov 8  }
   0xc   : > { %p3982_p5 = pnand %p3721_p2, %p3708_p4  ;;  %s342_s16 = sshll.u32 %s5103_s7, 4  ;;  %s343_s16 = int_to_ptr.hbm [resolvable:$true] %s342_s16 }
   0xd   : > { %s3893_s18 = smov 256   ;;  %s3894_s19 = smov 16  }
   0xe   : > { %3714 = dma.hbm_to_vmem [thread:$0]  (!%p3982_p5), %s329_s20, 18432, %s331_s24, [#allocation5], %s3891_s12, %s3891_s12, %s3892_s13  }
   0xf   : > { %s314_s27 = sshll.u32 %s5142_s5, 4  ;;  %s3895_s23 = smov [#allocation6]   ;;  %s315_s27 = int_to_ptr.hbm [resolvable:$true] %s314_s27 }
  0x10   : > { %3711 = dma.hbm_to_vmem [thread:$0]  (!%p3982_p5), %s315_s27, 18432, %s317_s30, [#allocation3], %s3893_s18, %s3893_s18, %s3894_s19  }
  0x11   : > { %s344_s25 = sshll.u32 %s3895_s23, 4  ;;  %s356_s29 = sshll.u32 %s5104_s8, 4  ;;  %s345_s25 = int_to_ptr.vmem [resolvable:$true] %s344_s25  ;;  %s357_s29 = int_to_ptr.hbm [resolvable:$true] %s356_s29 }
  0x12   : > { %3717 = dma.hbm_to_vmem [thread:$0]  (!%p3982_p5), %s343_s16, 9216, %s345_s25, [#allocation5], %s3891_s12, %s3891_s12, %s3892_s13  }
  0x13   : > { %s3896_s20 = smov [#allocation7]   ;;  %388 = sbr.rel (%p3971_p3) target bundleno = 1901 (0x76d), region = 64 }
  0x14   : > { %s358_s24 = sshll.u32 %s3896_s20, 4  ;;  %s359_s24 = int_to_ptr.vmem [resolvable:$true] %s358_s24 }
  0x15   : > { %3720 = dma.hbm_to_vmem [thread:$0]  (!%p3982_p5), %s357_s29, 18432, %s359_s24, [#allocation8], %s3891_s12, %s3891_s12, %s3892_s13  }
  0x18   : > { %3874 = dma.done.wait (%p3721_p2), [#allocation3], 18432  }
  0x19   : > { %3876 = vsyncadd (%p3721_p2), [#allocation3], 4294948864 }
  0x1a   : > { %3878 = dma.done.wait (%p3721_p2), [#allocation5], 27648  }
  0x1b   : > { %3880 = vsyncadd (%p3721_p2), [#allocation5], 4294939648 }
  0x1c   : > { %3882 = dma.done.wait (%p3721_p2), [#allocation8], 18432  }
  0x1d   : > { %3884 = vsyncadd (%p3721_p2), [#allocation8], 4294948864  ;;  %p444_p6 = scmp.lt.s32.totalorder %s3966_s21, 1  ;;  %v4028_v1 = vld [vmem:[%s5097_s1] ss:$0 sm:$0xff]  ;;  %vm2097_vm0 = vcmask 523264  }
  0x1e   : > { %v4033_v2 = vld [vmem:[%s5098_s2] ss:$0 sm:$0xff] }
  0x1f   : > { %s5233_s21 = smov (!%p444_p6, %s3966_s21), 1 }
  0x20   : > { %s3690_s5 = sshll.u32 %s5233_s21, 8  ;;  %s3691_s30 = sshll.u32 %s5233_s21, 6 }
  0x21   : > { %s4022_s28 = scalar_lea.vmem %s5096_s0, %s3690_s5  ;;  %s5076_s14 = scalar_lea.vmem %s5107_s11, %s3691_s30 }
  0x22   : > { %v469_v0 = vld [vmem:[%s4022_s28 + $0x78] sm:$0xff]  ;;  %v468_v6 = vld [vmem:[%s4022_s28 + $0x70] sm:$0xff]  ;;  %v467_v8 = vld [vmem:[%s4022_s28 + $0x68] sm:$0xff] }
  0x23   : > { %v485_v3 = vld [vmem:[%s4022_s28 + $0xf8] sm:$0xff]  ;;  %v505_v4 = vmul.f32 %v4028_v1, %v469_v0  ;;  %v484_v7 = vld [vmem:[%s4022_s28 + $0xf0] sm:$0xff]  ;;  %v504_v9 = vmul.f32 %v4028_v1, %v468_v6  ;;  %v503_v11 = vmul.f32 %v4028_v1, %v467_v8  ;;  %v483_v12 = vld [vmem:[%s4022_s28 + $0xe8] sm:$0xff] }
  0x24   : > { %v521_v5 = vmul.f32 %v4028_v1, %v485_v3  ;;  %v520_v10 = vmul.f32 %v4028_v1, %v484_v7  ;;  %v466_v13 = vld [vmem:[%s4022_s28 + $0x60] sm:$0xff]  ;;  %v519_v17 = vmul.f32 %v4028_v1, %v483_v12  ;;  %v465_v23 = vld [vmem:[%s4022_s28 + $0x58] sm:$0xff]  ;;  %v464_v29 = vld [vmem:[%s4022_s28 + $0x50] sm:$0xff] }
  0x25   : > { %v482_v14 = vld [vmem:[%s4022_s28 + $0xe0] sm:$0xff]  ;;  %v541_v15 = vadd.f32 %v4033_v2, %v505_v4  ;;  %v502_v18 = vmul.f32 %v4028_v1, %v466_v13  ;;  %v540_v19 = vadd.f32 %v4033_v2, %v504_v9  ;;  %v539_v21 = vadd.f32 %v4033_v2, %v503_v11  ;;  %v481_v24 = vld [vmem:[%s4022_s28 + $0xd8] sm:$0xff]  ;;  %v480_v30 = vld [vmem:[%s4022_s28 + $0xd0] sm:$0xff] }
  0x26   : > { %v557_v16 = vadd.f32 %v4033_v2, %v521_v5  ;;  %v556_v20 = vadd.f32 %v4033_v2, %v520_v10  ;;  %v518_v22 = vmul.f32 %v4028_v1, %v482_v14  ;;  %v555_v27 = vadd.f32 %v4033_v2, %v519_v17  ;;  %v463_v31 = vld [vmem:[%s4022_s28 + $0x48] sm:$0xff]  ;;  %v462_v44 = vld [vmem:[%s4022_s28 + $0x40] sm:$0xff]  ;;  %v461_v53 = vld [vmem:[%s4022_s28 + $0x38] sm:$0xff] }
  0x27   : > { %v4057_v25 = vmax.f32 %v541_v15, 0.0  ;;  %v538_v28 = vadd.f32 %v4033_v2, %v502_v18  ;;  %v4066_v32 = vmax.f32 %v540_v19, 0.0  ;;  %v479_v35 = vld [vmem:[%s4022_s28 + $0xc8] sm:$0xff]  ;;  %v4074_v36 = vmax.f32 %v539_v21, 0.0  ;;  %v478_v49 = vld [vmem:[%s4022_s28 + $0xc0] sm:$0xff]  ;;  %v477_v54 = vld [vmem:[%s4022_s28 + $0xb8] sm:$0xff] }
  0x28   : > { %v4059_v26 = vmax.f32 %v557_v16, 0.0  ;;  %v4068_v33 = vmax.f32 %v556_v20, 0.0  ;;  %v554_v34 = vadd.f32 %v4033_v2, %v518_v22  ;;  %v4076_v37 = vmax.f32 %v555_v27, 0.0  ;;  %v460_v59 = vld [vmem:[%s4022_s28 + $0x30] sm:$0xff]  ;;  %v459_v63 = vld [vmem:[%s4022_s28 + $0x28] sm:$0xff]  ;;  %v458_v11 = vld [vmem:[%s4022_s28 + $0x20] sm:$0xff] }
  0x29   : > { %5144 = vst [vmem:[#allocation12_spill] sm:$0xff] %v4057_v25  ;;  %606 = vmatpush.msra.mxu0 %v4057_v25  ;;  %v501_v38 = vmul.f32 %v4028_v1, %v465_v23  ;;  %v517_v39 = vmul.f32 %v4028_v1, %v481_v24  ;;  %721 = vmatpush.msra.mxu2 %v4057_v25  ;;  %v4082_v40 = vmax.f32 %v538_v28, 0.0  ;;  %v476_v60 = vld [vmem:[%s4022_s28 + $0xb0] sm:$0xff]  ;;  %v475_v6 = vld [vmem:[%s4022_s28 + $0xa8] sm:$0xff]  ;;  %v474_v16 = vld [vmem:[%s4022_s28 + $0xa0] sm:$0xff] }
  0x2a   : > { %5145 = vst [vmem:[#allocation13_spill] sm:$0xff] %v4059_v26  ;;  %647 = vmatpush.msra.mxu1 %v4059_v26  ;;  %762 = vmatpush.msra.mxu3 %v4059_v26  ;;  %v500_v41 = vmul.f32 %v4028_v1, %v464_v29  ;;  %v516_v42 = vmul.f32 %v4028_v1, %v480_v30  ;;  %v4090_v45 = vmax.f32 %v554_v34, 0.0  ;;  %v457_v19 = vld [vmem:[%s4022_s28 + $0x18] sm:$0xff]  ;;  %v456_v27 = vld [vmem:[%s4022_s28 + $0x10] sm:$0xff] }
  0x2b   : > { %5146 = vst [vmem:[#allocation14_spill] sm:$0xff] %v4066_v32  ;;  %v499_v43 = vmul.f32 %v4028_v1, %v463_v31  ;;  %607 = vmatpush.msra.mxu0 %v4066_v32  ;;  %v537_v46 = vadd.f32 %v4033_v2, %v501_v38  ;;  %v553_v47 = vadd.f32 %v4033_v2, %v517_v39  ;;  %v473_v20 = vld [vmem:[%s4022_s28 + $0x98] sm:$0xff]  ;;  %v472_v31 = vld [vmem:[%s4022_s28 + $0x90] sm:$0xff] }
  0x2c   : > { %5147 = vst [vmem:[#allocation15_spill] sm:$0xff] %v4068_v33  ;;  %648 = vmatpush.msra.mxu1 %v4068_v33  ;;  %v515_v48 = vmul.f32 %v4028_v1, %v479_v35  ;;  %722 = vmatpush.msra.mxu2 %v4066_v32  ;;  %v536_v50 = vadd.f32 %v4033_v2, %v500_v41 }
  0x2d   : > { %5148 = vst [vmem:[#allocation16_spill] sm:$0xff] %v4074_v36  ;;  %763 = vmatpush.msra.mxu3 %v4068_v33  ;;  %v552_v51 = vadd.f32 %v4033_v2, %v516_v42  ;;  %v535_v52 = vadd.f32 %v4033_v2, %v499_v43  ;;  %608 = vmatpush.msra.mxu0 %v4074_v36  ;;  %v4105_v55 = vmax.f32 %v537_v46, 0.0  ;;  %v4107_v56 = vmax.f32 %v553_v47, 0.0  ;;  %v455_v43 = vld [vmem:[%s4022_s28 + $0x8] sm:$0xff] }
  0x2e   : > { %5149 = vst [vmem:[#allocation17_spill] sm:$0xff] %v4076_v37  ;;  %649 = vmatpush.msra.mxu1 %v4076_v37  ;;  %v551_v57 = vadd.f32 %v4033_v2, %v515_v48  ;;  %v498_v58 = vmul.f32 %v4028_v1, %v462_v44  ;;  %723 = vmatpush.msra.mxu2 %v4074_v36  ;;  %v4115_v61 = vmax.f32 %v536_v50, 0.0  ;;  %v471_v44 = vld [vmem:[%s4022_s28 + $0x88] sm:$0xff] }
  0x2f   : > { %5150 = vst [vmem:[#allocation18_spill] sm:$0xff] %v4082_v40  ;;  %764 = vmatpush.msra.mxu3 %v4076_v37  ;;  %v514_v62 = vmul.f32 %v4028_v1, %v478_v49  ;;  %609 = vmatpush.msra.mxu0 %v4082_v40  ;;  %v4121_v0 = vmax.f32 %v552_v51, 0.0  ;;  %v497_v4 = vmul.f32 %v4028_v1, %v461_v53  ;;  %v4129_v7 = vmax.f32 %v535_v52, 0.0  ;;  %v454_v52 = vld [vmem:[%s4022_s28] sm:$0xff] }
  0x30   : > { %5151 = vst [vmem:[#allocation19_spill] sm:$0xff] %v4090_v45  ;;  %650 = vmatpush.msra.mxu1 %v4090_v45  ;;  %v534_v3 = vadd.f32 %v4033_v2, %v498_v58  ;;  %v513_v5 = vmul.f32 %v4028_v1, %v477_v54  ;;  %724 = vmatpush.msra.mxu2 %v4082_v40  ;;  %v4137_v12 = vmax.f32 %v551_v57, 0.0  ;;  %v470_v53 = vld [vmem:[%s4022_s28 + $0x80] sm:$0xff] }
  0x31   : > { %5152 = vst [vmem:[#allocation20_spill] sm:$0xff] %v4105_v55  ;;  %765 = vmatpush.msra.mxu3 %v4090_v45  ;;  %v550_v8 = vadd.f32 %v4033_v2, %v514_v62  ;;  %v496_v9 = vmul.f32 %v4028_v1, %v460_v59  ;;  %v512_v10 = vmul.f32 %v4028_v1, %v476_v60 }
  0x32   : > { %5153 = vst [vmem:[#allocation21_spill] sm:$0xff] %v4107_v56  ;;  %610 = vmatpush.msra.mxu0 %v4105_v55  ;;  %651 = vmatpush.msra.mxu1 %v4107_v56  ;;  %v533_v13 = vadd.f32 %v4033_v2, %v497_v4  ;;  %v549_v14 = vadd.f32 %v4033_v2, %v513_v5  ;;  %v4145_v17 = vmax.f32 %v534_v3, 0.0 }
  0x33   : > { %5154 = vst [vmem:[#allocation22_spill] sm:$0xff] %v4115_v61  ;;  %v495_v15 = vmul.f32 %v4028_v1, %v459_v63  ;;  %725 = vmatpush.msra.mxu2 %v4105_v55  ;;  %766 = vmatpush.msra.mxu3 %v4107_v56  ;;  %v511_v18 = vmul.f32 %v4028_v1, %v475_v6  ;;  %v4152_v21 = vmax.f32 %v550_v8, 0.0 }
  0x34   : > { %5155 = vst [vmem:[#allocation23_spill] sm:$0xff] %v4121_v0  ;;  %611 = vmatpush.msra.mxu0 %v4115_v61  ;;  %652 = vmatpush.msra.mxu1 %v4121_v0  ;;  %v532_v22 = vadd.f32 %v4033_v2, %v496_v9  ;;  %v548_v23 = vadd.f32 %v4033_v2, %v512_v10  ;;  %v4160_v28 = vmax.f32 %v533_v13, 0.0  ;;  %v4167_v34 = vmax.f32 %v549_v14, 0.0 }
  0x35   : > { %5156 = vst [vmem:[#allocation24_spill] sm:$0xff] %v4129_v7  ;;  %v494_v24 = vmul.f32 %v4028_v1, %v458_v11  ;;  %726 = vmatpush.msra.mxu2 %v4115_v61  ;;  %767 = vmatpush.msra.mxu3 %v4121_v0  ;;  %v531_v29 = vadd.f32 %v4033_v2, %v495_v15 }
  0x36   : > { %5157 = vst [vmem:[#allocation25_spill] sm:$0xff] %v4137_v12  ;;  %v510_v30 = vmul.f32 %v4028_v1, %v474_v16  ;;  %612 = vmatpush.msra.mxu0 %v4129_v7  ;;  %653 = vmatpush.msra.mxu1 %v4137_v12  ;;  %v547_v35 = vadd.f32 %v4033_v2, %v511_v18  ;;  %v4180_v46 = vmax.f32 %v532_v22, 0.0  ;;  %v4182_v47 = vmax.f32 %v548_v23, 0.0  ;;  %v705_v22 = vld [vmem:[#allocation2 + $0x80] sm:$0xff]  ;;  %v706_v23 = vld [vmem:[#allocation2 + $0x88] sm:$0xff] }
  0x37   : > { %5158 = vst [vmem:[#allocation26_spill] sm:$0xff] %v4145_v17  ;;  %v493_v38 = vmul.f32 %v4028_v1, %v457_v19  ;;  %v509_v39 = vmul.f32 %v4028_v1, %v473_v20  ;;  %727 = vmatpush.msra.mxu2 %v4129_v7  ;;  %768 = vmatpush.msra.mxu3 %v4137_v12  ;;  %v4188_v50 = vmax.f32 %v531_v29, 0.0  ;;  %v590_v19 = vld [vmem:[#allocation2] sm:$0xff]  ;;  %v591_v20 = vld [vmem:[#allocation2 + $0x8] sm:$0xff]  ;;  %v707_v29 = vld [vmem:[#allocation2 + $0x90] sm:$0xff] }
  0x38   : > { %5159 = vst [vmem:[#allocation27_spill] sm:$0xff] %v4152_v21  ;;  %v530_v41 = vadd.f32 %v4033_v2, %v494_v24  ;;  %v492_v42 = vmul.f32 %v4028_v1, %v456_v27  ;;  %613 = vmatpush.msra.mxu0 %v4145_v17  ;;  %654 = vmatpush.msra.mxu1 %v4152_v21  ;;  %v4195_v54 = vmax.f32 %v547_v35, 0.0  ;;  %v592_v24 = vld [vmem:[#allocation2 + $0x10] sm:$0xff]  ;;  %v593_v27 = vld [vmem:[#allocation2 + $0x18] sm:$0xff]  ;;  %v595_v35 = vld [vmem:[#allocation2 + $0x28] sm:$0xff] }
  0x39   : > { %5160 = vst [vmem:[#allocation28_spill] sm:$0xff] %v4160_v28  ;;  %v546_v48 = vadd.f32 %v4033_v2, %v510_v30  ;;  %v508_v49 = vmul.f32 %v4028_v1, %v472_v31  ;;  %728 = vmatpush.msra.mxu2 %v4145_v17  ;;  %769 = vmatpush.msra.mxu3 %v4152_v21  ;;  %v708_v30 = vld [vmem:[#allocation2 + $0x98] sm:$0xff]  ;;  %v594_v31 = vld [vmem:[#allocation2 + $0x20] sm:$0xff] }
  0x3a   : > { %5161 = vst [vmem:[#allocation29_spill] sm:$0xff] %v4167_v34  ;;  %v529_v51 = vadd.f32 %v4033_v2, %v493_v38  ;;  %614 = vmatpush.msra.mxu0 %v4160_v28  ;;  %655 = vmatpush.msra.mxu1 %v4167_v34  ;;  %v545_v57 = vadd.f32 %v4033_v2, %v509_v39  ;;  %v4202_v60 = vmax.f32 %v530_v41, 0.0  ;;  %v709_v38 = vld [vmem:[#allocation2 + $0xa0] sm:$0xff]  ;;  %v710_v39 = vld [vmem:[#allocation2 + $0xa8] sm:$0xff]  ;;  %v596_v41 = vld [vmem:[#allocation2 + $0x30] sm:$0xff] }
  0x3b   : > { %5162 = vst [vmem:[#allocation30_spill] sm:$0xff] %v4180_v46  ;;  %v491_v58 = vmul.f32 %v4028_v1, %v455_v43  ;;  %v507_v59 = vmul.f32 %v4028_v1, %v471_v44  ;;  %729 = vmatpush.msra.mxu2 %v4160_v28  ;;  %770 = vmatpush.msra.mxu3 %v4167_v34  ;;  %v4207_v63 = vmax.f32 %v546_v48, 0.0  ;;  %v711_v43 = vld [vmem:[#allocation2 + $0xb0] sm:$0xff]  ;;  %v712_v44 = vld [vmem:[#allocation2 + $0xb8] sm:$0xff]  ;;  %v598_v48 = vld [vmem:[#allocation2 + $0x40] sm:$0xff] }
  0x3c   : > { %5163 = vst [vmem:[#allocation31_spill] sm:$0xff] %v4182_v47  ;;  %v528_v62 = vadd.f32 %v4033_v2, %v492_v42  ;;  %615 = vmatpush.msra.mxu0 %v4180_v46  ;;  %656 = vmatpush.msra.mxu1 %v4182_v47  ;;  %v544_v3 = vadd.f32 %v4033_v2, %v508_v49  ;;  %v4216_v6 = vmax.f32 %v529_v51, 0.0  ;;  %v4218_v8 = vmax.f32 %v545_v57, 0.0  ;;  %v597_v42 = vld [vmem:[#allocation2 + $0x38] sm:$0xff]  ;;  %v599_v49 = vld [vmem:[#allocation2 + $0x48] sm:$0xff]  ;;  %v713_v51 = vld [vmem:[#allocation2 + $0xc0] sm:$0xff] }
  0x3d   : > { %5164 = vst [vmem:[#allocation32_spill] sm:$0xff] %v4188_v50  ;;  %v490_v4 = vmul.f32 %v4028_v1, %v454_v52  ;;  %v506_v5 = vmul.f32 %v4028_v1, %v470_v53  ;;  %730 = vmatpush.msra.mxu2 %v4180_v46  ;;  %771 = vmatpush.msra.mxu3 %v4182_v47  ;;  %v714_v52 = vld [vmem:[#allocation2 + $0xc8] sm:$0xff]  ;;  %v600_v53 = vld [vmem:[#allocation2 + $0x50] sm:$0xff]  ;;  %v601_v57 = vld [vmem:[#allocation2 + $0x58] sm:$0xff] }
  0x3e   : > { %5165 = vst [vmem:[#allocation33_spill] sm:$0xff] %v4195_v54  ;;  %616 = vmatpush.msra.mxu0 %v4188_v50  ;;  %657 = vmatpush.msra.mxu1 %v4195_v54  ;;  %v527_v9 = vadd.f32 %v4033_v2, %v491_v58  ;;  %v543_v10 = vadd.f32 %v4033_v2, %v507_v59  ;;  %v4226_v1 = vmax.f32 %v528_v62, 0.0  ;;  %v4228_v11 = vmax.f32 %v544_v3, 0.0  ;;  %v715_v58 = vld [vmem:[#allocation2 + $0xd0] sm:$0xff]  ;;  %v716_v59 = vld [vmem:[#allocation2 + $0xd8] sm:$0xff]  ;;  %v602_v62 = vld [vmem:[#allocation2 + $0x60] sm:$0xff] }
  0x3f   : > { %5166 = vst [vmem:[#allocation34_spill] sm:$0xff] %v4202_v60  ;;  %731 = vmatpush.msra.mxu2 %v4188_v50  ;;  %772 = vmatpush.msra.mxu3 %v4195_v54  ;;  %v526_v13 = vadd.f32 %v4033_v2, %v490_v4  ;;  %v542_v14 = vadd.f32 %v4033_v2, %v506_v5  ;;  %v603_v3 = vld [vmem:[#allocation2 + $0x68] sm:$0xff]  ;;  %v717_v4 = vld [vmem:[#allocation2 + $0xe0] sm:$0xff] }
  0x40   : > { %5167 = vst [vmem:[#allocation35_spill] sm:$0xff] %v4207_v63  ;;  %617 = vmatpush.msra.mxu0 %v4202_v60  ;;  %658 = vmatpush.msra.mxu1 %v4207_v63  ;;  %v4236_v15 = vmax.f32 %v527_v9, 0.0  ;;  %v4238_v16 = vmax.f32 %v543_v10, 0.0  ;;  %v718_v5 = vld [vmem:[#allocation2 + $0xe8] sm:$0xff]  ;;  %v604_v9 = vld [vmem:[#allocation2 + $0x70] sm:$0xff]  ;;  %v605_v10 = vld [vmem:[#allocation2 + $0x78] sm:$0xff] }
  0x41   : > { %5168 = vst [vmem:[#allocation36_spill] sm:$0xff] %v4216_v6  ;;  %732 = vmatpush.msra.mxu2 %v4202_v60  ;;  %773 = vmatpush.msra.mxu3 %v4207_v63  ;;  %v4244_v2 = vmax.f32 %v526_v13, 0.0  ;;  %v4246_v18 = vmax.f32 %v542_v14, 0.0  ;;  %v719_v13 = vld [vmem:[#allocation2 + $0xf0] sm:$0xff]  ;;  %v720_v14 = vld [vmem:[#allocation2 + $0xf8] sm:$0xff] }
  0x42   : > { %5169 = vst [vmem:[#allocation37_spill] sm:$0xff] %v4218_v8  ;;  %618 = vmatpush.msra.mxu0 %v4216_v6  ;;  %659 = vmatpush.msra.mxu1 %v4218_v8 }
  0x43   : > { %5170 = vst [vmem:[#allocation38_spill] sm:$0xff] %v4226_v1  ;;  %733 = vmatpush.msra.mxu2 %v4216_v6  ;;  %774 = vmatpush.msra.mxu3 %v4218_v8 }
  0x44   : > { %5171 = vst [vmem:[#allocation39_spill] sm:$0xff] %v4228_v11  ;;  %619 = vmatpush.msra.mxu0 %v4226_v1  ;;  %660 = vmatpush.msra.mxu1 %v4228_v11 }
  0x45   : > { %5172 = vst [vmem:[#allocation40_spill] sm:$0xff] %v4236_v15  ;;  %734 = vmatpush.msra.mxu2 %v4226_v1  ;;  %775 = vmatpush.msra.mxu3 %v4228_v11 }
  0x46   : > { %5173 = vst [vmem:[#allocation41_spill] sm:$0xff] %v4238_v16  ;;  %620 = vmatpush.msra.mxu0 %v4236_v15  ;;  %661 = vmatpush.msra.mxu1 %v4238_v16 }
  0x47   : > { %5174 = vst [vmem:[#allocation42_spill] sm:$0xff] %v4244_v2  ;;  %735 = vmatpush.msra.mxu2 %v4236_v15  ;;  %776 = vmatpush.msra.mxu3 %v4238_v16 }
  0x48   : > { %5175 = vst [vmem:[#allocation43_spill] sm:$0xff] %v4246_v18  ;;  %621 = vmatpush.msra.mxu0 %v4244_v2  ;;  %662 = vmatpush.msra.mxu1 %v4246_v18 }
  0x49   : > { %736 = vmatpush.msra.mxu2 %v4244_v2  ;;  %777 = vmatpush.msra.mxu3 %v4246_v18 }
  0x4a   : > { %622 = vmatmul.f32.vlgmr.msra.gmra.mxu0 %v590_v19  ;;  %663 = vmatmul.f32.vlgmr.msra.gmra.mxu1 %v591_v20  ;;  %v903_v19 = vld [vmem:[#allocation2 + $0x100] sm:$0xff]  ;;  %v904_v20 = vld [vmem:[#allocation2 + $0x108] sm:$0xff] }
  0x4b   : > { %737 = vmatmul.f32.vlgmr.msra.gmra.mxu2 %v705_v22  ;;  %778 = vmatmul.f32.vlgmr.msra.gmra.mxu3 %v706_v23  ;;  %v703_v22 = vld [vmem:[#allocation4 + $0x78] sm:$0xff]  ;;  %v702_v23 = vld [vmem:[#allocation4 + $0x70] sm:$0xff] }
  0x4c   : > { %919 = vmatpush.msrb.mxu2 %v4057_v25  ;;  %960 = vmatpush.msrb.mxu3 %v4059_v26 }
  0x4d   : > { %861 = vmatpush.msrb.mxu1 %v703_v22  ;;  %v808_v22 = vld [vmem:[#allocation4 + $0xa0] sm:$0xff] }
  0x4e   : > { %920 = vmatpush.msrb.mxu2 %v4066_v32  ;;  %961 = vmatpush.msrb.mxu3 %v4068_v33 }
  0x4f   : > { %862 = vmatpush.msrb.mxu1 %v702_v23  ;;  %v689_v23 = vld [vmem:[#allocation4 + $0x8] sm:$0xff] }
  0x50   : > { %921 = vmatpush.msrb.mxu2 %v4074_v36  ;;  %962 = vmatpush.msrb.mxu3 %v4076_v37 }
  0x52   : > { %625 = vmatmul.f32.gmra.mxu0 %v592_v24  ;;  %666 = vmatmul.f32.gmra.mxu1 %v593_v27  ;;  %v819_v24 = vld [vmem:[#allocation4 + $0xf8] sm:$0xff]  ;;  %v701_v27 = vld [vmem:[#allocation4 + $0x68] sm:$0xff] }
  0x53   : > { %740 = vmatmul.f32.gmra.mxu2 %v707_v29  ;;  %781 = vmatmul.f32.gmra.mxu3 %v708_v30  ;;  %v700_v29 = vld [vmem:[#allocation4 + $0x60] sm:$0xff]  ;;  %v905_v30 = vld [vmem:[#allocation2 + $0x110] sm:$0xff] }
  0x54   : > { %922 = vmatpush.msrb.mxu2 %v4082_v40  ;;  %963 = vmatpush.msrb.mxu3 %v4090_v45 }
  0x55   : > { %820 = vmatpush.msrb.mxu0 %v819_v24  ;;  %863 = vmatpush.msrb.mxu1 %v701_v27  ;;  %v912_v24 = vld [vmem:[#allocation2 + $0x148] sm:$0xff]  ;;  %v807_v27 = vld [vmem:[#allocation4 + $0x98] sm:$0xff] }
  0x56   : > { %923 = vmatpush.msrb.mxu2 %v4105_v55  ;;  %964 = vmatpush.msrb.mxu3 %v4107_v56 }
  0x57   : > { %864 = vmatpush.msrb.mxu1 %v700_v29  ;;  %v688_v29 = vld [vmem:[#allocation4] sm:$0xff] }
  0x58   : > { %924 = vmatpush.msrb.mxu2 %v4115_v61  ;;  %965 = vmatpush.msrb.mxu3 %v4121_v0 }
  0x5a   : > { %628 = vmatmul.f32.gmra.mxu0 %v594_v31  ;;  %669 = vmatmul.f32.gmra.mxu1 %v595_v35  ;;  %v906_v31 = vld [vmem:[#allocation2 + $0x118] sm:$0xff]  ;;  %v818_v35 = vld [vmem:[#allocation4 + $0xf0] sm:$0xff] }
  0x5b   : > { %743 = vmatmul.f32.gmra.mxu2 %v709_v38  ;;  %784 = vmatmul.f32.gmra.mxu3 %v710_v39  ;;  %v699_v38 = vld [vmem:[#allocation4 + $0x58] sm:$0xff]  ;;  %v817_v39 = vld [vmem:[#allocation4 + $0xe8] sm:$0xff] }
  0x5c   : > { %925 = vmatpush.msrb.mxu2 %v4129_v7  ;;  %966 = vmatpush.msrb.mxu3 %v4137_v12 }
  0x5d   : > { %821 = vmatpush.msrb.mxu0 %v818_v35  ;;  %865 = vmatpush.msrb.mxu1 %v699_v38  ;;  %v804_v35 = vld [vmem:[#allocation4 + $0x80] sm:$0xff]  ;;  %v913_v38 = vld [vmem:[#allocation2 + $0x150] sm:$0xff] }
  0x5e   : > { %926 = vmatpush.msrb.mxu2 %v4145_v17  ;;  %967 = vmatpush.msrb.mxu3 %v4152_v21 }
  0x5f   : > { %822 = vmatpush.msrb.mxu0 %v817_v39  ;;  %v914_v39 = vld [vmem:[#allocation2 + $0x158] sm:$0xff] }
  0x60   : > { %927 = vmatpush.msrb.mxu2 %v4160_v28  ;;  %968 = vmatpush.msrb.mxu3 %v4167_v34 }
  0x62   : > { %631 = vmatmul.f32.gmra.mxu0 %v596_v41  ;;  %672 = vmatmul.f32.gmra.mxu1 %v597_v42  ;;  %v698_v41 = vld [vmem:[#allocation4 + $0x50] sm:$0xff]  ;;  %v816_v42 = vld [vmem:[#allocation4 + $0xe0] sm:$0xff] }
  0x63   : > { %746 = vmatmul.f32.gmra.mxu2 %v711_v43  ;;  %787 = vmatmul.f32.gmra.mxu3 %v712_v44  ;;  %v697_v43 = vld [vmem:[#allocation4 + $0x48] sm:$0xff]  ;;  %v815_v44 = vld [vmem:[#allocation4 + $0xd8] sm:$0xff] }
  0x64   : > { %928 = vmatpush.msrb.mxu2 %v4180_v46  ;;  %969 = vmatpush.msrb.mxu3 %v4182_v47 }
  0x65   : > { %866 = vmatpush.msrb.mxu1 %v698_v41  ;;  %823 = vmatpush.msrb.mxu0 %v816_v42  ;;  %v915_v41 = vld [vmem:[#allocation2 + $0x160] sm:$0xff]  ;;  %v916_v42 = vld [vmem:[#allocation2 + $0x168] sm:$0xff] }
  0x66   : > { %929 = vmatpush.msrb.mxu2 %v4188_v50  ;;  %970 = vmatpush.msrb.mxu3 %v4195_v54 }
  0x67   : > { %867 = vmatpush.msrb.mxu1 %v697_v43  ;;  %824 = vmatpush.msrb.mxu0 %v815_v44  ;;  %v917_v43 = vld [vmem:[#allocation2 + $0x170] sm:$0xff]  ;;  %v918_v44 = vld [vmem:[#allocation2 + $0x178] sm:$0xff] }
  0x68   : > { %930 = vmatpush.msrb.mxu2 %v4202_v60  ;;  %971 = vmatpush.msrb.mxu3 %v4207_v63 }
  0x6a   : > { %634 = vmatmul.f32.gmra.mxu0 %v598_v48  ;;  %675 = vmatmul.f32.gmra.mxu1 %v599_v49  ;;  %v696_v48 = vld [vmem:[#allocation4 + $0x40] sm:$0xff] }
  0x6b   : > { %749 = vmatmul.f32.gmra.mxu2 %v713_v51  ;;  %790 = vmatmul.f32.gmra.mxu3 %v714_v52  ;;  %v907_v49 = vld [vmem:[#allocation2 + $0x120] sm:$0xff]  ;;  %v908_v51 = vld [vmem:[#allocation2 + $0x128] sm:$0xff]  ;;  %v814_v52 = vld [vmem:[#allocation4 + $0xd0] sm:$0xff] }
  0x6c   : > { %931 = vmatpush.msrb.mxu2 %v4216_v6  ;;  %972 = vmatpush.msrb.mxu3 %v4218_v8 }
  0x6d   : > { %868 = vmatpush.msrb.mxu1 %v696_v48  ;;  %825 = vmatpush.msrb.mxu0 %v814_v52 }
  0x6e   : > { %932 = vmatpush.msrb.mxu2 %v4226_v1  ;;  %973 = vmatpush.msrb.mxu3 %v4228_v11 }
  0x70   : > { %933 = vmatpush.msrb.mxu2 %v4236_v15  ;;  %974 = vmatpush.msrb.mxu3 %v4238_v16 }
  0x72   : > { %637 = vmatmul.f32.gmra.mxu0 %v600_v53  ;;  %678 = vmatmul.f32.gmra.mxu1 %v601_v57  ;;  %v695_v53 = vld [vmem:[#allocation4 + $0x38] sm:$0xff]  ;;  %v813_v57 = vld [vmem:[#allocation4 + $0xc8] sm:$0xff] }
  0x73   : > { %752 = vmatmul.f32.gmra.mxu2 %v715_v58  ;;  %793 = vmatmul.f32.gmra.mxu3 %v716_v59  ;;  %v694_v58 = vld [vmem:[#allocation4 + $0x30] sm:$0xff]  ;;  %v812_v59 = vld [vmem:[#allocation4 + $0xc0] sm:$0xff] }
  0x74   : > { %934 = vmatpush.msrb.mxu2 %v4244_v2  ;;  %975 = vmatpush.msrb.mxu3 %v4246_v18 }
  0x75   : > { %869 = vmatpush.msrb.mxu1 %v695_v53  ;;  %826 = vmatpush.msrb.mxu0 %v813_v57 }
  0x76   : > { %1125 = vmatpush.msra.mxu2 %v4059_v26 }
  0x77   : > { %870 = vmatpush.msrb.mxu1 %v694_v58  ;;  %827 = vmatpush.msrb.mxu0 %v812_v59 }
  0x78   : > { %1126 = vmatpush.msra.mxu2 %v4068_v33 }
  0x7a   : > { %1127 = vmatpush.msra.mxu2 %v4076_v37  ;;  %640 = vmatmul.f32.gmra.mxu0 %v602_v62  ;;  %v693_v62 = vld [vmem:[#allocation4 + $0x28] sm:$0xff] }
  0x7b   : > { %681 = vmatmul.f32.gmra.mxu1 %v603_v3  ;;  %755 = vmatmul.f32.gmra.mxu2 %v717_v4  ;;  %v811_v3 = vld [vmem:[#allocation4 + $0xb8] sm:$0xff]  ;;  %v692_v4 = vld [vmem:[#allocation4 + $0x20] sm:$0xff] }
  0x7c   : > { %796 = vmatmul.f32.gmra.mxu3 %v718_v5  ;;  %1128 = vmatpush.msra.mxu2 %v4090_v45  ;;  %v909_v5 = vld [vmem:[#allocation2 + $0x130] sm:$0xff] }
  0x7d   : > { %871 = vmatpush.msrb.mxu1 %v693_v62  ;;  %828 = vmatpush.msrb.mxu0 %v811_v3  ;;  %v1017_v3 = vld [vmem:[#allocation4 + $0x178] sm:$0xff] }
  0x7e   : > { %1129 = vmatpush.msra.mxu2 %v4107_v56 }
  0x7f   : > { %872 = vmatpush.msrb.mxu1 %v692_v4  ;;  %v1016_v4 = vld [vmem:[#allocation4 + $0x170] sm:$0xff] }
  0x80   : > { %1130 = vmatpush.msra.mxu2 %v4121_v0 }
  0x82   : > { %643 = vmatmul.f32.gmra.mxu0 %v604_v9  ;;  %1131 = vmatpush.msra.mxu2 %v4137_v12  ;;  %v910_v9 = vld [vmem:[#allocation2 + $0x138] sm:$0xff] }
  0x83   : > { %684 = vmatmul.f32.gmra.mxu1 %v605_v10  ;;  %758 = vmatmul.f32.gmra.mxu2 %v719_v13  ;;  %v810_v10 = vld [vmem:[#allocation4 + $0xb0] sm:$0xff]  ;;  %v691_v13 = vld [vmem:[#allocation4 + $0x18] sm:$0xff] }
  0x84   : > { %799 = vmatmul.f32.gmra.mxu3 %v720_v14  ;;  %1132 = vmatpush.msra.mxu2 %v4152_v21  ;;  %v809_v14 = vld [vmem:[#allocation4 + $0xa8] sm:$0xff] }
  0x85   : > { %829 = vmatpush.msrb.mxu0 %v810_v10  ;;  %873 = vmatpush.msrb.mxu1 %v691_v13 }
  0x86   : > { %1133 = vmatpush.msra.mxu2 %v4167_v34 }
  0x87   : > { %830 = vmatpush.msrb.mxu0 %v809_v14 }
  0x88   : > { %1134 = vmatpush.msra.mxu2 %v4182_v47 }
  0x89   : > { %831 = vmatpush.msrb.mxu0 %v808_v22 }
  0x8a   : > { %1135 = vmatpush.msra.mxu2 %v4195_v54 }
  0x8b   : > { %935 = vmatmul.f32.vlgmr.msrb.gmra.mxu2 %v903_v19  ;;  %v690_v19 = vld [vmem:[#allocation4 + $0x10] sm:$0xff]  ;;  %832 = vmatpush.msrb.mxu0 %v807_v27  ;;  %v1011_v27 = vld [vmem:[#allocation4 + $0x148] sm:$0xff] }
  0x8c   : > { %976 = vmatmul.f32.vlgmr.msrb.gmra.mxu3 %v904_v20  ;;  %1136 = vmatpush.msra.mxu2 %v4207_v63  ;;  %v911_v20 = vld [vmem:[#allocation2 + $0x140] sm:$0xff] }
  0x8d   : > { %874 = vmatpush.msrb.mxu1 %v690_v19 }
  0x8e   : > { %1137 = vmatpush.msra.mxu2 %v4218_v8 }
  0x8f   : > { %875 = vmatpush.msrb.mxu1 %v689_v23  ;;  %v1013_v23 = vld [vmem:[#allocation4 + $0x158] sm:$0xff] }
  0x90   : > { %1138 = vmatpush.msra.mxu2 %v4228_v11 }
  0x91   : > { %876 = vmatpush.msrb.mxu1 %v688_v29 }
  0x92   : > { %1139 = vmatpush.msra.mxu2 %v4238_v16 }
  0x93   : > { %938 = vmatmul.f32.gmra.mxu2 %v905_v30  ;;  %v806_v30 = vld [vmem:[#allocation4 + $0x90] sm:$0xff]  ;;  %1084 = vmatpush.msra.mxu1 %v4057_v25 }
  0x94   : > { %979 = vmatmul.f32.gmra.mxu3 %v906_v31  ;;  %1140 = vmatpush.msra.mxu2 %v4246_v18  ;;  %v805_v31 = vld [vmem:[#allocation4 + $0x88] sm:$0xff] }
  0x95   : > { %833 = vmatpush.msrb.mxu0 %v806_v30  ;;  %1085 = vmatpush.msra.mxu1 %v4066_v32 }
  0x97   : > { %834 = vmatpush.msrb.mxu0 %v805_v31  ;;  %1086 = vmatpush.msra.mxu1 %v4074_v36 }
  0x99   : > { %835 = vmatpush.msrb.mxu0 %v804_v35  ;;  %1087 = vmatpush.msra.mxu1 %v4082_v40 }
  0x9b   : > { %941 = vmatmul.f32.gmra.mxu2 %v907_v49  ;;  %1088 = vmatpush.msra.mxu1 %v4105_v55 }
  0x9c   : > { %982 = vmatmul.f32.gmra.mxu3 %v908_v51  ;;  %1018 = vmatpush.msra.mxu0 %v1017_v3  ;;  %v1004_v3 = vld [vmem:[#allocation4 + $0x110] sm:$0xff] }
  0x9d   : > { %1089 = vmatpush.msra.mxu1 %v4115_v61 }
  0x9e   : > { %1019 = vmatpush.msra.mxu0 %v1016_v4  ;;  %v1071_v4 = vld [vmem:[#allocation2 + $0x198] sm:$0xff] }
  0x9f   : > { %1090 = vmatpush.msra.mxu1 %v4129_v7 }
  0xa1   : > { %1091 = vmatpush.msra.mxu1 %v4145_v17 }
  0xa3   : > { %944 = vmatmul.f32.gmra.mxu2 %v909_v5  ;;  %1092 = vmatpush.msra.mxu1 %v4160_v28  ;;  %v1015_v5 = vld [vmem:[#allocation4 + $0x168] sm:$0xff] }
  0xa4   : > { %985 = vmatmul.f32.gmra.mxu3 %v910_v9  ;;  %1020 = vmatpush.msra.mxu0 %v1015_v5  ;;  %v1003_v5 = vld [vmem:[#allocation4 + $0x108] sm:$0xff] }
  0xa5   : > { %1093 = vmatpush.msra.mxu1 %v4180_v46 }
  0xa7   : > { %1094 = vmatpush.msra.mxu1 %v4188_v50 }
  0xa9   : > { %1095 = vmatpush.msra.mxu1 %v4202_v60 }
  0xab   : > { %947 = vmatmul.f32.gmra.mxu2 %v911_v20  ;;  %1096 = vmatpush.msra.mxu1 %v4216_v6  ;;  %v1014_v20 = vld [vmem:[#allocation4 + $0x160] sm:$0xff] }
  0xac   : > { %988 = vmatmul.f32.gmra.mxu3 %v912_v24  ;;  %1021 = vmatpush.msra.mxu0 %v1014_v20  ;;  %v1012_v24 = vld [vmem:[#allocation4 + $0x150] sm:$0xff]  ;;  %v1002_v20 = vld [vmem:[#allocation4 + $0x100] sm:$0xff] }
  0xad   : > { %1097 = vmatpush.msra.mxu1 %v4226_v1 }
  0xae   : > { %1022 = vmatpush.msra.mxu0 %v1013_v23  ;;  %v1073_v23 = vld [vmem:[#allocation2 + $0x1a8] sm:$0xff] }
  0xaf   : > { %1098 = vmatpush.msra.mxu1 %v4236_v15 }
  0xb0   : > { %1023 = vmatpush.msra.mxu0 %v1012_v24 }
  0xb1   : > { %1099 = vmatpush.msra.mxu1 %v4244_v2 }
  0xb2   : > { %1024 = vmatpush.msra.mxu0 %v1011_v27 }
  0xb3   : > { %950 = vmatmul.f32.gmra.mxu2 %v913_v38 }
  0xb4   : > { %991 = vmatmul.f32.gmra.mxu3 %v914_v39  ;;  %v1010_v39 = vld [vmem:[#allocation4 + $0x140] sm:$0xff] }
  0xb5   : > { %1025 = vmatpush.msra.mxu0 %v1010_v39 }
  0xbb   : > { %953 = vmatmul.f32.gmra.mxu2 %v915_v41 }
  0xbc   : > { %994 = vmatmul.f32.gmra.mxu3 %v916_v42  ;;  %v1009_v42 = vld [vmem:[#allocation4 + $0x138] sm:$0xff] }
  0xbd   : > { %1026 = vmatpush.msra.mxu0 %v1009_v42 }
  0xc3   : > { %956 = vmatmul.f32.gmra.mxu2 %v917_v43  ;;  %v1008_v43 = vld [vmem:[#allocation4 + $0x130] sm:$0xff] }
  0xc4   : > { %997 = vmatmul.f32.gmra.mxu3 %v918_v44  ;;  %v1069_v44 = vld [vmem:[#allocation2 + $0x188] sm:$0xff]  ;;  %1027 = vmatpush.msra.mxu0 %v1008_v43 }
  0xc7   : > { %v623_v48 = vpop.f32.mrf.mxu0  ;;  %v664_v49 = vpop.f32.mrf.mxu1 }
  0xc8   : > { %v665_v51 = vadd.f32 %v664_v49, %v623_v48  ;;  %v1007_v48 = vld [vmem:[#allocation4 + $0x128] sm:$0xff] }
  0xc9   : > { %1028 = vmatpush.msra.mxu0 %v1007_v48 }
  0xca   : > { %877 = vmatmul.f32.vlgmr.msrb.gmra.mxu1 %v665_v51 }
  0xcb   : > { %1290 = vmatpush.msrb.mxu1 %v4059_v26  ;;  %1141 = vmatmul.f32.vlgmr.msra.gmra.mxu2 %v1069_v44 }
  0xcd   : > { %1291 = vmatpush.msrb.mxu1 %v4068_v33 }
  0xce   : > { %v738_v52 = vpop.f32.mrf.mxu2  ;;  %v779_v53 = vpop.f32.mrf.mxu3 }
  0xcf   : > { %v780_v57 = vadd.f32 %v779_v53, %v738_v52  ;;  %v626_v58 = vpop.f32.mrf.mxu0  ;;  %v667_v59 = vpop.f32.mrf.mxu1  ;;  %1292 = vmatpush.msrb.mxu1 %v4076_v37  ;;  %v1006_v52 = vld [vmem:[#allocation4 + $0x120] sm:$0xff] }
  0xd0   : > { %v668_v62 = vadd.f32 %v667_v59, %v626_v58  ;;  %1029 = vmatpush.msra.mxu0 %v1006_v52 }
  0xd1   : > { %836 = vmatmul.f32.vlgmr.msrb.gmra.mxu0 %v780_v57  ;;  %1293 = vmatpush.msrb.mxu1 %v4090_v45 }
  0xd2   : > { %880 = vmatmul.f32.gmra.mxu1 %v668_v62  ;;  %v1005_v62 = vld [vmem:[#allocation4 + $0x118] sm:$0xff] }
  0xd3   : > { %1294 = vmatpush.msrb.mxu1 %v4107_v56  ;;  %1030 = vmatpush.msra.mxu0 %v1005_v62 }
  0xd4   : > { %1144 = vmatmul.f32.gmra.mxu2 %v1071_v4  ;;  %v1070_v4 = vld [vmem:[#allocation2 + $0x190] sm:$0xff] }
  0xd5   : > { %1295 = vmatpush.msrb.mxu1 %v4121_v0  ;;  %1031 = vmatpush.msra.mxu0 %v1004_v3 }
  0xd6   : > { %v741_v9 = vpop.f32.mrf.mxu2  ;;  %v782_v10 = vpop.f32.mrf.mxu3 }
  0xd7   : > { %v629_v13 = vpop.f32.mrf.mxu0  ;;  %v670_v14 = vpop.f32.mrf.mxu1  ;;  %v783_v19 = vadd.f32 %v782_v10, %v741_v9  ;;  %1296 = vmatpush.msrb.mxu1 %v4137_v12  ;;  %1032 = vmatpush.msra.mxu0 %v1003_v5  ;;  %v1081_v5 = vld [vmem:[#allocation2 + $0x1e8] sm:$0xff] }
  0xd8   : > { %v671_v22 = vadd.f32 %v670_v14, %v629_v13 }
  0xd9   : > { %839 = vmatmul.f32.gmra.mxu0 %v783_v19  ;;  %1297 = vmatpush.msrb.mxu1 %v4152_v21 }
  0xda   : > { %883 = vmatmul.f32.gmra.mxu1 %v671_v22  ;;  %1033 = vmatpush.msra.mxu0 %v1002_v20 }
  0xdb   : > { %1298 = vmatpush.msrb.mxu1 %v4167_v34 }
  0xdc   : > { %1249 = vmatpush.msrb.mxu0 %v4057_v25  ;;  %1147 = vmatmul.f32.gmra.mxu2 %v1073_v23 }
  0xdd   : > { %1299 = vmatpush.msrb.mxu1 %v4182_v47 }
  0xde   : > { %v744_v29 = vpop.f32.mrf.mxu2  ;;  %v785_v30 = vpop.f32.mrf.mxu3  ;;  %1250 = vmatpush.msrb.mxu0 %v4066_v32 }
  0xdf   : > { %v632_v31 = vpop.f32.mrf.mxu0  ;;  %v673_v35 = vpop.f32.mrf.mxu1  ;;  %v786_v38 = vadd.f32 %v785_v30, %v744_v29  ;;  %1300 = vmatpush.msrb.mxu1 %v4195_v54 }
  0xe0   : > { %v674_v41 = vadd.f32 %v673_v35, %v632_v31  ;;  %1251 = vmatpush.msrb.mxu0 %v4074_v36 }
  0xe1   : > { %842 = vmatmul.f32.gmra.mxu0 %v786_v38  ;;  %1301 = vmatpush.msrb.mxu1 %v4207_v63  ;;  %v1075_v38 = vld [vmem:[#allocation2 + $0x1b8] sm:$0xff] }
  0xe2   : > { %886 = vmatmul.f32.gmra.mxu1 %v674_v41  ;;  %1252 = vmatpush.msrb.mxu0 %v4082_v40 }
  0xe3   : > { %1302 = vmatpush.msrb.mxu1 %v4218_v8 }
  0xe4   : > { %1253 = vmatpush.msrb.mxu0 %v4105_v55  ;;  %1150 = vmatmul.f32.gmra.mxu2 %v1075_v38 }
  0xe5   : > { %1303 = vmatpush.msrb.mxu1 %v4228_v11 }
  0xe6   : > { %v747_v49 = vpop.f32.mrf.mxu2  ;;  %v788_v51 = vpop.f32.mrf.mxu3  ;;  %1254 = vmatpush.msrb.mxu0 %v4115_v61 }
  0xe7   : > { %v635_v53 = vpop.f32.mrf.mxu0  ;;  %v676_v57 = vpop.f32.mrf.mxu1  ;;  %v789_v58 = vadd.f32 %v788_v51, %v747_v49  ;;  %1304 = vmatpush.msrb.mxu1 %v4238_v16  ;;  %v1077_v49 = vld [vmem:[#allocation2 + $0x1c8] sm:$0xff] }
  0xe8   : > { %v677_v59 = vadd.f32 %v676_v57, %v635_v53  ;;  %1255 = vmatpush.msrb.mxu0 %v4129_v7  ;;  %v1068_v57 = vld [vmem:[#allocation2 + $0x180] sm:$0xff] }
  0xe9   : > { %845 = vmatmul.f32.gmra.mxu0 %v789_v58  ;;  %1305 = vmatpush.msrb.mxu1 %v4246_v18  ;;  %v1079_v58 = vld [vmem:[#allocation2 + $0x1d8] sm:$0xff] }
  0xea   : > { %889 = vmatmul.f32.gmra.mxu1 %v677_v59  ;;  %1256 = vmatpush.msrb.mxu0 %v4145_v17 }
  0xec   : > { %1257 = vmatpush.msrb.mxu0 %v4160_v28  ;;  %1153 = vmatmul.f32.gmra.mxu2 %v1077_v49 }
  0xee   : > { %v750_v9 = vpop.f32.mrf.mxu2  ;;  %v791_v10 = vpop.f32.mrf.mxu3  ;;  %1258 = vmatpush.msrb.mxu0 %v4180_v46 }
  0xef   : > { %v638_v13 = vpop.f32.mrf.mxu0  ;;  %v679_v14 = vpop.f32.mrf.mxu1  ;;  %v792_v19 = vadd.f32 %v791_v10, %v750_v9 }
  0xf0   : > { %v680_v22 = vadd.f32 %v679_v14, %v638_v13  ;;  %1259 = vmatpush.msrb.mxu0 %v4188_v50  ;;  %v1072_v14 = vld [vmem:[#allocation2 + $0x1a0] sm:$0xff] }
  0xf1   : > { %848 = vmatmul.f32.gmra.mxu0 %v792_v19  ;;  %v1083_v19 = vld [vmem:[#allocation2 + $0x1f8] sm:$0xff] }
  0xf2   : > { %892 = vmatmul.f32.gmra.mxu1 %v680_v22  ;;  %1260 = vmatpush.msrb.mxu0 %v4202_v60 }
  0xf4   : > { %1261 = vmatpush.msrb.mxu0 %v4216_v6  ;;  %1156 = vmatmul.f32.gmra.mxu2 %v1079_v58 }
  0xf6   : > { %v753_v24 = vpop.f32.mrf.mxu2  ;;  %v794_v27 = vpop.f32.mrf.mxu3  ;;  %1262 = vmatpush.msrb.mxu0 %v4226_v1 }
  0xf7   : > { %v641_v29 = vpop.f32.mrf.mxu0  ;;  %v795_v31 = vadd.f32 %v794_v27, %v753_v24  ;;  %v1074_v24 = vld [vmem:[#allocation2 + $0x1b0] sm:$0xff] }
  0xf8   : > { %v682_v30 = vpop.f32.mrf.mxu1  ;;  %1263 = vmatpush.msrb.mxu0 %v4236_v15 }
  0xf9   : > { %v683_v35 = vadd.f32 %v682_v30, %v641_v29  ;;  %851 = vmatmul.f32.gmra.mxu0 %v795_v31  ;;  %v1076_v31 = vld [vmem:[#allocation2 + $0x1c0] sm:$0xff] }
  0xfa   : > { %1264 = vmatpush.msrb.mxu0 %v4244_v2 }
  0xfb   : > { %895 = vmatmul.f32.gmra.mxu1 %v683_v35 }
  0xfc   : > { %1159 = vmatmul.f32.gmra.mxu2 %v1081_v5  ;;  %v1181_v5 = vld [vmem:[#allocation4 + $0x1f0] sm:$0xff] }
  0xfe   : > { %v756_v39 = vpop.f32.mrf.mxu2 }
  0xff   : > { %v797_v41 = vpop.f32.mrf.mxu3  ;;  %v644_v42 = vpop.f32.mrf.mxu0 }
 0x100   : > { %v685_v43 = vpop.f32.mrf.mxu1  ;;  %v798_v44 = vadd.f32 %v797_v41, %v756_v39  ;;  %v1078_v41 = vld [vmem:[#allocation2 + $0x1d0] sm:$0xff] }
 0x101   : > { %v686_v48 = vadd.f32 %v685_v43, %v644_v42 }
 0x102   : > { %854 = vmatmul.f32.gmra.mxu0 %v798_v44 }
 0x103   : > { %898 = vmatmul.f32.gmra.mxu1 %v686_v48  ;;  %v1080_v48 = vld [vmem:[#allocation2 + $0x1e0] sm:$0xff] }
 0x104   : > { %1162 = vmatmul.f32.gmra.mxu2 %v1083_v19  ;;  %v1180_v19 = vld [vmem:[#allocation4 + $0x1e8] sm:$0xff] }
 0x106   : > { %v759_v51 = vpop.f32.mrf.mxu2 }
 0x107   : > { %v800_v52 = vpop.f32.mrf.mxu3 }
 0x108   : > { %v801_v53 = vadd.f32 %v800_v52, %v759_v51 }
 0x10a   : > { %857 = vmatmul.f32.gmra.mxu0 %v801_v53  ;;  %v1082_v53 = vld [vmem:[#allocation2 + $0x1f0] sm:$0xff] }
 0x10b   : > { %1100 = vmatmul.f32.vlgmr.msra.gmra.mxu1 %v1068_v57 }
 0x10e   : > { %v936_v59 = vpop.f32.mrf.mxu2 }
 0x10f   : > { %v977_v62 = vpop.f32.mrf.mxu3 }
 0x110   : > { %v978_v3 = vadd.f32 %v977_v62, %v936_v59 }
 0x112   : > { %1034 = vmatmul.f32.vlgmr.msra.gmra.mxu0 %v978_v3  ;;  %v1234_v3 = vld [vmem:[#allocation2 + $0x208] sm:$0xff] }
 0x113   : > { %1103 = vmatmul.f32.gmra.mxu1 %v1070_v4  ;;  %1455 = vmatpush.msra.mxu0 %v4059_v26  ;;  %v1182_v4 = vld [vmem:[#allocation4 + $0x1f8] sm:$0xff] }
 0x114   : > { %1183 = vmatpush.msra.mxu3 %v1182_v4  ;;  %v1167_v4 = vld [vmem:[#allocation4 + $0x180] sm:$0xff] }
 0x115   : > { %1456 = vmatpush.msra.mxu0 %v4068_v33 }
 0x116   : > { %v939_v9 = vpop.f32.mrf.mxu2  ;;  %1184 = vmatpush.msra.mxu3 %v1181_v5 }
 0x117   : > { %v980_v10 = vpop.f32.mrf.mxu3  ;;  %1457 = vmatpush.msra.mxu0 %v4076_v37 }
 0x118   : > { %v981_v13 = vadd.f32 %v980_v10, %v939_v9  ;;  %v1233_v10 = vld [vmem:[#allocation2 + $0x200] sm:$0xff]  ;;  %1185 = vmatpush.msra.mxu3 %v1180_v19  ;;  %v1244_v19 = vld [vmem:[#allocation2 + $0x258] sm:$0xff] }
 0x119   : > { %1458 = vmatpush.msra.mxu0 %v4090_v45 }
 0x11a   : > { %1037 = vmatmul.f32.gmra.mxu0 %v981_v13 }
 0x11b   : > { %1106 = vmatmul.f32.gmra.mxu1 %v1072_v14  ;;  %1459 = vmatpush.msra.mxu0 %v4107_v56  ;;  %v1236_v14 = vld [vmem:[#allocation2 + $0x218] sm:$0xff] }
 0x11d   : > { %1460 = vmatpush.msra.mxu0 %v4121_v0 }
 0x11e   : > { %v942_v20 = vpop.f32.mrf.mxu2 }
 0x11f   : > { %v983_v22 = vpop.f32.mrf.mxu3  ;;  %1461 = vmatpush.msra.mxu0 %v4137_v12 }
 0x120   : > { %v984_v23 = vadd.f32 %v983_v22, %v942_v20  ;;  %v1179_v20 = vld [vmem:[#allocation4 + $0x1e0] sm:$0xff]  ;;  %v1178_v22 = vld [vmem:[#allocation4 + $0x1d8] sm:$0xff] }
 0x121   : > { %1462 = vmatpush.msra.mxu0 %v4152_v21  ;;  %1186 = vmatpush.msra.mxu3 %v1179_v20 }
 0x122   : > { %1040 = vmatmul.f32.gmra.mxu0 %v984_v23  ;;  %v1177_v23 = vld [vmem:[#allocation4 + $0x1d0] sm:$0xff] }
 0x123   : > { %1109 = vmatmul.f32.gmra.mxu1 %v1074_v24  ;;  %1463 = vmatpush.msra.mxu0 %v4167_v34 }
 0x124   : > { %1187 = vmatpush.msra.mxu3 %v1178_v22  ;;  %v1243_v22 = vld [vmem:[#allocation2 + $0x250] sm:$0xff] }
 0x125   : > { %1464 = vmatpush.msra.mxu0 %v4182_v47 }
 0x126   : > { %v945_v27 = vpop.f32.mrf.mxu2  ;;  %1188 = vmatpush.msra.mxu3 %v1177_v23 }
 0x127   : > { %v986_v29 = vpop.f32.mrf.mxu3  ;;  %1465 = vmatpush.msra.mxu0 %v4195_v54 }
 0x128   : > { %v987_v30 = vadd.f32 %v986_v29, %v945_v27  ;;  %v1235_v27 = vld [vmem:[#allocation2 + $0x210] sm:$0xff] }
 0x129   : > { %1466 = vmatpush.msra.mxu0 %v4207_v63 }
 0x12a   : > { %1043 = vmatmul.f32.gmra.mxu0 %v987_v30  ;;  %v1238_v30 = vld [vmem:[#allocation2 + $0x228] sm:$0xff] }
 0x12b   : > { %1112 = vmatmul.f32.gmra.mxu1 %v1076_v31  ;;  %1467 = vmatpush.msra.mxu0 %v4218_v8  ;;  %v1176_v31 = vld [vmem:[#allocation4 + $0x1c8] sm:$0xff] }
 0x12c   : > { %1189 = vmatpush.msra.mxu3 %v1176_v31 }
 0x12d   : > { %1468 = vmatpush.msra.mxu0 %v4228_v11 }
 0x12e   : > { %v948_v35 = vpop.f32.mrf.mxu2 }
 0x12f   : > { %v989_v38 = vpop.f32.mrf.mxu3  ;;  %1469 = vmatpush.msra.mxu0 %v4238_v16 }
 0x130   : > { %v990_v39 = vadd.f32 %v989_v38, %v948_v35  ;;  %v1175_v35 = vld [vmem:[#allocation4 + $0x1c0] sm:$0xff]  ;;  %v1174_v38 = vld [vmem:[#allocation4 + $0x1b8] sm:$0xff] }
 0x131   : > { %1470 = vmatpush.msra.mxu0 %v4246_v18  ;;  %1190 = vmatpush.msra.mxu3 %v1175_v35  ;;  %v1245_v35 = vld [vmem:[#allocation2 + $0x260] sm:$0xff] }
 0x132   : > { %1046 = vmatmul.f32.gmra.mxu0 %v990_v39  ;;  %v1173_v39 = vld [vmem:[#allocation4 + $0x1b0] sm:$0xff] }
 0x133   : > { %1115 = vmatmul.f32.gmra.mxu1 %v1078_v41  ;;  %1191 = vmatpush.msra.mxu3 %v1174_v38 }
 0x135   : > { %1192 = vmatpush.msra.mxu3 %v1173_v39  ;;  %v1248_v39 = vld [vmem:[#allocation2 + $0x278] sm:$0xff] }
 0x136   : > { %v951_v42 = vpop.f32.mrf.mxu2 }
 0x137   : > { %v992_v43 = vpop.f32.mrf.mxu3 }
 0x138   : > { %v993_v44 = vadd.f32 %v992_v43, %v951_v42  ;;  %v1237_v42 = vld [vmem:[#allocation2 + $0x220] sm:$0xff] }
 0x13a   : > { %1049 = vmatmul.f32.gmra.mxu0 %v993_v44  ;;  %v1240_v44 = vld [vmem:[#allocation2 + $0x238] sm:$0xff] }
 0x13b   : > { %1118 = vmatmul.f32.gmra.mxu1 %v1080_v48  ;;  %v1172_v48 = vld [vmem:[#allocation4 + $0x1a8] sm:$0xff] }
 0x13c   : > { %1193 = vmatpush.msra.mxu3 %v1172_v48  ;;  %v1247_v48 = vld [vmem:[#allocation2 + $0x270] sm:$0xff] }
 0x13e   : > { %v954_v49 = vpop.f32.mrf.mxu2 }
 0x13f   : > { %v995_v51 = vpop.f32.mrf.mxu3 }
 0x140   : > { %v996_v52 = vadd.f32 %v995_v51, %v954_v49  ;;  %v1171_v49 = vld [vmem:[#allocation4 + $0x1a0] sm:$0xff]  ;;  %v1170_v51 = vld [vmem:[#allocation4 + $0x198] sm:$0xff] }
 0x141   : > { %1194 = vmatpush.msra.mxu3 %v1171_v49 }
 0x142   : > { %1052 = vmatmul.f32.gmra.mxu0 %v996_v52  ;;  %v1169_v52 = vld [vmem:[#allocation4 + $0x190] sm:$0xff] }
 0x143   : > { %1121 = vmatmul.f32.gmra.mxu1 %v1082_v53  ;;  %1195 = vmatpush.msra.mxu3 %v1170_v51 }
 0x145   : > { %1196 = vmatpush.msra.mxu3 %v1169_v52 }
 0x146   : > { %v957_v57 = vpop.f32.mrf.mxu2 }
 0x147   : > { %v998_v58 = vpop.f32.mrf.mxu3  ;;  %v4370_v59 = vpop.f32.mrf.mxu1 }
 0x148   : > { %5176 = vst [vmem:[#allocation44_spill] sm:$0xff] %v4370_v59  ;;  %v999_v62 = vadd.f32 %v998_v58, %v957_v57  ;;  %v1239_v57 = vld [vmem:[#allocation2 + $0x230] sm:$0xff]  ;;  %v1409_v59 = vld [vmem:[#allocation2 + $0x2d8] sm:$0xff] }
 0x14a   : > { %1055 = vmatmul.f32.gmra.mxu0 %v999_v62  ;;  %v1242_v62 = vld [vmem:[#allocation2 + $0x248] sm:$0xff] }
 0x14b   : > { %1306 = vmatmul.f32.vlgmr.msrb.gmra.mxu1 %v1234_v3  ;;  %v1168_v3 = vld [vmem:[#allocation4 + $0x188] sm:$0xff] }
 0x14c   : > { %1197 = vmatpush.msra.mxu3 %v1168_v3  ;;  %v1347_v3 = vld [vmem:[#allocation4 + $0x278] sm:$0xff] }
 0x14d   : > { %1348 = vmatpush.msrb.mxu2 %v1347_v3 }
 0x14e   : > { %v4372_v9 = vpop.f32.mrf.mxu0  ;;  %1198 = vmatpush.msra.mxu3 %v1167_v4 }
 0x14f   : > { %5177 = vst [vmem:[#allocation45_spill] sm:$0xff] %v4372_v9  ;;  %v4374_v13 = vpop.f32.mrf.mxu1  ;;  %v1412_v9 = vld [vmem:[#allocation2 + $0x2f0] sm:$0xff] }
 0x150   : > { %5178 = vst [vmem:[#allocation46_spill] sm:$0xff] %v4374_v13  ;;  %1414 = vmatpush.msrb.mxu3 %v4057_v25 }
 0x152   : > { %1265 = vmatmul.f32.vlgmr.msrb.gmra.mxu0 %v1233_v10  ;;  %1415 = vmatpush.msrb.mxu3 %v4066_v32  ;;  %v1241_v10 = vld [vmem:[#allocation2 + $0x240] sm:$0xff] }
 0x153   : > { %1309 = vmatmul.f32.gmra.mxu1 %v1236_v14 }
 0x154   : > { %1416 = vmatpush.msrb.mxu3 %v4074_v36 }
 0x156   : > { %v4376_v24 = vpop.f32.mrf.mxu0  ;;  %1417 = vmatpush.msrb.mxu3 %v4082_v40 }
 0x157   : > { %5179 = vst [vmem:[#allocation47_spill] sm:$0xff] %v4376_v24  ;;  %v4378_v29 = vpop.f32.mrf.mxu1 }
 0x158   : > { %1418 = vmatpush.msrb.mxu3 %v4105_v55 }
 0x15a   : > { %1268 = vmatmul.f32.gmra.mxu0 %v1235_v27  ;;  %1419 = vmatpush.msrb.mxu3 %v4115_v61  ;;  %v1246_v27 = vld [vmem:[#allocation2 + $0x268] sm:$0xff] }
 0x15b   : > { %1312 = vmatmul.f32.gmra.mxu1 %v1238_v30  ;;  %v1142_v30 = vpop.f32.mrf.mxu2 }
 0x15c   : > { %1420 = vmatpush.msrb.mxu3 %v4129_v7 }
 0x15e   : > { %v4380_v41 = vpop.f32.mrf.mxu0  ;;  %1421 = vmatpush.msrb.mxu3 %v4145_v17 }
 0x15f   : > { %v4382_v43 = vpop.f32.mrf.mxu1 }
 0x160   : > { %1422 = vmatpush.msrb.mxu3 %v4160_v28 }
 0x162   : > { %1271 = vmatmul.f32.gmra.mxu0 %v1237_v42  ;;  %1423 = vmatpush.msrb.mxu3 %v4180_v46 }
 0x163   : > { %1315 = vmatmul.f32.gmra.mxu1 %v1240_v44  ;;  %v1145_v42 = vpop.f32.mrf.mxu2 }
 0x164   : > { %1424 = vmatpush.msrb.mxu3 %v4188_v50 }
 0x166   : > { %v4384_v53 = vpop.f32.mrf.mxu0  ;;  %1425 = vmatpush.msrb.mxu3 %v4202_v60 }
 0x167   : > { %v4386_v58 = vpop.f32.mrf.mxu1 }
 0x168   : > { %1426 = vmatpush.msrb.mxu3 %v4216_v6 }
 0x16a   : > { %1274 = vmatmul.f32.gmra.mxu0 %v1239_v57  ;;  %1427 = vmatpush.msrb.mxu3 %v4226_v1 }
 0x16b   : > { %1318 = vmatmul.f32.gmra.mxu1 %v1242_v62  ;;  %v1148_v52 = vpop.f32.mrf.mxu2 }
 0x16c   : > { %1428 = vmatpush.msrb.mxu3 %v4236_v15 }
 0x16e   : > { %v4390_v5 = vpop.f32.mrf.mxu0  ;;  %1429 = vmatpush.msrb.mxu3 %v4244_v2 }
 0x16f   : > { %v4392_v14 = vpop.f32.mrf.mxu1 }
 0x172   : > { %1277 = vmatmul.f32.gmra.mxu0 %v1241_v10  ;;  %v1346_v10 = vld [vmem:[#allocation4 + $0x270] sm:$0xff] }
 0x173   : > { %1321 = vmatmul.f32.gmra.mxu1 %v1244_v19  ;;  %1349 = vmatpush.msrb.mxu2 %v1346_v10  ;;  %v1151_v19 = vpop.f32.mrf.mxu2  ;;  %v1339_v10 = vld [vmem:[#allocation4 + $0x238] sm:$0xff] }
 0x176   : > { %v4398_v20 = vpop.f32.mrf.mxu0 }
 0x178   : > { %v4400_v23 = vpop.f32.mrf.mxu1 }
 0x17a   : > { %1280 = vmatmul.f32.gmra.mxu0 %v1243_v22  ;;  %v1345_v22 = vld [vmem:[#allocation4 + $0x268] sm:$0xff] }
 0x17b   : > { %1324 = vmatmul.f32.gmra.mxu1 %v1246_v27  ;;  %1350 = vmatpush.msrb.mxu2 %v1345_v22  ;;  %v1154_v3 = vpop.f32.mrf.mxu2  ;;  %v1338_v22 = vld [vmem:[#allocation4 + $0x230] sm:$0xff] }
 0x17f   : > { %v4406_v31 = vpop.f32.mrf.mxu0 }
 0x180   : > { %v4408_v38 = vpop.f32.mrf.mxu1 }
 0x182   : > { %1283 = vmatmul.f32.gmra.mxu0 %v1245_v35  ;;  %v1344_v35 = vld [vmem:[#allocation4 + $0x260] sm:$0xff] }
 0x183   : > { %1327 = vmatmul.f32.gmra.mxu1 %v1248_v39  ;;  %v1343_v39 = vld [vmem:[#allocation4 + $0x258] sm:$0xff]  ;;  %1351 = vmatpush.msrb.mxu2 %v1344_v35 }
 0x185   : > { %1352 = vmatpush.msrb.mxu2 %v1343_v39 }
 0x187   : > { %v4414_v44 = vpop.f32.mrf.mxu0 }
 0x188   : > { %v1101_v49 = vpop.f32.mrf.mxu1 }
 0x189   : > { %v1143_v51 = vadd.f32 %v1142_v30, %v1101_v49  ;;  %v1341_v49 = vld [vmem:[#allocation4 + $0x248] sm:$0xff] }
 0x18a   : > { %1286 = vmatmul.f32.gmra.mxu0 %v1247_v48  ;;  %v1342_v48 = vld [vmem:[#allocation4 + $0x250] sm:$0xff] }
 0x18b   : > { %1199 = vmatmul.f32.vlgmr.msra.gmra.mxu3 %v1143_v51  ;;  %1353 = vmatpush.msrb.mxu2 %v1342_v48  ;;  %v1335_v48 = vld [vmem:[#allocation4 + $0x218] sm:$0xff] }
 0x18c   : > { %1620 = vmatpush.msra.mxu3 %v4059_v26 }
 0x18d   : > { %1354 = vmatpush.msrb.mxu2 %v1341_v49  ;;  %v1157_v49 = vpop.f32.mrf.mxu2 }
 0x18e   : > { %1621 = vmatpush.msra.mxu3 %v4068_v33 }
 0x18f   : > { %v4420_v57 = vpop.f32.mrf.mxu0 }
 0x190   : > { %5180 = vst [vmem:[#allocation48_spill] sm:$0xff] %v4420_v57  ;;  %v1104_v62 = vpop.f32.mrf.mxu1  ;;  %1622 = vmatpush.msra.mxu3 %v4076_v37  ;;  %v1399_v57 = vld [vmem:[#allocation2 + $0x288] sm:$0xff] }
 0x191   : > { %v1146_v4 = vadd.f32 %v1145_v42, %v1104_v62 }
 0x192   : > { %1623 = vmatpush.msra.mxu3 %v4090_v45  ;;  %1471 = vmatmul.f32.vlgmr.msra.gmra.mxu0 %v1399_v57 }
 0x193   : > { %1202 = vmatmul.f32.gmra.mxu3 %v1146_v4  ;;  %v1340_v4 = vld [vmem:[#allocation4 + $0x240] sm:$0xff] }
 0x194   : > { %1624 = vmatpush.msra.mxu3 %v4107_v56  ;;  %1355 = vmatpush.msrb.mxu2 %v1340_v4  ;;  %v1333_v4 = vld [vmem:[#allocation4 + $0x208] sm:$0xff] }
 0x196   : > { %1625 = vmatpush.msra.mxu3 %v4121_v0  ;;  %1356 = vmatpush.msrb.mxu2 %v1339_v10 }
 0x197   : > { %v4426_v27 = vpop.f32.mrf.mxu0 }
 0x198   : > { %5181 = vst [vmem:[#allocation49_spill] sm:$0xff] %v4426_v27  ;;  %v1107_v30 = vpop.f32.mrf.mxu1  ;;  %1626 = vmatpush.msra.mxu3 %v4137_v12  ;;  %1357 = vmatpush.msrb.mxu2 %v1338_v22  ;;  %v1332_v22 = vld [vmem:[#allocation4 + $0x200] sm:$0xff] }
 0x199   : > { %v1149_v42 = vadd.f32 %v1148_v52, %v1107_v30  ;;  %v1337_v30 = vld [vmem:[#allocation4 + $0x228] sm:$0xff] }
 0x19a   : > { %1627 = vmatpush.msra.mxu3 %v4152_v21  ;;  %1358 = vmatpush.msrb.mxu2 %v1337_v30 }
 0x19b   : > { %1205 = vmatmul.f32.gmra.mxu3 %v1149_v42  ;;  %v1336_v42 = vld [vmem:[#allocation4 + $0x220] sm:$0xff] }
 0x19c   : > { %1628 = vmatpush.msra.mxu3 %v4167_v34  ;;  %1359 = vmatpush.msrb.mxu2 %v1336_v42 }
 0x19e   : > { %1629 = vmatpush.msra.mxu3 %v4182_v47  ;;  %1360 = vmatpush.msrb.mxu2 %v1335_v48 }
 0x19f   : > { %v4432_v51 = vpop.f32.mrf.mxu0 }
 0x1a0   : > { %5182 = vst [vmem:[#allocation50_spill] sm:$0xff] %v4432_v51  ;;  %v1110_v62 = vpop.f32.mrf.mxu1  ;;  %1630 = vmatpush.msra.mxu3 %v4195_v54 }
 0x1a1   : > { %v1152_v52 = vadd.f32 %v1151_v19, %v1110_v62  ;;  %v1334_v62 = vld [vmem:[#allocation4 + $0x210] sm:$0xff] }
 0x1a2   : > { %1631 = vmatpush.msra.mxu3 %v4207_v63  ;;  %1361 = vmatpush.msrb.mxu2 %v1334_v62 }
 0x1a3   : > { %1208 = vmatmul.f32.gmra.mxu3 %v1152_v52 }
 0x1a4   : > { %1632 = vmatpush.msra.mxu3 %v4218_v8  ;;  %1362 = vmatpush.msrb.mxu2 %v1333_v4 }
 0x1a6   : > { %1633 = vmatpush.msra.mxu3 %v4228_v11  ;;  %1363 = vmatpush.msrb.mxu2 %v1332_v22 }
 0x1a7   : > { %v4438_v35 = vpop.f32.mrf.mxu0 }
 0x1a8   : > { %v1113_v39 = vpop.f32.mrf.mxu1  ;;  %1634 = vmatpush.msra.mxu3 %v4238_v16  ;;  %1579 = vmatpush.msra.mxu2 %v4057_v25 }
 0x1a9   : > { %v1155_v19 = vadd.f32 %v1154_v3, %v1113_v39  ;;  %v1160_v3 = vpop.f32.mrf.mxu2 }
 0x1aa   : > { %1635 = vmatpush.msra.mxu3 %v4246_v18  ;;  %1580 = vmatpush.msra.mxu2 %v4066_v32 }
 0x1ab   : > { %1211 = vmatmul.f32.gmra.mxu3 %v1155_v19  ;;  %v1401_v19 = vld [vmem:[#allocation2 + $0x298] sm:$0xff] }
 0x1ac   : > { %1581 = vmatpush.msra.mxu2 %v4074_v36  ;;  %1474 = vmatmul.f32.gmra.mxu0 %v1401_v19 }
 0x1ae   : > { %1582 = vmatpush.msra.mxu2 %v4082_v40 }
 0x1af   : > { %v4442_v10 = vpop.f32.mrf.mxu0 }
 0x1b0   : > { %v1116_v52 = vpop.f32.mrf.mxu1  ;;  %1583 = vmatpush.msra.mxu2 %v4105_v55 }
 0x1b1   : > { %v1158_v30 = vadd.f32 %v1157_v49, %v1116_v52  ;;  %v1163_v57 = vpop.f32.mrf.mxu2  ;;  %v1403_v52 = vld [vmem:[#allocation2 + $0x2a8] sm:$0xff] }
 0x1b2   : > { %1584 = vmatpush.msra.mxu2 %v4115_v61 }
 0x1b3   : > { %1214 = vmatmul.f32.gmra.mxu3 %v1158_v30  ;;  %v1398_v30 = vld [vmem:[#allocation2 + $0x280] sm:$0xff] }
 0x1b4   : > { %1585 = vmatpush.msra.mxu2 %v4129_v7  ;;  %1477 = vmatmul.f32.gmra.mxu0 %v1403_v52 }
 0x1b6   : > { %1586 = vmatpush.msra.mxu2 %v4145_v17 }
 0x1b7   : > { %v4447_v39 = vpop.f32.mrf.mxu0 }
 0x1b8   : > { %v1119_v42 = vpop.f32.mrf.mxu1  ;;  %1587 = vmatpush.msra.mxu2 %v4160_v28 }
 0x1b9   : > { %v1161_v48 = vadd.f32 %v1160_v3, %v1119_v42  ;;  %v1405_v42 = vld [vmem:[#allocation2 + $0x2b8] sm:$0xff] }
 0x1ba   : > { %1588 = vmatpush.msra.mxu2 %v4180_v46 }
 0x1bb   : > { %1217 = vmatmul.f32.gmra.mxu3 %v1161_v48 }
 0x1bc   : > { %1589 = vmatpush.msra.mxu2 %v4188_v50  ;;  %1480 = vmatmul.f32.gmra.mxu0 %v1405_v42  ;;  %v1402_v42 = vld [vmem:[#allocation2 + $0x2a0] sm:$0xff] }
 0x1be   : > { %1590 = vmatpush.msra.mxu2 %v4202_v60 }
 0x1bf   : > { %v4453_v49 = vpop.f32.mrf.mxu0 }
 0x1c0   : > { %v1122_v62 = vpop.f32.mrf.mxu1  ;;  %1591 = vmatpush.msra.mxu2 %v4216_v6 }
 0x1c1   : > { %v1164_v4 = vadd.f32 %v1163_v57, %v1122_v62  ;;  %v1400_v57 = vld [vmem:[#allocation2 + $0x290] sm:$0xff] }
 0x1c2   : > { %1592 = vmatpush.msra.mxu2 %v4226_v1 }
 0x1c3   : > { %1220 = vmatmul.f32.gmra.mxu3 %v1164_v4  ;;  %v1407_v4 = vld [vmem:[#allocation2 + $0x2c8] sm:$0xff] }
 0x1c4   : > { %1593 = vmatpush.msra.mxu2 %v4236_v15  ;;  %1483 = vmatmul.f32.gmra.mxu0 %v1407_v4  ;;  %v1411_v4 = vld [vmem:[#allocation2 + $0x2e8] sm:$0xff] }
 0x1c6   : > { %1594 = vmatpush.msra.mxu2 %v4244_v2 }
 0x1c7   : > { %v4459_v22 = vpop.f32.mrf.mxu0 }
 0x1c8   : > { %v1307_v3 = vpop.f32.mrf.mxu1 }
 0x1cb   : > { %1430 = vmatmul.f32.vlgmr.msrb.gmra.mxu3 %v1398_v30 }
 0x1cc   : > { %1486 = vmatmul.f32.gmra.mxu0 %v1409_v59 }
 0x1cf   : > { %v1266_v48 = vpop.f32.mrf.mxu0 }
 0x1d0   : > { %v1308_v19 = vadd.f32 %v1307_v3, %v1266_v48  ;;  %v1310_v62 = vpop.f32.mrf.mxu1 }
 0x1d2   : > { %1364 = vmatmul.f32.vlgmr.msrb.gmra.mxu2 %v1308_v19  ;;  %v1404_v19 = vld [vmem:[#allocation2 + $0x2b0] sm:$0xff] }
 0x1d3   : > { %1433 = vmatmul.f32.gmra.mxu3 %v1400_v57  ;;  %1785 = vmatpush.msrb.mxu2 %v4059_v26 }
 0x1d4   : > { %1489 = vmatmul.f32.gmra.mxu0 %v1411_v4 }
 0x1d5   : > { %1786 = vmatpush.msrb.mxu2 %v4068_v33 }
 0x1d7   : > { %v1269_v52 = vpop.f32.mrf.mxu0  ;;  %1787 = vmatpush.msrb.mxu2 %v4076_v37 }
 0x1d8   : > { %v1311_v30 = vadd.f32 %v1310_v62, %v1269_v52  ;;  %v1313_v27 = vpop.f32.mrf.mxu1  ;;  %v1406_v52 = vld [vmem:[#allocation2 + $0x2c0] sm:$0xff] }
 0x1d9   : > { %1788 = vmatpush.msrb.mxu2 %v4090_v45 }
 0x1da   : > { %1367 = vmatmul.f32.gmra.mxu2 %v1311_v30 }
 0x1db   : > { %1436 = vmatmul.f32.gmra.mxu3 %v1402_v42  ;;  %1789 = vmatpush.msrb.mxu2 %v4107_v56  ;;  %v1413_v42 = vld [vmem:[#allocation2 + $0x2f8] sm:$0xff] }
 0x1dc   : > { %1492 = vmatmul.f32.gmra.mxu0 %v1413_v42 }
 0x1dd   : > { %1790 = vmatpush.msrb.mxu2 %v4121_v0 }
 0x1df   : > { %v1272_v3 = vpop.f32.mrf.mxu0  ;;  %1791 = vmatpush.msrb.mxu2 %v4137_v12 }
 0x1e0   : > { %v1314_v48 = vadd.f32 %v1313_v27, %v1272_v3  ;;  %v1316_v57 = vpop.f32.mrf.mxu1 }
 0x1e1   : > { %1792 = vmatpush.msrb.mxu2 %v4152_v21 }
 0x1e2   : > { %1370 = vmatmul.f32.gmra.mxu2 %v1314_v48  ;;  %v1408_v48 = vld [vmem:[#allocation2 + $0x2d0] sm:$0xff] }
 0x1e3   : > { %1439 = vmatmul.f32.gmra.mxu3 %v1404_v19  ;;  %1793 = vmatpush.msrb.mxu2 %v4167_v34 }
 0x1e5   : > { %1794 = vmatpush.msrb.mxu2 %v4182_v47 }
 0x1e7   : > { %v1275_v59 = vpop.f32.mrf.mxu0  ;;  %1795 = vmatpush.msrb.mxu2 %v4195_v54 }
 0x1e8   : > { %v1317_v62 = vadd.f32 %v1316_v57, %v1275_v59  ;;  %v1319_v30 = vpop.f32.mrf.mxu1  ;;  %v1410_v59 = vld [vmem:[#allocation2 + $0x2e0] sm:$0xff] }
 0x1e9   : > { %1796 = vmatpush.msrb.mxu2 %v4207_v63 }
 0x1ea   : > { %1373 = vmatmul.f32.gmra.mxu2 %v1317_v62 }
 0x1eb   : > { %1442 = vmatmul.f32.gmra.mxu3 %v1406_v52  ;;  %1797 = vmatpush.msrb.mxu2 %v4218_v8 }
 0x1ed   : > { %1798 = vmatpush.msrb.mxu2 %v4228_v11 }
 0x1ef   : > { %v1278_v27 = vpop.f32.mrf.mxu0  ;;  %1799 = vmatpush.msrb.mxu2 %v4238_v16 }
 0x1f0   : > { %v1320_v3 = vadd.f32 %v1319_v30, %v1278_v27  ;;  %v1322_v19 = vpop.f32.mrf.mxu1  ;;  %v1564_v27 = vld [vmem:[#allocation2 + $0x308] sm:$0xff] }
 0x1f1   : > { %1800 = vmatpush.msrb.mxu2 %v4246_v18 }
 0x1f2   : > { %1376 = vmatmul.f32.gmra.mxu2 %v1320_v3  ;;  %v1563_v3 = vld [vmem:[#allocation2 + $0x300] sm:$0xff] }
 0x1f3   : > { %1445 = vmatmul.f32.gmra.mxu3 %v1408_v48  ;;  %v1566_v48 = vld [vmem:[#allocation2 + $0x318] sm:$0xff] }
 0x1f7   : > { %v1281_v57 = vpop.f32.mrf.mxu0 }
 0x1f8   : > { %v1323_v4 = vadd.f32 %v1322_v19, %v1281_v57  ;;  %v1325_v62 = vpop.f32.mrf.mxu1  ;;  %v1512_v19 = vld [vmem:[#allocation4 + $0x2f8] sm:$0xff]  ;;  %v1511_v57 = vld [vmem:[#allocation4 + $0x2f0] sm:$0xff] }
 0x1f9   : > { %1513 = vmatpush.msra.mxu1 %v1512_v19  ;;  %v1504_v19 = vld [vmem:[#allocation4 + $0x2b8] sm:$0xff] }
 0x1fa   : > { %1379 = vmatmul.f32.gmra.mxu2 %v1323_v4 }
 0x1fb   : > { %1448 = vmatmul.f32.gmra.mxu3 %v1410_v59  ;;  %1514 = vmatpush.msra.mxu1 %v1511_v57  ;;  %v1510_v59 = vld [vmem:[#allocation4 + $0x2e8] sm:$0xff]  ;;  %v1503_v57 = vld [vmem:[#allocation4 + $0x2b0] sm:$0xff] }
 0x1fd   : > { %1515 = vmatpush.msra.mxu1 %v1510_v59 }
 0x1ff   : > { %v1284_v52 = vpop.f32.mrf.mxu0 }
 0x200   : > { %v1326_v42 = vadd.f32 %v1325_v62, %v1284_v52  ;;  %v1328_v51 = vpop.f32.mrf.mxu1  ;;  %v1509_v62 = vld [vmem:[#allocation4 + $0x2e0] sm:$0xff]  ;;  %v1507_v52 = vld [vmem:[#allocation4 + $0x2d0] sm:$0xff] }
 0x201   : > { %1516 = vmatpush.msra.mxu1 %v1509_v62  ;;  %v1569_v62 = vld [vmem:[#allocation2 + $0x330] sm:$0xff] }
 0x202   : > { %1382 = vmatmul.f32.gmra.mxu2 %v1326_v42 }
 0x203   : > { %1451 = vmatmul.f32.gmra.mxu3 %v1412_v9  ;;  %v1565_v9 = vld [vmem:[#allocation2 + $0x310] sm:$0xff] }
 0x207   : > { %v1287_v13 = vpop.f32.mrf.mxu0 }
 0x208   : > { %v1329_v30 = vadd.f32 %v1328_v51, %v1287_v13  ;;  %v1568_v13 = vld [vmem:[#allocation2 + $0x328] sm:$0xff]  ;;  %v1508_v51 = vld [vmem:[#allocation4 + $0x2d8] sm:$0xff] }
 0x209   : > { %1517 = vmatpush.msra.mxu1 %v1508_v51  ;;  %v1572_v51 = vld [vmem:[#allocation2 + $0x348] sm:$0xff] }
 0x20a   : > { %1385 = vmatmul.f32.gmra.mxu2 %v1329_v30  ;;  %v1506_v30 = vld [vmem:[#allocation4 + $0x2c8] sm:$0xff] }
 0x20b   : > { %1636 = vmatmul.f32.vlgmr.msra.gmra.mxu3 %v1564_v27  ;;  %1518 = vmatpush.msra.mxu1 %v1507_v52  ;;  %v1567_v27 = vld [vmem:[#allocation2 + $0x320] sm:$0xff]  ;;  %v1500_v52 = vld [vmem:[#allocation4 + $0x298] sm:$0xff] }
 0x20d   : > { %1519 = vmatpush.msra.mxu1 %v1506_v30  ;;  %v1499_v30 = vld [vmem:[#allocation4 + $0x290] sm:$0xff] }
 0x20e   : > { %v4482_v24 = vpop.f32.mrf.mxu3 }
 0x20f   : > { %5183 = vst [vmem:[#allocation51_spill] sm:$0xff] %v4482_v24 }
 0x212   : > { %1595 = vmatmul.f32.vlgmr.msra.gmra.mxu2 %v1563_v3  ;;  %v1505_v3 = vld [vmem:[#allocation4 + $0x2c0] sm:$0xff] }
 0x213   : > { %1639 = vmatmul.f32.gmra.mxu3 %v1566_v48  ;;  %v1570_v48 = vld [vmem:[#allocation2 + $0x338] sm:$0xff]  ;;  %1520 = vmatpush.msra.mxu1 %v1505_v3  ;;  %v1498_v3 = vld [vmem:[#allocation4 + $0x288] sm:$0xff] }
 0x215   : > { %1521 = vmatpush.msra.mxu1 %v1504_v19  ;;  %v1497_v19 = vld [vmem:[#allocation4 + $0x280] sm:$0xff] }
 0x216   : > { %v4484_v4 = vpop.f32.mrf.mxu3 }
 0x217   : > { %5184 = vst [vmem:[#allocation52_spill] sm:$0xff] %v4484_v4  ;;  %1522 = vmatpush.msra.mxu1 %v1503_v57  ;;  %v1574_v57 = vld [vmem:[#allocation2 + $0x358] sm:$0xff] }
 0x218   : > { %v1677_v4 = vld [vmem:[#allocation4 + $0x378] sm:$0xff] }
 0x219   : > { %1678 = vmatpush.msrb.mxu0 %v1677_v4  ;;  %v1673_v4 = vld [vmem:[#allocation4 + $0x358] sm:$0xff] }
 0x21a   : > { %1598 = vmatmul.f32.gmra.mxu2 %v1565_v9  ;;  %v1502_v9 = vld [vmem:[#allocation4 + $0x2a8] sm:$0xff] }
 0x21b   : > { %1642 = vmatmul.f32.gmra.mxu3 %v1568_v13  ;;  %1523 = vmatpush.msra.mxu1 %v1502_v9  ;;  %v1501_v13 = vld [vmem:[#allocation4 + $0x2a0] sm:$0xff] }
 0x21d   : > { %1524 = vmatpush.msra.mxu1 %v1501_v13  ;;  %v1576_v13 = vld [vmem:[#allocation2 + $0x368] sm:$0xff] }
 0x21e   : > { %v4486_v42 = vpop.f32.mrf.mxu3 }
 0x21f   : > { %1525 = vmatpush.msra.mxu1 %v1500_v52  ;;  %v1472_v52 = vpop.f32.mrf.mxu0 }
 0x221   : > { %1526 = vmatpush.msra.mxu1 %v1499_v30  ;;  %v1575_v30 = vld [vmem:[#allocation2 + $0x360] sm:$0xff] }
 0x222   : > { %1601 = vmatmul.f32.gmra.mxu2 %v1567_v27 }
 0x223   : > { %1645 = vmatmul.f32.gmra.mxu3 %v1570_v48  ;;  %v1571_v48 = vld [vmem:[#allocation2 + $0x340] sm:$0xff]  ;;  %1527 = vmatpush.msra.mxu1 %v1498_v3  ;;  %v1578_v3 = vld [vmem:[#allocation2 + $0x378] sm:$0xff] }
 0x225   : > { %1528 = vmatpush.msra.mxu1 %v1497_v19  ;;  %v1577_v19 = vld [vmem:[#allocation2 + $0x370] sm:$0xff] }
 0x226   : > { %v4488_v59 = vpop.f32.mrf.mxu3 }
 0x227   : > { %1744 = vmatpush.msrb.mxu1 %v4057_v25 }
 0x229   : > { %1745 = vmatpush.msrb.mxu1 %v4066_v32 }
 0x22a   : > { %1604 = vmatmul.f32.gmra.mxu2 %v1569_v62  ;;  %v1573_v62 = vld [vmem:[#allocation2 + $0x350] sm:$0xff] }
 0x22b   : > { %1648 = vmatmul.f32.gmra.mxu3 %v1572_v51  ;;  %1746 = vmatpush.msrb.mxu1 %v4074_v36 }
 0x22d   : > { %1747 = vmatpush.msrb.mxu1 %v4082_v40 }
 0x22e   : > { %v4490_v27 = vpop.f32.mrf.mxu3 }
 0x22f   : > { %1748 = vmatpush.msrb.mxu1 %v4105_v55 }
 0x231   : > { %1749 = vmatpush.msrb.mxu1 %v4115_v61 }
 0x232   : > { %1607 = vmatmul.f32.gmra.mxu2 %v1571_v48 }
 0x233   : > { %1651 = vmatmul.f32.gmra.mxu3 %v1574_v57  ;;  %1750 = vmatpush.msrb.mxu1 %v4129_v7  ;;  %v1475_v57 = vpop.f32.mrf.mxu0 }
 0x235   : > { %1751 = vmatpush.msrb.mxu1 %v4145_v17 }
 0x236   : > { %v4494_v9 = vpop.f32.mrf.mxu3 }
 0x237   : > { %1752 = vmatpush.msrb.mxu1 %v4160_v28 }
 0x239   : > { %1753 = vmatpush.msrb.mxu1 %v4180_v46 }
 0x23a   : > { %1610 = vmatmul.f32.gmra.mxu2 %v1573_v62 }
 0x23b   : > { %1654 = vmatmul.f32.gmra.mxu3 %v1576_v13  ;;  %1754 = vmatpush.msrb.mxu1 %v4188_v50 }
 0x23d   : > { %1755 = vmatpush.msrb.mxu1 %v4202_v60 }
 0x23e   : > { %v4500_v51 = vpop.f32.mrf.mxu3 }
 0x23f   : > { %1756 = vmatpush.msrb.mxu1 %v4216_v6 }
 0x241   : > { %1757 = vmatpush.msrb.mxu1 %v4226_v1 }
 0x242   : > { %1613 = vmatmul.f32.gmra.mxu2 %v1575_v30  ;;  %v1478_v30 = vpop.f32.mrf.mxu0 }
 0x243   : > { %1657 = vmatmul.f32.gmra.mxu3 %v1578_v3  ;;  %1758 = vmatpush.msrb.mxu1 %v4236_v15 }
 0x245   : > { %1759 = vmatpush.msrb.mxu1 %v4244_v2 }
 0x246   : > { %v4506_v48 = vpop.f32.mrf.mxu3 }
 0x24a   : > { %1616 = vmatmul.f32.gmra.mxu2 %v1577_v19 }
 0x24e   : > { %v1431_v62 = vpop.f32.mrf.mxu3 }
 0x24f   : > { %v1473_v13 = vadd.f32 %v1472_v52, %v1431_v62  ;;  %v1676_v52 = vld [vmem:[#allocation4 + $0x370] sm:$0xff]  ;;  %v1481_v62 = vpop.f32.mrf.mxu0 }
 0x250   : > { %1679 = vmatpush.msrb.mxu0 %v1676_v52 }
 0x251   : > { %1529 = vmatmul.f32.vlgmr.msra.gmra.mxu1 %v1473_v13  ;;  %v1675_v13 = vld [vmem:[#allocation4 + $0x368] sm:$0xff] }
 0x252   : > { %1950 = vmatpush.msra.mxu1 %v4059_v26  ;;  %1680 = vmatpush.msrb.mxu0 %v1675_v13 }
 0x254   : > { %1951 = vmatpush.msra.mxu1 %v4068_v33 }
 0x255   : > { %v4516_v3 = vpop.f32.mrf.mxu2 }
 0x256   : > { %5185 = vst [vmem:[#allocation53_spill] sm:$0xff] %v4516_v3  ;;  %v1434_v24 = vpop.f32.mrf.mxu3  ;;  %1952 = vmatpush.msra.mxu1 %v4076_v37  ;;  %v1674_v3 = vld [vmem:[#allocation4 + $0x360] sm:$0xff] }
 0x257   : > { %v1476_v19 = vadd.f32 %v1475_v57, %v1434_v24  ;;  %1681 = vmatpush.msrb.mxu0 %v1674_v3  ;;  %v1672_v57 = vld [vmem:[#allocation4 + $0x350] sm:$0xff] }
 0x258   : > { %1953 = vmatpush.msra.mxu1 %v4090_v45  ;;  %v1668_v3 = vld [vmem:[#allocation4 + $0x330] sm:$0xff]  ;;  %v1905_v45 = vld [vmem:[#allocation2 + $0x460] sm:$0xff] }
 0x259   : > { %1532 = vmatmul.f32.gmra.mxu1 %v1476_v19  ;;  %1682 = vmatpush.msrb.mxu0 %v1673_v4  ;;  %v1671_v19 = vld [vmem:[#allocation4 + $0x348] sm:$0xff] }
 0x25a   : > { %1954 = vmatpush.msra.mxu1 %v4107_v56  ;;  %v1667_v4 = vld [vmem:[#allocation4 + $0x328] sm:$0xff] }
 0x25b   : > { %1683 = vmatpush.msrb.mxu0 %v1672_v57 }
 0x25c   : > { %1955 = vmatpush.msra.mxu1 %v4121_v0  ;;  %v1484_v0 = vpop.f32.mrf.mxu0 }
 0x25d   : > { %v4522_v33 = vpop.f32.mrf.mxu2  ;;  %1684 = vmatpush.msrb.mxu0 %v1671_v19 }
 0x25e   : > { %v1437_v26 = vpop.f32.mrf.mxu3  ;;  %1956 = vmatpush.msra.mxu1 %v4137_v12  ;;  %v1670_v12 = vld [vmem:[#allocation4 + $0x340] sm:$0xff] }
 0x25f   : > { %v1479_v24 = vadd.f32 %v1478_v30, %v1437_v26  ;;  %1685 = vmatpush.msrb.mxu0 %v1670_v12  ;;  %v1669_v30 = vld [vmem:[#allocation4 + $0x338] sm:$0xff] }
 0x260   : > { %1957 = vmatpush.msra.mxu1 %v4152_v21  ;;  %v1665_v12 = vld [vmem:[#allocation4 + $0x318] sm:$0xff] }
 0x261   : > { %1535 = vmatmul.f32.gmra.mxu1 %v1479_v24  ;;  %1686 = vmatpush.msrb.mxu0 %v1669_v30  ;;  %v1729_v24 = vld [vmem:[#allocation2 + $0x388] sm:$0xff]  ;;  %v1664_v30 = vld [vmem:[#allocation4 + $0x310] sm:$0xff] }
 0x262   : > { %1958 = vmatpush.msra.mxu1 %v4167_v34  ;;  %1801 = vmatmul.f32.vlgmr.msrb.gmra.mxu2 %v1729_v24  ;;  %v1663_v24 = vld [vmem:[#allocation4 + $0x308] sm:$0xff]  ;;  %v1734_v34 = vld [vmem:[#allocation2 + $0x3b0] sm:$0xff] }
 0x263   : > { %1687 = vmatpush.msrb.mxu0 %v1668_v3  ;;  %v1731_v3 = vld [vmem:[#allocation2 + $0x398] sm:$0xff] }
 0x264   : > { %1959 = vmatpush.msra.mxu1 %v4182_v47 }
 0x265   : > { %v4528_v52 = vpop.f32.mrf.mxu2  ;;  %1688 = vmatpush.msrb.mxu0 %v1667_v4 }
 0x266   : > { %v1440_v13 = vpop.f32.mrf.mxu3  ;;  %1960 = vmatpush.msra.mxu1 %v4195_v54 }
 0x267   : > { %v1482_v26 = vadd.f32 %v1481_v62, %v1440_v13  ;;  %v1666_v62 = vld [vmem:[#allocation4 + $0x320] sm:$0xff] }
 0x268   : > { %1961 = vmatpush.msra.mxu1 %v4207_v63  ;;  %1689 = vmatpush.msrb.mxu0 %v1666_v62 }
 0x269   : > { %1538 = vmatmul.f32.gmra.mxu1 %v1482_v26  ;;  %v1487_v26 = vpop.f32.mrf.mxu0 }
 0x26a   : > { %1962 = vmatpush.msra.mxu1 %v4218_v8  ;;  %1690 = vmatpush.msrb.mxu0 %v1665_v12  ;;  %v1662_v8 = vld [vmem:[#allocation4 + $0x300] sm:$0xff] }
 0x26b   : > { %1804 = vmatmul.f32.gmra.mxu2 %v1731_v3 }
 0x26c   : > { %1963 = vmatpush.msra.mxu1 %v4228_v11  ;;  %1691 = vmatpush.msrb.mxu0 %v1664_v30 }
 0x26d   : > { %v4534_v57 = vpop.f32.mrf.mxu2 }
 0x26e   : > { %v1443_v19 = vpop.f32.mrf.mxu3  ;;  %1964 = vmatpush.msra.mxu1 %v4238_v16  ;;  %1692 = vmatpush.msrb.mxu0 %v1663_v24  ;;  %v1737_v24 = vld [vmem:[#allocation2 + $0x3c8] sm:$0xff]  ;;  %v1732_v16 = vld [vmem:[#allocation2 + $0x3a0] sm:$0xff] }
 0x26f   : > { %v1485_v13 = vadd.f32 %v1484_v0, %v1443_v19  ;;  %v1733_v0 = vld [vmem:[#allocation2 + $0x3a8] sm:$0xff] }
 0x270   : > { %1965 = vmatpush.msra.mxu1 %v4246_v18  ;;  %1693 = vmatpush.msrb.mxu0 %v1662_v8  ;;  %v1735_v8 = vld [vmem:[#allocation2 + $0x3b8] sm:$0xff] }
 0x271   : > { %1541 = vmatmul.f32.gmra.mxu1 %v1485_v13  ;;  %v1490_v19 = vpop.f32.mrf.mxu0 }
 0x272   : > { %1909 = vmatpush.msra.mxu0 %v4057_v25  ;;  %v2254_v25 = vld [vmem:[#allocation7 + $0x80] sm:$0xff] }
 0x273   : > { %1807 = vmatmul.f32.gmra.mxu2 %v1733_v0  ;;  %v1728_v0 = vld [vmem:[#allocation2 + $0x380] sm:$0xff] }
 0x274   : > { %1910 = vmatpush.msra.mxu0 %v4066_v32 }
 0x275   : > { %v4538_v11 = vpop.f32.mrf.mxu2 }
 0x276   : > { %v1446_v4 = vpop.f32.mrf.mxu3  ;;  %1911 = vmatpush.msra.mxu0 %v4074_v36 }
 0x277   : > { %v1488_v63 = vadd.f32 %v1487_v26, %v1446_v4 }
 0x278   : > { %1912 = vmatpush.msra.mxu0 %v4082_v40 }
 0x279   : > { %1544 = vmatmul.f32.gmra.mxu1 %v1488_v63  ;;  %v1493_v63 = vpop.f32.mrf.mxu0 }
 0x27a   : > { %1913 = vmatpush.msra.mxu0 %v4105_v55 }
 0x27b   : > { %1810 = vmatmul.f32.gmra.mxu2 %v1735_v8 }
 0x27c   : > { %1914 = vmatpush.msra.mxu0 %v4115_v61 }
 0x27d   : > { %v4543_v62 = vpop.f32.mrf.mxu2 }
 0x27e   : > { %v1449_v12 = vpop.f32.mrf.mxu3  ;;  %1915 = vmatpush.msra.mxu0 %v4129_v7 }
 0x27f   : > { %v1491_v13 = vadd.f32 %v1490_v19, %v1449_v12  ;;  %v1739_v12 = vld [vmem:[#allocation2 + $0x3d8] sm:$0xff] }
 0x280   : > { %1916 = vmatpush.msra.mxu0 %v4145_v17 }
 0x281   : > { %1547 = vmatmul.f32.gmra.mxu1 %v1491_v13 }
 0x282   : > { %1917 = vmatpush.msra.mxu0 %v4160_v28  ;;  %v1994_v28 = vld [vmem:[#allocation4 + $0x410] sm:$0xff] }
 0x283   : > { %1813 = vmatmul.f32.gmra.mxu2 %v1737_v24 }
 0x284   : > { %1918 = vmatpush.msra.mxu0 %v4180_v46  ;;  %v1999_v46 = vld [vmem:[#allocation4 + $0x438] sm:$0xff] }
 0x285   : > { %v4549_v26 = vpop.f32.mrf.mxu2 }
 0x286   : > { %v1452_v30 = vpop.f32.mrf.mxu3  ;;  %1919 = vmatpush.msra.mxu0 %v4188_v50  ;;  %v2004_v50 = vld [vmem:[#allocation4 + $0x460] sm:$0xff] }
 0x287   : > { %v1494_v3 = vadd.f32 %v1493_v63, %v1452_v30  ;;  %v1730_v63 = vld [vmem:[#allocation2 + $0x390] sm:$0xff] }
 0x288   : > { %1920 = vmatpush.msra.mxu0 %v4202_v60  ;;  %v2005_v60 = vld [vmem:[#allocation4 + $0x468] sm:$0xff] }
 0x289   : > { %1550 = vmatmul.f32.gmra.mxu1 %v1494_v3  ;;  %v1741_v3 = vld [vmem:[#allocation2 + $0x3e8] sm:$0xff] }
 0x28a   : > { %1921 = vmatpush.msra.mxu0 %v4216_v6  ;;  %v2007_v6 = vld [vmem:[#allocation4 + $0x478] sm:$0xff] }
 0x28b   : > { %1816 = vmatmul.f32.gmra.mxu2 %v1739_v12  ;;  %v1743_v12 = vld [vmem:[#allocation2 + $0x3f8] sm:$0xff] }
 0x28c   : > { %1922 = vmatpush.msra.mxu0 %v4226_v1  ;;  %2008 = vmatpush.msra.mxu2 %v2007_v6 }
 0x28d   : > { %v4555_v4 = vpop.f32.mrf.mxu2 }
 0x28e   : > { %v1637_v19 = vpop.f32.mrf.mxu3  ;;  %1923 = vmatpush.msra.mxu0 %v4236_v15 }
 0x290   : > { %1924 = vmatpush.msra.mxu0 %v4244_v2 }
 0x291   : > { %1760 = vmatmul.f32.vlgmr.msrb.gmra.mxu1 %v1728_v0 }
 0x293   : > { %1819 = vmatmul.f32.gmra.mxu2 %v1741_v3 }
 0x295   : > { %v1596_v13 = vpop.f32.mrf.mxu2 }
 0x296   : > { %v1638_v8 = vadd.f32 %v1637_v19, %v1596_v13  ;;  %v1640_v30 = vpop.f32.mrf.mxu3 }
 0x298   : > { %1694 = vmatmul.f32.vlgmr.msrb.gmra.mxu0 %v1638_v8  ;;  %v1736_v8 = vld [vmem:[#allocation2 + $0x3c0] sm:$0xff] }
 0x299   : > { %1763 = vmatmul.f32.gmra.mxu1 %v1730_v63 }
 0x29b   : > { %1822 = vmatmul.f32.gmra.mxu2 %v1743_v12  ;;  %v1740_v12 = vld [vmem:[#allocation2 + $0x3e0] sm:$0xff] }
 0x29d   : > { %v1599_v24 = vpop.f32.mrf.mxu2 }
 0x29e   : > { %v1641_v18 = vadd.f32 %v1640_v30, %v1599_v24  ;;  %v1643_v0 = vpop.f32.mrf.mxu3  ;;  %v1738_v24 = vld [vmem:[#allocation2 + $0x3d0] sm:$0xff] }
 0x2a0   : > { %1697 = vmatmul.f32.gmra.mxu0 %v1641_v18 }
 0x2a1   : > { %1766 = vmatmul.f32.gmra.mxu1 %v1732_v16 }
 0x2a5   : > { %v1602_v54 = vpop.f32.mrf.mxu2 }
 0x2a6   : > { %v1644_v47 = vadd.f32 %v1643_v0, %v1602_v54  ;;  %v1646_v19 = vpop.f32.mrf.mxu3  ;;  %v1742_v0 = vld [vmem:[#allocation2 + $0x3f0] sm:$0xff] }
 0x2a8   : > { %1700 = vmatmul.f32.gmra.mxu0 %v1644_v47 }
 0x2a9   : > { %1769 = vmatmul.f32.gmra.mxu1 %v1734_v34 }
 0x2ad   : > { %v1605_v13 = vpop.f32.mrf.mxu2 }
 0x2ae   : > { %v1647_v21 = vadd.f32 %v1646_v19, %v1605_v13  ;;  %v1649_v63 = vpop.f32.mrf.mxu3 }
 0x2b0   : > { %1703 = vmatmul.f32.gmra.mxu0 %v1647_v21 }
 0x2b1   : > { %1772 = vmatmul.f32.gmra.mxu1 %v1736_v8 }
 0x2b5   : > { %v1608_v3 = vpop.f32.mrf.mxu2 }
 0x2b6   : > { %v1650_v30 = vadd.f32 %v1649_v63, %v1608_v3  ;;  %v1652_v56 = vpop.f32.mrf.mxu3  ;;  %v1894_v63 = vld [vmem:[#allocation2 + $0x408] sm:$0xff]  ;;  %v1842_v3 = vld [vmem:[#allocation4 + $0x3f8] sm:$0xff] }
 0x2b7   : > { %1843 = vmatpush.msrb.mxu3 %v1842_v3  ;;  %v1833_v3 = vld [vmem:[#allocation4 + $0x3b0] sm:$0xff] }
 0x2b8   : > { %1706 = vmatmul.f32.gmra.mxu0 %v1650_v30  ;;  %v1841_v30 = vld [vmem:[#allocation4 + $0x3f0] sm:$0xff] }
 0x2b9   : > { %1775 = vmatmul.f32.gmra.mxu1 %v1738_v24  ;;  %1844 = vmatpush.msrb.mxu3 %v1841_v30  ;;  %v1897_v30 = vld [vmem:[#allocation2 + $0x420] sm:$0xff] }
 0x2bd   : > { %v1611_v16 = vpop.f32.mrf.mxu2 }
 0x2be   : > { %v1653_v18 = vadd.f32 %v1652_v56, %v1611_v16  ;;  %v1655_v54 = vpop.f32.mrf.mxu3  ;;  %v1893_v56 = vld [vmem:[#allocation2 + $0x400] sm:$0xff]  ;;  %v1896_v16 = vld [vmem:[#allocation2 + $0x418] sm:$0xff] }
 0x2c0   : > { %1709 = vmatmul.f32.gmra.mxu0 %v1653_v18  ;;  %v1840_v18 = vld [vmem:[#allocation4 + $0x3e8] sm:$0xff] }
 0x2c1   : > { %1778 = vmatmul.f32.gmra.mxu1 %v1740_v12  ;;  %1845 = vmatpush.msrb.mxu3 %v1840_v18  ;;  %v1839_v12 = vld [vmem:[#allocation4 + $0x3e0] sm:$0xff]  ;;  %v1832_v18 = vld [vmem:[#allocation4 + $0x3a8] sm:$0xff] }
 0x2c3   : > { %1846 = vmatpush.msrb.mxu3 %v1839_v12  ;;  %v1831_v12 = vld [vmem:[#allocation4 + $0x3a0] sm:$0xff] }
 0x2c5   : > { %v1614_v47 = vpop.f32.mrf.mxu2 }
 0x2c6   : > { %v1656_v34 = vadd.f32 %v1655_v54, %v1614_v47  ;;  %v1658_v19 = vpop.f32.mrf.mxu3  ;;  %v1838_v54 = vld [vmem:[#allocation4 + $0x3d8] sm:$0xff]  ;;  %v1837_v47 = vld [vmem:[#allocation4 + $0x3d0] sm:$0xff] }
 0x2c7   : > { %1847 = vmatpush.msrb.mxu3 %v1838_v54  ;;  %v1830_v54 = vld [vmem:[#allocation4 + $0x398] sm:$0xff] }
 0x2c8   : > { %1712 = vmatmul.f32.gmra.mxu0 %v1656_v34  ;;  %v1895_v34 = vld [vmem:[#allocation2 + $0x410] sm:$0xff] }
 0x2c9   : > { %1781 = vmatmul.f32.gmra.mxu1 %v1742_v0  ;;  %1848 = vmatpush.msrb.mxu3 %v1837_v47  ;;  %v1829_v47 = vld [vmem:[#allocation4 + $0x390] sm:$0xff] }
 0x2cd   : > { %v1617_v21 = vpop.f32.mrf.mxu2 }
 0x2ce   : > { %v1659_v13 = vadd.f32 %v1658_v19, %v1617_v21  ;;  %v4562_v8 = vpop.f32.mrf.mxu1  ;;  %v1898_v19 = vld [vmem:[#allocation2 + $0x428] sm:$0xff] }
 0x2cf   : > { %v1836_v21 = vld [vmem:[#allocation4 + $0x3c8] sm:$0xff] }
 0x2d0   : > { %1715 = vmatmul.f32.gmra.mxu0 %v1659_v13  ;;  %1849 = vmatpush.msrb.mxu3 %v1836_v21  ;;  %v1835_v13 = vld [vmem:[#allocation4 + $0x3c0] sm:$0xff]  ;;  %v1902_v21 = vld [vmem:[#allocation2 + $0x448] sm:$0xff] }
 0x2d1   : > { %1966 = vmatmul.f32.vlgmr.msra.gmra.mxu1 %v1894_v63  ;;  %v1834_v63 = vld [vmem:[#allocation4 + $0x3b8] sm:$0xff] }
 0x2d2   : > { %1850 = vmatpush.msrb.mxu3 %v1835_v13  ;;  %v1828_v13 = vld [vmem:[#allocation4 + $0x388] sm:$0xff] }
 0x2d4   : > { %1851 = vmatpush.msrb.mxu3 %v1834_v63  ;;  %v1827_v63 = vld [vmem:[#allocation4 + $0x380] sm:$0xff] }
 0x2d6   : > { %v4564_v24 = vpop.f32.mrf.mxu1  ;;  %1852 = vmatpush.msrb.mxu3 %v1833_v3  ;;  %v1901_v3 = vld [vmem:[#allocation2 + $0x440] sm:$0xff] }
 0x2d8   : > { %1925 = vmatmul.f32.vlgmr.msra.gmra.mxu0 %v1893_v56  ;;  %1853 = vmatpush.msrb.mxu3 %v1832_v18 }
 0x2d9   : > { %1969 = vmatmul.f32.gmra.mxu1 %v1896_v16  ;;  %v1900_v16 = vld [vmem:[#allocation2 + $0x438] sm:$0xff] }
 0x2da   : > { %1854 = vmatpush.msrb.mxu3 %v1831_v12 }
 0x2dc   : > { %1855 = vmatpush.msrb.mxu3 %v1830_v54  ;;  %v1906_v54 = vld [vmem:[#allocation2 + $0x468] sm:$0xff] }
 0x2de   : > { %v4566_v0 = vpop.f32.mrf.mxu1  ;;  %1856 = vmatpush.msrb.mxu3 %v1829_v47 }
 0x2e0   : > { %1928 = vmatmul.f32.gmra.mxu0 %v1895_v34  ;;  %v1899_v34 = vld [vmem:[#allocation2 + $0x430] sm:$0xff]  ;;  %1857 = vmatpush.msrb.mxu3 %v1828_v13 }
 0x2e1   : > { %1972 = vmatmul.f32.gmra.mxu1 %v1898_v19  ;;  %v1907_v13 = vld [vmem:[#allocation2 + $0x470] sm:$0xff] }
 0x2e2   : > { %1858 = vmatpush.msrb.mxu3 %v1827_v63 }
 0x2e5   : > { %v1802_v47 = vpop.f32.mrf.mxu2 }
 0x2e6   : > { %v4568_v56 = vpop.f32.mrf.mxu1 }
 0x2e8   : > { %1931 = vmatmul.f32.gmra.mxu0 %v1897_v30  ;;  %v1904_v30 = vld [vmem:[#allocation2 + $0x458] sm:$0xff] }
 0x2e9   : > { %1975 = vmatmul.f32.gmra.mxu1 %v1900_v16  ;;  %v1903_v16 = vld [vmem:[#allocation2 + $0x450] sm:$0xff] }
 0x2ee   : > { %v4570_v19 = vpop.f32.mrf.mxu1 }
 0x2f0   : > { %1934 = vmatmul.f32.gmra.mxu0 %v1899_v34  ;;  %v1908_v34 = vld [vmem:[#allocation2 + $0x478] sm:$0xff] }
 0x2f1   : > { %1978 = vmatmul.f32.gmra.mxu1 %v1902_v21  ;;  %v1805_v21 = vpop.f32.mrf.mxu2 }
 0x2f6   : > { %v4572_v18 = vpop.f32.mrf.mxu1 }
 0x2f8   : > { %1937 = vmatmul.f32.gmra.mxu0 %v1901_v3 }
 0x2f9   : > { %1981 = vmatmul.f32.gmra.mxu1 %v1904_v30  ;;  %v1808_v3 = vpop.f32.mrf.mxu2 }
 0x2fe   : > { %v4574_v12 = vpop.f32.mrf.mxu1 }
 0x300   : > { %1940 = vmatmul.f32.gmra.mxu0 %v1903_v16  ;;  %v2006_v16 = vld [vmem:[#allocation4 + $0x470] sm:$0xff] }
 0x301   : > { %1984 = vmatmul.f32.gmra.mxu1 %v1906_v54  ;;  %2009 = vmatpush.msra.mxu2 %v2006_v16  ;;  %v1811_v54 = vpop.f32.mrf.mxu2 }
 0x303   : > { %2010 = vmatpush.msra.mxu2 %v2005_v60  ;;  %v1998_v60 = vld [vmem:[#allocation4 + $0x430] sm:$0xff] }
 0x305   : > { %2011 = vmatpush.msra.mxu2 %v2004_v50  ;;  %v1997_v50 = vld [vmem:[#allocation4 + $0x428] sm:$0xff] }
 0x306   : > { %v4576_v37 = vpop.f32.mrf.mxu1 }
 0x308   : > { %1943 = vmatmul.f32.gmra.mxu0 %v1905_v45 }
 0x309   : > { %1987 = vmatmul.f32.gmra.mxu1 %v1908_v34 }
 0x30e   : > { %v1761_v63 = vpop.f32.mrf.mxu1 }
 0x30f   : > { %v1803_v2 = vadd.f32 %v1802_v47, %v1761_v63  ;;  %v2000_v63 = vld [vmem:[#allocation4 + $0x440] sm:$0xff] }
 0x310   : > { %1946 = vmatmul.f32.gmra.mxu0 %v1907_v13  ;;  %v2002_v13 = vld [vmem:[#allocation4 + $0x450] sm:$0xff] }
 0x311   : > { %1859 = vmatmul.f32.vlgmr.msrb.gmra.mxu3 %v1803_v2  ;;  %v2003_v2 = vld [vmem:[#allocation4 + $0x458] sm:$0xff] }
 0x312   : > { %2012 = vmatpush.msra.mxu2 %v2003_v2  ;;  %v1995_v2 = vld [vmem:[#allocation4 + $0x418] sm:$0xff] }
 0x314   : > { %2013 = vmatpush.msra.mxu2 %v2002_v13 }
 0x315   : > { %v4578_v30 = vpop.f32.mrf.mxu0 }
 0x316   : > { %v1764_v15 = vpop.f32.mrf.mxu1 }
 0x317   : > { %v1806_v1 = vadd.f32 %v1805_v21, %v1764_v15  ;;  %v2001_v15 = vld [vmem:[#allocation4 + $0x448] sm:$0xff] }
 0x318   : > { %2014 = vmatpush.msra.mxu2 %v2001_v15 }
 0x319   : > { %1862 = vmatmul.f32.gmra.mxu3 %v1806_v1  ;;  %v1814_v1 = vpop.f32.mrf.mxu2 }
 0x31a   : > { %2015 = vmatpush.msra.mxu2 %v2000_v63  ;;  %v1992_v63 = vld [vmem:[#allocation4 + $0x400] sm:$0xff] }
 0x31c   : > { %2016 = vmatpush.msra.mxu2 %v1999_v46 }
 0x31d   : > { %v4580_v45 = vpop.f32.mrf.mxu0 }
 0x31e   : > { %v1767_v34 = vpop.f32.mrf.mxu1  ;;  %2017 = vmatpush.msra.mxu2 %v1998_v60 }
 0x31f   : > { %v1809_v47 = vadd.f32 %v1808_v3, %v1767_v34 }
 0x320   : > { %2018 = vmatpush.msra.mxu2 %v1997_v50 }
 0x321   : > { %1865 = vmatmul.f32.gmra.mxu3 %v1809_v47  ;;  %v1996_v47 = vld [vmem:[#allocation4 + $0x420] sm:$0xff]  ;;  %v1817_v15 = vpop.f32.mrf.mxu2 }
 0x322   : > { %2019 = vmatpush.msra.mxu2 %v1996_v47 }
 0x324   : > { %2020 = vmatpush.msra.mxu2 %v1995_v2 }
 0x325   : > { %v4582_v21 = vpop.f32.mrf.mxu0 }
 0x326   : > { %v1770_v6 = vpop.f32.mrf.mxu1  ;;  %2021 = vmatpush.msra.mxu2 %v1994_v28 }
 0x327   : > { %v1812_v16 = vadd.f32 %v1811_v54, %v1770_v6  ;;  %v1993_v54 = vld [vmem:[#allocation4 + $0x408] sm:$0xff] }
 0x328   : > { %2022 = vmatpush.msra.mxu2 %v1993_v54 }
 0x329   : > { %1868 = vmatmul.f32.gmra.mxu3 %v1812_v16  ;;  %v1820_v60 = vpop.f32.mrf.mxu2 }
 0x32a   : > { %2023 = vmatpush.msra.mxu2 %v1992_v63 }
 0x32d   : > { %v4584_v3 = vpop.f32.mrf.mxu0 }
 0x32e   : > { %v1773_v34 = vpop.f32.mrf.mxu1 }
 0x32f   : > { %v1815_v13 = vadd.f32 %v1814_v1, %v1773_v34 }
 0x331   : > { %1871 = vmatmul.f32.gmra.mxu3 %v1815_v13  ;;  %v1823_v34 = vpop.f32.mrf.mxu2 }
 0x335   : > { %v4586_v6 = vpop.f32.mrf.mxu0 }
 0x336   : > { %v1776_v46 = vpop.f32.mrf.mxu1 }
 0x337   : > { %v1818_v16 = vadd.f32 %v1817_v15, %v1776_v46 }
 0x339   : > { %1874 = vmatmul.f32.gmra.mxu3 %v1818_v16 }
 0x33d   : > { %v4588_v50 = vpop.f32.mrf.mxu0 }
 0x33e   : > { %v1779_v17 = vpop.f32.mrf.mxu1 }
 0x33f   : > { %v1821_v1 = vadd.f32 %v1820_v60, %v1779_v17 }
 0x341   : > { %1877 = vmatmul.f32.gmra.mxu3 %v1821_v1 }
 0x345   : > { %v4590_v47 = vpop.f32.mrf.mxu0 }
 0x346   : > { %v1782_v2 = vpop.f32.mrf.mxu1 }
 0x347   : > { %v1824_v28 = vadd.f32 %v1823_v34, %v1782_v2 }
 0x349   : > { %1880 = vmatmul.f32.gmra.mxu3 %v1824_v28 }
 0x34d   : > { %v4592_v13 = vpop.f32.mrf.mxu0 }
 0x34e   : > { %v1967_v54 = vpop.f32.mrf.mxu1 }
 0x355   : > { %v1926_v7 = vpop.f32.mrf.mxu0 }
 0x356   : > { %v1968_v61 = vadd.f32 %v1967_v54, %v1926_v7  ;;  %v1970_v15 = vpop.f32.mrf.mxu1 }
 0x358   : > { %2024 = vmatmul.f32.vlgmr.msra.gmra.mxu2 %v1968_v61 }
 0x35d   : > { %v1929_v46 = vpop.f32.mrf.mxu0 }
 0x35e   : > { %v1971_v63 = vadd.f32 %v1970_v15, %v1929_v46  ;;  %v1973_v16 = vpop.f32.mrf.mxu1 }
 0x360   : > { %2027 = vmatmul.f32.gmra.mxu2 %v1971_v63 }
 0x365   : > { %v1932_v55 = vpop.f32.mrf.mxu0 }
 0x366   : > { %v1974_v17 = vadd.f32 %v1973_v16, %v1932_v55  ;;  %v1976_v60 = vpop.f32.mrf.mxu1 }
 0x368   : > { %2030 = vmatmul.f32.gmra.mxu2 %v1974_v17 }
 0x36d   : > { %v1935_v1 = vpop.f32.mrf.mxu0 }
 0x36e   : > { %v1977_v40 = vadd.f32 %v1976_v60, %v1935_v1  ;;  %v1979_v36 = vpop.f32.mrf.mxu1  ;;  %v2267_v1 = vld [vmem:[#allocation7 + $0xe8] sm:$0xff] }
 0x370   : > { %2033 = vmatmul.f32.gmra.mxu2 %v1977_v40 }
 0x375   : > { %v1938_v34 = vpop.f32.mrf.mxu0 }
 0x376   : > { %v1980_v2 = vadd.f32 %v1979_v36, %v1938_v34  ;;  %v1982_v28 = vpop.f32.mrf.mxu1  ;;  %v2269_v36 = vld [vmem:[#allocation7 + $0xf8] sm:$0xff]  ;;  %v2266_v34 = vld [vmem:[#allocation7 + $0xe0] sm:$0xff] }
 0x377   : > { %2270 = vmatpush.msrb.mxu1 %v2269_v36  ;;  %v2259_v36 = vld [vmem:[#allocation7 + $0xa8] sm:$0xff] }
 0x378   : > { %2036 = vmatmul.f32.gmra.mxu2 %v1980_v2 }
 0x37d   : > { %v1941_v32 = vpop.f32.mrf.mxu0 }
 0x37e   : > { %v1983_v7 = vadd.f32 %v1982_v28, %v1941_v32  ;;  %v1985_v61 = vpop.f32.mrf.mxu1  ;;  %v2268_v32 = vld [vmem:[#allocation7 + $0xf0] sm:$0xff]  ;;  %v2265_v28 = vld [vmem:[#allocation7 + $0xd8] sm:$0xff] }
 0x37f   : > { %2271 = vmatpush.msrb.mxu1 %v2268_v32 }
 0x380   : > { %2039 = vmatmul.f32.gmra.mxu2 %v1983_v7  ;;  %v2264_v7 = vld [vmem:[#allocation7 + $0xd0] sm:$0xff] }
 0x381   : > { %2272 = vmatpush.msrb.mxu1 %v2267_v1  ;;  %v2258_v1 = vld [vmem:[#allocation7 + $0xa0] sm:$0xff] }
 0x383   : > { %2273 = vmatpush.msrb.mxu1 %v2266_v34 }
 0x385   : > { %v1944_v54 = vpop.f32.mrf.mxu0  ;;  %2274 = vmatpush.msrb.mxu1 %v2265_v28  ;;  %v2257_v28 = vld [vmem:[#allocation7 + $0x98] sm:$0xff] }
 0x386   : > { %v1986_v15 = vadd.f32 %v1985_v61, %v1944_v54  ;;  %v1988_v46 = vpop.f32.mrf.mxu1  ;;  %v2263_v54 = vld [vmem:[#allocation7 + $0xc8] sm:$0xff] }
 0x387   : > { %2275 = vmatpush.msrb.mxu1 %v2264_v7  ;;  %v2256_v7 = vld [vmem:[#allocation7 + $0x90] sm:$0xff] }
 0x388   : > { %2042 = vmatmul.f32.gmra.mxu2 %v1986_v15  ;;  %v2262_v15 = vld [vmem:[#allocation7 + $0xc0] sm:$0xff] }
 0x389   : > { %2276 = vmatpush.msrb.mxu1 %v2263_v54  ;;  %v2255_v54 = vld [vmem:[#allocation7 + $0x88] sm:$0xff] }
 0x38b   : > { %2277 = vmatpush.msrb.mxu1 %v2262_v15 }
 0x38d   : > { %v1947_v63 = vpop.f32.mrf.mxu0 }
 0x38e   : > { %v1989_v55 = vadd.f32 %v1988_v46, %v1947_v63  ;;  %v2261_v63 = vld [vmem:[#allocation7 + $0xb8] sm:$0xff] }
 0x38f   : > { %2278 = vmatpush.msrb.mxu1 %v2261_v63  ;;  %v897_v63 = vadd.f32 %v4400_v23, %v4406_v31  ;;  %v888_v23 = vadd.f32 %v4382_v43, %v4384_v53  ;;  %v5188_v53 = vld [vmem:[#allocation47_spill] sm:$0xff] }
 0x390   : > { %2045 = vmatmul.f32.gmra.mxu2 %v1989_v55  ;;  %v2260_v55 = vld [vmem:[#allocation7 + $0xb0] sm:$0xff] }
 0x391   : > { %2279 = vmatpush.msrb.mxu1 %v2260_v55 }
 0x393   : > { %2280 = vmatpush.msrb.mxu1 %v2259_v36  ;;  %v894_v36 = vadd.f32 %v4392_v14, %v4398_v20 }
 0x394   : > { %v4594_v16 = vpop.f32.mrf.mxu3 }
 0x395   : > { %2281 = vmatpush.msrb.mxu1 %v2258_v1 }
 0x397   : > { %2282 = vmatpush.msrb.mxu1 %v2257_v28  ;;  %v891_v28 = vadd.f32 %v4386_v58, %v4390_v5  ;;  %v885_v58 = vadd.f32 %v4378_v29, %v4380_v41  ;;  %v1062_v5 = vadd.f32 %v4438_v35, %v888_v23  ;;  %v5195_v23 = vld [vmem:[#allocation52_spill] sm:$0xff] }
 0x399   : > { %2283 = vmatpush.msrb.mxu1 %v2256_v7  ;;  %v900_v7 = vadd.f32 %v4408_v38, %v4414_v44  ;;  %v1063_v31 = vadd.f32 %v4442_v10, %v891_v28  ;;  %v5189_v10 = vld [vmem:[#allocation46_spill] sm:$0xff] }
 0x39b   : > { %2284 = vmatpush.msrb.mxu1 %v2255_v54  ;;  %v1064_v54 = vadd.f32 %v4447_v39, %v894_v36  ;;  %v1066_v14 = vadd.f32 %v4459_v22, %v900_v7  ;;  %v1228_v38 = vadd.f32 %v4490_v27, %v1063_v31  ;;  %v882_v22 = vadd.f32 %v5189_v10, %v5188_v53 }
 0x39c   : > { %v4596_v17 = vpop.f32.mrf.mxu3 }
 0x39d   : > { %2285 = vmatpush.msrb.mxu1 %v2254_v25  ;;  %v1229_v20 = vadd.f32 %v4494_v9, %v1064_v54  ;;  %v1231_v44 = vadd.f32 %v4506_v48, %v1066_v14  ;;  %v1393_v29 = vadd.f32 %v4538_v11, %v1228_v38  ;;  %v5191_v48 = vld [vmem:[#allocation45_spill] sm:$0xff] }
 0x39f   : > { %v1394_v39 = vadd.f32 %v4543_v62, %v1229_v20  ;;  %v1396_v41 = vadd.f32 %v4555_v4, %v1231_v44  ;;  %v5192_v62 = vld [vmem:[#allocation44_spill] sm:$0xff]  ;;  %v5197_v44 = vld [vmem:[#allocation53_spill] sm:$0xff] }
 0x3a1   : > { %v1559_v35 = vadd.f32 %v4572_v18, %v1394_v39  ;;  %v1561_v54 = vadd.f32 %v4576_v37, %v1396_v41 }
 0x3a3   : > { %v1724_v11 = vadd.f32 %v4588_v50, %v1559_v35 }
 0x3a4   : > { %v4600_v60 = vpop.f32.mrf.mxu3 }
 0x3ac   : > { %v4604_v61 = vpop.f32.mrf.mxu3 }
 0x3b4   : > { %v4608_v32 = vpop.f32.mrf.mxu3 }
 0x3bc   : > { %v1875_v15 = vpop.f32.mrf.mxu3 }
 0x3c4   : > { %v1878_v1 = vpop.f32.mrf.mxu3 }
 0x3cc   : > { %v1881_v20 = vpop.f32.mrf.mxu3 }
 0x3db   : > { %v4598_v40 = vpop.f32.mrf.mxu2 }
 0x3dc   : > { %5186 = vst [vmem:[#allocation54_spill] sm:$0xff] %v4598_v40 }
 0x3e3   : > { %v4602_v2 = vpop.f32.mrf.mxu2 }
 0x3e4   : > { %5187 = vst [vmem:[#allocation55_spill] sm:$0xff] %v4602_v2  ;;  %v1065_v2 = vadd.f32 %v4453_v49, %v897_v63  ;;  %v879_v63 = vadd.f32 %v5192_v62, %v5191_v48 }
 0x3e6   : > { %v1230_v25 = vadd.f32 %v4500_v51, %v1065_v2  ;;  %v5190_v51 = vld [vmem:[#allocation50_spill] sm:$0xff] }
 0x3e7   : > { %v1061_v9 = vadd.f32 %v5190_v51, %v885_v58  ;;  %v5196_v58 = vld [vmem:[#allocation51_spill] sm:$0xff] }
 0x3e8   : > { %v1395_v49 = vadd.f32 %v4549_v26, %v1230_v25  ;;  %v1227_v26 = vadd.f32 %v4488_v59, %v1062_v5  ;;  %v1558_v59 = vadd.f32 %v4570_v19, %v1393_v29  ;;  %v5194_v25 = vld [vmem:[#allocation48_spill] sm:$0xff] }
 0x3e9   : > { %v1226_v28 = vadd.f32 %v4486_v42, %v1061_v9  ;;  %v1059_v18 = vadd.f32 %v5194_v25, %v879_v63 }
 0x3ea   : > { %v1560_v43 = vadd.f32 %v4574_v12, %v1395_v49  ;;  %v5193_v12 = vld [vmem:[#allocation49_spill] sm:$0xff]  ;;  %v1392_v7 = vadd.f32 %v4534_v57, %v1227_v26  ;;  %v1723_v42 = vadd.f32 %v4586_v6, %v1558_v59  ;;  %v1726_v57 = vadd.f32 %v4592_v13, %v1561_v54 }
 0x3eb   : > { %v4606_v46 = vpop.f32.mrf.mxu2  ;;  %v1060_v36 = vadd.f32 %v5193_v12, %v882_v22  ;;  %v1391_v31 = vadd.f32 %v4528_v52, %v1226_v28  ;;  %v1889_v49 = vadd.f32 %v1875_v15, %v1724_v11  ;;  %v1224_v37 = vadd.f32 %v5196_v58, %v1059_v18  ;;  %v2089_v18 = vld [vmem:[#allocation6] sm:$0xff]  ;;  %v2094_v58 = vld [vmem:[#allocation6 + $0x28] sm:$0xff] }
 0x3ec   : > { %v1725_v27 = vadd.f32 %v4590_v47, %v1560_v43  ;;  %v1557_v14 = vadd.f32 %v4568_v56, %v1392_v7  ;;  %v1888_v38 = vadd.f32 %v4608_v32, %v1723_v42  ;;  %v1891_v52 = vadd.f32 %v1881_v20, %v1726_v57  ;;  %v3747_v56 = vld [vmem:[%s5099_s3] ss:$0 sm:$0xff]  ;;  %v2182_v20 = vld [vmem:[#allocation6 + $0x50] sm:$0xff]  ;;  %v2092_v42 = vld [vmem:[#allocation6 + $0x18] sm:$0xff] }
 0x3ed   : > { %v1225_v47 = vadd.f32 %v5195_v23, %v1060_v36  ;;  %v1389_v13 = vadd.f32 %v5197_v44, %v1224_v37  ;;  %v2180_v23 = vld [vmem:[#allocation6 + $0x40] sm:$0xff]  ;;  %v2183_v57 = vld [vmem:[#allocation6 + $0x58] sm:$0xff]  ;;  %v2185_v37 = vld [vmem:[#allocation6 + $0x68] sm:$0xff] }
 0x3ee   : > { %v1890_v4 = vadd.f32 %v1878_v1, %v1725_v27  ;;  %v1556_v1 = vadd.f32 %v4566_v0, %v1391_v31  ;;  %v1722_v5 = vadd.f32 %v4584_v3, %v1557_v14  ;;  %v2181_v31 = vld [vmem:[#allocation6 + $0x48] sm:$0xff]  ;;  %v2091_v14 = vld [vmem:[#allocation6 + $0x10] sm:$0xff] }
 0x3ef   : > { %v1390_v50 = vadd.f32 %v4522_v33, %v1225_v47  ;;  %v1554_v32 = vadd.f32 %v4562_v8, %v1389_v13  ;;  %v2090_v47 = vld [vmem:[#allocation6 + $0x8] sm:$0xff]  ;;  %v2177_v44 = vld [vmem:[#allocation7 + $0x70] sm:$0xff] }
 0x3f0   : > { %v1721_v39 = vadd.f32 %v4582_v21, %v1556_v1  ;;  %v1887_v33 = vadd.f32 %v4604_v61, %v1722_v5  ;;  %v2186_v1 = vld [vmem:[#allocation6 + $0x70] sm:$0xff]  ;;  %v2096_v5 = vld [vmem:[#allocation6 + $0x38] sm:$0xff]  ;;  %v2176_v13 = vld [vmem:[#allocation7 + $0x68] sm:$0xff] }
 0x3f1   : > { %v1555_v15 = vadd.f32 %v4564_v24, %v1390_v50  ;;  %v1719_v9 = vadd.f32 %v4578_v30, %v1554_v32  ;;  %v2095_v50 = vld [vmem:[#allocation6 + $0x30] sm:$0xff]  ;;  %v2170_v32 = vld [vmem:[#allocation7 + $0x38] sm:$0xff] }
 0x3f2   : > { %v1886_v22 = vadd.f32 %v4600_v60, %v1721_v39  ;;  %v5198_v60 = vld [vmem:[#allocation55_spill] sm:$0xff]  ;;  %v2355_v39 = vld [vmem:[#allocation6 + $0x90] sm:$0xff] }
 0x3f3   : > { %v4610_v34 = vpop.f32.mrf.mxu2  ;;  %v1720_v10 = vadd.f32 %v4580_v45, %v1555_v15  ;;  %v1884_v45 = vadd.f32 %v4594_v16, %v1719_v9  ;;  %v2175_v15 = vld [vmem:[#allocation7 + $0x60] sm:$0xff]  ;;  %v2164_v9 = vld [vmem:[#allocation7 + $0x8] sm:$0xff] }
 0x3f4   : > { %v2052_v24 = vadd.f32 %v4610_v34, %v1887_v33  ;;  %v2051_v61 = vadd.f32 %v4606_v46, %v1886_v22  ;;  %v5199_v34 = vld [vmem:[#allocation54_spill] sm:$0xff]  ;;  %v2168_v22 = vld [vmem:[#allocation7 + $0x28] sm:$0xff] }
 0x3f5   : > { %v2049_v48 = vadd.f32 %v5199_v34, %v1884_v45  ;;  %v2173_v33 = vld [vmem:[#allocation7 + $0x50] sm:$0xff]  ;;  %v2633_v45 = vld [vmem:[#allocation6 + $0x100] sm:$0xff]  ;;  %v2440_v34 = vld [vmem:[#allocation7 + $0x168] sm:$0xff] }
 0x3f6   : > { %v2064_v41 = vmul.f32 %v3747_v56, %v2052_v24  ;;  %v2063_v62 = vmul.f32 %v3747_v56, %v2051_v61  ;;  %v2357_v24 = vld [vmem:[#allocation6 + $0xa0] sm:$0xff]  ;;  %v2358_v61 = vld [vmem:[#allocation6 + $0xa8] sm:$0xff] }
 0x3f7   : > { %v2061_v12 = vmul.f32 %v3747_v56, %v2049_v48 }
 0x3fb   : > { %v2037_v40 = vpop.f32.mrf.mxu2 }
 0x3fc   : > { %v2053_v0 = vadd.f32 %v2037_v40, %v1888_v38  ;;  %v1885_v40 = vadd.f32 %v4596_v17, %v1720_v10  ;;  %v2187_v38 = vld [vmem:[#allocation6 + $0x78] sm:$0xff]  ;;  %v2169_v10 = vld [vmem:[#allocation7 + $0x30] sm:$0xff] }
 0x3fe   : > { %v2065_v26 = vmul.f32 %v3747_v56, %v2053_v0  ;;  %v2050_v29 = vadd.f32 %v5198_v60, %v1885_v40  ;;  %v2172_v0 = vld [vmem:[#allocation7 + $0x48] sm:$0xff]  ;;  %v2163_v40 = vld [vmem:[#allocation7] sm:$0xff] }
 0x400   : > { %v2062_v17 = vmul.f32 %v3747_v56, %v2050_v29 }
 0x403   : > { %v2040_v55 = vpop.f32.mrf.mxu2 }
 0x404   : > { %v2054_v6 = vadd.f32 %v2040_v55, %v1889_v49  ;;  %v3748_v55 = vld [vmem:[%s5100_s4] ss:$0 sm:$0xff] }
 0x405   : > { %v2077_v63 = vadd.f32 %v3748_v55, %v2065_v26  ;;  %v2076_v16 = vadd.f32 %v3748_v55, %v2064_v41  ;;  %v2075_v36 = vadd.f32 %v3748_v55, %v2063_v62  ;;  %v2074_v7 = vadd.f32 %v3748_v55, %v2062_v17  ;;  %v2093_v49 = vld [vmem:[#allocation6 + $0x20] sm:$0xff]  ;;  %v2359_v26 = vld [vmem:[#allocation6 + $0xb0] sm:$0xff]  ;;  %v2442_v41 = vld [vmem:[#allocation7 + $0x178] sm:$0xff] }
 0x406   : > { %v2066_v51 = vmul.f32 %v3747_v56, %v2054_v6  ;;  %v2073_v54 = vadd.f32 %v3748_v55, %v2061_v12  ;;  %v2178_v6 = vld [vmem:[#allocation7 + $0x78] sm:$0xff]  ;;  %v2439_v62 = vld [vmem:[#allocation7 + $0x160] sm:$0xff]  ;;  %v2436_v12 = vld [vmem:[#allocation7 + $0x148] sm:$0xff] }
 0x407   : > { %v4695_v28 = vmax.f32 %v2077_v63, 0.0  ;;  %v4700_v59 = vmax.f32 %v2076_v16, 0.0  ;;  %v4705_v11 = vmax.f32 %v2075_v36, 0.0  ;;  %2311 = vmatpush.msrb.mxu2 %v2178_v6  ;;  %v2438_v17 = vld [vmem:[#allocation7 + $0x158] sm:$0xff]  ;;  %v2437_v16 = vld [vmem:[#allocation7 + $0x150] sm:$0xff] }
 0x408   : > { %v2078_v35 = vadd.f32 %v3748_v55, %v2066_v51  ;;  %v4715_v25 = vmax.f32 %v2073_v54, 0.0  ;;  %v2166_v51 = vld [vmem:[#allocation7 + $0x18] sm:$0xff] }
 0x409   : > { %2312 = vmatpush.msrb.mxu2 %v2177_v44  ;;  %v2636_v6 = vld [vmem:[#allocation6 + $0x118] sm:$0xff] }
 0x40a   : > { %v4690_v46 = vmax.f32 %v2078_v35, 0.0  ;;  %v2441_v35 = vld [vmem:[#allocation7 + $0x170] sm:$0xff] }
 0x40b   : > { %v2043_v2 = vpop.f32.mrf.mxu2  ;;  %2313 = vmatpush.msrb.mxu2 %v2176_v13  ;;  %v2493_v13 = vld [vmem:[#allocation6 + $0xc0] sm:$0xff] }
 0x40c   : > { %v2055_v19 = vadd.f32 %v2043_v2, %v1890_v4  ;;  %v4710_v4 = vmax.f32 %v2074_v7, 0.0  ;;  %v2435_v7 = vld [vmem:[#allocation7 + $0x140] sm:$0xff] }
 0x40d   : > { %2314 = vmatpush.msrb.mxu2 %v2175_v15  ;;  %v2637_v15 = vld [vmem:[#allocation6 + $0x120] sm:$0xff] }
 0x40e   : > { %v2067_v53 = vmul.f32 %v3747_v56, %v2055_v19  ;;  %v2184_v19 = vld [vmem:[#allocation6 + $0x60] sm:$0xff] }
 0x410   : > { %v2079_v8 = vadd.f32 %v3748_v55, %v2067_v53  ;;  %v2171_v53 = vld [vmem:[#allocation7 + $0x40] sm:$0xff] }
 0x412   : > { %v4685_v30 = vmax.f32 %v2079_v8, 0.0  ;;  %v2360_v8 = vld [vmem:[#allocation6 + $0xb8] sm:$0xff] }
 0x413   : > { %v2046_v43 = vpop.f32.mrf.mxu2 }
 0x414   : > { %v2056_v3 = vadd.f32 %v2046_v43, %v1891_v52  ;;  %v2353_v52 = vld [vmem:[#allocation6 + $0x80] sm:$0xff]  ;;  %v2174_v43 = vld [vmem:[#allocation7 + $0x58] sm:$0xff] }
 0x415   : > { %2315 = vmatpush.msrb.mxu2 %v2174_v43  ;;  %v2494_v43 = vld [vmem:[#allocation6 + $0xc8] sm:$0xff] }
 0x416   : > { %v2068_v21 = vmul.f32 %v3747_v56, %v2056_v3  ;;  %v2354_v56 = vld [vmem:[#allocation6 + $0x88] sm:$0xff]  ;;  %v2356_v3 = vld [vmem:[#allocation6 + $0x98] sm:$0xff] }
 0x417   : > { %2316 = vmatpush.msrb.mxu2 %v2173_v33  ;;  %v2638_v33 = vld [vmem:[#allocation6 + $0x128] sm:$0xff] }
 0x418   : > { %v2080_v2 = vadd.f32 %v3748_v55, %v2068_v21  ;;  %v2167_v55 = vld [vmem:[#allocation7 + $0x20] sm:$0xff]  ;;  %v2165_v21 = vld [vmem:[#allocation7 + $0x10] sm:$0xff] }
 0x419   : > { %2317 = vmatpush.msrb.mxu2 %v2172_v0  ;;  %v2496_v0 = vld [vmem:[#allocation6 + $0xd8] sm:$0xff] }
 0x41a   : > { %v4682_v27 = vmax.f32 %v2080_v2, 0.0 }
 0x41b   : > { %2318 = vmatpush.msrb.mxu2 %v2171_v53  ;;  %v2913_v53 = vld [vmem:[#allocation6 + $0x180] sm:$0xff] }
 0x41c   : > { %2130 = vmatpush.msra.mxu3 %v4682_v27  ;;  %2220 = vmatpush.msrb.mxu0 %v4682_v27 }
 0x41d   : > { %2533 = vmatpush.msra.mxu1 %v4682_v27  ;;  %2319 = vmatpush.msrb.mxu2 %v2170_v32  ;;  %v2914_v32 = vld [vmem:[#allocation6 + $0x188] sm:$0xff] }
 0x41e   : > { %2131 = vmatpush.msra.mxu3 %v4685_v30  ;;  %2221 = vmatpush.msrb.mxu0 %v4685_v30 }
 0x41f   : > { %2534 = vmatpush.msra.mxu1 %v4685_v30  ;;  %2320 = vmatpush.msrb.mxu2 %v2169_v10 }
 0x420   : > { %2132 = vmatpush.msra.mxu3 %v4690_v46  ;;  %2222 = vmatpush.msrb.mxu0 %v4690_v46 }
 0x421   : > { %2535 = vmatpush.msra.mxu1 %v4690_v46  ;;  %2321 = vmatpush.msrb.mxu2 %v2168_v22  ;;  %v2499_v22 = vld [vmem:[#allocation6 + $0xf0] sm:$0xff] }
 0x422   : > { %2133 = vmatpush.msra.mxu3 %v4695_v28  ;;  %2223 = vmatpush.msrb.mxu0 %v4695_v28 }
 0x423   : > { %2536 = vmatpush.msra.mxu1 %v4695_v28  ;;  %2322 = vmatpush.msrb.mxu2 %v2167_v55  ;;  %v2915_v55 = vld [vmem:[#allocation6 + $0x190] sm:$0xff] }
 0x424   : > { %2134 = vmatpush.msra.mxu3 %v4700_v59  ;;  %2224 = vmatpush.msrb.mxu0 %v4700_v59 }
 0x425   : > { %2537 = vmatpush.msra.mxu1 %v4700_v59  ;;  %2323 = vmatpush.msrb.mxu2 %v2166_v51  ;;  %v2500_v51 = vld [vmem:[#allocation6 + $0xf8] sm:$0xff] }
 0x426   : > { %2135 = vmatpush.msra.mxu3 %v4705_v11  ;;  %2225 = vmatpush.msrb.mxu0 %v4705_v11 }
 0x427   : > { %2538 = vmatpush.msra.mxu1 %v4705_v11  ;;  %2324 = vmatpush.msrb.mxu2 %v2165_v21  ;;  %v2916_v21 = vld [vmem:[#allocation6 + $0x198] sm:$0xff] }
 0x428   : > { %2136 = vmatpush.msra.mxu3 %v4710_v4  ;;  %2226 = vmatpush.msrb.mxu0 %v4710_v4 }
 0x429   : > { %2539 = vmatpush.msra.mxu1 %v4710_v4  ;;  %2325 = vmatpush.msrb.mxu2 %v2164_v9 }
 0x42a   : > { %2137 = vmatpush.msra.mxu3 %v4715_v25  ;;  %2227 = vmatpush.msrb.mxu0 %v4715_v25 }
 0x42b   : > { %2540 = vmatpush.msra.mxu1 %v4715_v25  ;;  %3616 = vmatmul.msk.f32.vlgmr.msra.gmra.mxu3 %vm2097_vm0, %v2089_v18  ;;  %v2434_v18 = vld [vmem:[#allocation7 + $0x138] sm:$0xff] }
 0x42c   : > { %3624 = vmatmul.msk.f32.vlgmr.msrb.gmra.mxu0 %vm2097_vm0, %v2180_v23  ;;  %2393 = vmatpush.msrb.mxu3 %v4682_v27  ;;  %v2433_v23 = vld [vmem:[#allocation7 + $0x130] sm:$0xff] }
 0x42d   : > { %2326 = vmatpush.msrb.mxu2 %v2163_v40  ;;  %2443 = vmatpush.msra.mxu0 %v2442_v41  ;;  %v2774_v41 = vld [vmem:[#allocation6 + $0x148] sm:$0xff] }
 0x42e   : > { %2394 = vmatpush.msrb.mxu3 %v4685_v30 }
 0x42f   : > { %2444 = vmatpush.msra.mxu0 %v2441_v35 }
 0x430   : > { %2395 = vmatpush.msrb.mxu3 %v4690_v46 }
 0x431   : > { %2445 = vmatpush.msra.mxu0 %v2440_v34  ;;  %v2579_v34 = vld [vmem:[#allocation7 + $0x1e0] sm:$0xff] }
 0x432   : > { %2396 = vmatpush.msrb.mxu3 %v4695_v28 }
 0x433   : > { %3617 = vmatmul.msk.f32.gmra.mxu3 %vm2097_vm0, %v2090_v47  ;;  %2446 = vmatpush.msra.mxu0 %v2439_v62  ;;  %v2432_v47 = vld [vmem:[#allocation7 + $0x128] sm:$0xff]  ;;  %v2722_v62 = vld [vmem:[#allocation7 + $0x278] sm:$0xff] }
 0x434   : > { %3625 = vmatmul.msk.f32.gmra.mxu0 %vm2097_vm0, %v2181_v31  ;;  %2397 = vmatpush.msrb.mxu3 %v4700_v59 }
 0x435   : > { %2447 = vmatpush.msra.mxu0 %v2438_v17  ;;  %v5203_v17 = vld [vmem:[#allocation18_spill] sm:$0xff] }
 0x436   : > { %2398 = vmatpush.msrb.mxu3 %v4705_v11 }
 0x437   : > { %2448 = vmatpush.msra.mxu0 %v2437_v16  ;;  %v2577_v16 = vld [vmem:[#allocation7 + $0x1d0] sm:$0xff] }
 0x438   : > { %2399 = vmatpush.msrb.mxu3 %v4710_v4 }
 0x439   : > { %2449 = vmatpush.msra.mxu0 %v2436_v12  ;;  %v2721_v12 = vld [vmem:[#allocation7 + $0x270] sm:$0xff] }
 0x43a   : > { %2400 = vmatpush.msrb.mxu3 %v4715_v25 }
 0x43b   : > { %3618 = vmatmul.msk.f32.gmra.mxu3 %vm2097_vm0, %v2091_v14  ;;  %2450 = vmatpush.msra.mxu0 %v2435_v7  ;;  %v2431_v14 = vld [vmem:[#allocation7 + $0x120] sm:$0xff]  ;;  %v2576_v7 = vld [vmem:[#allocation7 + $0x1c8] sm:$0xff] }
 0x43c   : > { %2673 = vmatpush.msra.mxu3 %v4682_v27  ;;  %3626 = vmatmul.msk.f32.gmra.mxu0 %vm2097_vm0, %v2182_v20  ;;  %v2430_v20 = vld [vmem:[#allocation7 + $0x118] sm:$0xff] }
 0x43d   : > { %2451 = vmatpush.msra.mxu0 %v2434_v18  ;;  %v5204_v18 = vld [vmem:[#allocation20_spill] sm:$0xff] }
 0x43e   : > { %2674 = vmatpush.msra.mxu3 %v4685_v30 }
 0x43f   : > { %2452 = vmatpush.msra.mxu0 %v2433_v23  ;;  %v5205_v23 = vld [vmem:[#allocation22_spill] sm:$0xff] }
 0x440   : > { %2675 = vmatpush.msra.mxu3 %v4690_v46 }
 0x441   : > { %2453 = vmatpush.msra.mxu0 %v2432_v47  ;;  %v2775_v47 = vld [vmem:[#allocation6 + $0x150] sm:$0xff] }
 0x442   : > { %2676 = vmatpush.msra.mxu3 %v4695_v28 }
 0x443   : > { %3619 = vmatmul.msk.f32.gmra.mxu3 %vm2097_vm0, %v2092_v42  ;;  %2454 = vmatpush.msra.mxu0 %v2431_v14  ;;  %v2575_v14 = vld [vmem:[#allocation7 + $0x1c0] sm:$0xff] }
 0x444   : > { %2677 = vmatpush.msra.mxu3 %v4700_v59  ;;  %3627 = vmatmul.msk.f32.gmra.mxu0 %vm2097_vm0, %v2183_v57  ;;  %v2429_v57 = vld [vmem:[#allocation7 + $0x110] sm:$0xff] }
 0x445   : > { %2455 = vmatpush.msra.mxu0 %v2430_v20  ;;  %v2719_v20 = vld [vmem:[#allocation7 + $0x260] sm:$0xff] }
 0x446   : > { %2678 = vmatpush.msra.mxu3 %v4705_v11 }
 0x447   : > { %2456 = vmatpush.msra.mxu0 %v2429_v57  ;;  %v5206_v57 = vld [vmem:[#allocation24_spill] sm:$0xff] }
 0x448   : > { %2679 = vmatpush.msra.mxu3 %v4710_v4 }
 0x44a   : > { %2680 = vmatpush.msra.mxu3 %v4715_v25 }
 0x44b   : > { %3620 = vmatmul.msk.f32.gmra.mxu3 %vm2097_vm0, %v2093_v49  ;;  %v2428_v49 = vld [vmem:[#allocation7 + $0x108] sm:$0xff] }
 0x44c   : > { %3628 = vmatmul.msk.f32.gmra.mxu0 %vm2097_vm0, %v2184_v19 }
 0x44d   : > { %2457 = vmatpush.msra.mxu0 %v2428_v49  ;;  %v2718_v49 = vld [vmem:[#allocation7 + $0x258] sm:$0xff] }
 0x453   : > { %3621 = vmatmul.msk.f32.gmra.mxu3 %vm2097_vm0, %v2094_v58  ;;  %v2427_v58 = vld [vmem:[#allocation7 + $0x100] sm:$0xff] }
 0x454   : > { %3629 = vmatmul.msk.f32.gmra.mxu0 %vm2097_vm0, %v2185_v37 }
 0x455   : > { %2458 = vmatpush.msra.mxu0 %v2427_v58  ;;  %v2573_v58 = vld [vmem:[#allocation7 + $0x1b0] sm:$0xff] }
 0x457   : > { %2723 = vmatpush.msrb.mxu0 %v2722_v62  ;;  %v3196_v62 = vld [vmem:[#allocation6 + $0x218] sm:$0xff] }
 0x459   : > { %2724 = vmatpush.msrb.mxu0 %v2721_v12  ;;  %v2862_v12 = vld [vmem:[#allocation7 + $0x2f8] sm:$0xff] }
 0x45b   : > { %3622 = vmatmul.msk.f32.gmra.mxu3 %vm2097_vm0, %v2095_v50  ;;  %v2634_v50 = vld [vmem:[#allocation6 + $0x108] sm:$0xff] }
 0x45c   : > { %3630 = vmatmul.msk.f32.gmra.mxu0 %vm2097_vm0, %v2186_v1 }
 0x463   : > { %3623 = vmatmul.msk.f32.gmra.mxu3 %vm2097_vm0, %v2096_v5 }
 0x464   : > { %3631 = vmatmul.msk.f32.gmra.mxu0 %vm2097_vm0, %v2187_v38  ;;  %v2635_v38 = vld [vmem:[#allocation6 + $0x110] sm:$0xff] }
 0x46b   : > { %3632 = vmatmul.msk.f32.vlgmr.msrb.gmra.mxu3 %vm2097_vm0, %v2353_v52 }
 0x46c   : > { %2953 = vmatpush.msrb.mxu3 %v4682_v27 }
 0x46e   : > { %2954 = vmatpush.msrb.mxu3 %v4685_v30 }
 0x470   : > { %2955 = vmatpush.msrb.mxu3 %v4690_v46 }
 0x472   : > { %2956 = vmatpush.msrb.mxu3 %v4695_v28 }
 0x473   : > { %3633 = vmatmul.msk.f32.gmra.mxu3 %vm2097_vm0, %v2354_v56 }
 0x474   : > { %2957 = vmatpush.msrb.mxu3 %v4700_v59 }
 0x476   : > { %2958 = vmatpush.msrb.mxu3 %v4705_v11 }
 0x478   : > { %2959 = vmatpush.msrb.mxu3 %v4710_v4 }
 0x47a   : > { %2960 = vmatpush.msrb.mxu3 %v4715_v25 }
 0x47b   : > { %3634 = vmatmul.msk.f32.gmra.mxu3 %vm2097_vm0, %v2355_v39 }
 0x483   : > { %3635 = vmatmul.msk.f32.gmra.mxu3 %vm2097_vm0, %v2356_v3  ;;  %v2498_v3 = vld [vmem:[#allocation6 + $0xe8] sm:$0xff] }
 0x48b   : > { %3636 = vmatmul.msk.f32.gmra.mxu3 %vm2097_vm0, %v2357_v24 }
 0x493   : > { %3637 = vmatmul.msk.f32.gmra.mxu3 %vm2097_vm0, %v2358_v61  ;;  %v2773_v61 = vld [vmem:[#allocation6 + $0x140] sm:$0xff] }
 0x49b   : > { %3638 = vmatmul.msk.f32.gmra.mxu3 %vm2097_vm0, %v2359_v26  ;;  %v2582_v26 = vld [vmem:[#allocation7 + $0x1f8] sm:$0xff] }
 0x49c   : > { %2583 = vmatpush.msra.mxu2 %v2582_v26  ;;  %v2707_v26 = vld [vmem:[#allocation7 + $0x200] sm:$0xff] }
 0x4a3   : > { %3639 = vmatmul.msk.f32.gmra.mxu3 %vm2097_vm0, %v2360_v8  ;;  %v2581_v8 = vld [vmem:[#allocation7 + $0x1f0] sm:$0xff] }
 0x4a4   : > { %2584 = vmatpush.msra.mxu2 %v2581_v8  ;;  %v3194_v8 = vld [vmem:[#allocation6 + $0x208] sm:$0xff] }
 0x4a9   : > { %v2229_v2 = vpop.f32.mrf.mxu0 }
 0x4aa   : > { %2286 = vmatmul.f32.vlgmr.msrb.gmra.mxu1 %v2229_v2  ;;  %v2917_v2 = vld [vmem:[#allocation6 + $0x1a0] sm:$0xff] }
 0x4ab   : > { %2813 = vmatpush.msrb.mxu1 %v4682_v27  ;;  %3648 = vmatmul.msk.f32.vlgmr.msra.gmra.mxu3 %vm2097_vm0, %v2633_v45  ;;  %v2580_v45 = vld [vmem:[#allocation7 + $0x1e8] sm:$0xff] }
 0x4ac   : > { %3233 = vmatpush.msra.mxu3 %v4682_v27  ;;  %2585 = vmatpush.msra.mxu2 %v2580_v45  ;;  %v2779_v45 = vld [vmem:[#allocation6 + $0x170] sm:$0xff] }
 0x4ad   : > { %2814 = vmatpush.msrb.mxu1 %v4685_v30 }
 0x4ae   : > { %v2139_v60 = vpop.f32.mrf.mxu3  ;;  %3234 = vmatpush.msra.mxu3 %v4685_v30  ;;  %2586 = vmatpush.msra.mxu2 %v2579_v34  ;;  %v2780_v34 = vld [vmem:[#allocation6 + $0x178] sm:$0xff] }
 0x4af   : > { %2815 = vmatpush.msrb.mxu1 %v4690_v46  ;;  %2327 = vmatmul.f32.vlgmr.msrb.gmra.mxu2 %v2139_v60  ;;  %v5200_v60 = vld [vmem:[#allocation12_spill] sm:$0xff] }
 0x4b0   : > { %3235 = vmatpush.msra.mxu3 %v4690_v46 }
 0x4b1   : > { %2816 = vmatpush.msrb.mxu1 %v4695_v28  ;;  %v2232_v29 = vpop.f32.mrf.mxu0 }
 0x4b2   : > { %2289 = vmatmul.f32.gmra.mxu1 %v2232_v29  ;;  %3236 = vmatpush.msra.mxu3 %v4695_v28  ;;  %v5201_v29 = vld [vmem:[#allocation14_spill] sm:$0xff] }
 0x4b3   : > { %2817 = vmatpush.msrb.mxu1 %v4700_v59  ;;  %3649 = vmatmul.msk.f32.gmra.mxu3 %vm2097_vm0, %v2634_v50  ;;  %v2919_v50 = vld [vmem:[#allocation6 + $0x1b0] sm:$0xff] }
 0x4b4   : > { %3237 = vmatpush.msra.mxu3 %v4700_v59 }
 0x4b5   : > { %2818 = vmatpush.msrb.mxu1 %v4705_v11 }
 0x4b6   : > { %v2142_v48 = vpop.f32.mrf.mxu3  ;;  %3238 = vmatpush.msra.mxu3 %v4705_v11 }
 0x4b7   : > { %2819 = vmatpush.msrb.mxu1 %v4710_v4  ;;  %2330 = vmatmul.f32.gmra.mxu2 %v2142_v48  ;;  %v2578_v48 = vld [vmem:[#allocation7 + $0x1d8] sm:$0xff] }
 0x4b8   : > { %3239 = vmatpush.msra.mxu3 %v4710_v4  ;;  %2587 = vmatpush.msra.mxu2 %v2578_v48 }
 0x4b9   : > { %2820 = vmatpush.msrb.mxu1 %v4715_v25  ;;  %v2235_v63 = vpop.f32.mrf.mxu0 }
 0x4ba   : > { %2292 = vmatmul.f32.gmra.mxu1 %v2235_v63  ;;  %3240 = vmatpush.msra.mxu3 %v4715_v25  ;;  %v5202_v63 = vld [vmem:[#allocation16_spill] sm:$0xff] }
 0x4bb   : > { %3650 = vmatmul.msk.f32.gmra.mxu3 %vm2097_vm0, %v2635_v38  ;;  %2588 = vmatpush.msra.mxu2 %v2577_v16  ;;  %v2716_v38 = vld [vmem:[#allocation7 + $0x248] sm:$0xff] }
 0x4bd   : > { %2589 = vmatpush.msra.mxu2 %v2576_v7  ;;  %v3197_v7 = vld [vmem:[#allocation6 + $0x220] sm:$0xff] }
 0x4be   : > { %v2145_v36 = vpop.f32.mrf.mxu3 }
 0x4bf   : > { %2333 = vmatmul.f32.gmra.mxu2 %v2145_v36  ;;  %v2918_v36 = vld [vmem:[#allocation6 + $0x1a8] sm:$0xff] }
 0x4c0   : > { %2590 = vmatpush.msra.mxu2 %v2575_v14  ;;  %v2859_v14 = vld [vmem:[#allocation7 + $0x2e0] sm:$0xff] }
 0x4c1   : > { %v2238_v54 = vpop.f32.mrf.mxu0 }
 0x4c2   : > { %2295 = vmatmul.f32.gmra.mxu1 %v2238_v54  ;;  %v2720_v54 = vld [vmem:[#allocation7 + $0x268] sm:$0xff] }
 0x4c3   : > { %3651 = vmatmul.msk.f32.gmra.mxu3 %vm2097_vm0, %v2636_v6  ;;  %2725 = vmatpush.msrb.mxu0 %v2720_v54  ;;  %v2860_v54 = vld [vmem:[#allocation7 + $0x2e8] sm:$0xff] }
 0x4c5   : > { %2726 = vmatpush.msrb.mxu0 %v2719_v20  ;;  %v2858_v20 = vld [vmem:[#allocation7 + $0x2d8] sm:$0xff] }
 0x4c6   : > { %v2148_v31 = vpop.f32.mrf.mxu3 }
 0x4c7   : > { %2336 = vmatmul.f32.gmra.mxu2 %v2148_v31  ;;  %2727 = vmatpush.msrb.mxu0 %v2718_v49  ;;  %v3001_v49 = vld [vmem:[#allocation7 + $0x370] sm:$0xff] }
 0x4c9   : > { %v2241_v42 = vpop.f32.mrf.mxu0 }
 0x4ca   : > { %2298 = vmatmul.f32.gmra.mxu1 %v2241_v42  ;;  %v2574_v42 = vld [vmem:[#allocation7 + $0x1b8] sm:$0xff] }
 0x4cb   : > { %3652 = vmatmul.msk.f32.gmra.mxu3 %vm2097_vm0, %v2637_v15  ;;  %2591 = vmatpush.msra.mxu2 %v2574_v42  ;;  %v2570_v15 = vld [vmem:[#allocation7 + $0x198] sm:$0xff] }
 0x4cc   : > { %v3002_v42 = vld [vmem:[#allocation7 + $0x378] sm:$0xff] }
 0x4cd   : > { %2592 = vmatpush.msra.mxu2 %v2573_v58  ;;  %v2856_v58 = vld [vmem:[#allocation7 + $0x2c8] sm:$0xff] }
 0x4ce   : > { %v2151_v19 = vpop.f32.mrf.mxu3 }
 0x4cf   : > { %2339 = vmatmul.f32.gmra.mxu2 %v2151_v19  ;;  %v5207_v19 = vld [vmem:[#allocation26_spill] sm:$0xff] }
 0x4d1   : > { %v2244_v37 = vpop.f32.mrf.mxu0 }
 0x4d2   : > { %2301 = vmatmul.f32.gmra.mxu1 %v2244_v37  ;;  %v2717_v37 = vld [vmem:[#allocation7 + $0x250] sm:$0xff] }
 0x4d3   : > { %3653 = vmatmul.msk.f32.gmra.mxu3 %vm2097_vm0, %v2638_v33  ;;  %2728 = vmatpush.msrb.mxu0 %v2717_v37  ;;  %v5211_v33 = vld [vmem:[#allocation34_spill] sm:$0xff]  ;;  %v3000_v37 = vld [vmem:[#allocation7 + $0x368] sm:$0xff] }
 0x4d5   : > { %2729 = vmatpush.msrb.mxu0 %v2716_v38  ;;  %v2855_v38 = vld [vmem:[#allocation7 + $0x2c0] sm:$0xff] }
 0x4d6   : > { %v2154_v1 = vpop.f32.mrf.mxu3 }
 0x4d7   : > { %2342 = vmatmul.f32.gmra.mxu2 %v2154_v1  ;;  %v2572_v1 = vld [vmem:[#allocation7 + $0x1a8] sm:$0xff] }
 0x4d8   : > { %2593 = vmatpush.msra.mxu2 %v2572_v1  ;;  %v3055_v1 = vld [vmem:[#allocation6 + $0x1d0] sm:$0xff] }
 0x4d9   : > { %v2247_v5 = vpop.f32.mrf.mxu0 }
 0x4da   : > { %2304 = vmatmul.f32.gmra.mxu1 %v2247_v5  ;;  %v5208_v5 = vld [vmem:[#allocation28_spill] sm:$0xff] }
 0x4de   : > { %v2157_v52 = vpop.f32.mrf.mxu3 }
 0x4df   : > { %2345 = vmatmul.f32.gmra.mxu2 %v2157_v52  ;;  %v5209_v52 = vld [vmem:[#allocation30_spill] sm:$0xff] }
 0x4e1   : > { %v2250_v56 = vpop.f32.mrf.mxu0 }
 0x4e2   : > { %2307 = vmatmul.f32.gmra.mxu1 %v2250_v56  ;;  %v2776_v56 = vld [vmem:[#allocation6 + $0x158] sm:$0xff] }
 0x4e6   : > { %v2160_v44 = vpop.f32.mrf.mxu3 }
 0x4e7   : > { %2348 = vmatmul.f32.gmra.mxu2 %v2160_v44  ;;  %v2571_v44 = vld [vmem:[#allocation7 + $0x1a0] sm:$0xff] }
 0x4e8   : > { %2594 = vmatpush.msra.mxu2 %v2571_v44  ;;  %v2998_v44 = vld [vmem:[#allocation7 + $0x358] sm:$0xff] }
 0x4ea   : > { %3640 = vmatmul.msk.f32.vlgmr.msra.gmra.mxu1 %vm2097_vm0, %v2493_v13  ;;  %v2715_v13 = vld [vmem:[#allocation7 + $0x240] sm:$0xff]  ;;  %2595 = vmatpush.msra.mxu2 %v2570_v15  ;;  %v2997_v15 = vld [vmem:[#allocation7 + $0x350] sm:$0xff] }
 0x4eb   : > { %3093 = vmatpush.msra.mxu1 %v4682_v27  ;;  %2730 = vmatpush.msrb.mxu0 %v2715_v13  ;;  %v2853_v13 = vld [vmem:[#allocation7 + $0x2b0] sm:$0xff] }
 0x4ed   : > { %3094 = vmatpush.msra.mxu1 %v4685_v30  ;;  %v2495_v30 = vld [vmem:[#allocation6 + $0xd0] sm:$0xff] }
 0x4ee   : > { %v2402_v39 = vpop.f32.mrf.mxu3 }
 0x4ef   : > { %3095 = vmatpush.msra.mxu1 %v4690_v46  ;;  %2459 = vmatmul.f32.vlgmr.msra.gmra.mxu0 %v2402_v39  ;;  %v2639_v46 = vld [vmem:[#allocation6 + $0x130] sm:$0xff]  ;;  %v5210_v39 = vld [vmem:[#allocation32_spill] sm:$0xff] }
 0x4f0   : > { %3654 = vmatmul.msk.f32.gmra.mxu3 %vm2097_vm0, %v2639_v46  ;;  %v2920_v46 = vld [vmem:[#allocation6 + $0x1b8] sm:$0xff] }
 0x4f1   : > { %3096 = vmatpush.msra.mxu1 %v4695_v28 }
 0x4f2   : > { %3641 = vmatmul.msk.f32.gmra.mxu1 %vm2097_vm0, %v2494_v43  ;;  %v2714_v43 = vld [vmem:[#allocation7 + $0x238] sm:$0xff] }
 0x4f3   : > { %3097 = vmatpush.msra.mxu1 %v4700_v59  ;;  %v2640_v59 = vld [vmem:[#allocation6 + $0x138] sm:$0xff]  ;;  %2731 = vmatpush.msrb.mxu0 %v2714_v43  ;;  %v2852_v43 = vld [vmem:[#allocation7 + $0x2a8] sm:$0xff] }
 0x4f5   : > { %3098 = vmatpush.msra.mxu1 %v4705_v11 }
 0x4f6   : > { %v2405_v27 = vpop.f32.mrf.mxu3 }
 0x4f7   : > { %3099 = vmatpush.msra.mxu1 %v4710_v4  ;;  %2462 = vmatmul.f32.gmra.mxu0 %v2405_v27  ;;  %v2497_v4 = vld [vmem:[#allocation6 + $0xe0] sm:$0xff]  ;;  %v2569_v27 = vld [vmem:[#allocation7 + $0x190] sm:$0xff] }
 0x4f8   : > { %3655 = vmatmul.msk.f32.gmra.mxu3 %vm2097_vm0, %v2640_v59  ;;  %2596 = vmatpush.msra.mxu2 %v2569_v27  ;;  %v2712_v59 = vld [vmem:[#allocation7 + $0x228] sm:$0xff] }
 0x4f9   : > { %3100 = vmatpush.msra.mxu1 %v4715_v25 }
 0x4fa   : > { %3642 = vmatmul.msk.f32.gmra.mxu1 %vm2097_vm0, %v2495_v30  ;;  %v2713_v30 = vld [vmem:[#allocation7 + $0x230] sm:$0xff] }
 0x4fb   : > { %2732 = vmatpush.msrb.mxu0 %v2713_v30  ;;  %v3056_v30 = vld [vmem:[#allocation6 + $0x1d8] sm:$0xff] }
 0x4fd   : > { %2733 = vmatpush.msrb.mxu0 %v2712_v59  ;;  %v2850_v59 = vld [vmem:[#allocation7 + $0x298] sm:$0xff] }
 0x4fe   : > { %v2408_v28 = vpop.f32.mrf.mxu3 }
 0x4ff   : > { %2465 = vmatmul.f32.gmra.mxu0 %v2408_v28  ;;  %v2568_v28 = vld [vmem:[#allocation7 + $0x188] sm:$0xff] }
 0x500   : > { %3664 = vmatmul.msk.f32.vlgmr.msrb.gmra.mxu3 %vm2097_vm0, %v2913_v53  ;;  %2597 = vmatpush.msra.mxu2 %v2568_v28  ;;  %v2777_v53 = vld [vmem:[#allocation6 + $0x160] sm:$0xff] }
 0x501   : > { %v2851_v28 = vld [vmem:[#allocation7 + $0x2a0] sm:$0xff] }
 0x502   : > { %3643 = vmatmul.msk.f32.gmra.mxu1 %vm2097_vm0, %v2496_v0  ;;  %v5212_v0 = vld [vmem:[#allocation36_spill] sm:$0xff] }
 0x506   : > { %v2411_v11 = vpop.f32.mrf.mxu3 }
 0x507   : > { %2468 = vmatmul.f32.gmra.mxu0 %v2411_v11  ;;  %v5213_v11 = vld [vmem:[#allocation38_spill] sm:$0xff] }
 0x508   : > { %3665 = vmatmul.msk.f32.gmra.mxu3 %vm2097_vm0, %v2914_v32  ;;  %v5214_v32 = vld [vmem:[#allocation40_spill] sm:$0xff] }
 0x50a   : > { %3644 = vmatmul.msk.f32.gmra.mxu1 %vm2097_vm0, %v2497_v4 }
 0x50e   : > { %v2414_v25 = vpop.f32.mrf.mxu3 }
 0x50f   : > { %2471 = vmatmul.f32.gmra.mxu0 %v2414_v25  ;;  %v2567_v25 = vld [vmem:[#allocation7 + $0x180] sm:$0xff] }
 0x510   : > { %3666 = vmatmul.msk.f32.gmra.mxu3 %vm2097_vm0, %v2915_v55  ;;  %2598 = vmatpush.msra.mxu2 %v2567_v25  ;;  %v2709_v55 = vld [vmem:[#allocation7 + $0x210] sm:$0xff] }
 0x511   : > { %v2993_v25 = vld [vmem:[#allocation7 + $0x330] sm:$0xff] }
 0x512   : > { %3645 = vmatmul.msk.f32.gmra.mxu1 %vm2097_vm0, %v2498_v3  ;;  %v2711_v3 = vld [vmem:[#allocation7 + $0x220] sm:$0xff]  ;;  %2863 = vmatpush.msrb.mxu2 %v2862_v12 }
 0x513   : > { %2734 = vmatpush.msrb.mxu0 %v2711_v3  ;;  %v3200_v3 = vld [vmem:[#allocation6 + $0x238] sm:$0xff] }
 0x516   : > { %v2417_v10 = vpop.f32.mrf.mxu3 }
 0x517   : > { %2474 = vmatmul.f32.gmra.mxu0 %v2417_v10  ;;  %v2710_v10 = vld [vmem:[#allocation7 + $0x218] sm:$0xff] }
 0x518   : > { %3667 = vmatmul.msk.f32.gmra.mxu3 %vm2097_vm0, %v2916_v21  ;;  %2735 = vmatpush.msrb.mxu0 %v2710_v10  ;;  %v2992_v10 = vld [vmem:[#allocation7 + $0x328] sm:$0xff] }
 0x51a   : > { %3646 = vmatmul.msk.f32.gmra.mxu1 %vm2097_vm0, %v2499_v22  ;;  %v5215_v22 = vld [vmem:[#allocation42_spill] sm:$0xff]  ;;  %2736 = vmatpush.msrb.mxu0 %v2709_v55  ;;  %v3057_v55 = vld [vmem:[#allocation6 + $0x1e0] sm:$0xff] }
 0x51e   : > { %v2420_v24 = vpop.f32.mrf.mxu3 }
 0x51f   : > { %2477 = vmatmul.f32.gmra.mxu0 %v2420_v24  ;;  %v3193_v24 = vld [vmem:[#allocation6 + $0x200] sm:$0xff] }
 0x520   : > { %3668 = vmatmul.msk.f32.gmra.mxu3 %vm2097_vm0, %v2917_v2 }
 0x522   : > { %3647 = vmatmul.msk.f32.gmra.mxu1 %vm2097_vm0, %v2500_v51  ;;  %v2708_v51 = vld [vmem:[#allocation7 + $0x208] sm:$0xff] }
 0x523   : > { %2737 = vmatpush.msrb.mxu0 %v2708_v51  ;;  %v2847_v51 = vld [vmem:[#allocation7 + $0x280] sm:$0xff] }
 0x525   : > { %2738 = vmatpush.msrb.mxu0 %v2707_v26  ;;  %v2989_v26 = vld [vmem:[#allocation7 + $0x310] sm:$0xff] }
 0x526   : > { %v2423_v40 = vpop.f32.mrf.mxu3 }
 0x527   : > { %v4815_v9 = vpop.f32.mrf.mxu1  ;;  %2480 = vmatmul.f32.gmra.mxu0 %v2423_v40  ;;  %v2778_v40 = vld [vmem:[#allocation6 + $0x168] sm:$0xff] }
 0x528   : > { %3669 = vmatmul.msk.f32.gmra.mxu3 %vm2097_vm0, %v2918_v36  ;;  %v2861_v36 = vld [vmem:[#allocation7 + $0x2f0] sm:$0xff]  ;;  %3003 = vmatpush.msra.mxu0 %v3002_v42 }
 0x529   : > { %2864 = vmatpush.msrb.mxu2 %v2861_v36  ;;  %v3141_v42 = vld [vmem:[#allocation7 + $0x3f0] sm:$0xff] }
 0x52a   : > { %3656 = vmatmul.msk.f32.vlgmr.msrb.gmra.mxu1 %vm2097_vm0, %v2773_v61  ;;  %3004 = vmatpush.msra.mxu0 %v3001_v49 }
 0x52b   : > { %3348 = vmatpush.msrb.mxu1 %v5200_v60  ;;  %2865 = vmatpush.msrb.mxu2 %v2860_v54 }
 0x52c   : > { %3005 = vmatpush.msra.mxu0 %v3000_v37  ;;  %v3139_v37 = vld [vmem:[#allocation7 + $0x3e0] sm:$0xff] }
 0x52d   : > { %3349 = vmatpush.msrb.mxu1 %v5201_v29  ;;  %v3195_v29 = vld [vmem:[#allocation6 + $0x210] sm:$0xff]  ;;  %2866 = vmatpush.msrb.mxu2 %v2859_v14 }
 0x52e   : > { %v2682_v61 = vpop.f32.mrf.mxu3 }
 0x52f   : > { %v4821_v35 = vpop.f32.mrf.mxu1  ;;  %3350 = vmatpush.msrb.mxu1 %v5202_v63  ;;  %2739 = vmatmul.f32.vlgmr.msrb.gmra.mxu0 %v2682_v61  ;;  %v2990_v61 = vld [vmem:[#allocation7 + $0x318] sm:$0xff] }
 0x530   : > { %3670 = vmatmul.msk.f32.gmra.mxu3 %vm2097_vm0, %v2919_v50  ;;  %2867 = vmatpush.msrb.mxu2 %v2858_v20  ;;  %v3142_v20 = vld [vmem:[#allocation7 + $0x3f8] sm:$0xff] }
 0x531   : > { %3351 = vmatpush.msrb.mxu1 %v5203_v17  ;;  %v3053_v17 = vld [vmem:[#allocation6 + $0x1c0] sm:$0xff] }
 0x532   : > { %3657 = vmatmul.msk.f32.gmra.mxu1 %vm2097_vm0, %v2774_v41  ;;  %v4878_v12 = vpop.f32.mrf.mxu2 }
 0x533   : > { %3352 = vmatpush.msrb.mxu1 %v5204_v18 }
 0x535   : > { %3353 = vmatpush.msrb.mxu1 %v5205_v23  ;;  %v3054_v23 = vld [vmem:[#allocation6 + $0x1c8] sm:$0xff] }
 0x536   : > { %v2685_v60 = vpop.f32.mrf.mxu3 }
 0x537   : > { %v4829_v31 = vpop.f32.mrf.mxu1  ;;  %3354 = vmatpush.msrb.mxu1 %v5206_v57  ;;  %2742 = vmatmul.f32.gmra.mxu0 %v2685_v60  ;;  %v2857_v57 = vld [vmem:[#allocation7 + $0x2d0] sm:$0xff] }
 0x538   : > { %3671 = vmatmul.msk.f32.gmra.mxu3 %vm2097_vm0, %v2920_v46  ;;  %2868 = vmatpush.msrb.mxu2 %v2857_v57  ;;  %v3140_v57 = vld [vmem:[#allocation7 + $0x3e8] sm:$0xff] }
 0x539   : > { %3355 = vmatpush.msrb.mxu1 %v5207_v19  ;;  %v3198_v19 = vld [vmem:[#allocation6 + $0x228] sm:$0xff] }
 0x53a   : > { %3658 = vmatmul.msk.f32.gmra.mxu1 %vm2097_vm0, %v2775_v47  ;;  %2869 = vmatpush.msrb.mxu2 %v2856_v58 }
 0x53b   : > { %3356 = vmatpush.msrb.mxu1 %v5208_v5 }
 0x53c   : > { %2870 = vmatpush.msrb.mxu2 %v2855_v38  ;;  %v3281_v38 = vld [vmem:[#allocation7 + $0x470] sm:$0xff] }
 0x53d   : > { %3357 = vmatpush.msrb.mxu1 %v5209_v52  ;;  %v2999_v52 = vld [vmem:[#allocation7 + $0x360] sm:$0xff] }
 0x53e   : > { %v2688_v48 = vpop.f32.mrf.mxu3  ;;  %3006 = vmatpush.msra.mxu0 %v2999_v52  ;;  %v3137_v52 = vld [vmem:[#allocation7 + $0x3d0] sm:$0xff] }
 0x53f   : > { %v4837_v6 = vpop.f32.mrf.mxu1  ;;  %3358 = vmatpush.msrb.mxu1 %v5210_v39  ;;  %2745 = vmatmul.f32.gmra.mxu0 %v2688_v48  ;;  %v3199_v39 = vld [vmem:[#allocation6 + $0x230] sm:$0xff]  ;;  %v2987_v48 = vld [vmem:[#allocation7 + $0x300] sm:$0xff] }
 0x540   : > { %3680 = vmatmul.msk.f32.vlgmr.msra.gmra.mxu3 %vm2097_vm0, %v3193_v24  ;;  %3007 = vmatpush.msra.mxu0 %v2998_v44  ;;  %v3136_v44 = vld [vmem:[#allocation7 + $0x3c8] sm:$0xff] }
 0x541   : > { %3359 = vmatpush.msrb.mxu1 %v5211_v33  ;;  %v2996_v33 = vld [vmem:[#allocation7 + $0x348] sm:$0xff] }
 0x542   : > { %3659 = vmatmul.msk.f32.gmra.mxu1 %vm2097_vm0, %v2776_v56  ;;  %v2854_v56 = vld [vmem:[#allocation7 + $0x2b8] sm:$0xff]  ;;  %3008 = vmatpush.msra.mxu0 %v2997_v15 }
 0x543   : > { %3360 = vmatpush.msrb.mxu1 %v5212_v0  ;;  %2871 = vmatpush.msrb.mxu2 %v2854_v56  ;;  %v2995_v0 = vld [vmem:[#allocation7 + $0x340] sm:$0xff]  ;;  %v3280_v56 = vld [vmem:[#allocation7 + $0x468] sm:$0xff] }
 0x544   : > { %3009 = vmatpush.msra.mxu0 %v2996_v33  ;;  %v3279_v33 = vld [vmem:[#allocation7 + $0x460] sm:$0xff] }
 0x545   : > { %3361 = vmatpush.msrb.mxu1 %v5213_v11  ;;  %2872 = vmatpush.msrb.mxu2 %v2853_v13  ;;  %v2994_v11 = vld [vmem:[#allocation7 + $0x338] sm:$0xff] }
 0x546   : > { %v2691_v16 = vpop.f32.mrf.mxu3  ;;  %3010 = vmatpush.msra.mxu0 %v2995_v0 }
 0x547   : > { %v4845_v4 = vpop.f32.mrf.mxu1  ;;  %3362 = vmatpush.msrb.mxu1 %v5214_v32  ;;  %2748 = vmatmul.f32.gmra.mxu0 %v2691_v16  ;;  %v2848_v32 = vld [vmem:[#allocation7 + $0x288] sm:$0xff] }
 0x548   : > { %3681 = vmatmul.msk.f32.gmra.mxu3 %vm2097_vm0, %v3194_v8  ;;  %2873 = vmatpush.msrb.mxu2 %v2852_v43  ;;  %v2988_v8 = vld [vmem:[#allocation7 + $0x308] sm:$0xff]  ;;  %v3135_v43 = vld [vmem:[#allocation7 + $0x3c0] sm:$0xff] }
 0x549   : > { %3363 = vmatpush.msrb.mxu1 %v5215_v22  ;;  %3011 = vmatpush.msra.mxu0 %v2994_v11  ;;  %v3276_v11 = vld [vmem:[#allocation7 + $0x448] sm:$0xff] }
 0x54a   : > { %3660 = vmatmul.msk.f32.gmra.mxu1 %vm2097_vm0, %v2777_v53  ;;  %2874 = vmatpush.msrb.mxu2 %v2851_v28  ;;  %v2849_v53 = vld [vmem:[#allocation7 + $0x290] sm:$0xff] }
 0x54b   : > { %3012 = vmatpush.msra.mxu0 %v2993_v25  ;;  %v3277_v28 = vld [vmem:[#allocation7 + $0x450] sm:$0xff] }
 0x54c   : > { %2875 = vmatpush.msrb.mxu2 %v2850_v59  ;;  %v3132_v59 = vld [vmem:[#allocation7 + $0x3a8] sm:$0xff] }
 0x54d   : > { %3013 = vmatpush.msra.mxu0 %v2992_v10  ;;  %v3130_v10 = vld [vmem:[#allocation7 + $0x398] sm:$0xff] }
 0x54e   : > { %v2694_v47 = vpop.f32.mrf.mxu3  ;;  %2876 = vmatpush.msrb.mxu2 %v2849_v53 }
 0x54f   : > { %v4851_v21 = vpop.f32.mrf.mxu1  ;;  %2751 = vmatmul.f32.gmra.mxu0 %v2694_v47 }
 0x550   : > { %3682 = vmatmul.msk.f32.gmra.mxu3 %vm2097_vm0, %v3195_v29  ;;  %2877 = vmatpush.msrb.mxu2 %v2848_v32  ;;  %v3058_v29 = vld [vmem:[#allocation6 + $0x1e8] sm:$0xff]  ;;  %v3275_v32 = vld [vmem:[#allocation7 + $0x440] sm:$0xff] }
 0x552   : > { %3661 = vmatmul.msk.f32.gmra.mxu1 %vm2097_vm0, %v2778_v40  ;;  %v2991_v40 = vld [vmem:[#allocation7 + $0x320] sm:$0xff]  ;;  %2878 = vmatpush.msrb.mxu2 %v2847_v51  ;;  %v3273_v51 = vld [vmem:[#allocation7 + $0x430] sm:$0xff] }
 0x553   : > { %3014 = vmatpush.msra.mxu0 %v2991_v40  ;;  %v3128_v40 = vld [vmem:[#allocation7 + $0x388] sm:$0xff] }
 0x555   : > { %3015 = vmatpush.msra.mxu0 %v2990_v61  ;;  %v3272_v61 = vld [vmem:[#allocation7 + $0x428] sm:$0xff] }
 0x556   : > { %v2697_v5 = vpop.f32.mrf.mxu3 }
 0x557   : > { %v4855_v2 = vpop.f32.mrf.mxu1  ;;  %2754 = vmatmul.f32.gmra.mxu0 %v2697_v5 }
 0x558   : > { %3683 = vmatmul.msk.f32.gmra.mxu3 %vm2097_vm0, %v3196_v62  ;;  %3016 = vmatpush.msra.mxu0 %v2989_v26 }
 0x55a   : > { %3662 = vmatmul.msk.f32.gmra.mxu1 %vm2097_vm0, %v2779_v45  ;;  %3017 = vmatpush.msra.mxu0 %v2988_v8 }
 0x55c   : > { %3018 = vmatpush.msra.mxu0 %v2987_v48  ;;  %v3270_v48 = vld [vmem:[#allocation7 + $0x418] sm:$0xff] }
 0x55f   : > { %v4859_v41 = vpop.f32.mrf.mxu1 }
 0x560   : > { %3684 = vmatmul.msk.f32.gmra.mxu3 %vm2097_vm0, %v3197_v7  ;;  %v3060_v7 = vld [vmem:[#allocation6 + $0x1f8] sm:$0xff] }
 0x562   : > { %3663 = vmatmul.msk.f32.gmra.mxu1 %vm2097_vm0, %v2780_v34 }
 0x567   : > { %v2542_v63 = vpop.f32.mrf.mxu1 }
 0x568   : > { %2599 = vmatmul.f32.vlgmr.msra.gmra.mxu2 %v2542_v63  ;;  %3685 = vmatmul.msk.f32.gmra.mxu3 %vm2097_vm0, %v3198_v19  ;;  %v3059_v63 = vld [vmem:[#allocation6 + $0x1f0] sm:$0xff] }
 0x569   : > { %3143 = vmatpush.msra.mxu2 %v3142_v20  ;;  %v3267_v20 = vld [vmem:[#allocation7 + $0x400] sm:$0xff] }
 0x56a   : > { %3672 = vmatmul.msk.f32.vlgmr.msra.gmra.mxu1 %vm2097_vm0, %v3053_v17 }
 0x56b   : > { %3144 = vmatpush.msra.mxu2 %v3141_v42 }
 0x56c   : > { %v4872_v45 = vpop.f32.mrf.mxu0 }
 0x56d   : > { %3145 = vmatpush.msra.mxu2 %v3140_v57  ;;  %v5219_v57 = vld [vmem:[#allocation19_spill] sm:$0xff] }
 0x56f   : > { %v2545_v18 = vpop.f32.mrf.mxu1  ;;  %3146 = vmatpush.msra.mxu2 %v3139_v37  ;;  %v5221_v37 = vld [vmem:[#allocation23_spill] sm:$0xff] }
 0x570   : > { %2602 = vmatmul.f32.gmra.mxu2 %v2545_v18  ;;  %3686 = vmatmul.msk.f32.gmra.mxu3 %vm2097_vm0, %v3199_v39 }
 0x572   : > { %3673 = vmatmul.msk.f32.gmra.mxu1 %vm2097_vm0, %v3054_v23  ;;  %v4883_v23 = vpop.f32.mrf.mxu2 }
 0x573   : > { %v2700_v46 = vpop.f32.mrf.mxu3 }
 0x574   : > { %2757 = vmatmul.f32.gmra.mxu0 %v2700_v46  ;;  %v4875_v16 = vpop.f32.mrf.mxu0  ;;  %v3133_v46 = vld [vmem:[#allocation7 + $0x3b0] sm:$0xff] }
 0x577   : > { %v2548_v50 = vpop.f32.mrf.mxu1 }
 0x578   : > { %2605 = vmatmul.f32.gmra.mxu2 %v2548_v50  ;;  %3687 = vmatmul.msk.f32.gmra.mxu3 %vm2097_vm0, %v3200_v3  ;;  %v3138_v50 = vld [vmem:[#allocation7 + $0x3d8] sm:$0xff]  ;;  %v3131_v3 = vld [vmem:[#allocation7 + $0x3a0] sm:$0xff] }
 0x579   : > { %3147 = vmatpush.msra.mxu2 %v3138_v50 }
 0x57a   : > { %3674 = vmatmul.msk.f32.gmra.mxu1 %vm2097_vm0, %v3055_v1  ;;  %v3282_v1 = vld [vmem:[#allocation7 + $0x478] sm:$0xff]  ;;  %v4887_v5 = vpop.f32.mrf.mxu2 }
 0x57b   : > { %v2703_v24 = vpop.f32.mrf.mxu3  ;;  %3283 = vmatpush.msrb.mxu0 %v3282_v1  ;;  %3148 = vmatpush.msra.mxu2 %v3137_v52  ;;  %v5222_v1 = vld [vmem:[#allocation25_spill] sm:$0xff] }
 0x57c   : > { %2760 = vmatmul.f32.gmra.mxu0 %v2703_v24  ;;  %v4880_v18 = vpop.f32.mrf.mxu0  ;;  %v3129_v24 = vld [vmem:[#allocation7 + $0x390] sm:$0xff] }
 0x57d   : > { %3284 = vmatpush.msrb.mxu0 %v3281_v38  ;;  %3149 = vmatpush.msra.mxu2 %v3136_v44  ;;  %v5224_v44 = vld [vmem:[#allocation29_spill] sm:$0xff] }
 0x57f   : > { %v2551_v27 = vpop.f32.mrf.mxu1  ;;  %3285 = vmatpush.msrb.mxu0 %v3280_v56  ;;  %3150 = vmatpush.msra.mxu2 %v3135_v43  ;;  %v5223_v56 = vld [vmem:[#allocation27_spill] sm:$0xff] }
 0x580   : > { %2608 = vmatmul.f32.gmra.mxu2 %v2551_v27  ;;  %v3134_v27 = vld [vmem:[#allocation7 + $0x3b8] sm:$0xff] }
 0x581   : > { %3286 = vmatpush.msrb.mxu0 %v3279_v33  ;;  %3151 = vmatpush.msra.mxu2 %v3134_v27  ;;  %v5226_v33 = vld [vmem:[#allocation33_spill] sm:$0xff] }
 0x582   : > { %3675 = vmatmul.msk.f32.gmra.mxu1 %vm2097_vm0, %v3056_v30  ;;  %v3278_v30 = vld [vmem:[#allocation7 + $0x458] sm:$0xff]  ;;  %v4891_v0 = vpop.f32.mrf.mxu2 }
 0x583   : > { %v2962_v34 = vpop.f32.mrf.mxu3  ;;  %3287 = vmatpush.msrb.mxu0 %v3278_v30  ;;  %3152 = vmatpush.msra.mxu2 %v3133_v46  ;;  %v5227_v30 = vld [vmem:[#allocation35_spill] sm:$0xff] }
 0x584   : > { %3019 = vmatmul.f32.vlgmr.msra.gmra.mxu0 %v2962_v34  ;;  %v4885_v49 = vpop.f32.mrf.mxu0  ;;  %v3271_v34 = vld [vmem:[#allocation7 + $0x420] sm:$0xff] }
 0x585   : > { %3288 = vmatpush.msrb.mxu0 %v3277_v28  ;;  %3153 = vmatpush.msra.mxu2 %v3132_v59  ;;  %v5228_v28 = vld [vmem:[#allocation37_spill] sm:$0xff]  ;;  %v5229_v59 = vld [vmem:[#allocation39_spill] sm:$0xff] }
 0x587   : > { %v2554_v22 = vpop.f32.mrf.mxu1  ;;  %3289 = vmatpush.msrb.mxu0 %v3276_v11  ;;  %3154 = vmatpush.msra.mxu2 %v3131_v3  ;;  %v2329_v3 = vadd.f32 %v4878_v12, %v4815_v9 }
 0x588   : > { %2611 = vmatmul.f32.gmra.mxu2 %v2554_v22  ;;  %v3274_v22 = vld [vmem:[#allocation7 + $0x438] sm:$0xff] }
 0x589   : > { %3290 = vmatpush.msrb.mxu0 %v3275_v32  ;;  %3155 = vmatpush.msra.mxu2 %v3130_v10  ;;  %v5231_v10 = vld [vmem:[#allocation43_spill] sm:$0xff] }
 0x58a   : > { %3676 = vmatmul.msk.f32.gmra.mxu1 %vm2097_vm0, %v3057_v55  ;;  %v4895_v26 = vpop.f32.mrf.mxu2 }
 0x58b   : > { %v2965_v17 = vpop.f32.mrf.mxu3  ;;  %3291 = vmatpush.msrb.mxu0 %v3274_v22  ;;  %3156 = vmatpush.msra.mxu2 %v3129_v24  ;;  %v2484_v22 = vadd.f32 %v4872_v45, %v2329_v3 }
 0x58c   : > { %3022 = vmatmul.f32.gmra.mxu0 %v2965_v17  ;;  %v4889_v13 = vpop.f32.mrf.mxu0  ;;  %v3269_v17 = vld [vmem:[#allocation7 + $0x410] sm:$0xff] }
 0x58d   : > { %3292 = vmatpush.msrb.mxu0 %v3273_v51  ;;  %3157 = vmatpush.msra.mxu2 %v3128_v40 }
 0x58f   : > { %v2557_v60 = vpop.f32.mrf.mxu1  ;;  %3293 = vmatpush.msrb.mxu0 %v3272_v61 }
 0x590   : > { %2614 = vmatmul.f32.gmra.mxu2 %v2557_v60 }
 0x591   : > { %3294 = vmatpush.msrb.mxu0 %v3271_v34 }
 0x592   : > { %3677 = vmatmul.msk.f32.gmra.mxu1 %vm2097_vm0, %v3058_v29  ;;  %v3127_v29 = vld [vmem:[#allocation7 + $0x380] sm:$0xff] }
 0x593   : > { %v2968_v54 = vpop.f32.mrf.mxu3  ;;  %3158 = vmatpush.msra.mxu2 %v3127_v29  ;;  %3295 = vmatpush.msrb.mxu0 %v3270_v48 }
 0x594   : > { %3025 = vmatmul.f32.gmra.mxu0 %v2968_v54  ;;  %v4893_v55 = vpop.f32.mrf.mxu0  ;;  %v5218_v54 = vld [vmem:[#allocation17_spill] sm:$0xff] }
 0x595   : > { %3296 = vmatpush.msrb.mxu0 %v3269_v17 }
 0x597   : > { %v2560_v62 = vpop.f32.mrf.mxu1 }
 0x598   : > { %2617 = vmatmul.f32.gmra.mxu2 %v2560_v62  ;;  %v5216_v62 = vld [vmem:[#allocation13_spill] sm:$0xff] }
 0x59a   : > { %3678 = vmatmul.msk.f32.gmra.mxu1 %vm2097_vm0, %v3059_v63 }
 0x59b   : > { %v2971_v14 = vpop.f32.mrf.mxu3 }
 0x59c   : > { %3028 = vmatmul.f32.gmra.mxu0 %v2971_v14  ;;  %v4898_v63 = vpop.f32.mrf.mxu0 }
 0x59f   : > { %v2563_v36 = vpop.f32.mrf.mxu1 }
 0x5a0   : > { %2620 = vmatmul.f32.gmra.mxu2 %v2563_v36  ;;  %v5217_v36 = vld [vmem:[#allocation15_spill] sm:$0xff] }
 0x5a2   : > { %3679 = vmatmul.msk.f32.gmra.mxu1 %vm2097_vm0, %v3060_v7  ;;  %v3268_v7 = vld [vmem:[#allocation7 + $0x408] sm:$0xff] }
 0x5a3   : > { %v2974_v58 = vpop.f32.mrf.mxu3  ;;  %3297 = vmatpush.msrb.mxu0 %v3268_v7 }
 0x5a4   : > { %3031 = vmatmul.f32.gmra.mxu0 %v2974_v58  ;;  %v4906_v58 = vpop.f32.mrf.mxu0 }
 0x5a5   : > { %3298 = vmatpush.msrb.mxu0 %v3267_v20 }
 0x5a7   : > { %v2822_v47 = vpop.f32.mrf.mxu1 }
 0x5a8   : > { %2879 = vmatmul.f32.vlgmr.msrb.gmra.mxu2 %v2822_v47  ;;  %v4902_v47 = vpop.f32.mrf.mxu2 }
 0x5a9   : > { %3389 = vmatpush.msrb.mxu2 %v5216_v62  ;;  %v2335_v62 = vadd.f32 %v4887_v5, %v4829_v31 }
 0x5ab   : > { %v2977_v39 = vpop.f32.mrf.mxu3  ;;  %3390 = vmatpush.msrb.mxu2 %v5217_v36  ;;  %v2486_v36 = vadd.f32 %v4880_v18, %v2335_v62 }
 0x5ac   : > { %3034 = vmatmul.f32.gmra.mxu0 %v2977_v39  ;;  %v5225_v39 = vld [vmem:[#allocation31_spill] sm:$0xff] }
 0x5ad   : > { %3391 = vmatpush.msrb.mxu2 %v5218_v54 }
 0x5af   : > { %v2825_v19 = vpop.f32.mrf.mxu1  ;;  %3392 = vmatpush.msrb.mxu2 %v5219_v57 }
 0x5b0   : > { %2882 = vmatmul.f32.gmra.mxu2 %v2825_v19  ;;  %v5220_v19 = vld [vmem:[#allocation21_spill] sm:$0xff]  ;;  %v4910_v52 = vpop.f32.mrf.mxu2 }
 0x5b1   : > { %3393 = vmatpush.msrb.mxu2 %v5220_v19 }
 0x5b3   : > { %v2980_v25 = vpop.f32.mrf.mxu3  ;;  %3394 = vmatpush.msrb.mxu2 %v5221_v37  ;;  %v2341_v37 = vadd.f32 %v4895_v26, %v4845_v4 }
 0x5b4   : > { %3037 = vmatmul.f32.gmra.mxu0 %v2980_v25  ;;  %v5230_v25 = vld [vmem:[#allocation41_spill] sm:$0xff] }
 0x5b5   : > { %3395 = vmatpush.msrb.mxu2 %v5222_v1  ;;  %v2488_v1 = vadd.f32 %v4889_v13, %v2341_v37 }
 0x5b7   : > { %v2828_v15 = vpop.f32.mrf.mxu1  ;;  %3396 = vmatpush.msrb.mxu2 %v5223_v56 }
 0x5b8   : > { %2885 = vmatmul.f32.gmra.mxu2 %v2828_v15  ;;  %v2740_v15 = vpop.f32.mrf.mxu0  ;;  %v4917_v46 = vpop.f32.mrf.mxu2 }
 0x5b9   : > { %3397 = vmatpush.msrb.mxu2 %v5224_v44 }
 0x5bb   : > { %v2983_v60 = vpop.f32.mrf.mxu3  ;;  %3398 = vmatpush.msrb.mxu2 %v5225_v39 }
 0x5bc   : > { %3040 = vmatmul.f32.gmra.mxu0 %v2983_v60 }
 0x5bd   : > { %3399 = vmatpush.msrb.mxu2 %v5226_v33 }
 0x5bf   : > { %v2831_v53 = vpop.f32.mrf.mxu1  ;;  %3400 = vmatpush.msrb.mxu2 %v5227_v30 }
 0x5c0   : > { %2888 = vmatmul.f32.gmra.mxu2 %v2831_v53  ;;  %v2743_v53 = vpop.f32.mrf.mxu0 }
 0x5c1   : > { %3401 = vmatpush.msrb.mxu2 %v5228_v28 }
 0x5c3   : > { %v3242_v42 = vpop.f32.mrf.mxu3  ;;  %3402 = vmatpush.msrb.mxu2 %v5229_v59 }
 0x5c4   : > { %3299 = vmatmul.f32.vlgmr.msrb.gmra.mxu0 %v3242_v42 }
 0x5c5   : > { %3403 = vmatpush.msrb.mxu2 %v5230_v25 }
 0x5c7   : > { %v2834_v8 = vpop.f32.mrf.mxu1  ;;  %3404 = vmatpush.msrb.mxu2 %v5231_v10  ;;  %v3338_v10 = vld [vmem:[%s5105_s9 + $0x30] sm:$0xff] }
 0x5c8   : > { %2891 = vmatmul.f32.gmra.mxu2 %v2834_v8  ;;  %v2332_v8 = vadd.f32 %v4883_v23, %v4821_v35  ;;  %v2746_v29 = vpop.f32.mrf.mxu0 }
 0x5ca   : > { %v2485_v9 = vadd.f32 %v4875_v16, %v2332_v8 }
 0x5cb   : > { %v3245_v38 = vpop.f32.mrf.mxu3 }
 0x5cc   : > { %3302 = vmatmul.f32.gmra.mxu0 %v3245_v38 }
 0x5cf   : > { %v2837_v14 = vpop.f32.mrf.mxu1 }
 0x5d0   : > { %2894 = vmatmul.f32.gmra.mxu2 %v2837_v14  ;;  %v2749_v23 = vpop.f32.mrf.mxu0  ;;  %v2338_v14 = vadd.f32 %v4891_v0, %v4837_v6 }
 0x5d2   : > { %v2487_v42 = vadd.f32 %v4885_v49, %v2338_v14  ;;  %v3332_v49 = vld [vmem:[%s5105_s9] sm:$0xff] }
 0x5d3   : > { %v3248_v27 = vpop.f32.mrf.mxu3  ;;  %3364 = vmatmul.f32.vlgmr.msrb.gmra.mxu1 %v3332_v49 }
 0x5d4   : > { %3305 = vmatmul.f32.gmra.mxu0 %v3248_v27  ;;  %v2347_v27 = vadd.f32 %v4910_v52, %v4855_v2 }
 0x5d6   : > { %v2490_v28 = vadd.f32 %v4898_v63, %v2347_v27  ;;  %v3333_v63 = vld [vmem:[%s5105_s9 + $0x8] sm:$0xff]  ;;  %v3437_v27 = vld [vmem:[%s5106_s10 + $0x38] sm:$0xff] }
 0x5d7   : > { %v2840_v50 = vpop.f32.mrf.mxu1 }
 0x5d8   : > { %2897 = vmatmul.f32.gmra.mxu2 %v2840_v50  ;;  %v2752_v57 = vpop.f32.mrf.mxu0 }
 0x5db   : > { %v3251_v32 = vpop.f32.mrf.mxu3 }
 0x5dc   : > { %3308 = vmatmul.f32.gmra.mxu0 %v3251_v32 }
 0x5df   : > { %v2843_v43 = vpop.f32.mrf.mxu1 }
 0x5e0   : > { %2900 = vmatmul.f32.gmra.mxu2 %v2843_v43  ;;  %v2755_v44 = vpop.f32.mrf.mxu0  ;;  %v3334_v43 = vld [vmem:[%s5105_s9 + $0x10] sm:$0xff] }
 0x5e1   : > { %3367 = vmatmul.f32.gmra.mxu1 %v3334_v43 }
 0x5e3   : > { %v3254_v60 = vpop.f32.mrf.mxu3 }
 0x5e4   : > { %3311 = vmatmul.f32.gmra.mxu0 %v3254_v60 }
 0x5e7   : > { %v3102_v11 = vpop.f32.mrf.mxu1 }
 0x5e8   : > { %3159 = vmatmul.f32.vlgmr.msra.gmra.mxu2 %v3102_v11 }
 0x5eb   : > { %v2600_v24 = vpop.f32.mrf.mxu2  ;;  %v3257_v17 = vpop.f32.mrf.mxu3 }
 0x5ec   : > { %v2624_v51 = vadd.f32 %v2600_v24, %v2484_v22  ;;  %3314 = vmatmul.f32.gmra.mxu0 %v3257_v17 }
 0x5ee   : > { %v4926_v40 = vadd.f32 %v2740_v15, %v2624_v51  ;;  %v2344_v15 = vadd.f32 %v4902_v47, %v4851_v21 }
 0x5ef   : > { %v3105_v61 = vpop.f32.mrf.mxu1 }
 0x5f0   : > { %3162 = vmatmul.f32.gmra.mxu2 %v3105_v61  ;;  %v2489_v4 = vadd.f32 %v4893_v55, %v2344_v15  ;;  %v3336_v55 = vld [vmem:[%s5105_s9 + $0x20] sm:$0xff]  ;;  %v3337_v61 = vld [vmem:[%s5105_s9 + $0x28] sm:$0xff] }
 0x5f1   : > { %v2758_v30 = vpop.f32.mrf.mxu0  ;;  %3370 = vmatmul.f32.gmra.mxu1 %v3336_v55 }
 0x5f3   : > { %v2603_v12 = vpop.f32.mrf.mxu2  ;;  %v3260_v20 = vpop.f32.mrf.mxu3 }
 0x5f4   : > { %v2625_v34 = vadd.f32 %v2603_v12, %v2485_v9  ;;  %3317 = vmatmul.f32.gmra.mxu0 %v3260_v20  ;;  %v3344_v9 = vld [vmem:[%s5105_s9 + $0x60] sm:$0xff]  ;;  %v3347_v20 = vld [vmem:[%s5105_s9 + $0x78] sm:$0xff] }
 0x5f6   : > { %v4931_v48 = vadd.f32 %v2743_v53, %v2625_v34  ;;  %v2350_v53 = vadd.f32 %v4917_v46, %v4859_v41  ;;  %v3340_v46 = vld [vmem:[%s5105_s9 + $0x40] sm:$0xff] }
 0x5f7   : > { %v3108_v45 = vpop.f32.mrf.mxu1 }
 0x5f8   : > { %3165 = vmatmul.f32.gmra.mxu2 %v3108_v45  ;;  %v2491_v25 = vadd.f32 %v4906_v58, %v2350_v53  ;;  %v3335_v58 = vld [vmem:[%s5105_s9 + $0x18] sm:$0xff]  ;;  %v3346_v45 = vld [vmem:[%s5105_s9 + $0x70] sm:$0xff] }
 0x5f9   : > { %v2761_v52 = vpop.f32.mrf.mxu0  ;;  %3373 = vmatmul.f32.gmra.mxu1 %v3338_v10  ;;  %v3433_v53 = vld [vmem:[%s5106_s10 + $0x18] sm:$0xff]  ;;  %v3430_v10 = vld [vmem:[%s5106_s10] sm:$0xff] }
 0x5fb   : > { %v2606_v35 = vpop.f32.mrf.mxu2  ;;  %v3263_v50 = vpop.f32.mrf.mxu3 }
 0x5fc   : > { %v2626_v7 = vadd.f32 %v2606_v35, %v2486_v36  ;;  %3320 = vmatmul.f32.gmra.mxu0 %v3263_v50  ;;  %v3343_v36 = vld [vmem:[%s5105_s9 + $0x58] sm:$0xff] }
 0x5fd   : > { %v3445_v50 = vld [vmem:[%s5106_s10 + $0x78] sm:$0xff] }
 0x5fe   : > { %v4936_v54 = vadd.f32 %v2746_v29, %v2626_v7  ;;  %v3339_v29 = vld [vmem:[%s5105_s9 + $0x38] sm:$0xff]  ;;  %v3345_v7 = vld [vmem:[%s5105_s9 + $0x68] sm:$0xff]  ;;  %3446 = vmatpush.msrb.mxu3 %v3445_v50 }
 0x5ff   : > { %v3111_v16 = vpop.f32.mrf.mxu1 }
 0x600   : > { %3168 = vmatmul.f32.gmra.mxu2 %v3111_v16 }
 0x601   : > { %3376 = vmatmul.f32.gmra.mxu1 %v3340_v46 }
 0x603   : > { %v2609_v31 = vpop.f32.mrf.mxu2 }
 0x604   : > { %v2627_v5 = vadd.f32 %v2609_v31, %v2487_v42 }
 0x606   : > { %v4941_v19 = vadd.f32 %v2749_v23, %v2627_v5 }
 0x607   : > { %v3114_v18 = vpop.f32.mrf.mxu1 }
 0x608   : > { %3171 = vmatmul.f32.gmra.mxu2 %v3114_v18 }
 0x60b   : > { %v2612_v6 = vpop.f32.mrf.mxu2 }
 0x60c   : > { %v2628_v0 = vadd.f32 %v2612_v6, %v2488_v1  ;;  %v3444_v1 = vld [vmem:[%s5106_s10 + $0x70] sm:$0xff] }
 0x60d   : > { %3447 = vmatpush.msrb.mxu3 %v3444_v1 }
 0x60e   : > { %v2768_v38 = vadd.f32 %v2752_v57, %v2628_v0 }
 0x60f   : > { %v3117_v56 = vpop.f32.mrf.mxu1 }
 0x610   : > { %3174 = vmatmul.f32.gmra.mxu2 %v3117_v56  ;;  %v3442_v56 = vld [vmem:[%s5106_s10 + $0x60] sm:$0xff] }
 0x613   : > { %v2615_v26 = vpop.f32.mrf.mxu2 }
 0x614   : > { %v2629_v39 = vadd.f32 %v2615_v26, %v2489_v4  ;;  %v3440_v4 = vld [vmem:[%s5106_s10 + $0x50] sm:$0xff] }
 0x616   : > { %v2769_v13 = vadd.f32 %v2755_v44, %v2629_v39  ;;  %v3441_v44 = vld [vmem:[%s5106_s10 + $0x58] sm:$0xff] }
 0x617   : > { %v3120_v33 = vpop.f32.mrf.mxu1 }
 0x618   : > { %3177 = vmatmul.f32.gmra.mxu2 %v3120_v33  ;;  %v3438_v33 = vld [vmem:[%s5106_s10 + $0x40] sm:$0xff] }
 0x61b   : > { %v2618_v21 = vpop.f32.mrf.mxu2 }
 0x61c   : > { %v2630_v47 = vadd.f32 %v2618_v21, %v2490_v28 }
 0x61e   : > { %v2770_v59 = vadd.f32 %v2758_v30, %v2630_v47  ;;  %v3436_v30 = vld [vmem:[%s5106_s10 + $0x30] sm:$0xff] }
 0x61f   : > { %v3123_v11 = vpop.f32.mrf.mxu1 }
 0x620   : > { %3180 = vmatmul.f32.gmra.mxu2 %v3123_v11  ;;  %v3434_v11 = vld [vmem:[%s5106_s10 + $0x20] sm:$0xff] }
 0x623   : > { %v2621_v2 = vpop.f32.mrf.mxu2 }
 0x624   : > { %v2631_v3 = vadd.f32 %v2621_v2, %v2491_v25  ;;  %v3432_v25 = vld [vmem:[%s5106_s10 + $0x10] sm:$0xff] }
 0x626   : > { %v2771_v32 = vadd.f32 %v2761_v52, %v2631_v3 }
 0x628   : > { %3405 = vmatmul.f32.vlgmr.msrb.gmra.mxu2 %v3333_v63  ;;  %v3431_v63 = vld [vmem:[%s5106_s10 + $0x8] sm:$0xff] }
 0x62b   : > { %v2880_v22 = vpop.f32.mrf.mxu2 }
 0x62c   : > { %v2904_v41 = vadd.f32 %v2880_v22, %v4926_v40  ;;  %v3342_v40 = vld [vmem:[%s5105_s9 + $0x50] sm:$0xff] }
 0x62d   : > { %3379 = vmatmul.f32.gmra.mxu1 %v3342_v40 }
 0x630   : > { %3408 = vmatmul.f32.gmra.mxu2 %v3335_v58 }
 0x633   : > { %v2883_v24 = vpop.f32.mrf.mxu2 }
 0x634   : > { %v2905_v51 = vadd.f32 %v2883_v24, %v4931_v48  ;;  %v3341_v48 = vld [vmem:[%s5105_s9 + $0x48] sm:$0xff] }
 0x635   : > { %3382 = vmatmul.f32.gmra.mxu1 %v3344_v9 }
 0x638   : > { %3411 = vmatmul.f32.gmra.mxu2 %v3337_v61 }
 0x63b   : > { %v2886_v8 = vpop.f32.mrf.mxu2 }
 0x63c   : > { %v2906_v60 = vadd.f32 %v2886_v8, %v4936_v54  ;;  %v3020_v54 = vpop.f32.mrf.mxu0 }
 0x63d   : > { %3385 = vmatmul.f32.gmra.mxu1 %v3346_v45  ;;  %v3044_v57 = vadd.f32 %v3020_v54, %v2904_v41 }
 0x640   : > { %3414 = vmatmul.f32.gmra.mxu2 %v3339_v29 }
 0x643   : > { %v2889_v12 = vpop.f32.mrf.mxu2 }
 0x644   : > { %v2907_v34 = vadd.f32 %v2889_v12, %v4941_v19  ;;  %v3023_v42 = vpop.f32.mrf.mxu0 }
 0x645   : > { %v3045_v6 = vadd.f32 %v3023_v42, %v2905_v51 }
 0x648   : > { %3417 = vmatmul.f32.gmra.mxu2 %v3341_v48 }
 0x64b   : > { %v2892_v62 = vpop.f32.mrf.mxu2 }
 0x64c   : > { %v2908_v17 = vadd.f32 %v2892_v62, %v2768_v38  ;;  %v3026_v37 = vpop.f32.mrf.mxu0  ;;  %v3443_v38 = vld [vmem:[%s5106_s10 + $0x68] sm:$0xff] }
 0x64d   : > { %3448 = vmatpush.msrb.mxu3 %v3443_v38  ;;  %v3046_v26 = vadd.f32 %v3026_v37, %v2906_v60 }
 0x64f   : > { %3449 = vmatpush.msrb.mxu3 %v3442_v56 }
 0x650   : > { %3420 = vmatmul.f32.gmra.mxu2 %v3343_v36  ;;  %v3365_v61 = vpop.f32.mrf.mxu1 }
 0x651   : > { %3450 = vmatpush.msrb.mxu3 %v3441_v44 }
 0x653   : > { %v2895_v35 = vpop.f32.mrf.mxu2  ;;  %3451 = vmatpush.msrb.mxu3 %v3440_v4 }
 0x654   : > { %v2909_v23 = vadd.f32 %v2895_v35, %v2769_v13  ;;  %v3029_v15 = vpop.f32.mrf.mxu0  ;;  %v3439_v13 = vld [vmem:[%s5106_s10 + $0x48] sm:$0xff] }
 0x655   : > { %3452 = vmatpush.msrb.mxu3 %v3439_v13  ;;  %v3047_v21 = vadd.f32 %v3029_v15, %v2907_v34 }
 0x657   : > { %3453 = vmatpush.msrb.mxu3 %v3438_v33 }
 0x658   : > { %3423 = vmatmul.f32.gmra.mxu2 %v3345_v7 }
 0x659   : > { %3454 = vmatpush.msrb.mxu3 %v3437_v27 }
 0x65b   : > { %v2898_v16 = vpop.f32.mrf.mxu2  ;;  %3455 = vmatpush.msrb.mxu3 %v3436_v30 }
 0x65c   : > { %v2910_v14 = vadd.f32 %v2898_v16, %v2770_v59  ;;  %v3032_v28 = vpop.f32.mrf.mxu0  ;;  %v3435_v59 = vld [vmem:[%s5106_s10 + $0x28] sm:$0xff] }
 0x65d   : > { %3456 = vmatpush.msrb.mxu3 %v3435_v59  ;;  %v3048_v2 = vadd.f32 %v3032_v28, %v2908_v17 }
 0x65e   : > { %v3368_v12 = vpop.f32.mrf.mxu1 }
 0x65f   : > { %3457 = vmatpush.msrb.mxu3 %v3434_v11 }
 0x660   : > { %3426 = vmatmul.f32.gmra.mxu2 %v3347_v20 }
 0x661   : > { %3458 = vmatpush.msrb.mxu3 %v3433_v53 }
 0x663   : > { %v2901_v31 = vpop.f32.mrf.mxu2  ;;  %3459 = vmatpush.msrb.mxu3 %v3432_v25 }
 0x664   : > { %v2911_v5 = vadd.f32 %v2901_v31, %v2771_v32  ;;  %v3035_v52 = vpop.f32.mrf.mxu0 }
 0x665   : > { %3460 = vmatpush.msrb.mxu3 %v3431_v63  ;;  %v3049_v22 = vadd.f32 %v3035_v52, %v2909_v23 }
 0x667   : > { %3461 = vmatpush.msrb.mxu3 %v3430_v10 }
 0x66b   : > { %v3160_v19 = vpop.f32.mrf.mxu2 }
 0x66c   : > { %v5007_v18 = vadd.f32 %v3160_v19, %v3044_v57  ;;  %v3038_v46 = vpop.f32.mrf.mxu0 }
 0x66d   : > { %v3050_v24 = vadd.f32 %v3038_v46, %v2910_v14 }
 0x66e   : > { %v3371_v45 = vpop.f32.mrf.mxu1 }
 0x673   : > { %v3163_v0 = vpop.f32.mrf.mxu2 }
 0x674   : > { %v5018_v49 = vadd.f32 %v3163_v0, %v3045_v6  ;;  %v3041_v8 = vpop.f32.mrf.mxu0 }
 0x675   : > { %v3051_v60 = vadd.f32 %v3041_v8, %v2911_v5 }
 0x676   : > { %v3374_v36 = vpop.f32.mrf.mxu1 }
 0x67b   : > { %v3166_v39 = vpop.f32.mrf.mxu2 }
 0x67c   : > { %v5032_v43 = vadd.f32 %v3166_v39, %v3046_v26  ;;  %v3300_v0 = vpop.f32.mrf.mxu0 }
 0x67d   : > { %v3324_v56 = vadd.f32 %v3300_v0, %v5007_v18 }
 0x67e   : > { %v3377_v54 = vpop.f32.mrf.mxu1 }
 0x683   : > { %v3169_v47 = vpop.f32.mrf.mxu2 }
 0x684   : > { %v5046_v55 = vadd.f32 %v3169_v47, %v3047_v21  ;;  %v3303_v38 = vpop.f32.mrf.mxu0 }
 0x685   : > { %v3325_v26 = vadd.f32 %v3303_v38, %v5018_v49 }
 0x68b   : > { %v3172_v3 = vpop.f32.mrf.mxu2 }
 0x68c   : > { %v5060_v32 = vadd.f32 %v3172_v3, %v3048_v2  ;;  %v3306_v4 = vpop.f32.mrf.mxu0 }
 0x68d   : > { %v3326_v33 = vadd.f32 %v3306_v4, %v5032_v43 }
 0x693   : > { %v3175_v41 = vpop.f32.mrf.mxu2 }
 0x694   : > { %v5065_v58 = vadd.f32 %v3175_v41, %v3049_v22  ;;  %v3309_v18 = vpop.f32.mrf.mxu0 }
 0x695   : > { %v3327_v21 = vadd.f32 %v3309_v18, %v5046_v55 }
 0x69b   : > { %v3178_v51 = vpop.f32.mrf.mxu2 }
 0x69c   : > { %v5067_v40 = vadd.f32 %v3178_v51, %v3050_v24  ;;  %v3312_v28 = vpop.f32.mrf.mxu0 }
 0x69d   : > { %v3328_v49 = vadd.f32 %v3312_v28, %v5060_v32 }
 0x6a3   : > { %v3181_v29 = vpop.f32.mrf.mxu2 }
 0x6a4   : > { %v5069_v9 = vadd.f32 %v3181_v29, %v3051_v60  ;;  %v3315_v11 = vpop.f32.mrf.mxu0 }
 0x6a5   : > { %v3329_v43 = vadd.f32 %v3315_v11, %v5065_v58 }
 0x6aa   : > { %v3380_v42 = vpop.f32.mrf.mxu1 }
 0x6ab   : > { %v3406_v34 = vpop.f32.mrf.mxu2 }
 0x6ac   : > { %v3407_v48 = vadd.f32 %v3406_v34, %v3365_v61  ;;  %v3318_v3 = vpop.f32.mrf.mxu0 }
 0x6ad   : > { %v3330_v63 = vadd.f32 %v3318_v3, %v5067_v40 }
 0x6ae   : > { %3462 = vmatmul.f32.vlgmr.msrb.gmra.mxu3 %v3407_v48 }
 0x6b2   : > { %v3383_v57 = vpop.f32.mrf.mxu1 }
 0x6b3   : > { %v3409_v62 = vpop.f32.mrf.mxu2 }
 0x6b4   : > { %v3410_v17 = vadd.f32 %v3409_v62, %v3368_v12  ;;  %v3321_v22 = vpop.f32.mrf.mxu0 }
 0x6b5   : > { %v3331_v41 = vadd.f32 %v3321_v22, %v5069_v9 }
 0x6b6   : > { %3465 = vmatmul.f32.gmra.mxu3 %v3410_v17 }
 0x6ba   : > { %v3386_v50 = vpop.f32.mrf.mxu1 }
 0x6bb   : > { %v3412_v35 = vpop.f32.mrf.mxu2 }
 0x6bc   : > { %v3413_v23 = vadd.f32 %v3412_v35, %v3371_v45 }
 0x6be   : > { %3468 = vmatmul.f32.gmra.mxu3 %v3413_v23 }
 0x6c3   : > { %v3415_v7 = vpop.f32.mrf.mxu2 }
 0x6c4   : > { %v3416_v16 = vadd.f32 %v3415_v7, %v3374_v36 }
 0x6c6   : > { %3471 = vmatmul.f32.gmra.mxu3 %v3416_v16 }
 0x6cb   : > { %v3418_v14 = vpop.f32.mrf.mxu2 }
 0x6cc   : > { %v3419_v20 = vadd.f32 %v3418_v14, %v3377_v54 }
 0x6ce   : > { %3474 = vmatmul.f32.gmra.mxu3 %v3419_v20 }
 0x6d3   : > { %v3421_v31 = vpop.f32.mrf.mxu2 }
 0x6d4   : > { %v3422_v5 = vadd.f32 %v3421_v31, %v3380_v42 }
 0x6d6   : > { %3477 = vmatmul.f32.gmra.mxu3 %v3422_v5 }
 0x6db   : > { %v3424_v19 = vpop.f32.mrf.mxu2 }
 0x6dc   : > { %v3425_v37 = vadd.f32 %v3424_v19, %v3383_v57 }
 0x6de   : > { %3480 = vmatmul.f32.gmra.mxu3 %v3425_v37 }
 0x6e3   : > { %v3427_v1 = vpop.f32.mrf.mxu2 }
 0x6e4   : > { %v3428_v6 = vadd.f32 %v3427_v1, %v3386_v50 }
 0x6e6   : > { %3483 = vmatmul.f32.gmra.mxu3 %v3428_v6 }
 0x731   : > { %v3463_v44 = vpop.f32.mrf.mxu3 }
 0x732   : > { %v3487_v15 = vadd.f32 %v3463_v44, %v3324_v56 }
 0x734   : > { %3495 = vst [vmem:[%s5076_s14] sm:$0xff] %v3487_v15 }
 0x739   : > { %v3466_v39 = vpop.f32.mrf.mxu3 }
 0x73a   : > { %v3488_v13 = vadd.f32 %v3466_v39, %v3325_v26 }
 0x73c   : > { %3496 = vst [vmem:[%s5076_s14 + $0x8] sm:$0xff] %v3488_v13 }
 0x741   : > { %v3469_v27 = vpop.f32.mrf.mxu3 }
 0x742   : > { %v3489_v30 = vadd.f32 %v3469_v27, %v3326_v33 }
 0x744   : > { %3497 = vst [vmem:[%s5076_s14 + $0x10] sm:$0xff] %v3489_v30 }
 0x749   : > { %v3472_v47 = vpop.f32.mrf.mxu3 }
 0x74a   : > { %v3490_v59 = vadd.f32 %v3472_v47, %v3327_v21 }
 0x74c   : > { %3498 = vst [vmem:[%s5076_s14 + $0x18] sm:$0xff] %v3490_v59 }
 0x751   : > { %v3475_v53 = vpop.f32.mrf.mxu3 }
 0x752   : > { %v3491_v25 = vadd.f32 %v3475_v53, %v3328_v49 }
 0x754   : > { %3499 = vst [vmem:[%s5076_s14 + $0x20] sm:$0xff] %v3491_v25 }
 0x759   : > { %v3478_v2 = vpop.f32.mrf.mxu3 }
 0x75a   : > { %v3492_v52 = vadd.f32 %v3478_v2, %v3329_v43 }
 0x75c   : > { %3500 = vst [vmem:[%s5076_s14 + $0x28] sm:$0xff] %v3492_v52 }
 0x761   : > { %v3481_v55 = vpop.f32.mrf.mxu3 }
 0x762   : > { %v3493_v10 = vadd.f32 %v3481_v55, %v3330_v63 }
 0x764   : > { %3501 = vst [vmem:[%s5076_s14 + $0x30] sm:$0xff] %v3493_v10 }
 0x769   : > { %v3484_v32 = vpop.f32.mrf.mxu3 }
 0x76a   : > { %v3494_v46 = vadd.f32 %v3484_v32, %v3331_v41 }
 0x76c   : > { %3502 = vst [vmem:[%s5076_s14 + $0x38] sm:$0xff] %v3494_v46 }
 0x76d PF: > { %s24_s17 = sadd.s32 1, %s3887_s17  }
 0x76e   : > { %p21_p7 = scmp.ge.s32.totalorder %s24_s17, 4  }
 0x770   :  { %23 = sbr.rel (!%p21_p7) target bundleno = 5 (0x5), region = 143 }
 0x775   :  { %3524 = vsyncpa [#allocation3], 1 }
 0x776   :  { %3526 = vsyncpa [#allocation3 + $0x1], 1 }
 0x777   :  { %3527 = vsyncpa [#allocation5], 1 }
 0x778   :  { %3528 = vsyncpa [#allocation8], 1 }

</bundles_post_ra>
